<compile_context>
chip_gen: v7x
topology: tpu7x:2x2x1
jax: 0.10.0
libtpu: 0.0.40
codegen_flags: <defaults>
</compile_context>

<pallas_src>
import functools

import numpy as np

import jax
import jax.numpy as jnp
from jax.experimental import pallas as pl
from jax.experimental.pallas import tpu as pltpu

EPS = 1e-5      # nn.BatchNorm2d default eps
LEAK = 0.2      # LeakyReLU negative slope
C1, C2, C3, C4 = 64, 128, 256, 512


# ----------------------------------------------------------------------------
# The fused kernel: all 5 conv layers, BN (batch stats) and activations.
# ----------------------------------------------------------------------------
def _disc_kernel(dims,
                 p1_ref, w1_ref,
                 w2_ref, gm2_ref, bt2_ref,
                 s3_ref, w3_ref, gm3_ref, bt3_ref,
                 s4_ref, w4_ref, gm4_ref, bt4_ref,
                 v5_ref, b5_ref,
                 out_ref,
                 h1_scr, g3_scr, g4_scr):
    m2, m3, m4, m5 = dims
    f32 = jnp.float32
    bf16 = jnp.bfloat16

    # --- Layer 1: Conv(4->64) + LeakyReLU.  p1 rows are already ordered
    # (layer2_tap, n, oh2, ow2); the augmented all-ones column applies the
    # bias only to in-bounds pixels, so padded rows stay exactly zero.
    h1 = jnp.dot(p1_ref[...], w1_ref[...], preferred_element_type=f32)
    h1_scr[...] = jnp.where(h1 > 0, h1, LEAK * h1)

    def conv_taps(g_ref, w_ref, m, cin, cout):
        # y = sum_t g[t] @ W[t]: 16 accumulating tap matmuls on the MXU.
        acc = jnp.zeros((m, cout), f32)
        for t in range(16):
            a = g_ref[t * m:(t + 1) * m, :].astype(bf16)
            b = w_ref[t * cin:(t + 1) * cin, :]
            acc = acc + jnp.dot(a, b, preferred_element_type=f32)
        return acc

    def bn_lrelu(acc, gm_ref, bt_ref, m):
        # One-pass batch statistics over all rows (exactly the N*OH*OW pixels
        # BatchNorm2d normalizes over), then LeakyReLU(0.2).
        inv_m = 1.0 / m
        s = jnp.sum(acc, axis=0, keepdims=True)
        ss = jnp.sum(acc * acc, axis=0, keepdims=True)
        mean = s * inv_m
        var = ss * inv_m - mean * mean
        y = (acc - mean) * jax.lax.rsqrt(var + EPS) * gm_ref[...] + bt_ref[...]
        return jnp.where(y > 0, y, LEAK * y).astype(bf16)

    # --- Layer 2: Conv(64->128) + BN + LeakyReLU (input already tap-gathered).
    h2 = bn_lrelu(conv_taps(h1_scr, w2_ref, m2, C1, C2), gm2_ref, bt2_ref, m2)

    # --- Layer 3: in-kernel gather (0/1 selection matmul) + conv taps.
    g3_scr[...] = jnp.dot(s3_ref[...], h2, preferred_element_type=f32)
    h3 = bn_lrelu(conv_taps(g3_scr, w3_ref, m3, C2, C3), gm3_ref, bt3_ref, m3)

    # --- Layer 4.
    g4_scr[...] = jnp.dot(s4_ref[...], h3, preferred_element_type=f32)
    h4 = bn_lrelu(conv_taps(g4_scr, w4_ref, m4, C3, C4), gm4_ref, bt4_ref, m4)

    # --- Layer 5: Conv(512->1) + Sigmoid via the combined (selector x weight)
    # tensor: a lane-dense VPU multiply + reductions, no 128-lane weight pad.
    prod = h4.astype(f32)[None] * v5_ref[...]            # (m5, m4, 512)
    r = jnp.sum(prod, axis=2)                            # (m5, m4)
    logit = jnp.sum(r, axis=1, keepdims=True) + b5_ref[...]
    out_ref[...] = jax.nn.sigmoid(logit)                 # (m5, 1)


# ----------------------------------------------------------------------------
# XLA-side glue (one tiny fusion per forward): layer-1 im2col, pre-gathered
# into layer-2 tap order, with a bias-carrying ones column.
# ----------------------------------------------------------------------------
def _layer1_pregathered_patches(gray, rgb):
    x = jnp.concatenate([gray, rgb], axis=1)              # torch.cat, NCHW
    x = jnp.transpose(x, (0, 2, 3, 1))                    # NHWC (N, H, W, 4)
    n, h, w, c = x.shape
    oh1, ow1 = h // 2, w // 2
    oh2, ow2 = oh1 // 2, ow1 // 2
    # layer-1 patches per layer-1 output pixel, (kh, kw, cin) tap order
    xp = jnp.pad(x, ((0, 0), (1, 1), (1, 1), (0, 0)))
    taps = [xp[:, kh:kh + 2 * oh1:2, kw:kw + 2 * ow1:2, :]
            for kh in range(4) for kw in range(4)]
    p = jnp.stack(taps, axis=3).reshape(n, oh1, ow1, 16 * c)
    # augmented ones column -> bias applied only to real pixels in-kernel
    p = jnp.concatenate([p, jnp.ones((n, oh1, ow1, 1), p.dtype)], axis=-1)
    # pre-gather for layer-2 taps: rows ordered (tap2, n, oh2, ow2)
    pp = jnp.pad(p, ((0, 0), (1, 1), (1, 1), (0, 0)))
    taps2 = [pp[:, kh:kh + 2 * oh2:2, kw:kw + 2 * ow2:2, :]
             for kh in range(4) for kw in range(4)]
    g = jnp.stack(taps2, axis=0).reshape(16 * n * oh2 * ow2, 16 * c + 1)
    return g.astype(jnp.bfloat16)


# ----------------------------------------------------------------------------
# One-time parameter / constant preparation (NOT per-step).
# ----------------------------------------------------------------------------
def _make_selector(n, ih, iw):
    """0/1 matrix gathering rows of an (n*ih*iw, C) activation (rows ordered
    (n, ih, iw)) into the 16 tap-stacked row blocks of the next k4/s2/p1 conv,
    rows ordered (tap, n, oh, ow).  Out-of-bounds taps give all-zero rows."""
    oh, ow = ih // 2, iw // 2
    s = np.zeros((16 * n * oh * ow, n * ih * iw), np.float32)
    t = 0
    for kh in range(4):
        for kw in range(4):
            for b in range(n):
                for y in range(oh):
                    for x in range(ow):
                        sh, sw = 2 * y + kh - 1, 2 * x + kw - 1
                        if 0 <= sh < ih and 0 <= sw < iw:
                            row = ((t * n + b) * oh + y) * ow + x
                            col = (b * ih + sh) * iw + sw
                            s[row, col] = 1.0
            t += 1
    return s


def prepare_params(params, batch, height, width):
    """Reformat PyTorch-layout params into kernel-ready arrays ONCE."""
    def wmat(w):  # (Cout, Cin, 4, 4) -> (16*Cin, Cout), (kh, kw, cin) rows
        cout, cin = w.shape[0], w.shape[1]
        return jnp.transpose(w, (2, 3, 1, 0)).reshape(16 * cin, cout)

    p = params
    # layer-1 bias folded in as an extra weight row (pairs with ones column)
    w1a = jnp.concatenate([wmat(p["c1"]["w"]), p["c1"]["b"].reshape(1, -1)], 0)

    s3 = _make_selector(batch, height // 4, width // 4)     # (16*M3, M2)
    s4 = _make_selector(batch, height // 8, width // 8)     # (16*M4, M3)
    s5 = _make_selector(batch, height // 16, width // 16)   # (16*M5, M4)

    m5 = batch * (height // 32) * (width // 32)
    m4 = batch * (height // 16) * (width // 16)
    w5 = np.asarray(wmat(p["c5"]["w"]), np.float32).reshape(16, C4)
    # combined selector x weight tensor for the 512->1 conv
    v5 = np.einsum("tmj,tc->mjc", s5.reshape(16, m5, m4), w5)

    # NOTE: conv biases b2..b4 are intentionally dropped - with training-mode
    # BatchNorm they cancel exactly (the batch mean absorbs them).
    return dict(
        w1=w1a.astype(jnp.bfloat16),
        w2=wmat(p["c2"]["w"]).astype(jnp.bfloat16),
        gm2=p["c2"]["gamma"].reshape(1, -1), bt2=p["c2"]["beta"].reshape(1, -1),
        s3=jnp.asarray(s3, jnp.bfloat16),
        w3=wmat(p["c3"]["w"]).astype(jnp.bfloat16),
        gm3=p["c3"]["gamma"].reshape(1, -1), bt3=p["c3"]["beta"].reshape(1, -1),
        s4=jnp.asarray(s4, jnp.bfloat16),
        w4=wmat(p["c4"]["w"]).astype(jnp.bfloat16),
        gm4=p["c4"]["gamma"].reshape(1, -1), bt4=p["c4"]["beta"].reshape(1, -1),
        v5=jnp.asarray(v5, jnp.float32),
        b5=p["c5"]["b"].reshape(1, 1).astype(jnp.float32),
    )


# ----------------------------------------------------------------------------
# Forward pass: one XLA prep fusion + one fused pallas_call.
# ----------------------------------------------------------------------------
@jax.jit
def discriminator_forward(grayscale, rgb, prepped):
    n, _, h, w = grayscale.shape
    m2 = n * (h // 4) * (w // 4)
    m3 = n * (h // 8) * (w // 8)
    m4 = n * (h // 16) * (w // 16)
    m5 = n * (h // 32) * (w // 32)

    p1 = _layer1_pregathered_patches(grayscale, rgb)        # (16*m2, 65) bf16

    args = (p1, prepped["w1"],
            prepped["w2"], prepped["gm2"], prepped["bt2"],
            prepped["s3"], prepped["w3"], prepped["gm3"], prepped["bt3"],
            prepped["s4"], prepped["w4"], prepped["gm4"], prepped["bt4"],
            prepped["v5"], prepped["b5"])

    flops = 2 * (p1.shape[0] * p1.shape[1] * C1
                 + 16 * (m2 * C1 * C2 + m3 * C2 * C3 + m4 * C3 * C4)
                 + 16 * (m3 * m2 * C2 + m4 * m3 * C3)
                 + m5 * m4 * C4)
    bytes_accessed = sum(int(a.size) * a.dtype.itemsize for a in args) + m5 * 4

    kernel = functools.partial(_disc_kernel, (m2, m3, m4, m5))
    out = pl.pallas_call(
        kernel,
        out_shape=jax.ShapeDtypeStruct((m5, 1), jnp.float32),
        in_specs=[pl.BlockSpec(memory_space=pltpu.MemorySpace.VMEM)] * len(args),
        out_specs=pl.BlockSpec(memory_space=pltpu.MemorySpace.VMEM),
        scratch_shapes=[
            pltpu.VMEM((16 * m2, C1), jnp.float32),   # tap-gathered layer-1 act
            pltpu.VMEM((16 * m3, C2), jnp.float32),   # tap-gathered layer-2 act
            pltpu.VMEM((16 * m4, C3), jnp.float32),   # tap-gathered layer-3 act
        ],
        cost_estimate=pl.CostEstimate(flops=flops,
                                      transcendentals=C2 + C3 + C4 + m5,
                                      bytes_accessed=bytes_accessed),
    )(*args)
    return out.reshape(-1)                                   # == .view(-1)


# ----------------------------------------------------------------------------
# Pure-JAX reference (f32) and synthetic parameter init.
# ----------------------------------------------------------------------------
def _reference_forward(gray, rgb, params):
    x = jnp.concatenate([gray, rgb], axis=1)
    def conv(x, w, b):
        y = jax.lax.conv_general_dilated(
            x, w, (2, 2), ((1, 1), (1, 1)),
            dimension_numbers=("NCHW", "OIHW", "NCHW"))
        return y + b.reshape(1, -1, 1, 1)
    def bn(y, g, b):
        mean = jnp.mean(y, axis=(0, 2, 3), keepdims=True)
        var = jnp.mean(jnp.square(y - mean), axis=(0, 2, 3), keepdims=True)
        return ((y - mean) * jax.lax.rsqrt(var + EPS) * g.reshape(1, -1, 1, 1)
                + b.reshape(1, -1, 1, 1))
    lrelu = lambda t: jnp.where(t > 0, t, LEAK * t)
    p = params
    h = lrelu(conv(x, p["c1"]["w"], p["c1"]["b"]))
    h = lrelu(bn(conv(h, p["c2"]["w"], p["c2"]["b"]), p["c2"]["gamma"], p["c2"]["beta"]))
    h = lrelu(bn(conv(h, p["c3"]["w"], p["c3"]["b"]), p["c3"]["gamma"], p["c3"]["beta"]))
    h = lrelu(bn(conv(h, p["c4"]["w"], p["c4"]["b"]), p["c4"]["gamma"], p["c4"]["beta"]))
    h = jax.nn.sigmoid(conv(h, p["c5"]["w"], p["c5"]["b"]))
    return h.reshape(-1)


def init_params(key):
    def conv_p(k, cout, cin, with_bn):
        kw, kb = jax.random.split(k)
        p = dict(w=0.1 * jax.random.normal(kw, (cout, cin, 4, 4), jnp.float32),
                 b=0.1 * jax.random.normal(kb, (cout,), jnp.float32))
        if with_bn:
            p["gamma"] = jnp.ones((cout,), jnp.float32)
            p["beta"] = jnp.zeros((cout,), jnp.float32)
        return p
    ks = jax.random.split(key, 5)
    return {"c1": conv_p(ks[0], C1, 4, False),
            "c2": conv_p(ks[1], C2, C1, True),
            "c3": conv_p(ks[2], C3, C2, True),
            "c4": conv_p(ks[3], C4, C3, True),
            "c5": conv_p(ks[4], 1, C4, False)}


if __name__ == "__main__":
    key = jax.random.PRNGKey(0)
    kg, kr, kp = jax.random.split(key, 3)
    # 32x32 is the smallest spatial size that survives five stride-2 convs.
    grayscale = jax.random.normal(kg, (2, 1, 32, 32), jnp.float32)
    rgb = jax.random.normal(kr, (2, 3, 32, 32), jnp.float32)
    params = init_params(kp)
    prepped = prepare_params(params, batch=2, height=32, width=32)

    y = discriminator_forward(grayscale, rgb, prepped)
    y = jax.block_until_ready(y)

    assert y.shape == (2,), y.shape                 # (N, 1, 1, 1).view(-1)
    assert bool(jnp.all(jnp.isfinite(y)))
    assert bool(jnp.all((y >= 0.0) & (y <= 1.0)))   # sigmoid range

    y_ref = _reference_forward(grayscale, rgb, params)
    assert jnp.allclose(y, y_ref, atol=5e-2), (y, y_ref)    # bf16 tolerance
    print("KERNEL_OK")
</pallas_src>

<mosaic_0001>
module attributes {stable_mosaic.version = 11 : i64} {
  func.func @_disc_kernel(%arg0: memref<2048x65xbf16, #tpu.memory_space<vmem>>, %arg1: memref<65x64xbf16, #tpu.memory_space<vmem>>, %arg2: memref<1024x128xbf16, #tpu.memory_space<vmem>>, %arg3: memref<1x128xf32, #tpu.memory_space<vmem>>, %arg4: memref<1x128xf32, #tpu.memory_space<vmem>>, %arg5: memref<512x128xbf16, #tpu.memory_space<vmem>>, %arg6: memref<2048x256xbf16, #tpu.memory_space<vmem>>, %arg7: memref<1x256xf32, #tpu.memory_space<vmem>>, %arg8: memref<1x256xf32, #tpu.memory_space<vmem>>, %arg9: memref<128x32xbf16, #tpu.memory_space<vmem>>, %arg10: memref<4096x512xbf16, #tpu.memory_space<vmem>>, %arg11: memref<1x512xf32, #tpu.memory_space<vmem>>, %arg12: memref<1x512xf32, #tpu.memory_space<vmem>>, %arg13: memref<2x8x512xf32, #tpu.memory_space<vmem>>, %arg14: memref<1x1xf32, #tpu.memory_space<vmem>>, %arg15: memref<2x1xf32, #tpu.memory_space<vmem>>, %arg16: memref<2048x64xf32, #tpu.memory_space<vmem>>, %arg17: memref<512x128xf32, #tpu.memory_space<vmem>>, %arg18: memref<128x256xf32, #tpu.memory_space<vmem>>) attributes {dimension_semantics = [], scalar_prefetch = 0 : i64, scratch_operands = 3 : i64, tpu.core_type = #tpu.core_type<tc>} {
    %c0 = arith.constant 0 : index
    %c0_0 = arith.constant 0 : index
    %0 = vector.load %arg0[%c0, %c0_0] : memref<2048x65xbf16, #tpu.memory_space<vmem>>, vector<2048x65xbf16>
    %c0_1 = arith.constant 0 : index
    %c0_2 = arith.constant 0 : index
    %1 = vector.load %arg1[%c0_1, %c0_2] : memref<65x64xbf16, #tpu.memory_space<vmem>>, vector<65x64xbf16>
    %cst = arith.constant dense<0.000000e+00> : vector<2048x64xf32>
    %2 = tpu.matmul %0, %1, %cst {dimension_numbers = #tpu.dot_dimension_numbers<[1], [0], [0], [1], [0, 0, 1, 1], [], []>} : vector<2048x65xbf16>, vector<65x64xbf16>, vector<2048x64xf32> -> vector<2048x64xf32>
    %cst_3 = arith.constant 0.000000e+00 : f32
    %3 = vector.broadcast %cst_3 : f32 to vector<2048x64xf32>
    %4 = arith.cmpf ogt, %2, %3 : vector<2048x64xf32>
    %cst_4 = arith.constant 2.000000e-01 : f32
    %5 = vector.broadcast %cst_4 : f32 to vector<2048x64xf32>
    %6 = arith.mulf %5, %2 : vector<2048x64xf32>
    %7 = arith.select %4, %2, %6 : vector<2048x64xi1>, vector<2048x64xf32>
    %c0_5 = arith.constant 0 : index
    %c0_6 = arith.constant 0 : index
    %8 = vector.load %arg16[%c0_5, %c0_6] : memref<2048x64xf32, #tpu.memory_space<vmem>>, vector<2048x64xf32>
    tpu.vector_store %arg16[%c0_5, %c0_6], %7 {strides = array<i32>} : memref<2048x64xf32, #tpu.memory_space<vmem>>, vector<2048x64xf32>,
    %cst_7 = arith.constant 0.000000e+00 : f32
    %9 = vector.broadcast %cst_7 : f32 to vector<128x128xf32>
    %c0_8 = arith.constant 0 : index
    %c0_9 = arith.constant 0 : index
    %10 = vector.load %arg16[%c0_8, %c0_9] : memref<2048x64xf32, #tpu.memory_space<vmem>>, vector<128x64xf32>
    %11 = arith.truncf %10 : vector<128x64xf32> to vector<128x64xbf16>
    %c0_10 = arith.constant 0 : index
    %c0_11 = arith.constant 0 : index
    %12 = vector.load %arg2[%c0_10, %c0_11] : memref<1024x128xbf16, #tpu.memory_space<vmem>>, vector<64x128xbf16>
    %cst_12 = arith.constant dense<0.000000e+00> : vector<128x128xf32>
    %13 = tpu.matmul %11, %12, %cst_12 {dimension_numbers = #tpu.dot_dimension_numbers<[1], [0], [0], [1], [0, 0, 1, 1], [], []>} : vector<128x64xbf16>, vector<64x128xbf16>, vector<128x128xf32> -> vector<128x128xf32>
    %14 = arith.addf %9, %13 : vector<128x128xf32>
    %c128 = arith.constant 128 : index
    %c0_13 = arith.constant 0 : index
    %15 = vector.load %arg16[%c128, %c0_13] : memref<2048x64xf32, #tpu.memory_space<vmem>>, vector<128x64xf32>
    %16 = arith.truncf %15 : vector<128x64xf32> to vector<128x64xbf16>
    %c64 = arith.constant 64 : index
    %c0_14 = arith.constant 0 : index
    %17 = vector.load %arg2[%c64, %c0_14] : memref<1024x128xbf16, #tpu.memory_space<vmem>>, vector<64x128xbf16>
    %cst_15 = arith.constant dense<0.000000e+00> : vector<128x128xf32>
    %18 = tpu.matmul %16, %17, %cst_15 {dimension_numbers = #tpu.dot_dimension_numbers<[1], [0], [0], [1], [0, 0, 1, 1], [], []>} : vector<128x64xbf16>, vector<64x128xbf16>, vector<128x128xf32> -> vector<128x128xf32>
    %19 = arith.addf %14, %18 : vector<128x128xf32>
    %c256 = arith.constant 256 : index
    %c0_16 = arith.constant 0 : index
    %20 = vector.load %arg16[%c256, %c0_16] : memref<2048x64xf32, #tpu.memory_space<vmem>>, vector<128x64xf32>
    %21 = arith.truncf %20 : vector<128x64xf32> to vector<128x64xbf16>
    %c128_17 = arith.constant 128 : index
    %c0_18 = arith.constant 0 : index
    %22 = vector.load %arg2[%c128_17, %c0_18] : memref<1024x128xbf16, #tpu.memory_space<vmem>>, vector<64x128xbf16>
    %cst_19 = arith.constant dense<0.000000e+00> : vector<128x128xf32>
    %23 = tpu.matmul %21, %22, %cst_19 {dimension_numbers = #tpu.dot_dimension_numbers<[1], [0], [0], [1], [0, 0, 1, 1], [], []>} : vector<128x64xbf16>, vector<64x128xbf16>, vector<128x128xf32> -> vector<128x128xf32>
    %24 = arith.addf %19, %23 : vector<128x128xf32>
    %c384 = arith.constant 384 : index
    %c0_20 = arith.constant 0 : index
    %25 = vector.load %arg16[%c384, %c0_20] : memref<2048x64xf32, #tpu.memory_space<vmem>>, vector<128x64xf32>
    %26 = arith.truncf %25 : vector<128x64xf32> to vector<128x64xbf16>
    %c192 = arith.constant 192 : index
    %c0_21 = arith.constant 0 : index
    %27 = vector.load %arg2[%c192, %c0_21] : memref<1024x128xbf16, #tpu.memory_space<vmem>>, vector<64x128xbf16>
    %cst_22 = arith.constant dense<0.000000e+00> : vector<128x128xf32>
    %28 = tpu.matmul %26, %27, %cst_22 {dimension_numbers = #tpu.dot_dimension_numbers<[1], [0], [0], [1], [0, 0, 1, 1], [], []>} : vector<128x64xbf16>, vector<64x128xbf16>, vector<128x128xf32> -> vector<128x128xf32>
    %29 = arith.addf %24, %28 : vector<128x128xf32>
    %c512 = arith.constant 512 : index
    %c0_23 = arith.constant 0 : index
    %30 = vector.load %arg16[%c512, %c0_23] : memref<2048x64xf32, #tpu.memory_space<vmem>>, vector<128x64xf32>
    %31 = arith.truncf %30 : vector<128x64xf32> to vector<128x64xbf16>
    %c256_24 = arith.constant 256 : index
    %c0_25 = arith.constant 0 : index
    %32 = vector.load %arg2[%c256_24, %c0_25] : memref<1024x128xbf16, #tpu.memory_space<vmem>>, vector<64x128xbf16>
    %cst_26 = arith.constant dense<0.000000e+00> : vector<128x128xf32>
    %33 = tpu.matmul %31, %32, %cst_26 {dimension_numbers = #tpu.dot_dimension_numbers<[1], [0], [0], [1], [0, 0, 1, 1], [], []>} : vector<128x64xbf16>, vector<64x128xbf16>, vector<128x128xf32> -> vector<128x128xf32>
    %34 = arith.addf %29, %33 : vector<128x128xf32>
    %c640 = arith.constant 640 : index
    %c0_27 = arith.constant 0 : index
    %35 = vector.load %arg16[%c640, %c0_27] : memref<2048x64xf32, #tpu.memory_space<vmem>>, vector<128x64xf32>
    %36 = arith.truncf %35 : vector<128x64xf32> to vector<128x64xbf16>
    %c320 = arith.constant 320 : index
    %c0_28 = arith.constant 0 : index
    %37 = vector.load %arg2[%c320, %c0_28] : memref<1024x128xbf16, #tpu.memory_space<vmem>>, vector<64x128xbf16>
    %cst_29 = arith.constant dense<0.000000e+00> : vector<128x128xf32>
    %38 = tpu.matmul %36, %37, %cst_29 {dimension_numbers = #tpu.dot_dimension_numbers<[1], [0], [0], [1], [0, 0, 1, 1], [], []>} : vector<128x64xbf16>, vector<64x128xbf16>, vector<128x128xf32> -> vector<128x128xf32>
    %39 = arith.addf %34, %38 : vector<128x128xf32>
    %c768 = arith.constant 768 : index
    %c0_30 = arith.constant 0 : index
    %40 = vector.load %arg16[%c768, %c0_30] : memref<2048x64xf32, #tpu.memory_space<vmem>>, vector<128x64xf32>
    %41 = arith.truncf %40 : vector<128x64xf32> to vector<128x64xbf16>
    %c384_31 = arith.constant 384 : index
    %c0_32 = arith.constant 0 : index
    %42 = vector.load %arg2[%c384_31, %c0_32] : memref<1024x128xbf16, #tpu.memory_space<vmem>>, vector<64x128xbf16>
    %cst_33 = arith.constant dense<0.000000e+00> : vector<128x128xf32>
    %43 = tpu.matmul %41, %42, %cst_33 {dimension_numbers = #tpu.dot_dimension_numbers<[1], [0], [0], [1], [0, 0, 1, 1], [], []>} : vector<128x64xbf16>, vector<64x128xbf16>, vector<128x128xf32> -> vector<128x128xf32>
    %44 = arith.addf %39, %43 : vector<128x128xf32>
    %c896 = arith.constant 896 : index
    %c0_34 = arith.constant 0 : index
    %45 = vector.load %arg16[%c896, %c0_34] : memref<2048x64xf32, #tpu.memory_space<vmem>>, vector<128x64xf32>
    %46 = arith.truncf %45 : vector<128x64xf32> to vector<128x64xbf16>
    %c448 = arith.constant 448 : index
    %c0_35 = arith.constant 0 : index
    %47 = vector.load %arg2[%c448, %c0_35] : memref<1024x128xbf16, #tpu.memory_space<vmem>>, vector<64x128xbf16>
    %cst_36 = arith.constant dense<0.000000e+00> : vector<128x128xf32>
    %48 = tpu.matmul %46, %47, %cst_36 {dimension_numbers = #tpu.dot_dimension_numbers<[1], [0], [0], [1], [0, 0, 1, 1], [], []>} : vector<128x64xbf16>, vector<64x128xbf16>, vector<128x128xf32> -> vector<128x128xf32>
    %49 = arith.addf %44, %48 : vector<128x128xf32>
    %c1024 = arith.constant 1024 : index
    %c0_37 = arith.constant 0 : index
    %50 = vector.load %arg16[%c1024, %c0_37] : memref<2048x64xf32, #tpu.memory_space<vmem>>, vector<128x64xf32>
    %51 = arith.truncf %50 : vector<128x64xf32> to vector<128x64xbf16>
    %c512_38 = arith.constant 512 : index
    %c0_39 = arith.constant 0 : index
    %52 = vector.load %arg2[%c512_38, %c0_39] : memref<1024x128xbf16, #tpu.memory_space<vmem>>, vector<64x128xbf16>
    %cst_40 = arith.constant dense<0.000000e+00> : vector<128x128xf32>
    %53 = tpu.matmul %51, %52, %cst_40 {dimension_numbers = #tpu.dot_dimension_numbers<[1], [0], [0], [1], [0, 0, 1, 1], [], []>} : vector<128x64xbf16>, vector<64x128xbf16>, vector<128x128xf32> -> vector<128x128xf32>
    %54 = arith.addf %49, %53 : vector<128x128xf32>
    %c1152 = arith.constant 1152 : index
    %c0_41 = arith.constant 0 : index
    %55 = vector.load %arg16[%c1152, %c0_41] : memref<2048x64xf32, #tpu.memory_space<vmem>>, vector<128x64xf32>
    %56 = arith.truncf %55 : vector<128x64xf32> to vector<128x64xbf16>
    %c576 = arith.constant 576 : index
    %c0_42 = arith.constant 0 : index
    %57 = vector.load %arg2[%c576, %c0_42] : memref<1024x128xbf16, #tpu.memory_space<vmem>>, vector<64x128xbf16>
    %cst_43 = arith.constant dense<0.000000e+00> : vector<128x128xf32>
    %58 = tpu.matmul %56, %57, %cst_43 {dimension_numbers = #tpu.dot_dimension_numbers<[1], [0], [0], [1], [0, 0, 1, 1], [], []>} : vector<128x64xbf16>, vector<64x128xbf16>, vector<128x128xf32> -> vector<128x128xf32>
    %59 = arith.addf %54, %58 : vector<128x128xf32>
    %c1280 = arith.constant 1280 : index
    %c0_44 = arith.constant 0 : index
    %60 = vector.load %arg16[%c1280, %c0_44] : memref<2048x64xf32, #tpu.memory_space<vmem>>, vector<128x64xf32>
    %61 = arith.truncf %60 : vector<128x64xf32> to vector<128x64xbf16>
    %c640_45 = arith.constant 640 : index
    %c0_46 = arith.constant 0 : index
    %62 = vector.load %arg2[%c640_45, %c0_46] : memref<1024x128xbf16, #tpu.memory_space<vmem>>, vector<64x128xbf16>
    %cst_47 = arith.constant dense<0.000000e+00> : vector<128x128xf32>
    %63 = tpu.matmul %61, %62, %cst_47 {dimension_numbers = #tpu.dot_dimension_numbers<[1], [0], [0], [1], [0, 0, 1, 1], [], []>} : vector<128x64xbf16>, vector<64x128xbf16>, vector<128x128xf32> -> vector<128x128xf32>
    %64 = arith.addf %59, %63 : vector<128x128xf32>
    %c1408 = arith.constant 1408 : index
    %c0_48 = arith.constant 0 : index
    %65 = vector.load %arg16[%c1408, %c0_48] : memref<2048x64xf32, #tpu.memory_space<vmem>>, vector<128x64xf32>
    %66 = arith.truncf %65 : vector<128x64xf32> to vector<128x64xbf16>
    %c704 = arith.constant 704 : index
    %c0_49 = arith.constant 0 : index
    %67 = vector.load %arg2[%c704, %c0_49] : memref<1024x128xbf16, #tpu.memory_space<vmem>>, vector<64x128xbf16>
    %cst_50 = arith.constant dense<0.000000e+00> : vector<128x128xf32>
    %68 = tpu.matmul %66, %67, %cst_50 {dimension_numbers = #tpu.dot_dimension_numbers<[1], [0], [0], [1], [0, 0, 1, 1], [], []>} : vector<128x64xbf16>, vector<64x128xbf16>, vector<128x128xf32> -> vector<128x128xf32>
    %69 = arith.addf %64, %68 : vector<128x128xf32>
    %c1536 = arith.constant 1536 : index
    %c0_51 = arith.constant 0 : index
    %70 = vector.load %arg16[%c1536, %c0_51] : memref<2048x64xf32, #tpu.memory_space<vmem>>, vector<128x64xf32>
    %71 = arith.truncf %70 : vector<128x64xf32> to vector<128x64xbf16>
    %c768_52 = arith.constant 768 : index
    %c0_53 = arith.constant 0 : index
    %72 = vector.load %arg2[%c768_52, %c0_53] : memref<1024x128xbf16, #tpu.memory_space<vmem>>, vector<64x128xbf16>
    %cst_54 = arith.constant dense<0.000000e+00> : vector<128x128xf32>
    %73 = tpu.matmul %71, %72, %cst_54 {dimension_numbers = #tpu.dot_dimension_numbers<[1], [0], [0], [1], [0, 0, 1, 1], [], []>} : vector<128x64xbf16>, vector<64x128xbf16>, vector<128x128xf32> -> vector<128x128xf32>
    %74 = arith.addf %69, %73 : vector<128x128xf32>
    %c1664 = arith.constant 1664 : index
    %c0_55 = arith.constant 0 : index
    %75 = vector.load %arg16[%c1664, %c0_55] : memref<2048x64xf32, #tpu.memory_space<vmem>>, vector<128x64xf32>
    %76 = arith.truncf %75 : vector<128x64xf32> to vector<128x64xbf16>
    %c832 = arith.constant 832 : index
    %c0_56 = arith.constant 0 : index
    %77 = vector.load %arg2[%c832, %c0_56] : memref<1024x128xbf16, #tpu.memory_space<vmem>>, vector<64x128xbf16>
    %cst_57 = arith.constant dense<0.000000e+00> : vector<128x128xf32>
    %78 = tpu.matmul %76, %77, %cst_57 {dimension_numbers = #tpu.dot_dimension_numbers<[1], [0], [0], [1], [0, 0, 1, 1], [], []>} : vector<128x64xbf16>, vector<64x128xbf16>, vector<128x128xf32> -> vector<128x128xf32>
    %79 = arith.addf %74, %78 : vector<128x128xf32>
    %c1792 = arith.constant 1792 : index
    %c0_58 = arith.constant 0 : index
    %80 = vector.load %arg16[%c1792, %c0_58] : memref<2048x64xf32, #tpu.memory_space<vmem>>, vector<128x64xf32>
    %81 = arith.truncf %80 : vector<128x64xf32> to vector<128x64xbf16>
    %c896_59 = arith.constant 896 : index
    %c0_60 = arith.constant 0 : index
    %82 = vector.load %arg2[%c896_59, %c0_60] : memref<1024x128xbf16, #tpu.memory_space<vmem>>, vector<64x128xbf16>
    %cst_61 = arith.constant dense<0.000000e+00> : vector<128x128xf32>
    %83 = tpu.matmul %81, %82, %cst_61 {dimension_numbers = #tpu.dot_dimension_numbers<[1], [0], [0], [1], [0, 0, 1, 1], [], []>} : vector<128x64xbf16>, vector<64x128xbf16>, vector<128x128xf32> -> vector<128x128xf32>
    %84 = arith.addf %79, %83 : vector<128x128xf32>
    %c1920 = arith.constant 1920 : index
    %c0_62 = arith.constant 0 : index
    %85 = vector.load %arg16[%c1920, %c0_62] : memref<2048x64xf32, #tpu.memory_space<vmem>>, vector<128x64xf32>
    %86 = arith.truncf %85 : vector<128x64xf32> to vector<128x64xbf16>
    %c960 = arith.constant 960 : index
    %c0_63 = arith.constant 0 : index
    %87 = vector.load %arg2[%c960, %c0_63] : memref<1024x128xbf16, #tpu.memory_space<vmem>>, vector<64x128xbf16>
    %cst_64 = arith.constant dense<0.000000e+00> : vector<128x128xf32>
    %88 = tpu.matmul %86, %87, %cst_64 {dimension_numbers = #tpu.dot_dimension_numbers<[1], [0], [0], [1], [0, 0, 1, 1], [], []>} : vector<128x64xbf16>, vector<64x128xbf16>, vector<128x128xf32> -> vector<128x128xf32>
    %89 = arith.addf %84, %88 : vector<128x128xf32>
    %cst_65 = arith.constant dense<0.000000e+00> : vector<128xf32>
    %90 = vector.multi_reduction <add>, %89, %cst_65 [0] : vector<128x128xf32> to vector<128xf32>
    %91 = vector.shape_cast %90 : vector<128xf32> to vector<1x128xf32>
    %92 = arith.mulf %89, %89 : vector<128x128xf32>
    %cst_66 = arith.constant dense<0.000000e+00> : vector<128xf32>
    %93 = vector.multi_reduction <add>, %92, %cst_66 [0] : vector<128x128xf32> to vector<128xf32>
    %94 = vector.shape_cast %93 : vector<128xf32> to vector<1x128xf32>
    %cst_67 = arith.constant 7.812500e-03 : f32
    %95 = vector.broadcast %cst_67 : f32 to vector<1x128xf32>
    %96 = arith.mulf %91, %95 : vector<1x128xf32>
    %cst_68 = arith.constant 7.812500e-03 : f32
    %97 = vector.broadcast %cst_68 : f32 to vector<1x128xf32>
    %98 = arith.mulf %94, %97 : vector<1x128xf32>
    %99 = arith.mulf %96, %96 : vector<1x128xf32>
    %100 = arith.subf %98, %99 : vector<1x128xf32>
    %101 = vector.broadcast %96 : vector<1x128xf32> to vector<128x128xf32>
    %102 = arith.subf %89, %101 : vector<128x128xf32>
    %cst_69 = arith.constant 9.99999974E-6 : f32
    %103 = vector.broadcast %cst_69 : f32 to vector<1x128xf32>
    %104 = arith.addf %100, %103 : vector<1x128xf32>
    %105 = math.rsqrt %104 : vector<1x128xf32>
    %106 = vector.broadcast %105 : vector<1x128xf32> to vector<128x128xf32>
    %107 = arith.mulf %102, %106 : vector<128x128xf32>
    %c0_70 = arith.constant 0 : index
    %c0_71 = arith.constant 0 : index
    %108 = vector.load %arg3[%c0_70, %c0_71] : memref<1x128xf32, #tpu.memory_space<vmem>>, vector<1x128xf32>
    %109 = vector.broadcast %108 : vector<1x128xf32> to vector<128x128xf32>
    %110 = arith.mulf %107, %109 : vector<128x128xf32>
    %c0_72 = arith.constant 0 : index
    %c0_73 = arith.constant 0 : index
    %111 = vector.load %arg4[%c0_72, %c0_73] : memref<1x128xf32, #tpu.memory_space<vmem>>, vector<1x128xf32>
    %112 = vector.broadcast %111 : vector<1x128xf32> to vector<128x128xf32>
    %113 = arith.addf %110, %112 : vector<128x128xf32>
    %cst_74 = arith.constant 0.000000e+00 : f32
    %114 = vector.broadcast %cst_74 : f32 to vector<128x128xf32>
    %115 = arith.cmpf ogt, %113, %114 : vector<128x128xf32>
    %cst_75 = arith.constant 2.000000e-01 : f32
    %116 = vector.broadcast %cst_75 : f32 to vector<128x128xf32>
    %117 = arith.mulf %116, %113 : vector<128x128xf32>
    %118 = arith.select %115, %113, %117 : vector<128x128xi1>, vector<128x128xf32>
    %119 = arith.truncf %118 : vector<128x128xf32> to vector<128x128xbf16>
    %c0_76 = arith.constant 0 : index
    %c0_77 = arith.constant 0 : index
    %120 = vector.load %arg5[%c0_76, %c0_77] : memref<512x128xbf16, #tpu.memory_space<vmem>>, vector<512x128xbf16>
    %cst_78 = arith.constant dense<0.000000e+00> : vector<512x128xf32>
    %121 = tpu.matmul %120, %119, %cst_78 {dimension_numbers = #tpu.dot_dimension_numbers<[1], [0], [0], [1], [0, 0, 1, 1], [], []>} : vector<512x128xbf16>, vector<128x128xbf16>, vector<512x128xf32> -> vector<512x128xf32>
    %c0_79 = arith.constant 0 : index
    %c0_80 = arith.constant 0 : index
    %122 = vector.load %arg17[%c0_79, %c0_80] : memref<512x128xf32, #tpu.memory_space<vmem>>, vector<512x128xf32>
    tpu.vector_store %arg17[%c0_79, %c0_80], %121 {strides = array<i32>} : memref<512x128xf32, #tpu.memory_space<vmem>>, vector<512x128xf32>,
    %cst_81 = arith.constant 0.000000e+00 : f32
    %123 = vector.broadcast %cst_81 : f32 to vector<32x256xf32>
    %c0_82 = arith.constant 0 : index
    %c0_83 = arith.constant 0 : index
    %124 = vector.load %arg17[%c0_82, %c0_83] : memref<512x128xf32, #tpu.memory_space<vmem>>, vector<32x128xf32>
    %125 = arith.truncf %124 : vector<32x128xf32> to vector<32x128xbf16>
    %c0_84 = arith.constant 0 : index
    %c0_85 = arith.constant 0 : index
    %126 = vector.load %arg6[%c0_84, %c0_85] : memref<2048x256xbf16, #tpu.memory_space<vmem>>, vector<128x256xbf16>
    %cst_86 = arith.constant dense<0.000000e+00> : vector<32x256xf32>
    %127 = tpu.matmul %125, %126, %cst_86 {dimension_numbers = #tpu.dot_dimension_numbers<[1], [0], [0], [1], [0, 0, 1, 1], [], []>} : vector<32x128xbf16>, vector<128x256xbf16>, vector<32x256xf32> -> vector<32x256xf32>
    %128 = arith.addf %123, %127 : vector<32x256xf32>
    %c32 = arith.constant 32 : index
    %c0_87 = arith.constant 0 : index
    %129 = vector.load %arg17[%c32, %c0_87] : memref<512x128xf32, #tpu.memory_space<vmem>>, vector<32x128xf32>
    %130 = arith.truncf %129 : vector<32x128xf32> to vector<32x128xbf16>
    %c128_88 = arith.constant 128 : index
    %c0_89 = arith.constant 0 : index
    %131 = vector.load %arg6[%c128_88, %c0_89] : memref<2048x256xbf16, #tpu.memory_space<vmem>>, vector<128x256xbf16>
    %cst_90 = arith.constant dense<0.000000e+00> : vector<32x256xf32>
    %132 = tpu.matmul %130, %131, %cst_90 {dimension_numbers = #tpu.dot_dimension_numbers<[1], [0], [0], [1], [0, 0, 1, 1], [], []>} : vector<32x128xbf16>, vector<128x256xbf16>, vector<32x256xf32> -> vector<32x256xf32>
    %133 = arith.addf %128, %132 : vector<32x256xf32>
    %c64_91 = arith.constant 64 : index
    %c0_92 = arith.constant 0 : index
    %134 = vector.load %arg17[%c64_91, %c0_92] : memref<512x128xf32, #tpu.memory_space<vmem>>, vector<32x128xf32>
    %135 = arith.truncf %134 : vector<32x128xf32> to vector<32x128xbf16>
    %c256_93 = arith.constant 256 : index
    %c0_94 = arith.constant 0 : index
    %136 = vector.load %arg6[%c256_93, %c0_94] : memref<2048x256xbf16, #tpu.memory_space<vmem>>, vector<128x256xbf16>
    %cst_95 = arith.constant dense<0.000000e+00> : vector<32x256xf32>
    %137 = tpu.matmul %135, %136, %cst_95 {dimension_numbers = #tpu.dot_dimension_numbers<[1], [0], [0], [1], [0, 0, 1, 1], [], []>} : vector<32x128xbf16>, vector<128x256xbf16>, vector<32x256xf32> -> vector<32x256xf32>
    %138 = arith.addf %133, %137 : vector<32x256xf32>
    %c96 = arith.constant 96 : index
    %c0_96 = arith.constant 0 : index
    %139 = vector.load %arg17[%c96, %c0_96] : memref<512x128xf32, #tpu.memory_space<vmem>>, vector<32x128xf32>
    %140 = arith.truncf %139 : vector<32x128xf32> to vector<32x128xbf16>
    %c384_97 = arith.constant 384 : index
    %c0_98 = arith.constant 0 : index
    %141 = vector.load %arg6[%c384_97, %c0_98] : memref<2048x256xbf16, #tpu.memory_space<vmem>>, vector<128x256xbf16>
    %cst_99 = arith.constant dense<0.000000e+00> : vector<32x256xf32>
    %142 = tpu.matmul %140, %141, %cst_99 {dimension_numbers = #tpu.dot_dimension_numbers<[1], [0], [0], [1], [0, 0, 1, 1], [], []>} : vector<32x128xbf16>, vector<128x256xbf16>, vector<32x256xf32> -> vector<32x256xf32>
    %143 = arith.addf %138, %142 : vector<32x256xf32>
    %c128_100 = arith.constant 128 : index
    %c0_101 = arith.constant 0 : index
    %144 = vector.load %arg17[%c128_100, %c0_101] : memref<512x128xf32, #tpu.memory_space<vmem>>, vector<32x128xf32>
    %145 = arith.truncf %144 : vector<32x128xf32> to vector<32x128xbf16>
    %c512_102 = arith.constant 512 : index
    %c0_103 = arith.constant 0 : index
    %146 = vector.load %arg6[%c512_102, %c0_103] : memref<2048x256xbf16, #tpu.memory_space<vmem>>, vector<128x256xbf16>
    %cst_104 = arith.constant dense<0.000000e+00> : vector<32x256xf32>
    %147 = tpu.matmul %145, %146, %cst_104 {dimension_numbers = #tpu.dot_dimension_numbers<[1], [0], [0], [1], [0, 0, 1, 1], [], []>} : vector<32x128xbf16>, vector<128x256xbf16>, vector<32x256xf32> -> vector<32x256xf32>
    %148 = arith.addf %143, %147 : vector<32x256xf32>
    %c160 = arith.constant 160 : index
    %c0_105 = arith.constant 0 : index
    %149 = vector.load %arg17[%c160, %c0_105] : memref<512x128xf32, #tpu.memory_space<vmem>>, vector<32x128xf32>
    %150 = arith.truncf %149 : vector<32x128xf32> to vector<32x128xbf16>
    %c640_106 = arith.constant 640 : index
    %c0_107 = arith.constant 0 : index
    %151 = vector.load %arg6[%c640_106, %c0_107] : memref<2048x256xbf16, #tpu.memory_space<vmem>>, vector<128x256xbf16>
    %cst_108 = arith.constant dense<0.000000e+00> : vector<32x256xf32>
    %152 = tpu.matmul %150, %151, %cst_108 {dimension_numbers = #tpu.dot_dimension_numbers<[1], [0], [0], [1], [0, 0, 1, 1], [], []>} : vector<32x128xbf16>, vector<128x256xbf16>, vector<32x256xf32> -> vector<32x256xf32>
    %153 = arith.addf %148, %152 : vector<32x256xf32>
    %c192_109 = arith.constant 192 : index
    %c0_110 = arith.constant 0 : index
    %154 = vector.load %arg17[%c192_109, %c0_110] : memref<512x128xf32, #tpu.memory_space<vmem>>, vector<32x128xf32>
    %155 = arith.truncf %154 : vector<32x128xf32> to vector<32x128xbf16>
    %c768_111 = arith.constant 768 : index
    %c0_112 = arith.constant 0 : index
    %156 = vector.load %arg6[%c768_111, %c0_112] : memref<2048x256xbf16, #tpu.memory_space<vmem>>, vector<128x256xbf16>
    %cst_113 = arith.constant dense<0.000000e+00> : vector<32x256xf32>
    %157 = tpu.matmul %155, %156, %cst_113 {dimension_numbers = #tpu.dot_dimension_numbers<[1], [0], [0], [1], [0, 0, 1, 1], [], []>} : vector<32x128xbf16>, vector<128x256xbf16>, vector<32x256xf32> -> vector<32x256xf32>
    %158 = arith.addf %153, %157 : vector<32x256xf32>
    %c224 = arith.constant 224 : index
    %c0_114 = arith.constant 0 : index
    %159 = vector.load %arg17[%c224, %c0_114] : memref<512x128xf32, #tpu.memory_space<vmem>>, vector<32x128xf32>
    %160 = arith.truncf %159 : vector<32x128xf32> to vector<32x128xbf16>
    %c896_115 = arith.constant 896 : index
    %c0_116 = arith.constant 0 : index
    %161 = vector.load %arg6[%c896_115, %c0_116] : memref<2048x256xbf16, #tpu.memory_space<vmem>>, vector<128x256xbf16>
    %cst_117 = arith.constant dense<0.000000e+00> : vector<32x256xf32>
    %162 = tpu.matmul %160, %161, %cst_117 {dimension_numbers = #tpu.dot_dimension_numbers<[1], [0], [0], [1], [0, 0, 1, 1], [], []>} : vector<32x128xbf16>, vector<128x256xbf16>, vector<32x256xf32> -> vector<32x256xf32>
    %163 = arith.addf %158, %162 : vector<32x256xf32>
    %c256_118 = arith.constant 256 : index
    %c0_119 = arith.constant 0 : index
    %164 = vector.load %arg17[%c256_118, %c0_119] : memref<512x128xf32, #tpu.memory_space<vmem>>, vector<32x128xf32>
    %165 = arith.truncf %164 : vector<32x128xf32> to vector<32x128xbf16>
    %c1024_120 = arith.constant 1024 : index
    %c0_121 = arith.constant 0 : index
    %166 = vector.load %arg6[%c1024_120, %c0_121] : memref<2048x256xbf16, #tpu.memory_space<vmem>>, vector<128x256xbf16>
    %cst_122 = arith.constant dense<0.000000e+00> : vector<32x256xf32>
    %167 = tpu.matmul %165, %166, %cst_122 {dimension_numbers = #tpu.dot_dimension_numbers<[1], [0], [0], [1], [0, 0, 1, 1], [], []>} : vector<32x128xbf16>, vector<128x256xbf16>, vector<32x256xf32> -> vector<32x256xf32>
    %168 = arith.addf %163, %167 : vector<32x256xf32>
    %c288 = arith.constant 288 : index
    %c0_123 = arith.constant 0 : index
    %169 = vector.load %arg17[%c288, %c0_123] : memref<512x128xf32, #tpu.memory_space<vmem>>, vector<32x128xf32>
    %170 = arith.truncf %169 : vector<32x128xf32> to vector<32x128xbf16>
    %c1152_124 = arith.constant 1152 : index
    %c0_125 = arith.constant 0 : index
    %171 = vector.load %arg6[%c1152_124, %c0_125] : memref<2048x256xbf16, #tpu.memory_space<vmem>>, vector<128x256xbf16>
    %cst_126 = arith.constant dense<0.000000e+00> : vector<32x256xf32>
    %172 = tpu.matmul %170, %171, %cst_126 {dimension_numbers = #tpu.dot_dimension_numbers<[1], [0], [0], [1], [0, 0, 1, 1], [], []>} : vector<32x128xbf16>, vector<128x256xbf16>, vector<32x256xf32> -> vector<32x256xf32>
    %173 = arith.addf %168, %172 : vector<32x256xf32>
    %c320_127 = arith.constant 320 : index
    %c0_128 = arith.constant 0 : index
    %174 = vector.load %arg17[%c320_127, %c0_128] : memref<512x128xf32, #tpu.memory_space<vmem>>, vector<32x128xf32>
    %175 = arith.truncf %174 : vector<32x128xf32> to vector<32x128xbf16>
    %c1280_129 = arith.constant 1280 : index
    %c0_130 = arith.constant 0 : index
    %176 = vector.load %arg6[%c1280_129, %c0_130] : memref<2048x256xbf16, #tpu.memory_space<vmem>>, vector<128x256xbf16>
    %cst_131 = arith.constant dense<0.000000e+00> : vector<32x256xf32>
    %177 = tpu.matmul %175, %176, %cst_131 {dimension_numbers = #tpu.dot_dimension_numbers<[1], [0], [0], [1], [0, 0, 1, 1], [], []>} : vector<32x128xbf16>, vector<128x256xbf16>, vector<32x256xf32> -> vector<32x256xf32>
    %178 = arith.addf %173, %177 : vector<32x256xf32>
    %c352 = arith.constant 352 : index
    %c0_132 = arith.constant 0 : index
    %179 = vector.load %arg17[%c352, %c0_132] : memref<512x128xf32, #tpu.memory_space<vmem>>, vector<32x128xf32>
    %180 = arith.truncf %179 : vector<32x128xf32> to vector<32x128xbf16>
    %c1408_133 = arith.constant 1408 : index
    %c0_134 = arith.constant 0 : index
    %181 = vector.load %arg6[%c1408_133, %c0_134] : memref<2048x256xbf16, #tpu.memory_space<vmem>>, vector<128x256xbf16>
    %cst_135 = arith.constant dense<0.000000e+00> : vector<32x256xf32>
    %182 = tpu.matmul %180, %181, %cst_135 {dimension_numbers = #tpu.dot_dimension_numbers<[1], [0], [0], [1], [0, 0, 1, 1], [], []>} : vector<32x128xbf16>, vector<128x256xbf16>, vector<32x256xf32> -> vector<32x256xf32>
    %183 = arith.addf %178, %182 : vector<32x256xf32>
    %c384_136 = arith.constant 384 : index
    %c0_137 = arith.constant 0 : index
    %184 = vector.load %arg17[%c384_136, %c0_137] : memref<512x128xf32, #tpu.memory_space<vmem>>, vector<32x128xf32>
    %185 = arith.truncf %184 : vector<32x128xf32> to vector<32x128xbf16>
    %c1536_138 = arith.constant 1536 : index
    %c0_139 = arith.constant 0 : index
    %186 = vector.load %arg6[%c1536_138, %c0_139] : memref<2048x256xbf16, #tpu.memory_space<vmem>>, vector<128x256xbf16>
    %cst_140 = arith.constant dense<0.000000e+00> : vector<32x256xf32>
    %187 = tpu.matmul %185, %186, %cst_140 {dimension_numbers = #tpu.dot_dimension_numbers<[1], [0], [0], [1], [0, 0, 1, 1], [], []>} : vector<32x128xbf16>, vector<128x256xbf16>, vector<32x256xf32> -> vector<32x256xf32>
    %188 = arith.addf %183, %187 : vector<32x256xf32>
    %c416 = arith.constant 416 : index
    %c0_141 = arith.constant 0 : index
    %189 = vector.load %arg17[%c416, %c0_141] : memref<512x128xf32, #tpu.memory_space<vmem>>, vector<32x128xf32>
    %190 = arith.truncf %189 : vector<32x128xf32> to vector<32x128xbf16>
    %c1664_142 = arith.constant 1664 : index
    %c0_143 = arith.constant 0 : index
    %191 = vector.load %arg6[%c1664_142, %c0_143] : memref<2048x256xbf16, #tpu.memory_space<vmem>>, vector<128x256xbf16>
    %cst_144 = arith.constant dense<0.000000e+00> : vector<32x256xf32>
    %192 = tpu.matmul %190, %191, %cst_144 {dimension_numbers = #tpu.dot_dimension_numbers<[1], [0], [0], [1], [0, 0, 1, 1], [], []>} : vector<32x128xbf16>, vector<128x256xbf16>, vector<32x256xf32> -> vector<32x256xf32>
    %193 = arith.addf %188, %192 : vector<32x256xf32>
    %c448_145 = arith.constant 448 : index
    %c0_146 = arith.constant 0 : index
    %194 = vector.load %arg17[%c448_145, %c0_146] : memref<512x128xf32, #tpu.memory_space<vmem>>, vector<32x128xf32>
    %195 = arith.truncf %194 : vector<32x128xf32> to vector<32x128xbf16>
    %c1792_147 = arith.constant 1792 : index
    %c0_148 = arith.constant 0 : index
    %196 = vector.load %arg6[%c1792_147, %c0_148] : memref<2048x256xbf16, #tpu.memory_space<vmem>>, vector<128x256xbf16>
    %cst_149 = arith.constant dense<0.000000e+00> : vector<32x256xf32>
    %197 = tpu.matmul %195, %196, %cst_149 {dimension_numbers = #tpu.dot_dimension_numbers<[1], [0], [0], [1], [0, 0, 1, 1], [], []>} : vector<32x128xbf16>, vector<128x256xbf16>, vector<32x256xf32> -> vector<32x256xf32>
    %198 = arith.addf %193, %197 : vector<32x256xf32>
    %c480 = arith.constant 480 : index
    %c0_150 = arith.constant 0 : index
    %199 = vector.load %arg17[%c480, %c0_150] : memref<512x128xf32, #tpu.memory_space<vmem>>, vector<32x128xf32>
    %200 = arith.truncf %199 : vector<32x128xf32> to vector<32x128xbf16>
    %c1920_151 = arith.constant 1920 : index
    %c0_152 = arith.constant 0 : index
    %201 = vector.load %arg6[%c1920_151, %c0_152] : memref<2048x256xbf16, #tpu.memory_space<vmem>>, vector<128x256xbf16>
    %cst_153 = arith.constant dense<0.000000e+00> : vector<32x256xf32>
    %202 = tpu.matmul %200, %201, %cst_153 {dimension_numbers = #tpu.dot_dimension_numbers<[1], [0], [0], [1], [0, 0, 1, 1], [], []>} : vector<32x128xbf16>, vector<128x256xbf16>, vector<32x256xf32> -> vector<32x256xf32>
    %203 = arith.addf %198, %202 : vector<32x256xf32>
    %cst_154 = arith.constant dense<0.000000e+00> : vector<256xf32>
    %204 = vector.multi_reduction <add>, %203, %cst_154 [0] : vector<32x256xf32> to vector<256xf32>
    %205 = vector.shape_cast %204 : vector<256xf32> to vector<1x256xf32>
    %206 = arith.mulf %203, %203 : vector<32x256xf32>
    %cst_155 = arith.constant dense<0.000000e+00> : vector<256xf32>
    %207 = vector.multi_reduction <add>, %206, %cst_155 [0] : vector<32x256xf32> to vector<256xf32>
    %208 = vector.shape_cast %207 : vector<256xf32> to vector<1x256xf32>
    %cst_156 = arith.constant 3.125000e-02 : f32
    %209 = vector.broadcast %cst_156 : f32 to vector<1x256xf32>
    %210 = arith.mulf %205, %209 : vector<1x256xf32>
    %cst_157 = arith.constant 3.125000e-02 : f32
    %211 = vector.broadcast %cst_157 : f32 to vector<1x256xf32>
    %212 = arith.mulf %208, %211 : vector<1x256xf32>
    %213 = arith.mulf %210, %210 : vector<1x256xf32>
    %214 = arith.subf %212, %213 : vector<1x256xf32>
    %215 = vector.broadcast %210 : vector<1x256xf32> to vector<32x256xf32>
    %216 = arith.subf %203, %215 : vector<32x256xf32>
    %cst_158 = arith.constant 9.99999974E-6 : f32
    %217 = vector.broadcast %cst_158 : f32 to vector<1x256xf32>
    %218 = arith.addf %214, %217 : vector<1x256xf32>
    %219 = math.rsqrt %218 : vector<1x256xf32>
    %220 = vector.broadcast %219 : vector<1x256xf32> to vector<32x256xf32>
    %221 = arith.mulf %216, %220 : vector<32x256xf32>
    %c0_159 = arith.constant 0 : index
    %c0_160 = arith.constant 0 : index
    %222 = vector.load %arg7[%c0_159, %c0_160] : memref<1x256xf32, #tpu.memory_space<vmem>>, vector<1x256xf32>
    %223 = vector.broadcast %222 : vector<1x256xf32> to vector<32x256xf32>
    %224 = arith.mulf %221, %223 : vector<32x256xf32>
    %c0_161 = arith.constant 0 : index
    %c0_162 = arith.constant 0 : index
    %225 = vector.load %arg8[%c0_161, %c0_162] : memref<1x256xf32, #tpu.memory_space<vmem>>, vector<1x256xf32>
    %226 = vector.broadcast %225 : vector<1x256xf32> to vector<32x256xf32>
    %227 = arith.addf %224, %226 : vector<32x256xf32>
    %cst_163 = arith.constant 0.000000e+00 : f32
    %228 = vector.broadcast %cst_163 : f32 to vector<32x256xf32>
    %229 = arith.cmpf ogt, %227, %228 : vector<32x256xf32>
    %cst_164 = arith.constant 2.000000e-01 : f32
    %230 = vector.broadcast %cst_164 : f32 to vector<32x256xf32>
    %231 = arith.mulf %230, %227 : vector<32x256xf32>
    %232 = arith.select %229, %227, %231 : vector<32x256xi1>, vector<32x256xf32>
    %233 = arith.truncf %232 : vector<32x256xf32> to vector<32x256xbf16>
    %c0_165 = arith.constant 0 : index
    %c0_166 = arith.constant 0 : index
    %234 = vector.load %arg9[%c0_165, %c0_166] : memref<128x32xbf16, #tpu.memory_space<vmem>>, vector<128x32xbf16>
    %cst_167 = arith.constant dense<0.000000e+00> : vector<128x256xf32>
    %235 = tpu.matmul %234, %233, %cst_167 {dimension_numbers = #tpu.dot_dimension_numbers<[1], [0], [0], [1], [0, 0, 1, 1], [], []>} : vector<128x32xbf16>, vector<32x256xbf16>, vector<128x256xf32> -> vector<128x256xf32>
    %c0_168 = arith.constant 0 : index
    %c0_169 = arith.constant 0 : index
    %236 = vector.load %arg18[%c0_168, %c0_169] : memref<128x256xf32, #tpu.memory_space<vmem>>, vector<128x256xf32>
    tpu.vector_store %arg18[%c0_168, %c0_169], %235 {strides = array<i32>} : memref<128x256xf32, #tpu.memory_space<vmem>>, vector<128x256xf32>,
    %cst_170 = arith.constant 0.000000e+00 : f32
    %237 = vector.broadcast %cst_170 : f32 to vector<8x512xf32>
    %c0_171 = arith.constant 0 : index
    %c0_172 = arith.constant 0 : index
    %238 = vector.load %arg18[%c0_171, %c0_172] : memref<128x256xf32, #tpu.memory_space<vmem>>, vector<8x256xf32>
    %239 = arith.truncf %238 : vector<8x256xf32> to vector<8x256xbf16>
    %c0_173 = arith.constant 0 : index
    %c0_174 = arith.constant 0 : index
    %240 = vector.load %arg10[%c0_173, %c0_174] : memref<4096x512xbf16, #tpu.memory_space<vmem>>, vector<256x512xbf16>
    %cst_175 = arith.constant dense<0.000000e+00> : vector<8x512xf32>
    %241 = tpu.matmul %239, %240, %cst_175 {dimension_numbers = #tpu.dot_dimension_numbers<[1], [0], [0], [1], [0, 0, 1, 1], [], []>} : vector<8x256xbf16>, vector<256x512xbf16>, vector<8x512xf32> -> vector<8x512xf32>
    %242 = arith.addf %237, %241 : vector<8x512xf32>
    %c8 = arith.constant 8 : index
    %c0_176 = arith.constant 0 : index
    %243 = vector.load %arg18[%c8, %c0_176] : memref<128x256xf32, #tpu.memory_space<vmem>>, vector<8x256xf32>
    %244 = arith.truncf %243 : vector<8x256xf32> to vector<8x256xbf16>
    %c256_177 = arith.constant 256 : index
    %c0_178 = arith.constant 0 : index
    %245 = vector.load %arg10[%c256_177, %c0_178] : memref<4096x512xbf16, #tpu.memory_space<vmem>>, vector<256x512xbf16>
    %cst_179 = arith.constant dense<0.000000e+00> : vector<8x512xf32>
    %246 = tpu.matmul %244, %245, %cst_179 {dimension_numbers = #tpu.dot_dimension_numbers<[1], [0], [0], [1], [0, 0, 1, 1], [], []>} : vector<8x256xbf16>, vector<256x512xbf16>, vector<8x512xf32> -> vector<8x512xf32>
    %247 = arith.addf %242, %246 : vector<8x512xf32>
    %c16 = arith.constant 16 : index
    %c0_180 = arith.constant 0 : index
    %248 = vector.load %arg18[%c16, %c0_180] : memref<128x256xf32, #tpu.memory_space<vmem>>, vector<8x256xf32>
    %249 = arith.truncf %248 : vector<8x256xf32> to vector<8x256xbf16>
    %c512_181 = arith.constant 512 : index
    %c0_182 = arith.constant 0 : index
    %250 = vector.load %arg10[%c512_181, %c0_182] : memref<4096x512xbf16, #tpu.memory_space<vmem>>, vector<256x512xbf16>
    %cst_183 = arith.constant dense<0.000000e+00> : vector<8x512xf32>
    %251 = tpu.matmul %249, %250, %cst_183 {dimension_numbers = #tpu.dot_dimension_numbers<[1], [0], [0], [1], [0, 0, 1, 1], [], []>} : vector<8x256xbf16>, vector<256x512xbf16>, vector<8x512xf32> -> vector<8x512xf32>
    %252 = arith.addf %247, %251 : vector<8x512xf32>
    %c24 = arith.constant 24 : index
    %c0_184 = arith.constant 0 : index
    %253 = vector.load %arg18[%c24, %c0_184] : memref<128x256xf32, #tpu.memory_space<vmem>>, vector<8x256xf32>
    %254 = arith.truncf %253 : vector<8x256xf32> to vector<8x256xbf16>
    %c768_185 = arith.constant 768 : index
    %c0_186 = arith.constant 0 : index
    %255 = vector.load %arg10[%c768_185, %c0_186] : memref<4096x512xbf16, #tpu.memory_space<vmem>>, vector<256x512xbf16>
    %cst_187 = arith.constant dense<0.000000e+00> : vector<8x512xf32>
    %256 = tpu.matmul %254, %255, %cst_187 {dimension_numbers = #tpu.dot_dimension_numbers<[1], [0], [0], [1], [0, 0, 1, 1], [], []>} : vector<8x256xbf16>, vector<256x512xbf16>, vector<8x512xf32> -> vector<8x512xf32>
    %257 = arith.addf %252, %256 : vector<8x512xf32>
    %c32_188 = arith.constant 32 : index
    %c0_189 = arith.constant 0 : index
    %258 = vector.load %arg18[%c32_188, %c0_189] : memref<128x256xf32, #tpu.memory_space<vmem>>, vector<8x256xf32>
    %259 = arith.truncf %258 : vector<8x256xf32> to vector<8x256xbf16>
    %c1024_190 = arith.constant 1024 : index
    %c0_191 = arith.constant 0 : index
    %260 = vector.load %arg10[%c1024_190, %c0_191] : memref<4096x512xbf16, #tpu.memory_space<vmem>>, vector<256x512xbf16>
    %cst_192 = arith.constant dense<0.000000e+00> : vector<8x512xf32>
    %261 = tpu.matmul %259, %260, %cst_192 {dimension_numbers = #tpu.dot_dimension_numbers<[1], [0], [0], [1], [0, 0, 1, 1], [], []>} : vector<8x256xbf16>, vector<256x512xbf16>, vector<8x512xf32> -> vector<8x512xf32>
    %262 = arith.addf %257, %261 : vector<8x512xf32>
    %c40 = arith.constant 40 : index
    %c0_193 = arith.constant 0 : index
    %263 = vector.load %arg18[%c40, %c0_193] : memref<128x256xf32, #tpu.memory_space<vmem>>, vector<8x256xf32>
    %264 = arith.truncf %263 : vector<8x256xf32> to vector<8x256xbf16>
    %c1280_194 = arith.constant 1280 : index
    %c0_195 = arith.constant 0 : index
    %265 = vector.load %arg10[%c1280_194, %c0_195] : memref<4096x512xbf16, #tpu.memory_space<vmem>>, vector<256x512xbf16>
    %cst_196 = arith.constant dense<0.000000e+00> : vector<8x512xf32>
    %266 = tpu.matmul %264, %265, %cst_196 {dimension_numbers = #tpu.dot_dimension_numbers<[1], [0], [0], [1], [0, 0, 1, 1], [], []>} : vector<8x256xbf16>, vector<256x512xbf16>, vector<8x512xf32> -> vector<8x512xf32>
    %267 = arith.addf %262, %266 : vector<8x512xf32>
    %c48 = arith.constant 48 : index
    %c0_197 = arith.constant 0 : index
    %268 = vector.load %arg18[%c48, %c0_197] : memref<128x256xf32, #tpu.memory_space<vmem>>, vector<8x256xf32>
    %269 = arith.truncf %268 : vector<8x256xf32> to vector<8x256xbf16>
    %c1536_198 = arith.constant 1536 : index
    %c0_199 = arith.constant 0 : index
    %270 = vector.load %arg10[%c1536_198, %c0_199] : memref<4096x512xbf16, #tpu.memory_space<vmem>>, vector<256x512xbf16>
    %cst_200 = arith.constant dense<0.000000e+00> : vector<8x512xf32>
    %271 = tpu.matmul %269, %270, %cst_200 {dimension_numbers = #tpu.dot_dimension_numbers<[1], [0], [0], [1], [0, 0, 1, 1], [], []>} : vector<8x256xbf16>, vector<256x512xbf16>, vector<8x512xf32> -> vector<8x512xf32>
    %272 = arith.addf %267, %271 : vector<8x512xf32>
    %c56 = arith.constant 56 : index
    %c0_201 = arith.constant 0 : index
    %273 = vector.load %arg18[%c56, %c0_201] : memref<128x256xf32, #tpu.memory_space<vmem>>, vector<8x256xf32>
    %274 = arith.truncf %273 : vector<8x256xf32> to vector<8x256xbf16>
    %c1792_202 = arith.constant 1792 : index
    %c0_203 = arith.constant 0 : index
    %275 = vector.load %arg10[%c1792_202, %c0_203] : memref<4096x512xbf16, #tpu.memory_space<vmem>>, vector<256x512xbf16>
    %cst_204 = arith.constant dense<0.000000e+00> : vector<8x512xf32>
    %276 = tpu.matmul %274, %275, %cst_204 {dimension_numbers = #tpu.dot_dimension_numbers<[1], [0], [0], [1], [0, 0, 1, 1], [], []>} : vector<8x256xbf16>, vector<256x512xbf16>, vector<8x512xf32> -> vector<8x512xf32>
    %277 = arith.addf %272, %276 : vector<8x512xf32>
    %c64_205 = arith.constant 64 : index
    %c0_206 = arith.constant 0 : index
    %278 = vector.load %arg18[%c64_205, %c0_206] : memref<128x256xf32, #tpu.memory_space<vmem>>, vector<8x256xf32>
    %279 = arith.truncf %278 : vector<8x256xf32> to vector<8x256xbf16>
    %c2048 = arith.constant 2048 : index
    %c0_207 = arith.constant 0 : index
    %280 = vector.load %arg10[%c2048, %c0_207] : memref<4096x512xbf16, #tpu.memory_space<vmem>>, vector<256x512xbf16>
    %cst_208 = arith.constant dense<0.000000e+00> : vector<8x512xf32>
    %281 = tpu.matmul %279, %280, %cst_208 {dimension_numbers = #tpu.dot_dimension_numbers<[1], [0], [0], [1], [0, 0, 1, 1], [], []>} : vector<8x256xbf16>, vector<256x512xbf16>, vector<8x512xf32> -> vector<8x512xf32>
    %282 = arith.addf %277, %281 : vector<8x512xf32>
    %c72 = arith.constant 72 : index
    %c0_209 = arith.constant 0 : index
    %283 = vector.load %arg18[%c72, %c0_209] : memref<128x256xf32, #tpu.memory_space<vmem>>, vector<8x256xf32>
    %284 = arith.truncf %283 : vector<8x256xf32> to vector<8x256xbf16>
    %c2304 = arith.constant 2304 : index
    %c0_210 = arith.constant 0 : index
    %285 = vector.load %arg10[%c2304, %c0_210] : memref<4096x512xbf16, #tpu.memory_space<vmem>>, vector<256x512xbf16>
    %cst_211 = arith.constant dense<0.000000e+00> : vector<8x512xf32>
    %286 = tpu.matmul %284, %285, %cst_211 {dimension_numbers = #tpu.dot_dimension_numbers<[1], [0], [0], [1], [0, 0, 1, 1], [], []>} : vector<8x256xbf16>, vector<256x512xbf16>, vector<8x512xf32> -> vector<8x512xf32>
    %287 = arith.addf %282, %286 : vector<8x512xf32>
    %c80 = arith.constant 80 : index
    %c0_212 = arith.constant 0 : index
    %288 = vector.load %arg18[%c80, %c0_212] : memref<128x256xf32, #tpu.memory_space<vmem>>, vector<8x256xf32>
    %289 = arith.truncf %288 : vector<8x256xf32> to vector<8x256xbf16>
    %c2560 = arith.constant 2560 : index
    %c0_213 = arith.constant 0 : index
    %290 = vector.load %arg10[%c2560, %c0_213] : memref<4096x512xbf16, #tpu.memory_space<vmem>>, vector<256x512xbf16>
    %cst_214 = arith.constant dense<0.000000e+00> : vector<8x512xf32>
    %291 = tpu.matmul %289, %290, %cst_214 {dimension_numbers = #tpu.dot_dimension_numbers<[1], [0], [0], [1], [0, 0, 1, 1], [], []>} : vector<8x256xbf16>, vector<256x512xbf16>, vector<8x512xf32> -> vector<8x512xf32>
    %292 = arith.addf %287, %291 : vector<8x512xf32>
    %c88 = arith.constant 88 : index
    %c0_215 = arith.constant 0 : index
    %293 = vector.load %arg18[%c88, %c0_215] : memref<128x256xf32, #tpu.memory_space<vmem>>, vector<8x256xf32>
    %294 = arith.truncf %293 : vector<8x256xf32> to vector<8x256xbf16>
    %c2816 = arith.constant 2816 : index
    %c0_216 = arith.constant 0 : index
    %295 = vector.load %arg10[%c2816, %c0_216] : memref<4096x512xbf16, #tpu.memory_space<vmem>>, vector<256x512xbf16>
    %cst_217 = arith.constant dense<0.000000e+00> : vector<8x512xf32>
    %296 = tpu.matmul %294, %295, %cst_217 {dimension_numbers = #tpu.dot_dimension_numbers<[1], [0], [0], [1], [0, 0, 1, 1], [], []>} : vector<8x256xbf16>, vector<256x512xbf16>, vector<8x512xf32> -> vector<8x512xf32>
    %297 = arith.addf %292, %296 : vector<8x512xf32>
    %c96_218 = arith.constant 96 : index
    %c0_219 = arith.constant 0 : index
    %298 = vector.load %arg18[%c96_218, %c0_219] : memref<128x256xf32, #tpu.memory_space<vmem>>, vector<8x256xf32>
    %299 = arith.truncf %298 : vector<8x256xf32> to vector<8x256xbf16>
    %c3072 = arith.constant 3072 : index
    %c0_220 = arith.constant 0 : index
    %300 = vector.load %arg10[%c3072, %c0_220] : memref<4096x512xbf16, #tpu.memory_space<vmem>>, vector<256x512xbf16>
    %cst_221 = arith.constant dense<0.000000e+00> : vector<8x512xf32>
    %301 = tpu.matmul %299, %300, %cst_221 {dimension_numbers = #tpu.dot_dimension_numbers<[1], [0], [0], [1], [0, 0, 1, 1], [], []>} : vector<8x256xbf16>, vector<256x512xbf16>, vector<8x512xf32> -> vector<8x512xf32>
    %302 = arith.addf %297, %301 : vector<8x512xf32>
    %c104 = arith.constant 104 : index
    %c0_222 = arith.constant 0 : index
    %303 = vector.load %arg18[%c104, %c0_222] : memref<128x256xf32, #tpu.memory_space<vmem>>, vector<8x256xf32>
    %304 = arith.truncf %303 : vector<8x256xf32> to vector<8x256xbf16>
    %c3328 = arith.constant 3328 : index
    %c0_223 = arith.constant 0 : index
    %305 = vector.load %arg10[%c3328, %c0_223] : memref<4096x512xbf16, #tpu.memory_space<vmem>>, vector<256x512xbf16>
    %cst_224 = arith.constant dense<0.000000e+00> : vector<8x512xf32>
    %306 = tpu.matmul %304, %305, %cst_224 {dimension_numbers = #tpu.dot_dimension_numbers<[1], [0], [0], [1], [0, 0, 1, 1], [], []>} : vector<8x256xbf16>, vector<256x512xbf16>, vector<8x512xf32> -> vector<8x512xf32>
    %307 = arith.addf %302, %306 : vector<8x512xf32>
    %c112 = arith.constant 112 : index
    %c0_225 = arith.constant 0 : index
    %308 = vector.load %arg18[%c112, %c0_225] : memref<128x256xf32, #tpu.memory_space<vmem>>, vector<8x256xf32>
    %309 = arith.truncf %308 : vector<8x256xf32> to vector<8x256xbf16>
    %c3584 = arith.constant 3584 : index
    %c0_226 = arith.constant 0 : index
    %310 = vector.load %arg10[%c3584, %c0_226] : memref<4096x512xbf16, #tpu.memory_space<vmem>>, vector<256x512xbf16>
    %cst_227 = arith.constant dense<0.000000e+00> : vector<8x512xf32>
    %311 = tpu.matmul %309, %310, %cst_227 {dimension_numbers = #tpu.dot_dimension_numbers<[1], [0], [0], [1], [0, 0, 1, 1], [], []>} : vector<8x256xbf16>, vector<256x512xbf16>, vector<8x512xf32> -> vector<8x512xf32>
    %312 = arith.addf %307, %311 : vector<8x512xf32>
    %c120 = arith.constant 120 : index
    %c0_228 = arith.constant 0 : index
    %313 = vector.load %arg18[%c120, %c0_228] : memref<128x256xf32, #tpu.memory_space<vmem>>, vector<8x256xf32>
    %314 = arith.truncf %313 : vector<8x256xf32> to vector<8x256xbf16>
    %c3840 = arith.constant 3840 : index
    %c0_229 = arith.constant 0 : index
    %315 = vector.load %arg10[%c3840, %c0_229] : memref<4096x512xbf16, #tpu.memory_space<vmem>>, vector<256x512xbf16>
    %cst_230 = arith.constant dense<0.000000e+00> : vector<8x512xf32>
    %316 = tpu.matmul %314, %315, %cst_230 {dimension_numbers = #tpu.dot_dimension_numbers<[1], [0], [0], [1], [0, 0, 1, 1], [], []>} : vector<8x256xbf16>, vector<256x512xbf16>, vector<8x512xf32> -> vector<8x512xf32>
    %317 = arith.addf %312, %316 : vector<8x512xf32>
    %cst_231 = arith.constant dense<0.000000e+00> : vector<512xf32>
    %318 = vector.multi_reduction <add>, %317, %cst_231 [0] : vector<8x512xf32> to vector<512xf32>
    %319 = vector.shape_cast %318 : vector<512xf32> to vector<1x512xf32>
    %320 = arith.mulf %317, %317 : vector<8x512xf32>
    %cst_232 = arith.constant dense<0.000000e+00> : vector<512xf32>
    %321 = vector.multi_reduction <add>, %320, %cst_232 [0] : vector<8x512xf32> to vector<512xf32>
    %322 = vector.shape_cast %321 : vector<512xf32> to vector<1x512xf32>
    %cst_233 = arith.constant 1.250000e-01 : f32
    %323 = vector.broadcast %cst_233 : f32 to vector<1x512xf32>
    %324 = arith.mulf %319, %323 : vector<1x512xf32>
    %cst_234 = arith.constant 1.250000e-01 : f32
    %325 = vector.broadcast %cst_234 : f32 to vector<1x512xf32>
    %326 = arith.mulf %322, %325 : vector<1x512xf32>
    %327 = arith.mulf %324, %324 : vector<1x512xf32>
    %328 = arith.subf %326, %327 : vector<1x512xf32>
    %329 = vector.broadcast %324 : vector<1x512xf32> to vector<8x512xf32>
    %330 = arith.subf %317, %329 : vector<8x512xf32>
    %cst_235 = arith.constant 9.99999974E-6 : f32
    %331 = vector.broadcast %cst_235 : f32 to vector<1x512xf32>
    %332 = arith.addf %328, %331 : vector<1x512xf32>
    %333 = math.rsqrt %332 : vector<1x512xf32>
    %334 = vector.broadcast %333 : vector<1x512xf32> to vector<8x512xf32>
    %335 = arith.mulf %330, %334 : vector<8x512xf32>
    %c0_236 = arith.constant 0 : index
    %c0_237 = arith.constant 0 : index
    %336 = vector.load %arg11[%c0_236, %c0_237] : memref<1x512xf32, #tpu.memory_space<vmem>>, vector<1x512xf32>
    %337 = vector.broadcast %336 : vector<1x512xf32> to vector<8x512xf32>
    %338 = arith.mulf %335, %337 : vector<8x512xf32>
    %c0_238 = arith.constant 0 : index
    %c0_239 = arith.constant 0 : index
    %339 = vector.load %arg12[%c0_238, %c0_239] : memref<1x512xf32, #tpu.memory_space<vmem>>, vector<1x512xf32>
    %340 = vector.broadcast %339 : vector<1x512xf32> to vector<8x512xf32>
    %341 = arith.addf %338, %340 : vector<8x512xf32>
    %cst_240 = arith.constant 0.000000e+00 : f32
    %342 = vector.broadcast %cst_240 : f32 to vector<8x512xf32>
    %343 = arith.cmpf ogt, %341, %342 : vector<8x512xf32>
    %cst_241 = arith.constant 2.000000e-01 : f32
    %344 = vector.broadcast %cst_241 : f32 to vector<8x512xf32>
    %345 = arith.mulf %344, %341 : vector<8x512xf32>
    %346 = arith.select %343, %341, %345 : vector<8x512xi1>, vector<8x512xf32>
    %347 = arith.truncf %346 : vector<8x512xf32> to vector<8x512xbf16>
    %348 = arith.extf %347 : vector<8x512xbf16> to vector<8x512xf32>
    %349 = vector.shape_cast %348 : vector<8x512xf32> to vector<1x8x512xf32>
    %c0_242 = arith.constant 0 : index
    %c0_243 = arith.constant 0 : index
    %c0_244 = arith.constant 0 : index
    %350 = vector.load %arg13[%c0_242, %c0_243, %c0_244] : memref<2x8x512xf32, #tpu.memory_space<vmem>>, vector<2x8x512xf32>
    %351 = vector.broadcast %349 : vector<1x8x512xf32> to vector<2x8x512xf32>
    %352 = arith.mulf %351, %350 : vector<2x8x512xf32>
    %cst_245 = arith.constant dense<0.000000e+00> : vector<2x8xf32>
    %353 = vector.multi_reduction <add>, %352, %cst_245 [2] : vector<2x8x512xf32> to vector<2x8xf32>
    %cst_246 = arith.constant dense<0.000000e+00> : vector<2xf32>
    %354 = vector.multi_reduction <add>, %353, %cst_246 [1] : vector<2x8xf32> to vector<2xf32>
    %355 = vector.shape_cast %354 : vector<2xf32> to vector<2x1xf32>
    %c0_247 = arith.constant 0 : index
    %c0_248 = arith.constant 0 : index
    %356 = vector.load %arg14[%c0_247, %c0_248] : memref<1x1xf32, #tpu.memory_space<vmem>>, vector<1x1xf32>
    %357 = vector.broadcast %356 : vector<1x1xf32> to vector<2x1xf32>
    %358 = arith.addf %355, %357 : vector<2x1xf32>
    %359 = arith.negf %358 : vector<2x1xf32>
    %360 = math.exp %359 : vector<2x1xf32>
    %cst_249 = arith.constant 1.000000e+00 : f32
    %361 = vector.broadcast %cst_249 : f32 to vector<2x1xf32>
    %362 = arith.addf %361, %360 : vector<2x1xf32>
    %363 = arith.divf %361, %362 : vector<2x1xf32>
    %c0_250 = arith.constant 0 : index
    %c0_251 = arith.constant 0 : index
    %364 = vector.load %arg15[%c0_250, %c0_251] : memref<2x1xf32, #tpu.memory_space<vmem>>, vector<2x1xf32>
    tpu.vector_store %arg15[%c0_250, %c0_251], %363 {strides = array<i32>} : memref<2x1xf32, #tpu.memory_space<vmem>>, vector<2x1xf32>,
    return
  }
}

</mosaic_0001>

<bundles_post_ra>
// kernel: discriminator_forward.1
= control target key start
LH: loop header
LB: loop body
LE: loop exit
PB: predicated region body
PF: predicated region fallthrough
CT: control target
= control target key end

     0   :  { %vm985_vm0 = vcmask 531456   ;;  %vm1370_vm1 = vcmask 1040384   ;;  %v23608_v6 = vmov 0   ;;  %vm3201_vm3 = vcmask 523264   ;;  %s29686_s1 = inlined_call_operand.vmem [shape: bf16[65,64], index: 1, kind: input, shape index: {}]   ;;  %s29687_s0 = inlined_call_operand.vmem [shape: bf16[2048,65], index: 0, kind: input, shape index: {}]   ;;  %s29688_s2 = inlined_call_operand.vmem [shape: bf16[1024,128], index: 2, kind: input, shape index: {}]   ;;  %s29689_s5 = inlined_call_operand.vmem [shape: bf16[512,128], index: 5, kind: input, shape index: {}]   ;;  %s29690_s3 = inlined_call_operand.vmem [shape: f32[1,128], index: 3, kind: input, shape index: {}]   ;;  %s29691_s4 = inlined_call_operand.vmem [shape: f32[1,128], index: 4, kind: input, shape index: {}]   ;;  %s29692_s6 = inlined_call_operand.vmem [shape: bf16[2048,256], index: 6, kind: input, shape index: {}]   ;;  %s29693_s9 = inlined_call_operand.vmem [shape: bf16[128,32], index: 9, kind: input, shape index: {}]   ;;  %s29694_s10 = inlined_call_operand.vmem [shape: bf16[4096,512], index: 10, kind: input, shape index: {}]   ;;  %s29695_s7 = inlined_call_operand.vmem [shape: f32[1,256], index: 7, kind: input, shape index: {}]   ;;  %s29696_s8 = inlined_call_operand.vmem [shape: f32[1,256], index: 8, kind: input, shape index: {}]   ;;  %s29697_s11 = inlined_call_operand.vmem [shape: f32[1,512], index: 11, kind: input, shape index: {}]   ;;  %s29698_s12 = inlined_call_operand.vmem [shape: f32[1,512], index: 12, kind: input, shape index: {}]   ;;  %s29699_s13 = inlined_call_operand.vmem [shape: f32[2,8,512], index: 13, kind: input, shape index: {}]   ;;  %s29700_s14 = inlined_call_operand.<no memory space> [shape: f32[1,1], index: 14, kind: input, shape index: {}]   ;;  %s29701_s15 = inlined_call_operand.vmem [shape: f32[2,1], index: 15, kind: output, shape index: {}]  }
   0x1   :  { %v21433_v0 = vld [vmem:[%s29686_s1] sm:$0xff]   ;;  %v21434_v1 = vld [vmem:[%s29686_s1 + $0x8] sm:$0xff]   ;;  %v21435_v2 = vld [vmem:[%s29686_s1 + $0x10] sm:$0xff]   ;;  %v1372_v7 = vsel %vm1370_vm1, 65535, %v23608_v6 }
   0x2   :  { %20226 = vmatprep.subr.bf16.mxu0 %v21433_v0  ;;  %v21438_v3 = vld [vmem:[%s29687_s0] sm:$0xff]   ;;  %v21436_v5 = vld [vmem:[%s29686_s1 + $0x18] sm:$0xff]   ;;  %v21439_v9 = vld [vmem:[%s29687_s0 + $0x8] sm:$0xff]  }
   0x3   :  { %20227 = vmatpush3.bf16.msra.mxu0 %v21433_v0  ;;  %v21437_v4 = vld [vmem:[%s29686_s1 + $0x20] ss:$0 sps:$4 sm:$0x11]   ;;  %20236 = vmatprep.mubr.msk.bf16.mxu0 %vm985_vm0, %v21438_v3  ;;  %v21440_v10 = vld [vmem:[%s29687_s0 + $0x10] sm:$0xff]   ;;  %v21441_v11 = vld [vmem:[%s29687_s0 + $0x18] sm:$0xff]  }
   0x4   :  { %20228 = vmatprep.subr.bf16.mxu0 %v21434_v1  ;;  %v1374_v8 = vand.u32 %v21437_v4, %v1372_v7  ;;  %v21442_v12 = vld [vmem:[%s29687_s0 + $0x20] sm:$0xff]   ;;  %v21443_v13 = vld [vmem:[%s29687_s0 + $0x28] sm:$0xff]   ;;  %v21444_v14 = vld [vmem:[%s29687_s0 + $0x30] sm:$0xff]  }
   0x5   :  { %v21445_v15 = vld [vmem:[%s29687_s0 + $0x38] sm:$0xff]   ;;  %v21446_v16 = vld [vmem:[%s29687_s0 + $0x40] sm:$0xff]   ;;  %v21447_v17 = vld [vmem:[%s29687_s0 + $0x48] sm:$0xff]  }
   0x6   :  { %v21448_v18 = vld [vmem:[%s29687_s0 + $0x50] sm:$0xff]   ;;  %v21449_v19 = vld [vmem:[%s29687_s0 + $0x58] sm:$0xff]   ;;  %v21450_v20 = vld [vmem:[%s29687_s0 + $0x60] sm:$0xff]  }
   0x7   :  { %20229 = vmatpush3.bf16.msra.mxu0 %v21434_v1  ;;  %v21451_v21 = vld [vmem:[%s29687_s0 + $0x68] sm:$0xff]   ;;  %v21452_v22 = vld [vmem:[%s29687_s0 + $0x70] sm:$0xff]   ;;  %v21453_v23 = vld [vmem:[%s29687_s0 + $0x78] sm:$0xff]  }
   0x8   :  { %20230 = vmatprep.subr.bf16.mxu0 %v21435_v2  ;;  %v21454_v24 = vld [vmem:[%s29687_s0 + $0x80] sm:$0xff]   ;;  %v21455_v25 = vld [vmem:[%s29687_s0 + $0x88] sm:$0xff]   ;;  %v21456_v26 = vld [vmem:[%s29687_s0 + $0x90] sm:$0xff]  }
   0x9   :  { %v21457_v27 = vld [vmem:[%s29687_s0 + $0x98] sm:$0xff]   ;;  %v21458_v28 = vld [vmem:[%s29687_s0 + $0xa0] sm:$0xff]   ;;  %v21459_v29 = vld [vmem:[%s29687_s0 + $0xa8] sm:$0xff]  }
   0xa   :  { %v21460_v30 = vld [vmem:[%s29687_s0 + $0xb0] sm:$0xff]   ;;  %v21461_v31 = vld [vmem:[%s29687_s0 + $0xb8] sm:$0xff]   ;;  %v21462_v32 = vld [vmem:[%s29687_s0 + $0xc0] sm:$0xff]  }
   0xb   :  { %20231 = vmatpush3.bf16.msra.mxu0 %v21435_v2  ;;  %v21463_v33 = vld [vmem:[%s29687_s0 + $0xc8] sm:$0xff]   ;;  %v21464_v34 = vld [vmem:[%s29687_s0 + $0xd0] sm:$0xff]   ;;  %v21465_v35 = vld [vmem:[%s29687_s0 + $0xd8] sm:$0xff]  }
   0xc   :  { %20232 = vmatprep.subr.bf16.mxu0 %v21436_v5  ;;  %v21466_v36 = vld [vmem:[%s29687_s0 + $0xe0] sm:$0xff]   ;;  %v21467_v37 = vld [vmem:[%s29687_s0 + $0xe8] sm:$0xff]   ;;  %v21468_v38 = vld [vmem:[%s29687_s0 + $0xf0] sm:$0xff]  }
   0xd   :  { %v21469_v39 = vld [vmem:[%s29687_s0 + $0xf8] sm:$0xff]   ;;  %v21470_v40 = vld [vmem:[%s29687_s0 + $0x100] sm:$0xff]   ;;  %v21495_v42 = vld [vmem:[%s29688_s2 + $0x28] sm:$0xff]  }
   0xe   :  { %v21494_v41 = vld [vmem:[%s29688_s2 + $0x20] sm:$0xff]   ;;  %v21471_v43 = vld [vmem:[%s29687_s0 + $0x108] sm:$0xff]   ;;  %v21472_v44 = vld [vmem:[%s29687_s0 + $0x110] sm:$0xff]  }
   0xf   :  { %20233 = vmatpush3.bf16.msra.mxu0 %v21436_v5  ;;  %20492 = vmatprep.subr.bf16.mxu1 %v21494_v41  ;;  %v21498_v45 = vld [vmem:[%s29688_s2 + $0x30] sm:$0xff]   ;;  %v21499_v46 = vld [vmem:[%s29688_s2 + $0x38] sm:$0xff]   ;;  %v21474_v48 = vld [vmem:[%s29687_s0 + $0x120] sm:$0xff]  }
  0x10   :  { %20234 = vmatprep.subr.bf16.mxu0 %v1374_v8  ;;  %20493 = vmatpush3.bf16.msra.mxu1 %v21494_v41  ;;  %v21473_v47 = vld [vmem:[%s29687_s0 + $0x118] sm:$0xff]   ;;  %v21475_v49 = vld [vmem:[%s29687_s0 + $0x128] sm:$0xff]   ;;  %v21476_v50 = vld [vmem:[%s29687_s0 + $0x130] sm:$0xff]  }
  0x11   :  { %20494 = vmatprep.subr.bf16.mxu1 %v21495_v42  ;;  %v21477_v51 = vld [vmem:[%s29687_s0 + $0x138] sm:$0xff]   ;;  %v23879_v52 = vld [vmem:[%s29688_s2] sm:$0xff]   ;;  %v21479_v54 = vld [vmem:[%s29687_s0 + $0x148] sm:$0xff]  }
  0x12   :  { %v21478_v53 = vld [vmem:[%s29687_s0 + $0x140] sm:$0xff]   ;;  %v21480_v55 = vld [vmem:[%s29687_s0 + $0x150] sm:$0xff]   ;;  %v21481_v56 = vld [vmem:[%s29687_s0 + $0x158] sm:$0xff]  }
  0x13   :  { %20235 = vmatpush3.bf16.msra.mxu0 %v1374_v8  ;;  %v21482_v57 = vld [vmem:[%s29687_s0 + $0x160] sm:$0xff]   ;;  %v21483_v58 = vld [vmem:[%s29687_s0 + $0x168] sm:$0xff]   ;;  %v21484_v59 = vld [vmem:[%s29687_s0 + $0x170] sm:$0xff]  }
  0x14   :  { %20495 = vmatpush3.bf16.msra.mxu1 %v21495_v42  ;;  %v21485_v60 = vld [vmem:[%s29687_s0 + $0x178] sm:$0xff]   ;;  %v21486_v61 = vld [vmem:[%s29687_s0 + $0x180] sm:$0xff]   ;;  %v21487_v62 = vld [vmem:[%s29687_s0 + $0x188] sm:$0xff]  }
  0x15   :  { %20496 = vmatprep.subr.bf16.mxu1 %v21498_v45  ;;  %v21488_v63 = vld [vmem:[%s29687_s0 + $0x190] sm:$0xff]   ;;  %v21489_v0 = vld [vmem:[%s29687_s0 + $0x198] sm:$0xff]   ;;  %v21490_v1 = vld [vmem:[%s29687_s0 + $0x1a0] sm:$0xff]  }
  0x16   :  { %20237 = vmatmul.mubr.msk.bf16.vlgmr.msra.gmra.mrb[0].mxu0 %vm985_vm0, %v21439_v9  ;;  %v21491_v2 = vld [vmem:[%s29687_s0 + $0x1a8] sm:$0xff]   ;;  %v21492_v3 = vld [vmem:[%s29687_s0 + $0x1b0] sm:$0xff]   ;;  %v21493_v8 = vld [vmem:[%s29687_s0 + $0x1b8] sm:$0xff]  }
  0x17   :  { %20240 = vmatprep.mubr.msk.bf16.mxu0 %vm985_vm0, %v21440_v10 }
  0x18   :  { %20497 = vmatpush3.bf16.msra.mxu1 %v21498_v45 }
  0x19   :  { %20498 = vmatprep.subr.bf16.mxu1 %v21499_v46 }
  0x1c   :  { %20499 = vmatpush3.bf16.msra.mxu1 %v21499_v46 }
  0x1d   :  { %20516 = vmatprep.subr.bf16.mxu1 %v23879_v52 }
  0x1e   :  { %20241 = vmatmul.mubr.msk.bf16.gmra.mrb[4].mxu0 %vm985_vm0, %v21441_v11  ;;  %v21496_v11 = vld [vmem:[%s29687_s0 + $0x1c0] sm:$0xff]  }
  0x1f   :  { %20244 = vmatprep.mubr.msk.bf16.mxu0 %vm985_vm0, %v21442_v12 }
  0x26   :  { %20245 = vmatmul.mubr.msk.bf16.gmra.mrb[8].mxu0 %vm985_vm0, %v21443_v13 }
  0x27   :  { %20248 = vmatprep.mubr.msk.bf16.mxu0 %vm985_vm0, %v21444_v14 }
  0x2e   :  { %20249 = vmatmul.mubr.msk.bf16.gmra.mrb[12].mxu0 %vm985_vm0, %v21445_v15 }
  0x2f   :  { %20252 = vmatprep.mubr.msk.bf16.mxu0 %vm985_vm0, %v21446_v16 }
  0x36   :  { %20253 = vmatmul.mubr.msk.bf16.gmra.mrb[16].mxu0 %vm985_vm0, %v21447_v17 }
  0x37   :  { %20256 = vmatprep.mubr.msk.bf16.mxu0 %vm985_vm0, %v21448_v18 }
  0x3e   :  { %20257 = vmatmul.mubr.msk.bf16.gmra.mrb[20].mxu0 %vm985_vm0, %v21449_v19 }
  0x3f   :  { %20260 = vmatprep.mubr.msk.bf16.mxu0 %vm985_vm0, %v21450_v20 }
  0x46   :  { %20261 = vmatmul.mubr.msk.bf16.gmra.mrb[24].mxu0 %vm985_vm0, %v21451_v21 }
  0x47   :  { %20264 = vmatprep.mubr.msk.bf16.mxu0 %vm985_vm0, %v21452_v22  ;;  %v21497_v22 = vld [vmem:[%s29687_s0 + $0x1c8] sm:$0xff]  }
  0x4e   :  { %20265 = vmatmul.mubr.msk.bf16.gmra.mrb[28].mxu0 %vm985_vm0, %v21453_v23 }
  0x4f   :  { %20268 = vmatprep.mubr.msk.bf16.mxu0 %vm985_vm0, %v21454_v24 }
  0x56   :  { %20269 = vmatmul.mubr.msk.bf16.gmra.mrb[32].mxu0 %vm985_vm0, %v21455_v25  ;;  %v21500_v25 = vld [vmem:[%s29687_s0 + $0x1d0] sm:$0xff]  }
  0x57   :  { %20272 = vmatprep.mubr.msk.bf16.mxu0 %vm985_vm0, %v21456_v26 }
  0x5e   :  { %20273 = vmatmul.mubr.msk.bf16.gmra.mrb[36].mxu0 %vm985_vm0, %v21457_v27 }
  0x5f   :  { %20276 = vmatprep.mubr.msk.bf16.mxu0 %vm985_vm0, %v21458_v28 }
  0x66   :  { %20277 = vmatmul.mubr.msk.bf16.gmra.mrb[40].mxu0 %vm985_vm0, %v21459_v29 }
  0x67   :  { %20280 = vmatprep.mubr.msk.bf16.mxu0 %vm985_vm0, %v21460_v30 }
  0x6e   :  { %20281 = vmatmul.mubr.msk.bf16.gmra.mrb[44].mxu0 %vm985_vm0, %v21461_v31 }
  0x6f   :  { %20284 = vmatprep.mubr.msk.bf16.mxu0 %vm985_vm0, %v21462_v32 }
  0x76   :  { %20285 = vmatmul.mubr.msk.bf16.gmra.mrb[48].mxu0 %vm985_vm0, %v21463_v33 }
  0x77   :  { %20288 = vmatprep.mubr.msk.bf16.mxu0 %vm985_vm0, %v21464_v34 }
  0x7e   :  { %20289 = vmatmul.mubr.msk.bf16.gmra.mrb[52].mxu0 %vm985_vm0, %v21465_v35 }
  0x7f   :  { %20292 = vmatprep.mubr.msk.bf16.mxu0 %vm985_vm0, %v21466_v36  ;;  %v21501_v36 = vld [vmem:[%s29687_s0 + $0x1d8] sm:$0xff]  }
  0x86   :  { %20293 = vmatmul.mubr.msk.bf16.gmra.mrb[56].mxu0 %vm985_vm0, %v21467_v37 }
  0x87   :  { %20296 = vmatprep.mubr.msk.bf16.mxu0 %vm985_vm0, %v21468_v38 }
  0x8e   :  { %20297 = vmatmul.mubr.msk.bf16.gmra.mrb[60].mxu0 %vm985_vm0, %v21469_v39  ;;  %v21502_v39 = vld [vmem:[%s29687_s0 + $0x1e0] sm:$0xff]  }
  0x8f   :  { %20300 = vmatprep.mubr.msk.bf16.mxu0 %vm985_vm0, %v21470_v40 }
  0x96   :  { %20301 = vmatmul.mubr.msk.bf16.gmra.mrb[64].mxu0 %vm985_vm0, %v21471_v43 }
  0x97   :  { %20304 = vmatprep.mubr.msk.bf16.mxu0 %vm985_vm0, %v21472_v44 }
  0x9e   :  { %20305 = vmatmul.mubr.msk.bf16.gmra.mrb[68].mxu0 %vm985_vm0, %v21473_v47 }
  0x9f   :  { %20308 = vmatprep.mubr.msk.bf16.mxu0 %vm985_vm0, %v21474_v48 }
  0xa6   :  { %20309 = vmatmul.mubr.msk.bf16.gmra.mrb[72].mxu0 %vm985_vm0, %v21475_v49 }
  0xa7   :  { %20312 = vmatprep.mubr.msk.bf16.mxu0 %vm985_vm0, %v21476_v50  ;;  %v21503_v50 = vld [vmem:[%s29687_s0 + $0x1e8] sm:$0xff]  }
  0xae   :  { %20313 = vmatmul.mubr.msk.bf16.gmra.mrb[76].mxu0 %vm985_vm0, %v21477_v51 }
  0xaf   :  { %20316 = vmatprep.mubr.msk.bf16.mxu0 %vm985_vm0, %v21478_v53 }
  0xb6   :  { %20317 = vmatmul.mubr.msk.bf16.gmra.mrb[80].mxu0 %vm985_vm0, %v21479_v54  ;;  %v21504_v54 = vld [vmem:[%s29687_s0 + $0x1f0] sm:$0xff]  }
  0xb7   :  { %20320 = vmatprep.mubr.msk.bf16.mxu0 %vm985_vm0, %v21480_v55 }
  0xbe   :  { %20321 = vmatmul.mubr.msk.bf16.gmra.mrb[84].mxu0 %vm985_vm0, %v21481_v56 }
  0xbf   :  { %20324 = vmatprep.mubr.msk.bf16.mxu0 %vm985_vm0, %v21482_v57 }
  0xc6   :  { %20325 = vmatmul.mubr.msk.bf16.gmra.mrb[88].mxu0 %vm985_vm0, %v21483_v58 }
  0xc7   :  { %20328 = vmatprep.mubr.msk.bf16.mxu0 %vm985_vm0, %v21484_v59 }
  0xce   :  { %20329 = vmatmul.mubr.msk.bf16.gmra.mrb[92].mxu0 %vm985_vm0, %v21485_v60 }
  0xcf   :  { %20332 = vmatprep.mubr.msk.bf16.mxu0 %vm985_vm0, %v21486_v61 }
  0xd6   :  { %20333 = vmatmul.mubr.msk.bf16.gmra.mrb[96].mxu0 %vm985_vm0, %v21487_v62 }
  0xd7   :  { %20336 = vmatprep.mubr.msk.bf16.mxu0 %vm985_vm0, %v21488_v63 }
  0xde   :  { %20337 = vmatmul.mubr.msk.bf16.gmra.mrb[100].mxu0 %vm985_vm0, %v21489_v0 }
  0xdf   :  { %20340 = vmatprep.mubr.msk.bf16.mxu0 %vm985_vm0, %v21490_v1  ;;  %v21505_v1 = vld [vmem:[%s29687_s0 + $0x1f8] sm:$0xff]  }
  0xe6   :  { %20341 = vmatmul.mubr.msk.bf16.gmra.mrb[104].mxu0 %vm985_vm0, %v21491_v2 }
  0xe7   :  { %20344 = vmatprep.mubr.msk.bf16.mxu0 %vm985_vm0, %v21492_v3 }
  0xe9   :  { %v20238_v4 = vpop.f32.mrb[0].mxu0 }
  0xea   :  { %vm2435_vm2 = vcmp.gt.f32.partialorder %v20238_v4, 0.0  ;;  %v2691_v5 = vmul.f32 0.2, %v20238_v4  ;;  %v1410_v7 = vpop.f32.mrb[1].mxu0 }
  0xeb   :  { %vm2433_vm4 = vcmp.gt.f32.partialorder %v1410_v7, 0.0  ;;  %v2689_v9 = vmul.f32 0.2, %v1410_v7  ;;  %v20239_v10 = vpop.f32.mrb[2].mxu0 }
  0xec   :  { %v2947_v12 = vsel %vm2435_vm2, %v20238_v4, %v2691_v5  ;;  %vm2436_vm5 = vcmp.gt.f32.partialorder %v20239_v10, 0.0  ;;  %v2692_v13 = vmul.f32 0.2, %v20239_v10  ;;  %v1413_v14 = vpop.f32.mrb[3].mxu0  ;;  %v21508_v4 = vld [vmem:[%s29687_s0 + $0x200] sm:$0xff]  }
  0xed   :  { %3204 = vst.msk [vmem:[#allocation2 + $0x10] sm:$0xff] %vm3201_vm3, %v2947_v12  ;;  %v2945_v15 = vsel %vm2433_vm4, %v1410_v7, %v2689_v9  ;;  %vm2434_vm6 = vcmp.gt.f32.partialorder %v1413_v14, 0.0  ;;  %v2690_v16 = vmul.f32 0.2, %v1413_v14 }
  0xee   :  { %3202 = vst.msk [vmem:[#allocation2] sm:$0xff] %vm3201_vm3, %v2945_v15  ;;  %v2948_v17 = vsel %vm2436_vm5, %v20239_v10, %v2692_v13  ;;  %20345 = vmatmul.mubr.msk.bf16.gmra.mrb[108].mxu0 %vm985_vm0, %v21493_v8 }
  0xef   :  { %3205 = vst.msk [vmem:[#allocation2 + $0x18] sm:$0xff] %vm3201_vm3, %v2948_v17  ;;  %v2946_v18 = vsel %vm2434_vm6, %v1413_v14, %v2690_v16  ;;  %20348 = vmatprep.mubr.msk.bf16.mxu0 %vm985_vm0, %v21496_v11  ;;  %v21509_v16 = vld [vmem:[%s29687_s0 + $0x208] sm:$0xff]  }
  0xf0   :  { %3203 = vst.msk [vmem:[#allocation2 + $0x8] sm:$0xff] %vm3201_vm3, %v2946_v18 }
  0xf1   :  { %v20242_v19 = vpop.f32.mrb[4].mxu0 }
  0xf2   :  { %vm2439_vm7 = vcmp.gt.f32.partialorder %v20242_v19, 0.0  ;;  %v2695_v20 = vmul.f32 0.2, %v20242_v19  ;;  %v1426_v21 = vpop.f32.mrb[5].mxu0 }
  0xf3   :  { %vm2437_vm8 = vcmp.gt.f32.partialorder %v1426_v21, 0.0  ;;  %v2693_v23 = vmul.f32 0.2, %v1426_v21  ;;  %v20243_v24 = vpop.f32.mrb[6].mxu0 }
  0xf4   :  { %v2951_v26 = vsel %vm2439_vm7, %v20242_v19, %v2695_v20  ;;  %vm2440_vm9 = vcmp.gt.f32.partialorder %v20243_v24, 0.0  ;;  %v2696_v27 = vmul.f32 0.2, %v20243_v24  ;;  %v1429_v28 = vpop.f32.mrb[7].mxu0  ;;  %v21512_v19 = vld [vmem:[%s29687_s0 + $0x210] sm:$0xff]  }
  0xf5   :  { %3208 = vst.msk [vmem:[#allocation2 + $0x30] sm:$0xff] %vm3201_vm3, %v2951_v26  ;;  %v2949_v29 = vsel %vm2437_vm8, %v1426_v21, %v2693_v23  ;;  %vm2438_vm10 = vcmp.gt.f32.partialorder %v1429_v28, 0.0  ;;  %v2694_v30 = vmul.f32 0.2, %v1429_v28 }
  0xf6   :  { %3206 = vst.msk [vmem:[#allocation2 + $0x20] sm:$0xff] %vm3201_vm3, %v2949_v29  ;;  %v2952_v31 = vsel %vm2440_vm9, %v20243_v24, %v2696_v27  ;;  %20349 = vmatmul.mubr.msk.bf16.gmra.mrb[112].mxu0 %vm985_vm0, %v21497_v22 }
  0xf7   :  { %3209 = vst.msk [vmem:[#allocation2 + $0x38] sm:$0xff] %vm3201_vm3, %v2952_v31  ;;  %v2950_v32 = vsel %vm2438_vm10, %v1429_v28, %v2694_v30  ;;  %20352 = vmatprep.mubr.msk.bf16.mxu0 %vm985_vm0, %v21500_v25 }
  0xf8   :  { %3207 = vst.msk [vmem:[#allocation2 + $0x28] sm:$0xff] %vm3201_vm3, %v2950_v32 }
  0xf9   :  { %v20246_v33 = vpop.f32.mrb[8].mxu0 }
  0xfa   :  { %vm2443_vm11 = vcmp.gt.f32.partialorder %v20246_v33, 0.0  ;;  %v2699_v34 = vmul.f32 0.2, %v20246_v33  ;;  %v1442_v35 = vpop.f32.mrb[9].mxu0 }
  0xfb   :  { %vm2441_vm12 = vcmp.gt.f32.partialorder %v1442_v35, 0.0  ;;  %v2697_v37 = vmul.f32 0.2, %v1442_v35  ;;  %v20247_v38 = vpop.f32.mrb[10].mxu0 }
  0xfc   :  { %v2955_v40 = vsel %vm2443_vm11, %v20246_v33, %v2699_v34  ;;  %vm2444_vm13 = vcmp.gt.f32.partialorder %v20247_v38, 0.0  ;;  %v2700_v41 = vmul.f32 0.2, %v20247_v38  ;;  %v1445_v42 = vpop.f32.mrb[11].mxu0  ;;  %v21507_v34 = vld [vmem:[%s29688_s2 + $0x8] sm:$0xff]  }
  0xfd   :  { %3212 = vst.msk [vmem:[#allocation2 + $0x50] sm:$0xff] %vm3201_vm3, %v2955_v40  ;;  %v2953_v43 = vsel %vm2441_vm12, %v1442_v35, %v2697_v37  ;;  %vm2442_vm14 = vcmp.gt.f32.partialorder %v1445_v42, 0.0  ;;  %v2698_v44 = vmul.f32 0.2, %v1445_v42  ;;  %v21513_v37 = vld [vmem:[%s29687_s0 + $0x218] sm:$0xff]   ;;  %v21514_v40 = vld [vmem:[%s29687_s0 + $0x220] sm:$0xff]  }
  0xfe   :  { %3210 = vst.msk [vmem:[#allocation2 + $0x40] sm:$0xff] %vm3201_vm3, %v2953_v43  ;;  %v2956_v45 = vsel %vm2444_vm13, %v20247_v38, %v2700_v41  ;;  %20353 = vmatmul.mubr.msk.bf16.gmra.mrb[116].mxu0 %vm985_vm0, %v21501_v36 }
  0xff   :  { %3213 = vst.msk [vmem:[#allocation2 + $0x58] sm:$0xff] %vm3201_vm3, %v2956_v45  ;;  %v2954_v46 = vsel %vm2442_vm14, %v1445_v42, %v2698_v44  ;;  %20356 = vmatprep.mubr.msk.bf16.mxu0 %vm985_vm0, %v21502_v39 }
 0x100   :  { %3211 = vst.msk [vmem:[#allocation2 + $0x48] sm:$0xff] %vm3201_vm3, %v2954_v46  ;;  %v21510_v46 = vld [vmem:[%s29688_s2 + $0x10] sm:$0xff]  }
 0x101   :  { %v20250_v47 = vpop.f32.mrb[12].mxu0 }
 0x102   :  { %vm2447_vm15 = vcmp.gt.f32.partialorder %v20250_v47, 0.0  ;;  %v2703_v48 = vmul.f32 0.2, %v20250_v47  ;;  %v1458_v49 = vpop.f32.mrb[13].mxu0 }
 0x103   :  { %vm2445_vm1 = vcmp.gt.f32.partialorder %v1458_v49, 0.0  ;;  %v2701_v51 = vmul.f32 0.2, %v1458_v49  ;;  %v20251_v53 = vpop.f32.mrb[14].mxu0 }
 0x104   :  { %v2959_v55 = vsel %vm2447_vm15, %v20250_v47, %v2703_v48  ;;  %vm2448_vm2 = vcmp.gt.f32.partialorder %v20251_v53, 0.0  ;;  %v2704_v56 = vmul.f32 0.2, %v20251_v53  ;;  %v1461_v57 = vpop.f32.mrb[15].mxu0 }
 0x105   :  { %3216 = vst.msk [vmem:[#allocation2 + $0x70] sm:$0xff] %vm3201_vm3, %v2959_v55  ;;  %v2957_v58 = vsel %vm2445_vm1, %v1458_v49, %v2701_v51  ;;  %vm2446_vm4 = vcmp.gt.f32.partialorder %v1461_v57, 0.0  ;;  %v2702_v59 = vmul.f32 0.2, %v1461_v57 }
 0x106   :  { %3214 = vst.msk [vmem:[#allocation2 + $0x60] sm:$0xff] %vm3201_vm3, %v2957_v58  ;;  %v2960_v60 = vsel %vm2448_vm2, %v20251_v53, %v2704_v56  ;;  %20357 = vmatmul.mubr.msk.bf16.gmra.mrb[120].mxu0 %vm985_vm0, %v21503_v50  ;;  %v21511_v56 = vld [vmem:[%s29688_s2 + $0x18] sm:$0xff]  }
 0x107   :  { %3217 = vst.msk [vmem:[#allocation2 + $0x78] sm:$0xff] %vm3201_vm3, %v2960_v60  ;;  %v2958_v61 = vsel %vm2446_vm4, %v1461_v57, %v2702_v59  ;;  %20360 = vmatprep.mubr.msk.bf16.mxu0 %vm985_vm0, %v21504_v54  ;;  %v21515_v59 = vld [vmem:[%s29687_s0 + $0x228] sm:$0xff]  }
 0x108   :  { %3215 = vst.msk [vmem:[#allocation2 + $0x68] sm:$0xff] %vm3201_vm3, %v2958_v61 }
 0x109   :  { %v20254_v62 = vpop.f32.mrb[16].mxu0 }
 0x10a   :  { %vm2451_vm5 = vcmp.gt.f32.partialorder %v20254_v62, 0.0  ;;  %v2707_v63 = vmul.f32 0.2, %v20254_v62  ;;  %v1474_v0 = vpop.f32.mrb[17].mxu0 }
 0x10b   :  { %vm2449_vm6 = vcmp.gt.f32.partialorder %v1474_v0, 0.0  ;;  %v2705_v2 = vmul.f32 0.2, %v1474_v0  ;;  %v20255_v3 = vpop.f32.mrb[18].mxu0 }
 0x10c   :  { %v2963_v5 = vsel %vm2451_vm5, %v20254_v62, %v2707_v63  ;;  %vm2452_vm7 = vcmp.gt.f32.partialorder %v20255_v3, 0.0  ;;  %v2708_v7 = vmul.f32 0.2, %v20255_v3  ;;  %v1477_v8 = vpop.f32.mrb[19].mxu0  ;;  %v21516_v62 = vld [vmem:[%s29687_s0 + $0x230] sm:$0xff]  }
 0x10d   :  { %3220 = vst.msk [vmem:[#allocation2 + $0x90] sm:$0xff] %vm3201_vm3, %v2963_v5  ;;  %v2961_v9 = vsel %vm2449_vm6, %v1474_v0, %v2705_v2  ;;  %vm2450_vm8 = vcmp.gt.f32.partialorder %v1477_v8, 0.0  ;;  %v2706_v10 = vmul.f32 0.2, %v1477_v8 }
 0x10e   :  { %3218 = vst.msk [vmem:[#allocation2 + $0x80] sm:$0xff] %vm3201_vm3, %v2961_v9  ;;  %v2964_v11 = vsel %vm2452_vm7, %v20255_v3, %v2708_v7  ;;  %20361 = vmatmul.mubr.msk.bf16.gmra.mrb[124].mxu0 %vm985_vm0, %v21505_v1 }
 0x10f   :  { %3221 = vst.msk [vmem:[#allocation2 + $0x98] sm:$0xff] %vm3201_vm3, %v2964_v11  ;;  %v2962_v12 = vsel %vm2450_vm8, %v1477_v8, %v2706_v10  ;;  %20364 = vmatprep.mubr.msk.bf16.mxu0 %vm985_vm0, %v21508_v4  ;;  %v24051_v4 = vld [vmem:[%s29688_s2 + $0x40] sm:$0xff]  }
 0x110   :  { %3219 = vst.msk [vmem:[#allocation2 + $0x88] sm:$0xff] %vm3201_vm3, %v2962_v12 }
 0x111   :  { %v20258_v13 = vpop.f32.mrb[20].mxu0 }
 0x112   :  { %vm2455_vm9 = vcmp.gt.f32.partialorder %v20258_v13, 0.0  ;;  %v2711_v14 = vmul.f32 0.2, %v20258_v13  ;;  %v1490_v15 = vpop.f32.mrb[21].mxu0 }
 0x113   :  { %vm2453_vm10 = vcmp.gt.f32.partialorder %v1490_v15, 0.0  ;;  %v2709_v17 = vmul.f32 0.2, %v1490_v15  ;;  %v20259_v18 = vpop.f32.mrb[22].mxu0 }
 0x114   :  { %v2967_v20 = vsel %vm2455_vm9, %v20258_v13, %v2711_v14  ;;  %vm2456_vm11 = vcmp.gt.f32.partialorder %v20259_v18, 0.0  ;;  %v2712_v21 = vmul.f32 0.2, %v20259_v18  ;;  %v1493_v22 = vpop.f32.mrb[23].mxu0  ;;  %v3492_v31 = vld [vmem:[#allocation2 + $0x90] sm:$0xff] }
 0x115   :  { %3224 = vst.msk [vmem:[#allocation2 + $0xb0] sm:$0xff] %vm3201_vm3, %v2967_v20  ;;  %v2965_v23 = vsel %vm2453_vm10, %v1490_v15, %v2709_v17  ;;  %vm2454_vm12 = vcmp.gt.f32.partialorder %v1493_v22, 0.0  ;;  %v2710_v24 = vmul.f32 0.2, %v1493_v22  ;;  %v3490_v28 = vld [vmem:[#allocation2 + $0x80] sm:$0xff]  ;;  %v21517_v17 = vld [vmem:[%s29687_s0 + $0x238] sm:$0xff]  }
 0x116   :  { %3222 = vst.msk [vmem:[#allocation2 + $0xa0] sm:$0xff] %vm3201_vm3, %v2965_v23  ;;  %v2968_v25 = vsel %vm2456_vm11, %v20259_v18, %v2712_v21  ;;  %v3493_v26 = vld [vmem:[#allocation2 + $0x98] sm:$0xff]  ;;  %20365 = vmatmul.mubr.msk.bf16.gmra.mrb[128].mxu0 %vm985_vm0, %v21509_v16  ;;  %v21520_v20 = vld [vmem:[%s29687_s0 + $0x240] sm:$0xff]  }
 0x117   :  { %3225 = vst.msk [vmem:[#allocation2 + $0xb8] sm:$0xff] %vm3201_vm3, %v2968_v25  ;;  %v2966_v27 = vsel %vm2454_vm12, %v1493_v22, %v2710_v24  ;;  %v3491_v29 = vld [vmem:[#allocation2 + $0x88] sm:$0xff]  ;;  %20368 = vmatprep.mubr.msk.bf16.mxu0 %vm985_vm0, %v21512_v19  ;;  %v3507_v33 = vpack.c.bf16 %v3493_v26, %v3492_v31 }
 0x118   :  { %3223 = vst.msk [vmem:[#allocation2 + $0xa8] sm:$0xff] %vm3201_vm3, %v2966_v27  ;;  %v3506_v30 = vpack.c.bf16 %v3491_v29, %v3490_v28 }
 0x119   :  { %v20262_v32 = vpop.f32.mrb[24].mxu0 }
 0x11a   :  { %vm2459_vm13 = vcmp.gt.f32.partialorder %v20262_v32, 0.0  ;;  %v2715_v35 = vmul.f32 0.2, %v20262_v32  ;;  %v1506_v36 = vpop.f32.mrb[25].mxu0  ;;  %20500 = vmatprep.mubr.msk.bf16.mxu1 %vm3201_vm3, %v3506_v30  ;;  %v3459_v30 = vld [vmem:[#allocation2 + $0x8] sm:$0xff] }
 0x11b   :  { %vm2457_vm14 = vcmp.gt.f32.partialorder %v1506_v36, 0.0  ;;  %v2713_v38 = vmul.f32 0.2, %v1506_v36  ;;  %v20263_v39 = vpop.f32.mrb[26].mxu0  ;;  %20501 = vmatmul.mubr.msk.bf16.vlgmr.msra.gmra.mrb[0].mxu1 %vm3201_vm3, %v3507_v33 }
 0x11c   :  { %v2971_v41 = vsel %vm2459_vm13, %v20262_v32, %v2715_v35  ;;  %vm2460_vm15 = vcmp.gt.f32.partialorder %v20263_v39, 0.0  ;;  %v2716_v42 = vmul.f32 0.2, %v20263_v39  ;;  %v1509_v43 = vpop.f32.mrb[27].mxu0  ;;  %20517 = vmatpush3.bf16.msra.mxu1 %v23879_v52  ;;  %v3496_v53 = vld [vmem:[#allocation2 + $0xb0] sm:$0xff]  ;;  %v3458_v35 = vld [vmem:[#allocation2] sm:$0xff] }
 0x11d   :  { %3228 = vst.msk [vmem:[#allocation2 + $0xd0] sm:$0xff] %vm3201_vm3, %v2971_v41  ;;  %v2969_v44 = vsel %vm2457_vm14, %v1506_v36, %v2713_v38  ;;  %vm2458_vm1 = vcmp.gt.f32.partialorder %v1509_v43, 0.0  ;;  %v2714_v45 = vmul.f32 0.2, %v1509_v43  ;;  %20518 = vmatprep.subr.bf16.mxu1 %v21507_v34  ;;  %v3494_v52 = vld [vmem:[#allocation2 + $0xa0] sm:$0xff] }
 0x11e   :  { %3226 = vst.msk [vmem:[#allocation2 + $0xc0] sm:$0xff] %vm3201_vm3, %v2969_v44  ;;  %v2972_v47 = vsel %vm2460_vm15, %v20263_v39, %v2716_v42  ;;  %v3497_v48 = vld [vmem:[#allocation2 + $0xb8] sm:$0xff]  ;;  %20369 = vmatmul.mubr.msk.bf16.gmra.mrb[132].mxu0 %vm985_vm0, %v21513_v37  ;;  %v3474_v37 = vpack.c.bf16 %v3459_v30, %v3458_v35 }
 0x11f   :  { %3229 = vst.msk [vmem:[#allocation2 + $0xd8] sm:$0xff] %vm3201_vm3, %v2972_v47  ;;  %v2970_v49 = vsel %vm2458_vm1, %v1509_v43, %v2714_v45  ;;  %v3495_v50 = vld [vmem:[#allocation2 + $0xa8] sm:$0xff]  ;;  %20372 = vmatprep.mubr.msk.bf16.mxu0 %vm985_vm0, %v21514_v40  ;;  %v3509_v55 = vpack.c.bf16 %v3497_v48, %v3496_v53  ;;  %v21524_v43 = vld [vmem:[%s29687_s0 + $0x250] sm:$0xff]   ;;  %v3469_v30 = vld [vmem:[#allocation2 + $0x58] sm:$0xff] }
 0x120   :  { %3227 = vst.msk [vmem:[#allocation2 + $0xc8] sm:$0xff] %vm3201_vm3, %v2970_v49  ;;  %v3508_v51 = vpack.c.bf16 %v3495_v50, %v3494_v52  ;;  %20519 = vmatpush3.bf16.msra.mxu1 %v21507_v34  ;;  %v21521_v40 = vld [vmem:[%s29687_s0 + $0x248] sm:$0xff]   ;;  %v3461_v49 = vld [vmem:[#allocation2 + $0x18] sm:$0xff]  ;;  %v3460_v53 = vld [vmem:[#allocation2 + $0x10] sm:$0xff] }
 0x121   :  { %v20266_v54 = vpop.f32.mrb[28].mxu0  ;;  %20520 = vmatprep.subr.bf16.mxu1 %v21510_v46  ;;  %v3463_v50 = vld [vmem:[#allocation2 + $0x28] sm:$0xff] }
 0x122   :  { %vm2463_vm2 = vcmp.gt.f32.partialorder %v20266_v54, 0.0  ;;  %v2719_v57 = vmul.f32 0.2, %v20266_v54  ;;  %v1522_v58 = vpop.f32.mrb[29].mxu0  ;;  %20504 = vmatprep.mubr.msk.bf16.mxu1 %vm3201_vm3, %v3508_v51 }
 0x123   :  { %vm2461_vm4 = vcmp.gt.f32.partialorder %v1522_v58, 0.0  ;;  %v2717_v60 = vmul.f32 0.2, %v1522_v58  ;;  %v20267_v61 = vpop.f32.mrb[30].mxu0  ;;  %20505 = vmatmul.mubr.msk.bf16.gmra.mrb[4].mxu1 %vm3201_vm3, %v3509_v55  ;;  %v3462_v55 = vld [vmem:[#allocation2 + $0x20] sm:$0xff] }
 0x124   :  { %v2975_v63 = vsel %vm2463_vm2, %v20266_v54, %v2719_v57  ;;  %vm2464_vm5 = vcmp.gt.f32.partialorder %v20267_v61, 0.0  ;;  %v2720_v0 = vmul.f32 0.2, %v20267_v61  ;;  %v1525_v1 = vpop.f32.mrb[31].mxu0  ;;  %20521 = vmatpush3.bf16.msra.mxu1 %v21510_v46  ;;  %v3500_v12 = vld [vmem:[#allocation2 + $0xd0] sm:$0xff]  ;;  %v3475_v54 = vpack.c.bf16 %v3461_v49, %v3460_v53 }
 0x125   :  { %3232 = vst.msk [vmem:[#allocation2 + $0xf0] sm:$0xff] %vm3201_vm3, %v2975_v63  ;;  %v2973_v2 = vsel %vm2461_vm4, %v1522_v58, %v2717_v60  ;;  %vm2462_vm6 = vcmp.gt.f32.partialorder %v1525_v1, 0.0  ;;  %v2718_v3 = vmul.f32 0.2, %v1525_v1  ;;  %20522 = vmatprep.subr.bf16.mxu1 %v21511_v56  ;;  %v3498_v9 = vld [vmem:[#allocation2 + $0xc0] sm:$0xff]  ;;  %v3476_v58 = vpack.c.bf16 %v3463_v50, %v3462_v55  ;;  %v3472_v55 = vld [vmem:[#allocation2 + $0x70] sm:$0xff] }
 0x126   :  { %3230 = vst.msk [vmem:[#allocation2 + $0xe0] sm:$0xff] %vm3201_vm3, %v2973_v2  ;;  %v2976_v5 = vsel %vm2464_vm5, %v20267_v61, %v2720_v0  ;;  %v3501_v7 = vld [vmem:[#allocation2 + $0xd8] sm:$0xff]  ;;  %20373 = vmatmul.mubr.msk.bf16.gmra.mrb[136].mxu0 %vm985_vm0, %v21515_v59  ;;  %v21526_v0 = vld [vmem:[%s29687_s0 + $0x260] sm:$0xff]  }
 0x127   :  { %3233 = vst.msk [vmem:[#allocation2 + $0xf8] sm:$0xff] %vm3201_vm3, %v2976_v5  ;;  %v2974_v8 = vsel %vm2462_vm6, %v1525_v1, %v2718_v3  ;;  %v3499_v10 = vld [vmem:[#allocation2 + $0xc8] sm:$0xff]  ;;  %20376 = vmatprep.mubr.msk.bf16.mxu0 %vm985_vm0, %v21516_v62  ;;  %v3511_v13 = vpack.c.bf16 %v3501_v7, %v3500_v12  ;;  %v21525_v61 = vld [vmem:[%s29687_s0 + $0x258] sm:$0xff]   ;;  %v21522_v5 = vld [vmem:[%s29688_s2 + $0x50] sm:$0xff]  }
 0x128   :  { %3231 = vst.msk [vmem:[#allocation2 + $0xe8] sm:$0xff] %vm3201_vm3, %v2974_v8  ;;  %v3510_v11 = vpack.c.bf16 %v3499_v10, %v3498_v9  ;;  %20523 = vmatpush3.bf16.msra.mxu1 %v21511_v56  ;;  %v21519_v56 = vld [vmem:[%s29688_s2 + $0x48] sm:$0xff]   ;;  %v3465_v9 = vld [vmem:[#allocation2 + $0x38] sm:$0xff]  ;;  %v3464_v12 = vld [vmem:[#allocation2 + $0x30] sm:$0xff] }
 0x129   :  { %v20270_v14 = vpop.f32.mrb[32].mxu0  ;;  %20540 = vmatprep.subr.bf16.mxu1 %v24051_v4 }
 0x12a   :  { %20508 = vmatprep.mubr.msk.bf16.mxu1 %vm3201_vm3, %v3510_v11  ;;  %vm2467_vm7 = vcmp.gt.f32.partialorder %v20270_v14, 0.0  ;;  %v2723_v15 = vmul.f32 0.2, %v20270_v14  ;;  %v1538_v16 = vpop.f32.mrb[33].mxu0 }
 0x12b   :  { %20509 = vmatmul.mubr.msk.bf16.gmra.mrb[8].mxu1 %vm3201_vm3, %v3511_v13  ;;  %vm2465_vm8 = vcmp.gt.f32.partialorder %v1538_v16, 0.0  ;;  %v2721_v18 = vmul.f32 0.2, %v1538_v16  ;;  %v20271_v19 = vpop.f32.mrb[34].mxu0  ;;  %v3477_v13 = vpack.c.bf16 %v3465_v9, %v3464_v12 }
 0x12c   :  { %v2979_v21 = vsel %vm2467_vm7, %v20270_v14, %v2723_v15  ;;  %vm2468_vm9 = vcmp.gt.f32.partialorder %v20271_v19, 0.0  ;;  %v2724_v22 = vmul.f32 0.2, %v20271_v19  ;;  %v1541_v23 = vpop.f32.mrb[35].mxu0  ;;  %v3504_v33 = vld [vmem:[#allocation2 + $0xf0] sm:$0xff]  ;;  %v3466_v14 = vld [vmem:[#allocation2 + $0x40] sm:$0xff] }
 0x12d   :  { %3236 = vst.msk [vmem:[#allocation2 + $0x110] sm:$0xff] %vm3201_vm3, %v2979_v21  ;;  %v2977_v24 = vsel %vm2465_vm8, %v1538_v16, %v2721_v18  ;;  %vm2466_vm10 = vcmp.gt.f32.partialorder %v1541_v23, 0.0  ;;  %v2722_v25 = vmul.f32 0.2, %v1541_v23  ;;  %v3502_v28 = vld [vmem:[#allocation2 + $0xe0] sm:$0xff]  ;;  %v21523_v15 = vld [vmem:[%s29688_s2 + $0x58] sm:$0xff]  }
 0x12e   :  { %v3505_v26 = vld [vmem:[#allocation2 + $0xf8] sm:$0xff]  ;;  %3234 = vst.msk [vmem:[#allocation2 + $0x100] sm:$0xff] %vm3201_vm3, %v2977_v24  ;;  %v2980_v27 = vsel %vm2468_vm9, %v20271_v19, %v2724_v22  ;;  %20377 = vmatmul.mubr.msk.bf16.gmra.mrb[140].mxu0 %vm985_vm0, %v21517_v17 }
 0x12f   :  { %v3503_v29 = vld [vmem:[#allocation2 + $0xe8] sm:$0xff]  ;;  %3237 = vst.msk [vmem:[#allocation2 + $0x118] sm:$0xff] %vm3201_vm3, %v2980_v27  ;;  %v2978_v31 = vsel %vm2466_vm10, %v1541_v23, %v2722_v25  ;;  %20380 = vmatprep.mubr.msk.bf16.mxu0 %vm985_vm0, %v21520_v20  ;;  %v3513_v34 = vpack.c.bf16 %v3505_v26, %v3504_v33  ;;  %v21528_v23 = vld [vmem:[%s29687_s0 + $0x270] sm:$0xff]  }
 0x130   :  { %v3512_v32 = vpack.c.bf16 %v3503_v29, %v3502_v28  ;;  %3235 = vst.msk [vmem:[#allocation2 + $0x108] sm:$0xff] %vm3201_vm3, %v2978_v31  ;;  %v21527_v20 = vld [vmem:[%s29687_s0 + $0x268] sm:$0xff]   ;;  %v24124_v29 = vld [vmem:[%s29688_s2 + $0x60] sm:$0xff]  }
 0x131   :  { %v20274_v36 = vpop.f32.mrb[36].mxu0 }
 0x132   :  { %20512 = vmatprep.mubr.msk.bf16.mxu1 %vm3201_vm3, %v3512_v32  ;;  %vm2471_vm11 = vcmp.gt.f32.partialorder %v20274_v36, 0.0  ;;  %v2727_v38 = vmul.f32 0.2, %v20274_v36  ;;  %v1554_v39 = vpop.f32.mrb[37].mxu0  ;;  %v3471_v32 = vld [vmem:[#allocation2 + $0x68] sm:$0xff] }
 0x133   :  { %20513 = vmatmul.mubr.msk.bf16.gmra.mrb[12].mxu1 %vm3201_vm3, %v3513_v34  ;;  %vm2469_vm12 = vcmp.gt.f32.partialorder %v1554_v39, 0.0  ;;  %v2725_v41 = vmul.f32 0.2, %v1554_v39  ;;  %v20275_v42 = vpop.f32.mrb[38].mxu0  ;;  %v3468_v34 = vld [vmem:[#allocation2 + $0x50] sm:$0xff] }
 0x134   :  { %20524 = vmatprep.mubr.msk.bf16.mxu1 %vm3201_vm3, %v3474_v37  ;;  %v2983_v44 = vsel %vm2471_vm11, %v20274_v36, %v2727_v38  ;;  %vm2472_vm13 = vcmp.gt.f32.partialorder %v20275_v42, 0.0  ;;  %v2728_v45 = vmul.f32 0.2, %v20275_v42  ;;  %v1557_v46 = vpop.f32.mrb[39].mxu0  ;;  %v3479_v35 = vpack.c.bf16 %v3469_v30, %v3468_v34  ;;  %v3470_v36 = vld [vmem:[#allocation2 + $0x60] sm:$0xff] }
 0x135   :  { %3240 = vst.msk [vmem:[#allocation2 + $0x130] sm:$0xff] %vm3201_vm3, %v2983_v44  ;;  %v2981_v47 = vsel %vm2469_vm12, %v1554_v39, %v2725_v41  ;;  %vm2470_vm14 = vcmp.gt.f32.partialorder %v1557_v46, 0.0  ;;  %v2726_v48 = vmul.f32 0.2, %v1557_v46  ;;  %v3480_v38 = vpack.c.bf16 %v3471_v32, %v3470_v36  ;;  %v21529_v41 = vld [vmem:[%s29687_s0 + $0x278] sm:$0xff]   ;;  %v21532_v44 = vld [vmem:[%s29687_s0 + $0x280] sm:$0xff]  }
 0x136   :  { %3238 = vst.msk [vmem:[#allocation2 + $0x120] sm:$0xff] %vm3201_vm3, %v2981_v47  ;;  %v2984_v52 = vsel %vm2472_vm13, %v20275_v42, %v2728_v45  ;;  %20381 = vmatmul.mubr.msk.bf16.gmra.mrb[144].mxu0 %vm985_vm0, %v21521_v40 }
 0x137   :  { %3241 = vst.msk [vmem:[#allocation2 + $0x138] sm:$0xff] %vm3201_vm3, %v2984_v52  ;;  %v2982_v51 = vsel %vm2470_vm14, %v1557_v46, %v2726_v48  ;;  %20384 = vmatprep.mubr.msk.bf16.mxu0 %vm985_vm0, %v21524_v43  ;;  %v3812_v48 = vld [vmem:[#allocation2 + $0x100] sm:$0xff]  ;;  %v3813_v49 = vld [vmem:[#allocation2 + $0x108] sm:$0xff] }
 0x138   :  { %3239 = vst.msk [vmem:[#allocation2 + $0x128] sm:$0xff] %vm3201_vm3, %v2982_v51  ;;  %v3473_v51 = vld [vmem:[#allocation2 + $0x78] sm:$0xff] }
 0x139   :  { %v20278_v57 = vpop.f32.mrb[40].mxu0 }
 0x13a   :  { %vm2475_vm15 = vcmp.gt.f32.partialorder %v20278_v57, 0.0  ;;  %v2731_v59 = vmul.f32 0.2, %v20278_v57  ;;  %v1570_v60 = vpop.f32.mrb[41].mxu0 }
 0x13b   :  { %20525 = vmatmul.mubr.msk.bf16.vlgmr.msra.gmra.mrb[0].mxu1 %vm3201_vm3, %v3475_v54  ;;  %vm2473_vm1 = vcmp.gt.f32.partialorder %v1570_v60, 0.0  ;;  %v2729_v62 = vmul.f32 0.2, %v1570_v60  ;;  %v20279_v63 = vpop.f32.mrb[42].mxu0 }
 0x13c   :  { %20528 = vmatprep.mubr.msk.bf16.mxu1 %vm3201_vm3, %v3476_v58  ;;  %20541 = vmatpush3.bf16.msra.mxu1 %v24051_v4  ;;  %v2987_v1 = vsel %vm2475_vm15, %v20278_v57, %v2731_v59  ;;  %vm2476_vm2 = vcmp.gt.f32.partialorder %v20279_v63, 0.0  ;;  %v2732_v2 = vmul.f32 0.2, %v20279_v63  ;;  %v1573_v3 = vpop.f32.mrb[43].mxu0  ;;  %v3467_v4 = vld [vmem:[#allocation2 + $0x48] sm:$0xff]  ;;  %v3481_v57 = vpack.c.bf16 %v3473_v51, %v3472_v55  ;;  %v3818_v32 = vld [vmem:[#allocation2 + $0x130] sm:$0xff] }
 0x13d   :  { %20542 = vmatprep.subr.bf16.mxu1 %v21519_v56  ;;  %3244 = vst.msk [vmem:[#allocation2 + $0x150] sm:$0xff] %vm3201_vm3, %v2987_v1  ;;  %v2985_v7 = vsel %vm2473_vm1, %v1570_v60, %v2729_v62  ;;  %vm2474_vm4 = vcmp.gt.f32.partialorder %v1573_v3, 0.0  ;;  %v2730_v8 = vmul.f32 0.2, %v1573_v3  ;;  %v3478_v17 = vpack.c.bf16 %v3467_v4, %v3466_v14  ;;  %v3815_v4 = vld [vmem:[#allocation2 + $0x118] sm:$0xff]  ;;  %v24196_v51 = vld [vmem:[%s29688_s2 + $0x80] sm:$0xff]  }
 0x13e   :  { %3242 = vst.msk [vmem:[#allocation2 + $0x140] sm:$0xff] %vm3201_vm3, %v2985_v7  ;;  %v2988_v10 = vsel %vm2476_vm2, %v20279_v63, %v2732_v2  ;;  %20385 = vmatmul.mubr.msk.bf16.gmra.mrb[148].mxu0 %vm985_vm0, %v21525_v61  ;;  %v21533_v61 = vld [vmem:[%s29687_s0 + $0x288] sm:$0xff]  }
 0x13f   :  { %3245 = vst.msk [vmem:[#allocation2 + $0x158] sm:$0xff] %vm3201_vm3, %v2988_v10  ;;  %v2986_v11 = vsel %vm2474_vm4, %v1573_v3, %v2730_v8  ;;  %20388 = vmatprep.mubr.msk.bf16.mxu0 %vm985_vm0, %v21526_v0  ;;  %v21536_v0 = vld [vmem:[%s29687_s0 + $0x290] sm:$0xff]   ;;  %v3817_v7 = vld [vmem:[#allocation2 + $0x128] sm:$0xff] }
 0x140   :  { %20543 = vmatpush3.bf16.msra.mxu1 %v21519_v56  ;;  %3243 = vst.msk [vmem:[#allocation2 + $0x148] sm:$0xff] %vm3201_vm3, %v2986_v11  ;;  %v3828_v56 = vpack.c.bf16 %v3813_v49, %v3812_v48  ;;  %v3814_v10 = vld [vmem:[#allocation2 + $0x110] sm:$0xff] }
 0x141   :  { %20544 = vmatprep.subr.bf16.mxu1 %v21522_v5  ;;  %v20282_v16 = vpop.f32.mrb[44].mxu0  ;;  %v3829_v14 = vpack.c.bf16 %v3815_v4, %v3814_v10 }
 0x142   :  { %vm2479_vm5 = vcmp.gt.f32.partialorder %v20282_v16, 0.0  ;;  %v2735_v18 = vmul.f32 0.2, %v20282_v16  ;;  %v1586_v19 = vpop.f32.mrb[45].mxu0 }
 0x143   :  { %20529 = vmatmul.mubr.msk.bf16.gmra.mrb[4].mxu1 %vm3201_vm3, %v3477_v13  ;;  %vm2477_vm6 = vcmp.gt.f32.partialorder %v1586_v19, 0.0  ;;  %v2733_v21 = vmul.f32 0.2, %v1586_v19  ;;  %v20283_v22 = vpop.f32.mrb[46].mxu0 }
 0x144   :  { %20532 = vmatprep.mubr.msk.bf16.mxu1 %vm3201_vm3, %v3478_v17  ;;  %20545 = vmatpush3.bf16.msra.mxu1 %v21522_v5  ;;  %v2991_v24 = vsel %vm2479_vm5, %v20282_v16, %v2735_v18  ;;  %vm2480_vm7 = vcmp.gt.f32.partialorder %v20283_v22, 0.0  ;;  %v2736_v25 = vmul.f32 0.2, %v20283_v22  ;;  %v1589_v26 = vpop.f32.mrb[47].mxu0  ;;  %v3816_v5 = vld [vmem:[#allocation2 + $0x120] sm:$0xff] }
 0x145   :  { %20546 = vmatprep.subr.bf16.mxu1 %v21523_v15  ;;  %3248 = vst.msk [vmem:[#allocation2 + $0x170] sm:$0xff] %vm3201_vm3, %v2991_v24  ;;  %v2989_v27 = vsel %vm2477_vm6, %v1586_v19, %v2733_v21  ;;  %vm2478_vm8 = vcmp.gt.f32.partialorder %v1589_v26, 0.0  ;;  %v2734_v28 = vmul.f32 0.2, %v1589_v26  ;;  %v3830_v13 = vpack.c.bf16 %v3817_v7, %v3816_v5  ;;  %v21537_v19 = vld [vmem:[%s29687_s0 + $0x298] sm:$0xff]  }
 0x146   :  { %3246 = vst.msk [vmem:[#allocation2 + $0x160] sm:$0xff] %vm3201_vm3, %v2989_v27  ;;  %v2992_v31 = vsel %vm2480_vm7, %v20283_v22, %v2736_v25  ;;  %20389 = vmatmul.mubr.msk.bf16.gmra.mrb[152].mxu0 %vm985_vm0, %v21527_v20  ;;  %v21538_v22 = vld [vmem:[%s29687_s0 + $0x2a0] sm:$0xff]  }
 0x147   :  { %3249 = vst.msk [vmem:[#allocation2 + $0x178] sm:$0xff] %vm3201_vm3, %v2992_v31  ;;  %v2990_v33 = vsel %vm2478_vm8, %v1589_v26, %v2734_v28  ;;  %20392 = vmatprep.mubr.msk.bf16.mxu0 %vm985_vm0, %v21528_v23  ;;  %v3820_v26 = vld [vmem:[#allocation2 + $0x140] sm:$0xff]  ;;  %v3821_v27 = vld [vmem:[#allocation2 + $0x148] sm:$0xff]  ;;  %v21534_v28 = vld [vmem:[%s29688_s2 + $0x70] sm:$0xff]  }
 0x148   :  { %20547 = vmatpush3.bf16.msra.mxu1 %v21523_v15  ;;  %3247 = vst.msk [vmem:[#allocation2 + $0x168] sm:$0xff] %vm3201_vm3, %v2990_v33  ;;  %v21531_v15 = vld [vmem:[%s29688_s2 + $0x68] sm:$0xff]   ;;  %v3819_v33 = vld [vmem:[#allocation2 + $0x138] sm:$0xff] }
 0x149   :  { %v20286_v37 = vpop.f32.mrb[48].mxu0  ;;  %20564 = vmatprep.subr.bf16.mxu1 %v24124_v29  ;;  %v3831_v36 = vpack.c.bf16 %v3819_v33, %v3818_v32 }
 0x14a   :  { %vm2483_vm9 = vcmp.gt.f32.partialorder %v20286_v37, 0.0  ;;  %v2739_v39 = vmul.f32 0.2, %v20286_v37  ;;  %v1602_v40 = vpop.f32.mrb[49].mxu0 }
 0x14b   :  { %20533 = vmatmul.mubr.msk.bf16.gmra.mrb[8].mxu1 %vm3201_vm3, %v3479_v35  ;;  %vm2481_vm10 = vcmp.gt.f32.partialorder %v1602_v40, 0.0  ;;  %v2737_v42 = vmul.f32 0.2, %v1602_v40  ;;  %v20287_v43 = vpop.f32.mrb[50].mxu0  ;;  %v3832_v35 = vpack.c.bf16 %v3821_v27, %v3820_v26 }
 0x14c   :  { %20536 = vmatprep.mubr.msk.bf16.mxu1 %vm3201_vm3, %v3480_v38  ;;  %v2995_v45 = vsel %vm2483_vm9, %v20286_v37, %v2739_v39  ;;  %vm2484_vm11 = vcmp.gt.f32.partialorder %v20287_v43, 0.0  ;;  %v2740_v46 = vmul.f32 0.2, %v20287_v43  ;;  %v1605_v47 = vpop.f32.mrb[51].mxu0  ;;  %v21535_v37 = vld [vmem:[%s29688_s2 + $0x78] sm:$0xff]   ;;  %v3826_v4 = vld [vmem:[#allocation2 + $0x170] sm:$0xff] }
 0x14d   :  { %3252 = vst.msk [vmem:[#allocation2 + $0x190] sm:$0xff] %vm3201_vm3, %v2995_v45  ;;  %v2993_v52 = vsel %vm2481_vm10, %v1602_v40, %v2737_v42  ;;  %vm2482_vm12 = vcmp.gt.f32.partialorder %v1605_v47, 0.0  ;;  %v2738_v50 = vmul.f32 0.2, %v1605_v47  ;;  %v3824_v48 = vld [vmem:[#allocation2 + $0x160] sm:$0xff] }
 0x14e   :  { %3250 = vst.msk [vmem:[#allocation2 + $0x180] sm:$0xff] %vm3201_vm3, %v2993_v52  ;;  %v2996_v53 = vsel %vm2484_vm11, %v20287_v43, %v2740_v46  ;;  %20393 = vmatmul.mubr.msk.bf16.gmra.mrb[156].mxu0 %vm985_vm0, %v21529_v41  ;;  %v21539_v41 = vld [vmem:[%s29687_s0 + $0x2a8] sm:$0xff]  }
 0x14f   :  { %3253 = vst.msk [vmem:[#allocation2 + $0x198] sm:$0xff] %vm3201_vm3, %v2996_v53  ;;  %v2994_v54 = vsel %vm2482_vm12, %v1605_v47, %v2738_v50  ;;  %20396 = vmatprep.mubr.msk.bf16.mxu0 %vm985_vm0, %v21532_v44  ;;  %v21540_v44 = vld [vmem:[%s29687_s0 + $0x2b0] sm:$0xff]   ;;  %v3825_v49 = vld [vmem:[#allocation2 + $0x168] sm:$0xff] }
 0x150   :  { %3251 = vst.msk [vmem:[#allocation2 + $0x188] sm:$0xff] %vm3201_vm3, %v2994_v54  ;;  %v3822_v53 = vld [vmem:[#allocation2 + $0x150] sm:$0xff]  ;;  %v3823_v54 = vld [vmem:[#allocation2 + $0x158] sm:$0xff] }
 0x151   :  { %v20290_v58 = vpop.f32.mrb[52].mxu0 }
 0x152   :  { %vm2487_vm13 = vcmp.gt.f32.partialorder %v20290_v58, 0.0  ;;  %v2743_v59 = vmul.f32 0.2, %v20290_v58  ;;  %v1618_v60 = vpop.f32.mrb[53].mxu0 }
 0x153   :  { %20537 = vmatmul.mubr.msk.bf16.gmra.mrb[12].mxu1 %vm3201_vm3, %v3481_v57  ;;  %vm2485_vm14 = vcmp.gt.f32.partialorder %v1618_v60, 0.0  ;;  %v2741_v62 = vmul.f32 0.2, %v1618_v60  ;;  %v20291_v63 = vpop.f32.mrb[54].mxu0  ;;  %v3834_v57 = vpack.c.bf16 %v3825_v49, %v3824_v48  ;;  %v21546_v49 = vld [vmem:[%s29688_s2 + $0x90] sm:$0xff]  }
 0x154   :  { %20548 = vmatprep.mubr.msk.bf16.mxu1 %vm3201_vm3, %v3828_v56  ;;  %v2999_v1 = vsel %vm2487_vm13, %v20290_v58, %v2743_v59  ;;  %vm2488_vm15 = vcmp.gt.f32.partialorder %v20291_v63, 0.0  ;;  %v2744_v2 = vmul.f32 0.2, %v20291_v63  ;;  %v1621_v3 = vpop.f32.mrb[55].mxu0  ;;  %v3833_v58 = vpack.c.bf16 %v3823_v54, %v3822_v53 }
 0x155   :  { %3256 = vst.msk [vmem:[#allocation2 + $0x1b0] sm:$0xff] %vm3201_vm3, %v2999_v1  ;;  %v2997_v8 = vsel %vm2485_vm14, %v1618_v60, %v2741_v62  ;;  %vm2486_vm1 = vcmp.gt.f32.partialorder %v1621_v3, 0.0  ;;  %v2742_v9 = vmul.f32 0.2, %v1621_v3  ;;  %v4005_v7 = vld [vmem:[#allocation2 + $0x180] sm:$0xff] }
 0x156   :  { %3254 = vst.msk [vmem:[#allocation2 + $0x1a0] sm:$0xff] %vm3201_vm3, %v2997_v8  ;;  %v3000_v11 = vsel %vm2488_vm15, %v20291_v63, %v2744_v2  ;;  %20397 = vmatmul.mubr.msk.bf16.gmra.mrb[160].mxu0 %vm985_vm0, %v21533_v61  ;;  %v21541_v61 = vld [vmem:[%s29687_s0 + $0x2b8] sm:$0xff]  }
 0x157   :  { %3257 = vst.msk [vmem:[#allocation2 + $0x1b8] sm:$0xff] %vm3201_vm3, %v3000_v11  ;;  %v2998_v12 = vsel %vm2486_vm1, %v1621_v3, %v2742_v9  ;;  %20400 = vmatprep.mubr.msk.bf16.mxu0 %vm985_vm0, %v21536_v0  ;;  %v21544_v0 = vld [vmem:[%s29687_s0 + $0x2c0] sm:$0xff]   ;;  %v4006_v8 = vld [vmem:[#allocation2 + $0x188] sm:$0xff]  ;;  %v3827_v11 = vld [vmem:[#allocation2 + $0x178] sm:$0xff] }
 0x158   :  { %3255 = vst.msk [vmem:[#allocation2 + $0x1a8] sm:$0xff] %vm3201_vm3, %v2998_v12  ;;  %v4008_v32 = vld [vmem:[#allocation2 + $0x198] sm:$0xff] }
 0x159   :  { %v20294_v16 = vpop.f32.mrb[56].mxu0 }
 0x15a   :  { %vm2491_vm2 = vcmp.gt.f32.partialorder %v20294_v16, 0.0  ;;  %v2747_v17 = vmul.f32 0.2, %v20294_v16  ;;  %v1634_v18 = vpop.f32.mrb[57].mxu0 }
 0x15b   :  { %20549 = vmatmul.mubr.msk.bf16.vlgmr.msra.gmra.mrb[0].mxu1 %vm3201_vm3, %v3829_v14  ;;  %vm2489_vm4 = vcmp.gt.f32.partialorder %v1634_v18, 0.0  ;;  %v2745_v20 = vmul.f32 0.2, %v1634_v18  ;;  %v20295_v21 = vpop.f32.mrb[58].mxu0  ;;  %v4021_v14 = vpack.c.bf16 %v4006_v8, %v4005_v7 }
 0x15c   :  { %20552 = vmatprep.mubr.msk.bf16.mxu1 %vm3201_vm3, %v3830_v13  ;;  %20565 = vmatpush3.bf16.msra.mxu1 %v24124_v29  ;;  %v3003_v23 = vsel %vm2491_vm2, %v20294_v16, %v2747_v17  ;;  %vm2492_vm5 = vcmp.gt.f32.partialorder %v20295_v21, 0.0  ;;  %v2748_v24 = vmul.f32 0.2, %v20295_v21  ;;  %v1637_v25 = vpop.f32.mrb[59].mxu0  ;;  %v4011_v53 = vld [vmem:[#allocation2 + $0x1b0] sm:$0xff] }
 0x15d   :  { %20566 = vmatprep.subr.bf16.mxu1 %v21531_v15  ;;  %3260 = vst.msk [vmem:[#allocation2 + $0x1d0] sm:$0xff] %vm3201_vm3, %v3003_v23  ;;  %v3001_v30 = vsel %vm2489_vm4, %v1634_v18, %v2745_v20  ;;  %vm2490_vm6 = vcmp.gt.f32.partialorder %v1637_v25, 0.0  ;;  %v2746_v31 = vmul.f32 0.2, %v1637_v25  ;;  %v21545_v18 = vld [vmem:[%s29687_s0 + $0x2c8] sm:$0xff]   ;;  %v4009_v26 = vld [vmem:[#allocation2 + $0x1a0] sm:$0xff] }
 0x15e   :  { %3258 = vst.msk [vmem:[#allocation2 + $0x1c0] sm:$0xff] %vm3201_vm3, %v3001_v30  ;;  %v3004_v29 = vsel %vm2492_vm5, %v20295_v21, %v2748_v24  ;;  %20401 = vmatmul.mubr.msk.bf16.gmra.mrb[164].mxu0 %vm985_vm0, %v21537_v19  ;;  %v21548_v21 = vld [vmem:[%s29687_s0 + $0x2d0] sm:$0xff]   ;;  %v4012_v54 = vld [vmem:[#allocation2 + $0x1b8] sm:$0xff] }
 0x15f   :  { %3261 = vst.msk [vmem:[#allocation2 + $0x1d8] sm:$0xff] %vm3201_vm3, %v3004_v29  ;;  %v3002_v34 = vsel %vm2490_vm6, %v1637_v25, %v2746_v31  ;;  %20404 = vmatprep.mubr.msk.bf16.mxu0 %vm985_vm0, %v21538_v22  ;;  %v4010_v27 = vld [vmem:[#allocation2 + $0x1a8] sm:$0xff]  ;;  %v4007_v31 = vld [vmem:[#allocation2 + $0x190] sm:$0xff] }
 0x160   :  { %20567 = vmatpush3.bf16.msra.mxu1 %v21531_v15  ;;  %3259 = vst.msk [vmem:[#allocation2 + $0x1c8] sm:$0xff] %vm3201_vm3, %v3002_v34  ;;  %v3835_v15 = vpack.c.bf16 %v3827_v11, %v3826_v4  ;;  %v4023_v34 = vpack.c.bf16 %v4010_v27, %v4009_v26  ;;  %v24268_v4 = vld [vmem:[%s29688_s2 + $0xa0] sm:$0xff]  }
 0x161   :  { %20568 = vmatprep.subr.bf16.mxu1 %v21534_v28  ;;  %v20298_v38 = vpop.f32.mrb[60].mxu0 }
 0x162   :  { %vm2495_vm7 = vcmp.gt.f32.partialorder %v20298_v38, 0.0  ;;  %v2751_v39 = vmul.f32 0.2, %v20298_v38  ;;  %v1650_v40 = vpop.f32.mrb[61].mxu0 }
 0x163   :  { %20553 = vmatmul.mubr.msk.bf16.gmra.mrb[4].mxu1 %vm3201_vm3, %v3831_v36  ;;  %vm2493_vm8 = vcmp.gt.f32.partialorder %v1650_v40, 0.0  ;;  %v2749_v42 = vmul.f32 0.2, %v1650_v40  ;;  %v20299_v43 = vpop.f32.mrb[62].mxu0  ;;  %v21543_v36 = vld [vmem:[%s29688_s2 + $0x88] sm:$0xff]  }
 0x164   :  { %20556 = vmatprep.mubr.msk.bf16.mxu1 %vm3201_vm3, %v3832_v35  ;;  %20569 = vmatpush3.bf16.msra.mxu1 %v21534_v28  ;;  %v3007_v45 = vsel %vm2495_vm7, %v20298_v38, %v2751_v39  ;;  %vm2496_vm9 = vcmp.gt.f32.partialorder %v20299_v43, 0.0  ;;  %v2752_v46 = vmul.f32 0.2, %v20299_v43  ;;  %v1653_v47 = vpop.f32.mrb[63].mxu0  ;;  %v4022_v35 = vpack.c.bf16 %v4008_v32, %v4007_v31  ;;  %v4015_v11 = vld [vmem:[#allocation2 + $0x1d0] sm:$0xff] }
 0x165   :  { %20570 = vmatprep.subr.bf16.mxu1 %v21535_v37  ;;  %3264 = vst.msk [vmem:[#allocation2 + $0x1f0] sm:$0xff] %vm3201_vm3, %v3007_v45  ;;  %v3005_v52 = vsel %vm2493_vm8, %v1650_v40, %v2749_v42  ;;  %vm2494_vm10 = vcmp.gt.f32.partialorder %v1653_v47, 0.0  ;;  %v2750_v50 = vmul.f32 0.2, %v1653_v47  ;;  %v21549_v40 = vld [vmem:[%s29687_s0 + $0x2d8] sm:$0xff]  }
 0x166   :  { %3262 = vst.msk [vmem:[#allocation2 + $0x1e0] sm:$0xff] %vm3201_vm3, %v3005_v52  ;;  %v3008_v55 = vsel %vm2496_vm9, %v20299_v43, %v2752_v46  ;;  %20405 = vmatmul.mubr.msk.bf16.gmra.mrb[168].mxu0 %vm985_vm0, %v21539_v41  ;;  %v21550_v43 = vld [vmem:[%s29687_s0 + $0x2e0] sm:$0xff]  }
 0x167   :  { %3265 = vst.msk [vmem:[#allocation2 + $0x1f8] sm:$0xff] %vm3201_vm3, %v3008_v55  ;;  %v3006_v56 = vsel %vm2494_vm10, %v1653_v47, %v2750_v50  ;;  %20408 = vmatprep.mubr.msk.bf16.mxu0 %vm985_vm0, %v21540_v44  ;;  %v4013_v47 = vld [vmem:[#allocation2 + $0x1c0] sm:$0xff]  ;;  %v4014_v48 = vld [vmem:[#allocation2 + $0x1c8] sm:$0xff] }
 0x168   :  { %20571 = vmatpush3.bf16.msra.mxu1 %v21535_v37  ;;  %3263 = vst.msk [vmem:[#allocation2 + $0x1e8] sm:$0xff] %vm3201_vm3, %v3006_v56  ;;  %v4025_v56 = vpack.c.bf16 %v4014_v48, %v4013_v47 }
 0x169   :  { %v20302_v59 = vpop.f32.mrb[64].mxu0  ;;  %20588 = vmatprep.subr.bf16.mxu1 %v24196_v51 }
 0x16a   :  { %v1666_v60 = vpop.f32.mrb[65].mxu0  ;;  %vm2499_vm11 = vcmp.gt.f32.partialorder %v20302_v59, 0.0  ;;  %v2755_v62 = vmul.f32 0.2, %v20302_v59 }
 0x16b   :  { %20557 = vmatmul.mubr.msk.bf16.gmra.mrb[8].mxu1 %vm3201_vm3, %v3833_v58  ;;  %v20303_v63 = vpop.f32.mrb[66].mxu0  ;;  %vm2497_vm12 = vcmp.gt.f32.partialorder %v1666_v60, 0.0  ;;  %v2753_v1 = vmul.f32 0.2, %v1666_v60  ;;  %v21547_v58 = vld [vmem:[%s29688_s2 + $0x98] sm:$0xff]  }
 0x16c   :  { %20560 = vmatprep.mubr.msk.bf16.mxu1 %vm3201_vm3, %v3834_v57  ;;  %v1669_v2 = vpop.f32.mrb[67].mxu0  ;;  %vm2500_vm13 = vcmp.gt.f32.partialorder %v20303_v63, 0.0  ;;  %v2756_v3 = vmul.f32 0.2, %v20303_v63  ;;  %v3011_v5 = vsel %vm2499_vm11, %v20302_v59, %v2755_v62  ;;  %v4024_v57 = vpack.c.bf16 %v4012_v54, %v4011_v53  ;;  %v21551_v62 = vld [vmem:[%s29687_s0 + $0x2e8] sm:$0xff]   ;;  %v4019_v32 = vld [vmem:[#allocation2 + $0x1f0] sm:$0xff] }
 0x16d   :  { %vm2498_vm14 = vcmp.gt.f32.partialorder %v1669_v2, 0.0  ;;  %v2754_v9 = vmul.f32 0.2, %v1669_v2  ;;  %v3009_v10 = vsel %vm2497_vm12, %v1666_v60, %v2753_v1  ;;  %3268 = vst.msk [vmem:[#allocation2 + $0x210] sm:$0xff] %vm3201_vm3, %v3011_v5  ;;  %v21552_v1 = vld [vmem:[%s29687_s0 + $0x2f0] sm:$0xff]   ;;  %v4017_v7 = vld [vmem:[#allocation2 + $0x1e0] sm:$0xff] }
 0x16e   :  { %20409 = vmatmul.mubr.msk.bf16.gmra.mrb[172].mxu0 %vm985_vm0, %v21541_v61  ;;  %3266 = vst.msk [vmem:[#allocation2 + $0x200] sm:$0xff] %vm3201_vm3, %v3009_v10  ;;  %v3012_v12 = vsel %vm2500_vm13, %v20303_v63, %v2756_v3 }
 0x16f   :  { %20412 = vmatprep.mubr.msk.bf16.mxu0 %vm985_vm0, %v21544_v0  ;;  %v3010_v13 = vsel %vm2498_vm14, %v1669_v2, %v2754_v9  ;;  %3269 = vst.msk [vmem:[#allocation2 + $0x218] sm:$0xff] %vm3201_vm3, %v3012_v12  ;;  %v4018_v8 = vld [vmem:[#allocation2 + $0x1e8] sm:$0xff]  ;;  %v4016_v12 = vld [vmem:[#allocation2 + $0x1d8] sm:$0xff] }
 0x170   :  { %3267 = vst.msk [vmem:[#allocation2 + $0x208] sm:$0xff] %vm3201_vm3, %v3010_v13 }
 0x171   :  { %v20306_v16 = vpop.f32.mrb[68].mxu0 }
 0x172   :  { %v1682_v17 = vpop.f32.mrb[69].mxu0  ;;  %vm2503_vm15 = vcmp.gt.f32.partialorder %v20306_v16, 0.0  ;;  %v2759_v19 = vmul.f32 0.2, %v20306_v16 }
 0x173   :  { %20561 = vmatmul.mubr.msk.bf16.gmra.mrb[12].mxu1 %vm3201_vm3, %v3835_v15  ;;  %v20307_v20 = vpop.f32.mrb[70].mxu0  ;;  %vm2501_vm1 = vcmp.gt.f32.partialorder %v1682_v17, 0.0  ;;  %v2757_v22 = vmul.f32 0.2, %v1682_v17  ;;  %v4027_v15 = vpack.c.bf16 %v4018_v8, %v4017_v7  ;;  %v21558_v8 = vld [vmem:[%s29688_s2 + $0xb0] sm:$0xff]  }
 0x174   :  { %20572 = vmatprep.mubr.msk.bf16.mxu1 %vm3201_vm3, %v4021_v14  ;;  %v1685_v23 = vpop.f32.mrb[71].mxu0  ;;  %vm2504_vm2 = vcmp.gt.f32.partialorder %v20307_v20, 0.0  ;;  %v2760_v24 = vmul.f32 0.2, %v20307_v20  ;;  %v3015_v25 = vsel %vm2503_vm15, %v20306_v16, %v2759_v19  ;;  %v4026_v16 = vpack.c.bf16 %v4016_v12, %v4015_v11 }
 0x175   :  { %vm2502_vm4 = vcmp.gt.f32.partialorder %v1685_v23, 0.0  ;;  %v2758_v28 = vmul.f32 0.2, %v1685_v23  ;;  %v3013_v30 = vsel %vm2501_vm1, %v1682_v17, %v2757_v22  ;;  %3272 = vst.msk [vmem:[#allocation2 + $0x230] sm:$0xff] %vm3201_vm3, %v3015_v25  ;;  %v4198_v27 = vld [vmem:[#allocation2 + $0x200] sm:$0xff] }
 0x176   :  { %20413 = vmatmul.mubr.msk.bf16.gmra.mrb[176].mxu0 %vm985_vm0, %v21545_v18  ;;  %3270 = vst.msk [vmem:[#allocation2 + $0x220] sm:$0xff] %vm3201_vm3, %v3013_v30  ;;  %v3016_v33 = vsel %vm2504_vm2, %v20307_v20, %v2760_v24  ;;  %v21553_v20 = vld [vmem:[%s29687_s0 + $0x2f8] sm:$0xff]  }
 0x177   :  { %20416 = vmatprep.mubr.msk.bf16.mxu0 %vm985_vm0, %v21548_v21  ;;  %v3014_v29 = vsel %vm2502_vm4, %v1685_v23, %v2758_v28  ;;  %3273 = vst.msk [vmem:[#allocation2 + $0x238] sm:$0xff] %vm3201_vm3, %v3016_v33  ;;  %v21556_v23 = vld [vmem:[%s29687_s0 + $0x300] sm:$0xff]   ;;  %v4199_v28 = vld [vmem:[#allocation2 + $0x208] sm:$0xff]  ;;  %v4020_v33 = vld [vmem:[#allocation2 + $0x1f8] sm:$0xff] }
 0x178   :  { %3271 = vst.msk [vmem:[#allocation2 + $0x228] sm:$0xff] %vm3201_vm3, %v3014_v29  ;;  %v4201_v53 = vld [vmem:[#allocation2 + $0x218] sm:$0xff] }
 0x179   :  { %v20310_v37 = vpop.f32.mrb[72].mxu0 }
 0x17a   :  { %vm2507_vm5 = vcmp.gt.f32.partialorder %v20310_v37, 0.0  ;;  %v2763_v38 = vmul.f32 0.2, %v20310_v37  ;;  %v1698_v39 = vpop.f32.mrb[73].mxu0 }
 0x17b   :  { %20573 = vmatmul.mubr.msk.bf16.vlgmr.msra.gmra.mrb[0].mxu1 %vm3201_vm3, %v4022_v35  ;;  %vm2505_vm6 = vcmp.gt.f32.partialorder %v1698_v39, 0.0  ;;  %v2761_v41 = vmul.f32 0.2, %v1698_v39  ;;  %v20311_v42 = vpop.f32.mrb[74].mxu0  ;;  %v4214_v35 = vpack.c.bf16 %v4199_v28, %v4198_v27 }
 0x17c   :  { %20576 = vmatprep.mubr.msk.bf16.mxu1 %vm3201_vm3, %v4023_v34  ;;  %20589 = vmatpush3.bf16.msra.mxu1 %v24196_v51  ;;  %v3019_v44 = vsel %vm2507_vm5, %v20310_v37, %v2763_v38  ;;  %vm2508_vm7 = vcmp.gt.f32.partialorder %v20311_v42, 0.0  ;;  %v2764_v45 = vmul.f32 0.2, %v20311_v42  ;;  %v1701_v46 = vpop.f32.mrb[75].mxu0  ;;  %v4204_v11 = vld [vmem:[#allocation2 + $0x230] sm:$0xff] }
 0x17d   :  { %20590 = vmatprep.subr.bf16.mxu1 %v21543_v36  ;;  %3276 = vst.msk [vmem:[#allocation2 + $0x250] sm:$0xff] %vm3201_vm3, %v3019_v44  ;;  %v3017_v52 = vsel %vm2505_vm6, %v1698_v39, %v2761_v41  ;;  %vm2506_vm8 = vcmp.gt.f32.partialorder %v1701_v46, 0.0  ;;  %v2762_v50 = vmul.f32 0.2, %v1701_v46  ;;  %v4202_v47 = vld [vmem:[#allocation2 + $0x220] sm:$0xff] }
 0x17e   :  { %3274 = vst.msk [vmem:[#allocation2 + $0x240] sm:$0xff] %vm3201_vm3, %v3017_v52  ;;  %v3020_v51 = vsel %vm2508_vm7, %v20311_v42, %v2764_v45  ;;  %20417 = vmatmul.mubr.msk.bf16.gmra.mrb[180].mxu0 %vm985_vm0, %v21549_v40  ;;  %v21557_v40 = vld [vmem:[%s29687_s0 + $0x308] sm:$0xff]   ;;  %v4205_v12 = vld [vmem:[#allocation2 + $0x238] sm:$0xff] }
 0x17f   :  { %3277 = vst.msk [vmem:[#allocation2 + $0x258] sm:$0xff] %vm3201_vm3, %v3020_v51  ;;  %v3018_v55 = vsel %vm2506_vm8, %v1701_v46, %v2762_v50  ;;  %20420 = vmatprep.mubr.msk.bf16.mxu0 %vm985_vm0, %v21550_v43  ;;  %v21560_v43 = vld [vmem:[%s29687_s0 + $0x310] sm:$0xff]   ;;  %v4203_v48 = vld [vmem:[#allocation2 + $0x228] sm:$0xff] }
 0x180   :  { %20591 = vmatpush3.bf16.msra.mxu1 %v21543_v36  ;;  %3275 = vst.msk [vmem:[#allocation2 + $0x248] sm:$0xff] %vm3201_vm3, %v3018_v55  ;;  %v4028_v36 = vpack.c.bf16 %v4020_v33, %v4019_v32  ;;  %v4200_v50 = vld [vmem:[#allocation2 + $0x210] sm:$0xff]  ;;  %v4216_v55 = vpack.c.bf16 %v4203_v48, %v4202_v47  ;;  %v24340_v32 = vld [vmem:[%s29688_s2 + $0xc0] sm:$0xff]  }
 0x181   :  { %20592 = vmatprep.subr.bf16.mxu1 %v21546_v49  ;;  %v20314_v59 = vpop.f32.mrb[76].mxu0 }
 0x182   :  { %vm2511_vm9 = vcmp.gt.f32.partialorder %v20314_v59, 0.0  ;;  %v2767_v60 = vmul.f32 0.2, %v20314_v59  ;;  %v1714_v61 = vpop.f32.mrb[77].mxu0 }
 0x183   :  { %20577 = vmatmul.mubr.msk.bf16.gmra.mrb[4].mxu1 %vm3201_vm3, %v4024_v57  ;;  %vm2509_vm10 = vcmp.gt.f32.partialorder %v1714_v61, 0.0  ;;  %v2765_v63 = vmul.f32 0.2, %v1714_v61  ;;  %v20315_v0 = vpop.f32.mrb[78].mxu0  ;;  %v21555_v57 = vld [vmem:[%s29688_s2 + $0xa8] sm:$0xff]  }
 0x184   :  { %20580 = vmatprep.mubr.msk.bf16.mxu1 %vm3201_vm3, %v4025_v56  ;;  %20593 = vmatpush3.bf16.msra.mxu1 %v21546_v49  ;;  %v3023_v2 = vsel %vm2511_vm9, %v20314_v59, %v2767_v60  ;;  %vm2512_vm11 = vcmp.gt.f32.partialorder %v20315_v0, 0.0  ;;  %v2768_v3 = vmul.f32 0.2, %v20315_v0  ;;  %v1717_v5 = vpop.f32.mrb[79].mxu0  ;;  %v4215_v56 = vpack.c.bf16 %v4201_v53, %v4200_v50  ;;  %v4208_v33 = vld [vmem:[#allocation2 + $0x250] sm:$0xff] }
 0x185   :  { %20594 = vmatprep.subr.bf16.mxu1 %v21547_v58  ;;  %3280 = vst.msk [vmem:[#allocation2 + $0x270] sm:$0xff] %vm3201_vm3, %v3023_v2  ;;  %v3021_v9 = vsel %vm2509_vm10, %v1714_v61, %v2765_v63  ;;  %vm2510_vm12 = vcmp.gt.f32.partialorder %v1717_v5, 0.0  ;;  %v2766_v10 = vmul.f32 0.2, %v1717_v5  ;;  %v21561_v61 = vld [vmem:[%s29687_s0 + $0x318] sm:$0xff]  }
 0x186   :  { %3278 = vst.msk [vmem:[#allocation2 + $0x260] sm:$0xff] %vm3201_vm3, %v3021_v9  ;;  %v3024_v13 = vsel %vm2512_vm11, %v20315_v0, %v2768_v3  ;;  %20421 = vmatmul.mubr.msk.bf16.gmra.mrb[184].mxu0 %vm985_vm0, %v21551_v62  ;;  %v21562_v0 = vld [vmem:[%s29687_s0 + $0x320] sm:$0xff]  }
 0x187   :  { %3281 = vst.msk [vmem:[#allocation2 + $0x278] sm:$0xff] %vm3201_vm3, %v3024_v13  ;;  %v3022_v14 = vsel %vm2510_vm12, %v1717_v5, %v2766_v10  ;;  %20424 = vmatprep.mubr.msk.bf16.mxu0 %vm985_vm0, %v21552_v1  ;;  %v4206_v5 = vld [vmem:[#allocation2 + $0x240] sm:$0xff]  ;;  %v4207_v7 = vld [vmem:[#allocation2 + $0x248] sm:$0xff] }
 0x188   :  { %20595 = vmatpush3.bf16.msra.mxu1 %v21547_v58  ;;  %3279 = vst.msk [vmem:[#allocation2 + $0x268] sm:$0xff] %vm3201_vm3, %v3022_v14  ;;  %v4218_v14 = vpack.c.bf16 %v4207_v7, %v4206_v5 }
 0x189   :  { %v20318_v17 = vpop.f32.mrb[80].mxu0  ;;  %20612 = vmatprep.subr.bf16.mxu1 %v24268_v4 }
 0x18a   :  { %vm2515_vm13 = vcmp.gt.f32.partialorder %v20318_v17, 0.0  ;;  %v2771_v18 = vmul.f32 0.2, %v20318_v17  ;;  %v1730_v19 = vpop.f32.mrb[81].mxu0 }
 0x18b   :  { %20581 = vmatmul.mubr.msk.bf16.gmra.mrb[8].mxu1 %vm3201_vm3, %v4026_v16  ;;  %vm2513_vm14 = vcmp.gt.f32.partialorder %v1730_v19, 0.0  ;;  %v2769_v21 = vmul.f32 0.2, %v1730_v19  ;;  %v20319_v22 = vpop.f32.mrb[82].mxu0  ;;  %v21559_v16 = vld [vmem:[%s29688_s2 + $0xb8] sm:$0xff]  }
 0x18c   :  { %20584 = vmatprep.mubr.msk.bf16.mxu1 %vm3201_vm3, %v4027_v15  ;;  %v3027_v24 = vsel %vm2515_vm13, %v20318_v17, %v2771_v18  ;;  %vm2516_vm15 = vcmp.gt.f32.partialorder %v20319_v22, 0.0  ;;  %v2772_v25 = vmul.f32 0.2, %v20319_v22  ;;  %v1733_v26 = vpop.f32.mrb[83].mxu0  ;;  %v4217_v15 = vpack.c.bf16 %v4205_v12, %v4204_v11  ;;  %v4212_v53 = vld [vmem:[#allocation2 + $0x270] sm:$0xff] }
 0x18d   :  { %3284 = vst.msk [vmem:[#allocation2 + $0x290] sm:$0xff] %vm3201_vm3, %v3027_v24  ;;  %v3025_v30 = vsel %vm2513_vm14, %v1730_v19, %v2769_v21  ;;  %vm2514_vm1 = vcmp.gt.f32.partialorder %v1733_v26, 0.0  ;;  %v2770_v31 = vmul.f32 0.2, %v1733_v26  ;;  %v4210_v27 = vld [vmem:[#allocation2 + $0x260] sm:$0xff] }
 0x18e   :  { %3282 = vst.msk [vmem:[#allocation2 + $0x280] sm:$0xff] %vm3201_vm3, %v3025_v30  ;;  %v3028_v29 = vsel %vm2516_vm15, %v20319_v22, %v2772_v25  ;;  %20425 = vmatmul.mubr.msk.bf16.gmra.mrb[188].mxu0 %vm985_vm0, %v21553_v20  ;;  %v21563_v20 = vld [vmem:[%s29687_s0 + $0x328] sm:$0xff]  }
 0x18f   :  { %3285 = vst.msk [vmem:[#allocation2 + $0x298] sm:$0xff] %vm3201_vm3, %v3028_v29  ;;  %v3026_v34 = vsel %vm2514_vm1, %v1733_v26, %v2770_v31  ;;  %20428 = vmatprep.mubr.msk.bf16.mxu0 %vm985_vm0, %v21556_v23  ;;  %v21564_v23 = vld [vmem:[%s29687_s0 + $0x330] sm:$0xff]   ;;  %v4211_v28 = vld [vmem:[#allocation2 + $0x268] sm:$0xff]  ;;  %v4209_v29 = vld [vmem:[#allocation2 + $0x258] sm:$0xff] }
 0x190   :  { %3283 = vst.msk [vmem:[#allocation2 + $0x288] sm:$0xff] %vm3201_vm3, %v3026_v34 }
 0x191   :  { %v20322_v37 = vpop.f32.mrb[84].mxu0 }
 0x192   :  { %vm2519_vm2 = vcmp.gt.f32.partialorder %v20322_v37, 0.0  ;;  %v2775_v38 = vmul.f32 0.2, %v20322_v37  ;;  %v1746_v39 = vpop.f32.mrb[85].mxu0 }
 0x193   :  { %20585 = vmatmul.mubr.msk.bf16.gmra.mrb[12].mxu1 %vm3201_vm3, %v4028_v36  ;;  %vm2517_vm4 = vcmp.gt.f32.partialorder %v1746_v39, 0.0  ;;  %v2773_v41 = vmul.f32 0.2, %v1746_v39  ;;  %v20323_v42 = vpop.f32.mrb[86].mxu0  ;;  %v4220_v36 = vpack.c.bf16 %v4211_v28, %v4210_v27  ;;  %v21570_v28 = vld [vmem:[%s29688_s2 + $0xd0] sm:$0xff]  }
 0x194   :  { %20596 = vmatprep.mubr.msk.bf16.mxu1 %vm3201_vm3, %v4214_v35  ;;  %v3031_v44 = vsel %vm2519_vm2, %v20322_v37, %v2775_v38  ;;  %vm2520_vm5 = vcmp.gt.f32.partialorder %v20323_v42, 0.0  ;;  %v2776_v45 = vmul.f32 0.2, %v20323_v42  ;;  %v1749_v46 = vpop.f32.mrb[87].mxu0  ;;  %v4219_v37 = vpack.c.bf16 %v4209_v29, %v4208_v33 }
 0x195   :  { %3288 = vst.msk [vmem:[#allocation2 + $0x2b0] sm:$0xff] %vm3201_vm3, %v3031_v44  ;;  %v3029_v49 = vsel %vm2517_vm4, %v1746_v39, %v2773_v41  ;;  %vm2518_vm6 = vcmp.gt.f32.partialorder %v1749_v46, 0.0  ;;  %v2774_v52 = vmul.f32 0.2, %v1749_v46  ;;  %v21565_v41 = vld [vmem:[%s29687_s0 + $0x338] sm:$0xff]   ;;  %v21568_v44 = vld [vmem:[%s29687_s0 + $0x340] sm:$0xff]  }
 0x196   :  { %3286 = vst.msk [vmem:[#allocation2 + $0x2a0] sm:$0xff] %vm3201_vm3, %v3029_v49  ;;  %v3032_v54 = vsel %vm2520_vm5, %v20323_v42, %v2776_v45  ;;  %20429 = vmatmul.mubr.msk.bf16.gmra.mrb[192].mxu0 %vm985_vm0, %v21557_v40  ;;  %v4391_v48 = vld [vmem:[#allocation2 + $0x280] sm:$0xff]  ;;  %v4394_v11 = vld [vmem:[#allocation2 + $0x298] sm:$0xff] }
 0x197   :  { %3289 = vst.msk [vmem:[#allocation2 + $0x2b8] sm:$0xff] %vm3201_vm3, %v3032_v54  ;;  %v3030_v51 = vsel %vm2518_vm6, %v1749_v46, %v2774_v52  ;;  %20432 = vmatprep.mubr.msk.bf16.mxu0 %vm985_vm0, %v21560_v43  ;;  %v4392_v49 = vld [vmem:[#allocation2 + $0x288] sm:$0xff]  ;;  %v4213_v54 = vld [vmem:[#allocation2 + $0x278] sm:$0xff] }
 0x198   :  { %3287 = vst.msk [vmem:[#allocation2 + $0x2a8] sm:$0xff] %vm3201_vm3, %v3030_v51 }
 0x199   :  { %v20326_v58 = vpop.f32.mrb[88].mxu0 }
 0x19a   :  { %vm2523_vm7 = vcmp.gt.f32.partialorder %v20326_v58, 0.0  ;;  %v2779_v59 = vmul.f32 0.2, %v20326_v58  ;;  %v1762_v60 = vpop.f32.mrb[89].mxu0 }
 0x19b   :  { %20597 = vmatmul.mubr.msk.bf16.vlgmr.msra.gmra.mrb[0].mxu1 %vm3201_vm3, %v4215_v56  ;;  %vm2521_vm8 = vcmp.gt.f32.partialorder %v1762_v60, 0.0  ;;  %v2777_v62 = vmul.f32 0.2, %v1762_v60  ;;  %v20327_v63 = vpop.f32.mrb[90].mxu0  ;;  %v4407_v56 = vpack.c.bf16 %v4392_v49, %v4391_v48 }
 0x19c   :  { %20600 = vmatprep.mubr.msk.bf16.mxu1 %vm3201_vm3, %v4216_v55  ;;  %20613 = vmatpush3.bf16.msra.mxu1 %v24268_v4  ;;  %v3035_v1 = vsel %vm2523_vm7, %v20326_v58, %v2779_v59  ;;  %vm2524_vm9 = vcmp.gt.f32.partialorder %v20327_v63, 0.0  ;;  %v2780_v2 = vmul.f32 0.2, %v20327_v63  ;;  %v1765_v3 = vpop.f32.mrb[91].mxu0  ;;  %v4397_v33 = vld [vmem:[#allocation2 + $0x2b0] sm:$0xff] }
 0x19d   :  { %20614 = vmatprep.subr.bf16.mxu1 %v21555_v57  ;;  %3292 = vst.msk [vmem:[#allocation2 + $0x2d0] sm:$0xff] %vm3201_vm3, %v3035_v1  ;;  %v3033_v9 = vsel %vm2521_vm8, %v1762_v60, %v2777_v62  ;;  %vm2522_vm10 = vcmp.gt.f32.partialorder %v1765_v3, 0.0  ;;  %v2778_v10 = vmul.f32 0.2, %v1765_v3  ;;  %v4395_v5 = vld [vmem:[#allocation2 + $0x2a0] sm:$0xff] }
 0x19e   :  { %3290 = vst.msk [vmem:[#allocation2 + $0x2c0] sm:$0xff] %vm3201_vm3, %v3033_v9  ;;  %v3036_v4 = vsel %vm2524_vm9, %v20327_v63, %v2780_v2  ;;  %20433 = vmatmul.mubr.msk.bf16.gmra.mrb[196].mxu0 %vm985_vm0, %v21561_v61  ;;  %v21569_v61 = vld [vmem:[%s29687_s0 + $0x348] sm:$0xff]   ;;  %v4398_v29 = vld [vmem:[#allocation2 + $0x2b8] sm:$0xff] }
 0x19f   :  { %3293 = vst.msk [vmem:[#allocation2 + $0x2d8] sm:$0xff] %vm3201_vm3, %v3036_v4  ;;  %v3034_v13 = vsel %vm2522_vm10, %v1765_v3, %v2778_v10  ;;  %20436 = vmatprep.mubr.msk.bf16.mxu0 %vm985_vm0, %v21562_v0  ;;  %v21572_v0 = vld [vmem:[%s29687_s0 + $0x350] sm:$0xff]   ;;  %v4396_v7 = vld [vmem:[#allocation2 + $0x2a8] sm:$0xff] }
 0x1a0   :  { %20615 = vmatpush3.bf16.msra.mxu1 %v21555_v57  ;;  %3291 = vst.msk [vmem:[#allocation2 + $0x2c8] sm:$0xff] %vm3201_vm3, %v3034_v13  ;;  %v4221_v57 = vpack.c.bf16 %v4213_v54, %v4212_v53  ;;  %v4393_v10 = vld [vmem:[#allocation2 + $0x290] sm:$0xff]  ;;  %v4409_v13 = vpack.c.bf16 %v4396_v7, %v4395_v5  ;;  %v24412_v53 = vld [vmem:[%s29688_s2 + $0xe0] sm:$0xff]  }
 0x1a1   :  { %20616 = vmatprep.subr.bf16.mxu1 %v21558_v8  ;;  %v20330_v17 = vpop.f32.mrb[92].mxu0 }
 0x1a2   :  { %vm2527_vm11 = vcmp.gt.f32.partialorder %v20330_v17, 0.0  ;;  %v2783_v18 = vmul.f32 0.2, %v20330_v17  ;;  %v1778_v19 = vpop.f32.mrb[93].mxu0 }
 0x1a3   :  { %20601 = vmatmul.mubr.msk.bf16.gmra.mrb[4].mxu1 %vm3201_vm3, %v4217_v15  ;;  %vm2525_vm12 = vcmp.gt.f32.partialorder %v1778_v19, 0.0  ;;  %v2781_v21 = vmul.f32 0.2, %v1778_v19  ;;  %v20331_v22 = vpop.f32.mrb[94].mxu0  ;;  %v21567_v15 = vld [vmem:[%s29688_s2 + $0xc8] sm:$0xff]  }
 0x1a4   :  { %20604 = vmatprep.mubr.msk.bf16.mxu1 %vm3201_vm3, %v4218_v14  ;;  %20617 = vmatpush3.bf16.msra.mxu1 %v21558_v8  ;;  %v3039_v24 = vsel %vm2527_vm11, %v20330_v17, %v2783_v18  ;;  %vm2528_vm13 = vcmp.gt.f32.partialorder %v20331_v22, 0.0  ;;  %v2784_v25 = vmul.f32 0.2, %v20331_v22  ;;  %v1781_v26 = vpop.f32.mrb[95].mxu0  ;;  %v4408_v14 = vpack.c.bf16 %v4394_v11, %v4393_v10  ;;  %v4401_v54 = vld [vmem:[#allocation2 + $0x2d0] sm:$0xff] }
 0x1a5   :  { %20618 = vmatprep.subr.bf16.mxu1 %v21559_v16  ;;  %3296 = vst.msk [vmem:[#allocation2 + $0x2f0] sm:$0xff] %vm3201_vm3, %v3039_v24  ;;  %v3037_v30 = vsel %vm2525_vm12, %v1778_v19, %v2781_v21  ;;  %vm2526_vm14 = vcmp.gt.f32.partialorder %v1781_v26, 0.0  ;;  %v2782_v31 = vmul.f32 0.2, %v1781_v26  ;;  %v21573_v19 = vld [vmem:[%s29687_s0 + $0x358] sm:$0xff]  }
 0x1a6   :  { %3294 = vst.msk [vmem:[#allocation2 + $0x2e0] sm:$0xff] %vm3201_vm3, %v3037_v30  ;;  %v3040_v34 = vsel %vm2528_vm13, %v20331_v22, %v2784_v25  ;;  %20437 = vmatmul.mubr.msk.bf16.gmra.mrb[200].mxu0 %vm985_vm0, %v21563_v20  ;;  %v21574_v22 = vld [vmem:[%s29687_s0 + $0x360] sm:$0xff]  }
 0x1a7   :  { %3297 = vst.msk [vmem:[#allocation2 + $0x2f8] sm:$0xff] %vm3201_vm3, %v3040_v34  ;;  %v3038_v35 = vsel %vm2526_vm14, %v1781_v26, %v2782_v31  ;;  %20440 = vmatprep.mubr.msk.bf16.mxu0 %vm985_vm0, %v21564_v23  ;;  %v4399_v26 = vld [vmem:[#allocation2 + $0x2c0] sm:$0xff]  ;;  %v4400_v27 = vld [vmem:[#allocation2 + $0x2c8] sm:$0xff] }
 0x1a8   :  { %20619 = vmatpush3.bf16.msra.mxu1 %v21559_v16  ;;  %3295 = vst.msk [vmem:[#allocation2 + $0x2e8] sm:$0xff] %vm3201_vm3, %v3038_v35  ;;  %v4411_v35 = vpack.c.bf16 %v4400_v27, %v4399_v26 }
 0x1a9   :  { %v20334_v38 = vpop.f32.mrb[96].mxu0  ;;  %20636 = vmatprep.subr.bf16.mxu1 %v24340_v32 }
 0x1aa   :  { %vm2531_vm15 = vcmp.gt.f32.partialorder %v20334_v38, 0.0  ;;  %v2787_v39 = vmul.f32 0.2, %v20334_v38  ;;  %v1794_v40 = vpop.f32.mrb[97].mxu0 }
 0x1ab   :  { %20605 = vmatmul.mubr.msk.bf16.gmra.mrb[8].mxu1 %vm3201_vm3, %v4219_v37  ;;  %vm2529_vm1 = vcmp.gt.f32.partialorder %v1794_v40, 0.0  ;;  %v2785_v42 = vmul.f32 0.2, %v1794_v40  ;;  %v20335_v43 = vpop.f32.mrb[98].mxu0  ;;  %v21571_v37 = vld [vmem:[%s29688_s2 + $0xd8] sm:$0xff]  }
 0x1ac   :  { %20608 = vmatprep.mubr.msk.bf16.mxu1 %vm3201_vm3, %v4220_v36  ;;  %v3043_v45 = vsel %vm2531_vm15, %v20334_v38, %v2787_v39  ;;  %vm2532_vm2 = vcmp.gt.f32.partialorder %v20335_v43, 0.0  ;;  %v2788_v46 = vmul.f32 0.2, %v20335_v43  ;;  %v1797_v47 = vpop.f32.mrb[99].mxu0  ;;  %v4410_v36 = vpack.c.bf16 %v4398_v29, %v4397_v33  ;;  %v4405_v11 = vld [vmem:[#allocation2 + $0x2f0] sm:$0xff] }
 0x1ad   :  { %3300 = vst.msk [vmem:[#allocation2 + $0x310] sm:$0xff] %vm3201_vm3, %v3043_v45  ;;  %v3041_v52 = vsel %vm2529_vm1, %v1794_v40, %v2785_v42  ;;  %vm2530_vm4 = vcmp.gt.f32.partialorder %v1797_v47, 0.0  ;;  %v2786_v50 = vmul.f32 0.2, %v1797_v47  ;;  %v4403_v48 = vld [vmem:[#allocation2 + $0x2e0] sm:$0xff] }
 0x1ae   :  { %3298 = vst.msk [vmem:[#allocation2 + $0x300] sm:$0xff] %vm3201_vm3, %v3041_v52  ;;  %v3044_v51 = vsel %vm2532_vm2, %v20335_v43, %v2788_v46  ;;  %20441 = vmatmul.mubr.msk.bf16.gmra.mrb[204].mxu0 %vm985_vm0, %v21565_v41  ;;  %v21575_v41 = vld [vmem:[%s29687_s0 + $0x368] sm:$0xff]  }
 0x1af   :  { %3301 = vst.msk [vmem:[#allocation2 + $0x318] sm:$0xff] %vm3201_vm3, %v3044_v51  ;;  %v3042_v55 = vsel %vm2530_vm4, %v1797_v47, %v2786_v50  ;;  %20444 = vmatprep.mubr.msk.bf16.mxu0 %vm985_vm0, %v21568_v44  ;;  %v21576_v44 = vld [vmem:[%s29687_s0 + $0x370] sm:$0xff]   ;;  %v4404_v49 = vld [vmem:[#allocation2 + $0x2e8] sm:$0xff]  ;;  %v4402_v51 = vld [vmem:[#allocation2 + $0x2d8] sm:$0xff] }
 0x1b0   :  { %3299 = vst.msk [vmem:[#allocation2 + $0x308] sm:$0xff] %vm3201_vm3, %v3042_v55 }
 0x1b1   :  { %v20338_v58 = vpop.f32.mrb[100].mxu0 }
 0x1b2   :  { %vm2535_vm5 = vcmp.gt.f32.partialorder %v20338_v58, 0.0  ;;  %v2791_v59 = vmul.f32 0.2, %v20338_v58  ;;  %v1810_v60 = vpop.f32.mrb[101].mxu0 }
 0x1b3   :  { %20609 = vmatmul.mubr.msk.bf16.gmra.mrb[12].mxu1 %vm3201_vm3, %v4221_v57  ;;  %vm2533_vm6 = vcmp.gt.f32.partialorder %v1810_v60, 0.0  ;;  %v2789_v62 = vmul.f32 0.2, %v1810_v60  ;;  %v20339_v63 = vpop.f32.mrb[102].mxu0  ;;  %v4413_v57 = vpack.c.bf16 %v4404_v49, %v4403_v48  ;;  %v21582_v49 = vld [vmem:[%s29688_s2 + $0xf0] sm:$0xff]  }
 0x1b4   :  { %20620 = vmatprep.mubr.msk.bf16.mxu1 %vm3201_vm3, %v4407_v56  ;;  %v3047_v1 = vsel %vm2535_vm5, %v20338_v58, %v2791_v59  ;;  %vm2536_vm7 = vcmp.gt.f32.partialorder %v20339_v63, 0.0  ;;  %v2792_v2 = vmul.f32 0.2, %v20339_v63  ;;  %v1813_v3 = vpop.f32.mrb[103].mxu0  ;;  %v4412_v58 = vpack.c.bf16 %v4402_v51, %v4401_v54 }
 0x1b5   :  { %3304 = vst.msk [vmem:[#allocation2 + $0x330] sm:$0xff] %vm3201_vm3, %v3047_v1  ;;  %v3045_v8 = vsel %vm2533_vm6, %v1810_v60, %v2789_v62  ;;  %vm2534_vm8 = vcmp.gt.f32.partialorder %v1813_v3, 0.0  ;;  %v2790_v9 = vmul.f32 0.2, %v1813_v3  ;;  %v21577_v62 = vld [vmem:[%s29687_s0 + $0x378] sm:$0xff]   ;;  %v21580_v1 = vld [vmem:[%s29687_s0 + $0x380] sm:$0xff]  }
 0x1b6   :  { %3302 = vst.msk [vmem:[#allocation2 + $0x320] sm:$0xff] %vm3201_vm3, %v3045_v8  ;;  %v3048_v12 = vsel %vm2536_vm7, %v20339_v63, %v2792_v2  ;;  %20445 = vmatmul.mubr.msk.bf16.gmra.mrb[208].mxu0 %vm985_vm0, %v21569_v61  ;;  %v4584_v7 = vld [vmem:[#allocation2 + $0x300] sm:$0xff]  ;;  %v4587_v33 = vld [vmem:[#allocation2 + $0x318] sm:$0xff] }
 0x1b7   :  { %3305 = vst.msk [vmem:[#allocation2 + $0x338] sm:$0xff] %vm3201_vm3, %v3048_v12  ;;  %v3046_v4 = vsel %vm2534_vm8, %v1813_v3, %v2790_v9  ;;  %20448 = vmatprep.mubr.msk.bf16.mxu0 %vm985_vm0, %v21572_v0  ;;  %v4585_v8 = vld [vmem:[#allocation2 + $0x308] sm:$0xff]  ;;  %v4406_v12 = vld [vmem:[#allocation2 + $0x2f8] sm:$0xff] }
 0x1b8   :  { %3303 = vst.msk [vmem:[#allocation2 + $0x328] sm:$0xff] %vm3201_vm3, %v3046_v4 }
 0x1b9   :  { %v20342_v16 = vpop.f32.mrb[104].mxu0 }
 0x1ba   :  { %vm2539_vm9 = vcmp.gt.f32.partialorder %v20342_v16, 0.0  ;;  %v2795_v17 = vmul.f32 0.2, %v20342_v16  ;;  %v1826_v18 = vpop.f32.mrb[105].mxu0 }
 0x1bb   :  { %20621 = vmatmul.mubr.msk.bf16.vlgmr.msra.gmra.mrb[0].mxu1 %vm3201_vm3, %v4408_v14  ;;  %vm2537_vm10 = vcmp.gt.f32.partialorder %v1826_v18, 0.0  ;;  %v2793_v20 = vmul.f32 0.2, %v1826_v18  ;;  %v20343_v21 = vpop.f32.mrb[106].mxu0  ;;  %v4600_v14 = vpack.c.bf16 %v4585_v8, %v4584_v7 }
 0x1bc   :  { %20624 = vmatprep.mubr.msk.bf16.mxu1 %vm3201_vm3, %v4409_v13  ;;  %20637 = vmatpush3.bf16.msra.mxu1 %v24340_v32  ;;  %v3051_v23 = vsel %vm2539_vm9, %v20342_v16, %v2795_v17  ;;  %vm2540_vm11 = vcmp.gt.f32.partialorder %v20343_v21, 0.0  ;;  %v2796_v24 = vmul.f32 0.2, %v20343_v21  ;;  %v1829_v25 = vpop.f32.mrb[107].mxu0  ;;  %v4590_v54 = vld [vmem:[#allocation2 + $0x330] sm:$0xff] }
 0x1bd   :  { %20638 = vmatprep.subr.bf16.mxu1 %v21567_v15  ;;  %3308 = vst.msk [vmem:[#allocation2 + $0x350] sm:$0xff] %vm3201_vm3, %v3051_v23  ;;  %v3049_v30 = vsel %vm2537_vm10, %v1826_v18, %v2793_v20  ;;  %vm2538_vm12 = vcmp.gt.f32.partialorder %v1829_v25, 0.0  ;;  %v2794_v31 = vmul.f32 0.2, %v1829_v25  ;;  %v4588_v26 = vld [vmem:[#allocation2 + $0x320] sm:$0xff] }
 0x1be   :  { %3306 = vst.msk [vmem:[#allocation2 + $0x340] sm:$0xff] %vm3201_vm3, %v3049_v30  ;;  %v3052_v32 = vsel %vm2540_vm11, %v20343_v21, %v2796_v24  ;;  %20449 = vmatmul.mubr.msk.bf16.gmra.mrb[212].mxu0 %vm985_vm0, %v21573_v19  ;;  %v21581_v19 = vld [vmem:[%s29687_s0 + $0x388] sm:$0xff]   ;;  %v4591_v51 = vld [vmem:[#allocation2 + $0x338] sm:$0xff] }
 0x1bf   :  { %3309 = vst.msk [vmem:[#allocation2 + $0x358] sm:$0xff] %vm3201_vm3, %v3052_v32  ;;  %v3050_v34 = vsel %vm2538_vm12, %v1829_v25, %v2794_v31  ;;  %20452 = vmatprep.mubr.msk.bf16.mxu0 %vm985_vm0, %v21574_v22  ;;  %v21584_v22 = vld [vmem:[%s29687_s0 + $0x390] sm:$0xff]   ;;  %v4589_v27 = vld [vmem:[#allocation2 + $0x328] sm:$0xff] }
 0x1c0   :  { %20639 = vmatpush3.bf16.msra.mxu1 %v21567_v15  ;;  %3307 = vst.msk [vmem:[#allocation2 + $0x348] sm:$0xff] %vm3201_vm3, %v3050_v34  ;;  %v4414_v15 = vpack.c.bf16 %v4406_v12, %v4405_v11  ;;  %v4586_v31 = vld [vmem:[#allocation2 + $0x310] sm:$0xff]  ;;  %v4602_v34 = vpack.c.bf16 %v4589_v27, %v4588_v26  ;;  %v24484_v11 = vld [vmem:[%s29688_s2 + $0x100] sm:$0xff]  }
 0x1c1   :  { %20640 = vmatprep.subr.bf16.mxu1 %v21570_v28  ;;  %v20346_v38 = vpop.f32.mrb[108].mxu0 }
 0x1c2   :  { %vm2543_vm13 = vcmp.gt.f32.partialorder %v20346_v38, 0.0  ;;  %v2799_v39 = vmul.f32 0.2, %v20346_v38  ;;  %v1842_v40 = vpop.f32.mrb[109].mxu0 }
 0x1c3   :  { %20625 = vmatmul.mubr.msk.bf16.gmra.mrb[4].mxu1 %vm3201_vm3, %v4410_v36  ;;  %vm2541_vm14 = vcmp.gt.f32.partialorder %v1842_v40, 0.0  ;;  %v2797_v42 = vmul.f32 0.2, %v1842_v40  ;;  %v20347_v43 = vpop.f32.mrb[110].mxu0  ;;  %v21579_v36 = vld [vmem:[%s29688_s2 + $0xe8] sm:$0xff]  }
 0x1c4   :  { %20628 = vmatprep.mubr.msk.bf16.mxu1 %vm3201_vm3, %v4411_v35  ;;  %20641 = vmatpush3.bf16.msra.mxu1 %v21570_v28  ;;  %v3055_v45 = vsel %vm2543_vm13, %v20346_v38, %v2799_v39  ;;  %vm2544_vm15 = vcmp.gt.f32.partialorder %v20347_v43, 0.0  ;;  %v2800_v46 = vmul.f32 0.2, %v20347_v43  ;;  %v1845_v47 = vpop.f32.mrb[111].mxu0  ;;  %v4601_v35 = vpack.c.bf16 %v4587_v33, %v4586_v31  ;;  %v4594_v12 = vld [vmem:[#allocation2 + $0x350] sm:$0xff] }
 0x1c5   :  { %20642 = vmatprep.subr.bf16.mxu1 %v21571_v37  ;;  %3312 = vst.msk [vmem:[#allocation2 + $0x370] sm:$0xff] %vm3201_vm3, %v3055_v45  ;;  %v3053_v52 = vsel %vm2541_vm14, %v1842_v40, %v2797_v42  ;;  %vm2542_vm1 = vcmp.gt.f32.partialorder %v1845_v47, 0.0  ;;  %v2798_v50 = vmul.f32 0.2, %v1845_v47  ;;  %v21585_v40 = vld [vmem:[%s29687_s0 + $0x398] sm:$0xff]  }
 0x1c6   :  { %3310 = vst.msk [vmem:[#allocation2 + $0x360] sm:$0xff] %vm3201_vm3, %v3053_v52  ;;  %v3056_v55 = vsel %vm2544_vm15, %v20347_v43, %v2800_v46  ;;  %20453 = vmatmul.mubr.msk.bf16.gmra.mrb[216].mxu0 %vm985_vm0, %v21575_v41  ;;  %v21586_v43 = vld [vmem:[%s29687_s0 + $0x3a0] sm:$0xff]  }
 0x1c7   :  { %3313 = vst.msk [vmem:[#allocation2 + $0x378] sm:$0xff] %vm3201_vm3, %v3056_v55  ;;  %v3054_v56 = vsel %vm2542_vm1, %v1845_v47, %v2798_v50  ;;  %20456 = vmatprep.mubr.msk.bf16.mxu0 %vm985_vm0, %v21576_v44  ;;  %v4592_v47 = vld [vmem:[#allocation2 + $0x340] sm:$0xff]  ;;  %v4593_v48 = vld [vmem:[#allocation2 + $0x348] sm:$0xff] }
 0x1c8   :  { %20643 = vmatpush3.bf16.msra.mxu1 %v21571_v37  ;;  %3311 = vst.msk [vmem:[#allocation2 + $0x368] sm:$0xff] %vm3201_vm3, %v3054_v56  ;;  %v4604_v56 = vpack.c.bf16 %v4593_v48, %v4592_v47 }
 0x1c9   :  { %v20350_v59 = vpop.f32.mrb[112].mxu0  ;;  %20660 = vmatprep.subr.bf16.mxu1 %v24412_v53 }
 0x1ca   :  { %vm2547_vm2 = vcmp.gt.f32.partialorder %v20350_v59, 0.0  ;;  %v2803_v60 = vmul.f32 0.2, %v20350_v59  ;;  %v1858_v61 = vpop.f32.mrb[113].mxu0 }
 0x1cb   :  { %20629 = vmatmul.mubr.msk.bf16.gmra.mrb[8].mxu1 %vm3201_vm3, %v4412_v58  ;;  %vm2545_vm4 = vcmp.gt.f32.partialorder %v1858_v61, 0.0  ;;  %v2801_v63 = vmul.f32 0.2, %v1858_v61  ;;  %v20351_v0 = vpop.f32.mrb[114].mxu0  ;;  %v21583_v58 = vld [vmem:[%s29688_s2 + $0xf8] sm:$0xff]  }
 0x1cc   :  { %20632 = vmatprep.mubr.msk.bf16.mxu1 %vm3201_vm3, %v4413_v57  ;;  %v3059_v2 = vsel %vm2547_vm2, %v20350_v59, %v2803_v60  ;;  %vm2548_vm5 = vcmp.gt.f32.partialorder %v20351_v0, 0.0  ;;  %v2804_v3 = vmul.f32 0.2, %v20351_v0  ;;  %v1861_v5 = vpop.f32.mrb[115].mxu0  ;;  %v4603_v57 = vpack.c.bf16 %v4591_v51, %v4590_v54  ;;  %v4598_v33 = vld [vmem:[#allocation2 + $0x370] sm:$0xff] }
 0x1cd   :  { %3316 = vst.msk [vmem:[#allocation2 + $0x390] sm:$0xff] %vm3201_vm3, %v3059_v2  ;;  %v3057_v9 = vsel %vm2545_vm4, %v1858_v61, %v2801_v63  ;;  %vm2546_vm6 = vcmp.gt.f32.partialorder %v1861_v5, 0.0  ;;  %v2802_v10 = vmul.f32 0.2, %v1861_v5  ;;  %v4596_v7 = vld [vmem:[#allocation2 + $0x360] sm:$0xff] }
 0x1ce   :  { %3314 = vst.msk [vmem:[#allocation2 + $0x380] sm:$0xff] %vm3201_vm3, %v3057_v9  ;;  %v3060_v4 = vsel %vm2548_vm5, %v20351_v0, %v2804_v3  ;;  %20457 = vmatmul.mubr.msk.bf16.gmra.mrb[220].mxu0 %vm985_vm0, %v21577_v62  ;;  %v21587_v62 = vld [vmem:[%s29687_s0 + $0x3a8] sm:$0xff]  }
 0x1cf   :  { %3317 = vst.msk [vmem:[#allocation2 + $0x398] sm:$0xff] %vm3201_vm3, %v3060_v4  ;;  %v3058_v13 = vsel %vm2546_vm6, %v1861_v5, %v2802_v10  ;;  %20460 = vmatprep.mubr.msk.bf16.mxu0 %vm985_vm0, %v21580_v1  ;;  %v21588_v1 = vld [vmem:[%s29687_s0 + $0x3b0] sm:$0xff]   ;;  %v4597_v8 = vld [vmem:[#allocation2 + $0x368] sm:$0xff]  ;;  %v4595_v4 = vld [vmem:[#allocation2 + $0x358] sm:$0xff] }
 0x1d0   :  { %3315 = vst.msk [vmem:[#allocation2 + $0x388] sm:$0xff] %vm3201_vm3, %v3058_v13 }
 0x1d1   :  { %v20354_v16 = vpop.f32.mrb[116].mxu0 }
 0x1d2   :  { %vm2551_vm7 = vcmp.gt.f32.partialorder %v20354_v16, 0.0  ;;  %v2807_v17 = vmul.f32 0.2, %v20354_v16  ;;  %v1874_v18 = vpop.f32.mrb[117].mxu0 }
 0x1d3   :  { %20633 = vmatmul.mubr.msk.bf16.gmra.mrb[12].mxu1 %vm3201_vm3, %v4414_v15  ;;  %vm2549_vm8 = vcmp.gt.f32.partialorder %v1874_v18, 0.0  ;;  %v2805_v20 = vmul.f32 0.2, %v1874_v18  ;;  %v20355_v21 = vpop.f32.mrb[118].mxu0  ;;  %v4606_v15 = vpack.c.bf16 %v4597_v8, %v4596_v7  ;;  %v21594_v8 = vld [vmem:[%s29688_s2 + $0x110] sm:$0xff]  }
 0x1d4   :  { %20644 = vmatprep.mubr.msk.bf16.mxu1 %vm3201_vm3, %v4600_v14  ;;  %v3063_v23 = vsel %vm2551_vm7, %v20354_v16, %v2807_v17  ;;  %vm2552_vm9 = vcmp.gt.f32.partialorder %v20355_v21, 0.0  ;;  %v2808_v24 = vmul.f32 0.2, %v20355_v21  ;;  %v1877_v25 = vpop.f32.mrb[119].mxu0  ;;  %v4605_v16 = vpack.c.bf16 %v4595_v4, %v4594_v12 }
 0x1d5   :  { %3320 = vst.msk [vmem:[#allocation2 + $0x3b0] sm:$0xff] %vm3201_vm3, %v3063_v23  ;;  %v3061_v28 = vsel %vm2549_vm8, %v1874_v18, %v2805_v20  ;;  %vm2550_vm10 = vcmp.gt.f32.partialorder %v1877_v25, 0.0  ;;  %v2806_v30 = vmul.f32 0.2, %v1877_v25  ;;  %v21589_v20 = vld [vmem:[%s29687_s0 + $0x3b8] sm:$0xff]   ;;  %v21592_v23 = vld [vmem:[%s29687_s0 + $0x3c0] sm:$0xff]  }
 0x1d6   :  { %3318 = vst.msk [vmem:[#allocation2 + $0x3a0] sm:$0xff] %vm3201_vm3, %v3061_v28  ;;  %v3064_v29 = vsel %vm2552_vm9, %v20355_v21, %v2808_v24  ;;  %20461 = vmatmul.mubr.msk.bf16.gmra.mrb[224].mxu0 %vm985_vm0, %v21581_v19  ;;  %v4777_v27 = vld [vmem:[#allocation2 + $0x380] sm:$0xff]  ;;  %v4780_v54 = vld [vmem:[#allocation2 + $0x398] sm:$0xff] }
 0x1d7   :  { %3321 = vst.msk [vmem:[#allocation2 + $0x3b8] sm:$0xff] %vm3201_vm3, %v3064_v29  ;;  %v3062_v32 = vsel %vm2550_vm10, %v1877_v25, %v2806_v30  ;;  %20464 = vmatprep.mubr.msk.bf16.mxu0 %vm985_vm0, %v21584_v22  ;;  %v4778_v28 = vld [vmem:[#allocation2 + $0x388] sm:$0xff]  ;;  %v4599_v29 = vld [vmem:[#allocation2 + $0x378] sm:$0xff] }
 0x1d8   :  { %3319 = vst.msk [vmem:[#allocation2 + $0x3a8] sm:$0xff] %vm3201_vm3, %v3062_v32 }
 0x1d9   :  { %v20358_v37 = vpop.f32.mrb[120].mxu0 }
 0x1da   :  { %vm2555_vm11 = vcmp.gt.f32.partialorder %v20358_v37, 0.0  ;;  %v2811_v38 = vmul.f32 0.2, %v20358_v37  ;;  %v1890_v39 = vpop.f32.mrb[121].mxu0 }
 0x1db   :  { %20645 = vmatmul.mubr.msk.bf16.vlgmr.msra.gmra.mrb[0].mxu1 %vm3201_vm3, %v4601_v35  ;;  %vm2553_vm12 = vcmp.gt.f32.partialorder %v1890_v39, 0.0  ;;  %v2809_v41 = vmul.f32 0.2, %v1890_v39  ;;  %v20359_v42 = vpop.f32.mrb[122].mxu0  ;;  %v4793_v35 = vpack.c.bf16 %v4778_v28, %v4777_v27 }
 0x1dc   :  { %20648 = vmatprep.mubr.msk.bf16.mxu1 %vm3201_vm3, %v4602_v34  ;;  %20661 = vmatpush3.bf16.msra.mxu1 %v24412_v53  ;;  %v3067_v44 = vsel %vm2555_vm11, %v20358_v37, %v2811_v38  ;;  %vm2556_vm13 = vcmp.gt.f32.partialorder %v20359_v42, 0.0  ;;  %v2812_v45 = vmul.f32 0.2, %v20359_v42  ;;  %v1893_v46 = vpop.f32.mrb[123].mxu0  ;;  %v4783_v12 = vld [vmem:[#allocation2 + $0x3b0] sm:$0xff] }
 0x1dd   :  { %20662 = vmatprep.subr.bf16.mxu1 %v21579_v36  ;;  %3324 = vst.msk [vmem:[#allocation2 + $0x3d0] sm:$0xff] %vm3201_vm3, %v3067_v44  ;;  %v3065_v52 = vsel %vm2553_vm12, %v1890_v39, %v2809_v41  ;;  %vm2554_vm14 = vcmp.gt.f32.partialorder %v1893_v46, 0.0  ;;  %v2810_v50 = vmul.f32 0.2, %v1893_v46  ;;  %v4781_v47 = vld [vmem:[#allocation2 + $0x3a0] sm:$0xff] }
 0x1de   :  { %3322 = vst.msk [vmem:[#allocation2 + $0x3c0] sm:$0xff] %vm3201_vm3, %v3065_v52  ;;  %v3068_v53 = vsel %vm2556_vm13, %v20359_v42, %v2812_v45  ;;  %20465 = vmatmul.mubr.msk.bf16.gmra.mrb[228].mxu0 %vm985_vm0, %v21585_v40  ;;  %v21593_v40 = vld [vmem:[%s29687_s0 + $0x3c8] sm:$0xff]   ;;  %v4784_v4 = vld [vmem:[#allocation2 + $0x3b8] sm:$0xff] }
 0x1df   :  { %3325 = vst.msk [vmem:[#allocation2 + $0x3d8] sm:$0xff] %vm3201_vm3, %v3068_v53  ;;  %v3066_v55 = vsel %vm2554_vm14, %v1893_v46, %v2810_v50  ;;  %20468 = vmatprep.mubr.msk.bf16.mxu0 %vm985_vm0, %v21586_v43  ;;  %v21596_v43 = vld [vmem:[%s29687_s0 + $0x3d0] sm:$0xff]   ;;  %v4782_v48 = vld [vmem:[#allocation2 + $0x3a8] sm:$0xff] }
 0x1e0   :  { %20663 = vmatpush3.bf16.msra.mxu1 %v21579_v36  ;;  %3323 = vst.msk [vmem:[#allocation2 + $0x3c8] sm:$0xff] %vm3201_vm3, %v3066_v55  ;;  %v4607_v36 = vpack.c.bf16 %v4599_v29, %v4598_v33  ;;  %v4779_v50 = vld [vmem:[#allocation2 + $0x390] sm:$0xff]  ;;  %v4795_v55 = vpack.c.bf16 %v4782_v48, %v4781_v47  ;;  %v24556_v33 = vld [vmem:[%s29688_s2 + $0x120] sm:$0xff]  }
 0x1e1   :  { %20664 = vmatprep.subr.bf16.mxu1 %v21582_v49  ;;  %v20362_v59 = vpop.f32.mrb[124].mxu0 }
 0x1e2   :  { %vm2559_vm15 = vcmp.gt.f32.partialorder %v20362_v59, 0.0  ;;  %v2815_v60 = vmul.f32 0.2, %v20362_v59  ;;  %v1906_v61 = vpop.f32.mrb[125].mxu0 }
 0x1e3   :  { %20649 = vmatmul.mubr.msk.bf16.gmra.mrb[4].mxu1 %vm3201_vm3, %v4603_v57  ;;  %vm2557_vm1 = vcmp.gt.f32.partialorder %v1906_v61, 0.0  ;;  %v2813_v63 = vmul.f32 0.2, %v1906_v61  ;;  %v20363_v0 = vpop.f32.mrb[126].mxu0  ;;  %v21591_v57 = vld [vmem:[%s29688_s2 + $0x108] sm:$0xff]  }
 0x1e4   :  { %20652 = vmatprep.mubr.msk.bf16.mxu1 %vm3201_vm3, %v4604_v56  ;;  %20665 = vmatpush3.bf16.msra.mxu1 %v21582_v49  ;;  %v3071_v2 = vsel %vm2559_vm15, %v20362_v59, %v2815_v60  ;;  %vm2560_vm2 = vcmp.gt.f32.partialorder %v20363_v0, 0.0  ;;  %v2816_v3 = vmul.f32 0.2, %v20363_v0  ;;  %v1909_v5 = vpop.f32.mrb[127].mxu0  ;;  %v4794_v56 = vpack.c.bf16 %v4780_v54, %v4779_v50  ;;  %v4787_v29 = vld [vmem:[#allocation2 + $0x3d0] sm:$0xff] }
 0x1e5   :  { %20666 = vmatprep.subr.bf16.mxu1 %v21583_v58  ;;  %3328 = vst.msk [vmem:[#allocation2 + $0x3f0] sm:$0xff] %vm3201_vm3, %v3071_v2  ;;  %v3069_v9 = vsel %vm2557_vm1, %v1906_v61, %v2813_v63  ;;  %vm2558_vm4 = vcmp.gt.f32.partialorder %v1909_v5, 0.0  ;;  %v2814_v10 = vmul.f32 0.2, %v1909_v5  ;;  %v21597_v61 = vld [vmem:[%s29687_s0 + $0x3d8] sm:$0xff]  }
 0x1e6   :  { %3326 = vst.msk [vmem:[#allocation2 + $0x3e0] sm:$0xff] %vm3201_vm3, %v3069_v9  ;;  %v3072_v13 = vsel %vm2560_vm2, %v20363_v0, %v2816_v3  ;;  %20469 = vmatmul.mubr.msk.bf16.gmra.mrb[232].mxu0 %vm985_vm0, %v21587_v62  ;;  %v21598_v0 = vld [vmem:[%s29687_s0 + $0x3e0] sm:$0xff]  }
 0x1e7   :  { %3329 = vst.msk [vmem:[#allocation2 + $0x3f8] sm:$0xff] %vm3201_vm3, %v3072_v13  ;;  %v3070_v14 = vsel %vm2558_vm4, %v1909_v5, %v2814_v10  ;;  %20472 = vmatprep.mubr.msk.bf16.mxu0 %vm985_vm0, %v21588_v1  ;;  %v4785_v5 = vld [vmem:[#allocation2 + $0x3c0] sm:$0xff]  ;;  %v4786_v7 = vld [vmem:[#allocation2 + $0x3c8] sm:$0xff] }
 0x1e8   :  { %20667 = vmatpush3.bf16.msra.mxu1 %v21583_v58  ;;  %3327 = vst.msk [vmem:[#allocation2 + $0x3e8] sm:$0xff] %vm3201_vm3, %v3070_v14  ;;  %v4797_v14 = vpack.c.bf16 %v4786_v7, %v4785_v5 }
 0x1e9   :  { %v20366_v17 = vpop.f32.mrb[128].mxu0  ;;  %20684 = vmatprep.subr.bf16.mxu1 %v24484_v11 }
 0x1ea   :  { %vm2563_vm5 = vcmp.gt.f32.partialorder %v20366_v17, 0.0  ;;  %v2819_v18 = vmul.f32 0.2, %v20366_v17  ;;  %v1922_v19 = vpop.f32.mrb[129].mxu0 }
 0x1eb   :  { %20653 = vmatmul.mubr.msk.bf16.gmra.mrb[8].mxu1 %vm3201_vm3, %v4605_v16  ;;  %vm2561_vm6 = vcmp.gt.f32.partialorder %v1922_v19, 0.0  ;;  %v2817_v21 = vmul.f32 0.2, %v1922_v19  ;;  %v20367_v22 = vpop.f32.mrb[130].mxu0  ;;  %v21595_v16 = vld [vmem:[%s29688_s2 + $0x118] sm:$0xff]  }
 0x1ec   :  { %20656 = vmatprep.mubr.msk.bf16.mxu1 %vm3201_vm3, %v4606_v15  ;;  %v3075_v24 = vsel %vm2563_vm5, %v20366_v17, %v2819_v18  ;;  %vm2564_vm7 = vcmp.gt.f32.partialorder %v20367_v22, 0.0  ;;  %v2820_v25 = vmul.f32 0.2, %v20367_v22  ;;  %v1925_v26 = vpop.f32.mrb[131].mxu0  ;;  %v4796_v15 = vpack.c.bf16 %v4784_v4, %v4783_v12  ;;  %v4791_v50 = vld [vmem:[#allocation2 + $0x3f0] sm:$0xff] }
 0x1ed   :  { %3332 = vst.msk [vmem:[#allocation2 + $0x410] sm:$0xff] %vm3201_vm3, %v3075_v24  ;;  %v3073_v30 = vsel %vm2561_vm6, %v1922_v19, %v2817_v21  ;;  %vm2562_vm8 = vcmp.gt.f32.partialorder %v1925_v26, 0.0  ;;  %v2818_v31 = vmul.f32 0.2, %v1925_v26  ;;  %v4789_v27 = vld [vmem:[#allocation2 + $0x3e0] sm:$0xff] }
 0x1ee   :  { %3330 = vst.msk [vmem:[#allocation2 + $0x400] sm:$0xff] %vm3201_vm3, %v3073_v30  ;;  %v3076_v32 = vsel %vm2564_vm7, %v20367_v22, %v2820_v25  ;;  %20473 = vmatmul.mubr.msk.bf16.gmra.mrb[236].mxu0 %vm985_vm0, %v21589_v20  ;;  %v21599_v20 = vld [vmem:[%s29687_s0 + $0x3e8] sm:$0xff]   ;;  %v4792_v54 = vld [vmem:[#allocation2 + $0x3f8] sm:$0xff] }
 0x1ef   :  { %3333 = vst.msk [vmem:[#allocation2 + $0x418] sm:$0xff] %vm3201_vm3, %v3076_v32  ;;  %v3074_v34 = vsel %vm2562_vm8, %v1925_v26, %v2818_v31  ;;  %20476 = vmatprep.mubr.msk.bf16.mxu0 %vm985_vm0, %v21592_v23  ;;  %v21600_v23 = vld [vmem:[%s29687_s0 + $0x3f0] sm:$0xff]   ;;  %v4790_v28 = vld [vmem:[#allocation2 + $0x3e8] sm:$0xff]  ;;  %v4788_v32 = vld [vmem:[#allocation2 + $0x3d8] sm:$0xff] }
 0x1f0   :  { %3331 = vst.msk [vmem:[#allocation2 + $0x408] sm:$0xff] %vm3201_vm3, %v3074_v34 }
 0x1f1   :  { %v20370_v37 = vpop.f32.mrb[132].mxu0 }
 0x1f2   :  { %vm2567_vm9 = vcmp.gt.f32.partialorder %v20370_v37, 0.0  ;;  %v2823_v38 = vmul.f32 0.2, %v20370_v37  ;;  %v1938_v39 = vpop.f32.mrb[133].mxu0 }
 0x1f3   :  { %20657 = vmatmul.mubr.msk.bf16.gmra.mrb[12].mxu1 %vm3201_vm3, %v4607_v36  ;;  %vm2565_vm10 = vcmp.gt.f32.partialorder %v1938_v39, 0.0  ;;  %v2821_v41 = vmul.f32 0.2, %v1938_v39  ;;  %v20371_v42 = vpop.f32.mrb[134].mxu0  ;;  %v4799_v36 = vpack.c.bf16 %v4790_v28, %v4789_v27 }
 0x1f4   :  { %20668 = vmatprep.mubr.msk.bf16.mxu1 %vm3201_vm3, %v4793_v35  ;;  %v3079_v44 = vsel %vm2567_vm9, %v20370_v37, %v2823_v38  ;;  %vm2568_vm11 = vcmp.gt.f32.partialorder %v20371_v42, 0.0  ;;  %v2824_v45 = vmul.f32 0.2, %v20371_v42  ;;  %v1941_v46 = vpop.f32.mrb[135].mxu0  ;;  %v4798_v37 = vpack.c.bf16 %v4788_v32, %v4787_v29  ;;  %v4972_v7 = vld [vmem:[#allocation2 + $0x410] sm:$0xff]  ;;  %v21605_v29 = vld [vmem:[%s29688_s2 + $0x138] sm:$0xff]  }
 0x1f5   :  { %3336 = vst.msk [vmem:[#allocation2 + $0x430] sm:$0xff] %vm3201_vm3, %v3079_v44  ;;  %v3077_v49 = vsel %vm2565_vm10, %v1938_v39, %v2821_v41  ;;  %vm2566_vm12 = vcmp.gt.f32.partialorder %v1941_v46, 0.0  ;;  %v2822_v52 = vmul.f32 0.2, %v1941_v46  ;;  %v21601_v41 = vld [vmem:[%s29687_s0 + $0x3f8] sm:$0xff]   ;;  %v4970_v47 = vld [vmem:[#allocation2 + $0x400] sm:$0xff] }
 0x1f6   :  { %3334 = vst.msk [vmem:[#allocation2 + $0x420] sm:$0xff] %vm3201_vm3, %v3077_v49  ;;  %v3080_v51 = vsel %vm2568_vm11, %v20371_v42, %v2824_v45  ;;  %20477 = vmatmul.mubr.msk.bf16.gmra.mrb[240].mxu0 %vm985_vm0, %v21593_v40 }
 0x1f7   :  { %3337 = vst.msk [vmem:[#allocation2 + $0x438] sm:$0xff] %vm3201_vm3, %v3080_v51  ;;  %v3078_v53 = vsel %vm2566_vm12, %v1941_v46, %v2822_v52  ;;  %20480 = vmatprep.mubr.msk.bf16.mxu0 %vm985_vm0, %v21596_v43  ;;  %v4971_v48 = vld [vmem:[#allocation2 + $0x408] sm:$0xff] }
 0x1f8   :  { %3335 = vst.msk [vmem:[#allocation2 + $0x428] sm:$0xff] %vm3201_vm3, %v3078_v53 }
 0x1f9   :  { %v20374_v58 = vpop.f32.mrb[136].mxu0 }
 0x1fa   :  { %vm2571_vm13 = vcmp.gt.f32.partialorder %v20374_v58, 0.0  ;;  %v2827_v59 = vmul.f32 0.2, %v20374_v58  ;;  %v1954_v60 = vpop.f32.mrb[137].mxu0 }
 0x1fb   :  { %20669 = vmatmul.mubr.msk.bf16.vlgmr.msra.gmra.mrb[0].mxu1 %vm3201_vm3, %v4794_v56  ;;  %vm2569_vm14 = vcmp.gt.f32.partialorder %v1954_v60, 0.0  ;;  %v2825_v62 = vmul.f32 0.2, %v1954_v60  ;;  %v20375_v63 = vpop.f32.mrb[138].mxu0  ;;  %v4800_v56 = vpack.c.bf16 %v4792_v54, %v4791_v50 }
 0x1fc   :  { %20672 = vmatprep.mubr.msk.bf16.mxu1 %vm3201_vm3, %v4795_v55  ;;  %20685 = vmatpush3.bf16.msra.mxu1 %v24484_v11  ;;  %v3083_v1 = vsel %vm2571_vm13, %v20374_v58, %v2827_v59  ;;  %vm2572_vm15 = vcmp.gt.f32.partialorder %v20375_v63, 0.0  ;;  %v2828_v2 = vmul.f32 0.2, %v20375_v63  ;;  %v1957_v3 = vpop.f32.mrb[139].mxu0  ;;  %v4986_v55 = vpack.c.bf16 %v4971_v48, %v4970_v47 }
 0x1fd   :  { %20686 = vmatprep.subr.bf16.mxu1 %v21591_v57  ;;  %3340 = vst.msk [vmem:[#allocation2 + $0x450] sm:$0xff] %vm3201_vm3, %v3083_v1  ;;  %v3081_v9 = vsel %vm2569_vm14, %v1954_v60, %v2825_v62  ;;  %vm2570_vm1 = vcmp.gt.f32.partialorder %v1957_v3, 0.0  ;;  %v2826_v10 = vmul.f32 0.2, %v1957_v3  ;;  %v4974_v1 = vld [vmem:[#allocation2 + $0x420] sm:$0xff] }
 0x1fe   :  { %3338 = vst.msk [vmem:[#allocation2 + $0x440] sm:$0xff] %vm3201_vm3, %v3081_v9  ;;  %v3084_v11 = vsel %vm2572_vm15, %v20375_v63, %v2828_v2  ;;  %20481 = vmatmul.mubr.msk.bf16.gmra.mrb[244].mxu0 %vm985_vm0, %v21597_v61  ;;  %v4977_v27 = vld [vmem:[#allocation2 + $0x438] sm:$0xff] }
 0x1ff   :  { %3341 = vst.msk [vmem:[#allocation2 + $0x458] sm:$0xff] %vm3201_vm3, %v3084_v11  ;;  %v3082_v13 = vsel %vm2570_vm1, %v1957_v3, %v2826_v10  ;;  %20484 = vmatprep.mubr.msk.bf16.mxu0 %vm985_vm0, %v21598_v0  ;;  %v4975_v2 = vld [vmem:[#allocation2 + $0x428] sm:$0xff] }
 0x200   :  { %20687 = vmatpush3.bf16.msra.mxu1 %v21591_v57  ;;  %3339 = vst.msk [vmem:[#allocation2 + $0x448] sm:$0xff] %vm3201_vm3, %v3082_v13  ;;  %v4988_v12 = vpack.c.bf16 %v4975_v2, %v4974_v1  ;;  %v21603_v11 = vld [vmem:[%s29688_s2 + $0x128] sm:$0xff]  }
 0x201   :  { %20688 = vmatprep.subr.bf16.mxu1 %v21594_v8  ;;  %v20378_v17 = vpop.f32.mrb[140].mxu0 }
 0x202   :  { %vm2575_vm2 = vcmp.gt.f32.partialorder %v20378_v17, 0.0  ;;  %v2831_v18 = vmul.f32 0.2, %v20378_v17  ;;  %v1970_v19 = vpop.f32.mrb[141].mxu0 }
 0x203   :  { %20673 = vmatmul.mubr.msk.bf16.gmra.mrb[4].mxu1 %vm3201_vm3, %v4796_v15  ;;  %vm2573_vm4 = vcmp.gt.f32.partialorder %v1970_v19, 0.0  ;;  %v2829_v21 = vmul.f32 0.2, %v1970_v19  ;;  %v20379_v22 = vpop.f32.mrb[142].mxu0 }
 0x204   :  { %20676 = vmatprep.mubr.msk.bf16.mxu1 %vm3201_vm3, %v4797_v14  ;;  %20689 = vmatpush3.bf16.msra.mxu1 %v21594_v8  ;;  %v3087_v24 = vsel %vm2575_vm2, %v20378_v17, %v2831_v18  ;;  %vm2576_vm5 = vcmp.gt.f32.partialorder %v20379_v22, 0.0  ;;  %v2832_v25 = vmul.f32 0.2, %v20379_v22  ;;  %v1973_v26 = vpop.f32.mrb[143].mxu0  ;;  %v4973_v8 = vld [vmem:[#allocation2 + $0x418] sm:$0xff] }
 0x205   :  { %20690 = vmatprep.subr.bf16.mxu1 %v21595_v16  ;;  %3344 = vst.msk [vmem:[#allocation2 + $0x470] sm:$0xff] %vm3201_vm3, %v3087_v24  ;;  %v3085_v30 = vsel %vm2573_vm4, %v1970_v19, %v2829_v21  ;;  %vm2574_vm6 = vcmp.gt.f32.partialorder %v1973_v26, 0.0  ;;  %v2830_v31 = vmul.f32 0.2, %v1973_v26  ;;  %v4987_v4 = vpack.c.bf16 %v4973_v8, %v4972_v7  ;;  %v4978_v21 = vld [vmem:[#allocation2 + $0x440] sm:$0xff] }
 0x206   :  { %3342 = vst.msk [vmem:[#allocation2 + $0x460] sm:$0xff] %vm3201_vm3, %v3085_v30  ;;  %v3088_v34 = vsel %vm2576_vm5, %v20379_v22, %v2832_v25  ;;  %20485 = vmatmul.mubr.msk.bf16.gmra.mrb[248].mxu0 %vm985_vm0, %v21599_v20  ;;  %v4981_v47 = vld [vmem:[#allocation2 + $0x458] sm:$0xff] }
 0x207   :  { %3345 = vst.msk [vmem:[#allocation2 + $0x478] sm:$0xff] %vm3201_vm3, %v3088_v34  ;;  %v3086_v35 = vsel %vm2574_vm6, %v1973_v26, %v2830_v31  ;;  %20488 = vmatprep.mubr.msk.bf16.mxu0 %vm985_vm0, %v21600_v23  ;;  %v4979_v22 = vld [vmem:[#allocation2 + $0x448] sm:$0xff]  ;;  %v21604_v23 = vld [vmem:[%s29688_s2 + $0x130] sm:$0xff]  }
 0x208   :  { %20691 = vmatpush3.bf16.msra.mxu1 %v21595_v16  ;;  %3343 = vst.msk [vmem:[#allocation2 + $0x468] sm:$0xff] %vm3201_vm3, %v3086_v35  ;;  %v4976_v26 = vld [vmem:[#allocation2 + $0x430] sm:$0xff]  ;;  %v4990_v31 = vpack.c.bf16 %v4979_v22, %v4978_v21 }
 0x209   :  { %v20382_v38 = vpop.f32.mrb[144].mxu0  ;;  %20708 = vmatprep.subr.bf16.mxu1 %v24556_v33 }
 0x20a   :  { %vm2579_vm7 = vcmp.gt.f32.partialorder %v20382_v38, 0.0  ;;  %v2835_v39 = vmul.f32 0.2, %v20382_v38  ;;  %v1986_v40 = vpop.f32.mrb[145].mxu0 }
 0x20b   :  { %20677 = vmatmul.mubr.msk.bf16.gmra.mrb[8].mxu1 %vm3201_vm3, %v4798_v37  ;;  %vm2577_vm8 = vcmp.gt.f32.partialorder %v1986_v40, 0.0  ;;  %v2833_v42 = vmul.f32 0.2, %v1986_v40  ;;  %v20383_v43 = vpop.f32.mrb[146].mxu0 }
 0x20c   :  { %20680 = vmatprep.mubr.msk.bf16.mxu1 %vm3201_vm3, %v4799_v36  ;;  %v3091_v44 = vsel %vm2579_vm7, %v20382_v38, %v2835_v39  ;;  %vm2580_vm9 = vcmp.gt.f32.partialorder %v20383_v43, 0.0  ;;  %v2836_v45 = vmul.f32 0.2, %v20383_v43  ;;  %v1989_v46 = vpop.f32.mrb[147].mxu0 }
 0x20d   :  { %3348 = vst.msk [vmem:[#allocation2 + $0x490] sm:$0xff] %vm3201_vm3, %v3091_v44  ;;  %v3089_v49 = vsel %vm2577_vm8, %v1986_v40, %v2833_v42  ;;  %vm2578_vm10 = vcmp.gt.f32.partialorder %v1989_v46, 0.0  ;;  %v2834_v52 = vmul.f32 0.2, %v1989_v46 }
 0x20e   :  { %3346 = vst.msk [vmem:[#allocation2 + $0x480] sm:$0xff] %vm3201_vm3, %v3089_v49  ;;  %v3092_v51 = vsel %vm2580_vm9, %v20383_v43, %v2836_v45  ;;  %20489 = vmatmul.mubr.msk.bf16.gmra.mrb[252].mxu0 %vm985_vm0, %v21601_v41  ;;  %v4982_v41 = vld [vmem:[#allocation2 + $0x460] sm:$0xff]  ;;  %v4985_v1 = vld [vmem:[#allocation2 + $0x478] sm:$0xff] }
 0x20f   :  { %3349 = vst.msk [vmem:[#allocation2 + $0x498] sm:$0xff] %vm3201_vm3, %v3092_v51  ;;  %v3090_v53 = vsel %vm2578_vm10, %v1989_v46, %v2834_v52  ;;  %v4983_v42 = vld [vmem:[#allocation2 + $0x468] sm:$0xff]  ;;  %v24602_v45 = vld [vmem:[%s29688_s2 + $0x140] sm:$0xff]   ;;  %v4980_v46 = vld [vmem:[#allocation2 + $0x450] sm:$0xff] }
 0x210   :  { %3347 = vst.msk [vmem:[#allocation2 + $0x488] sm:$0xff] %vm3201_vm3, %v3090_v53  ;;  %v4992_v52 = vpack.c.bf16 %v4983_v42, %v4982_v41  ;;  %v4991_v50 = vpack.c.bf16 %v4981_v47, %v4980_v46 }
 0x211   :  { %v20386_v57 = vpop.f32.mrb[148].mxu0 }
 0x212   :  { %vm2583_vm11 = vcmp.gt.f32.partialorder %v20386_v57, 0.0  ;;  %v2839_v58 = vmul.f32 0.2, %v20386_v57  ;;  %v2002_v59 = vpop.f32.mrb[149].mxu0 }
 0x213   :  { %20681 = vmatmul.mubr.msk.bf16.gmra.mrb[12].mxu1 %vm3201_vm3, %v4800_v56  ;;  %vm2581_vm12 = vcmp.gt.f32.partialorder %v2002_v59, 0.0  ;;  %v2837_v60 = vmul.f32 0.2, %v2002_v59  ;;  %v20387_v61 = vpop.f32.mrb[150].mxu0 }
 0x214   :  { %20692 = vmatprep.mubr.msk.bf16.mxu1 %vm3201_vm3, %v4986_v55  ;;  %v3095_v62 = vsel %vm2583_vm11, %v20386_v57, %v2839_v58  ;;  %vm2584_vm0 = vcmp.gt.f32.partialorder %v20387_v61, 0.0  ;;  %v2840_v63 = vmul.f32 0.2, %v20387_v61  ;;  %v2005_v0 = vpop.f32.mrb[151].mxu0 }
 0x215   :  { %3352 = vst.msk [vmem:[#allocation2 + $0x4b0] sm:$0xff] %vm3201_vm3, %v3095_v62  ;;  %v3093_v3 = vsel %vm2581_vm12, %v2002_v59, %v2837_v60  ;;  %vm2582_vm13 = vcmp.gt.f32.partialorder %v2005_v0, 0.0  ;;  %v2838_v5 = vmul.f32 0.2, %v2005_v0  ;;  %v5163_v60 = vld [vmem:[#allocation2 + $0x480] sm:$0xff] }
 0x216   :  { %3350 = vst.msk [vmem:[#allocation2 + $0x4a0] sm:$0xff] %vm3201_vm3, %v3093_v3  ;;  %v3096_v9 = vsel %vm2584_vm0, %v20387_v61, %v2840_v63 }
 0x217   :  { %3353 = vst.msk [vmem:[#allocation2 + $0x4b8] sm:$0xff] %vm3201_vm3, %v3096_v9  ;;  %v3094_v10 = vsel %vm2582_vm13, %v2005_v0, %v2838_v5  ;;  %v5164_v61 = vld [vmem:[#allocation2 + $0x488] sm:$0xff]  ;;  %v4984_v0 = vld [vmem:[#allocation2 + $0x470] sm:$0xff] }
 0x218   :  { %3351 = vst.msk [vmem:[#allocation2 + $0x4a8] sm:$0xff] %vm3201_vm3, %v3094_v10  ;;  %v5179_v5 = vpack.c.bf16 %v5164_v61, %v5163_v60  ;;  %v4993_v7 = vpack.c.bf16 %v4985_v1, %v4984_v0 }
 0x219   :  { %v20390_v13 = vpop.f32.mrb[152].mxu0 }
 0x21a   :  { %vm2587_vm14 = vcmp.gt.f32.partialorder %v20390_v13, 0.0  ;;  %v2843_v14 = vmul.f32 0.2, %v20390_v13  ;;  %v2018_v15 = vpop.f32.mrb[153].mxu0 }
 0x21b   :  { %20693 = vmatmul.mubr.msk.bf16.vlgmr.msra.gmra.mrb[0].mxu1 %vm3201_vm3, %v4987_v4  ;;  %vm2585_vm15 = vcmp.gt.f32.partialorder %v2018_v15, 0.0  ;;  %v2841_v16 = vmul.f32 0.2, %v2018_v15  ;;  %v20391_v17 = vpop.f32.mrb[154].mxu0 }
 0x21c   :  { %20696 = vmatprep.mubr.msk.bf16.mxu1 %vm3201_vm3, %v4988_v12  ;;  %20709 = vmatpush3.bf16.msra.mxu1 %v24556_v33  ;;  %v3099_v18 = vsel %vm2587_vm14, %v20390_v13, %v2843_v14  ;;  %vm2588_vm1 = vcmp.gt.f32.partialorder %v20391_v17, 0.0  ;;  %v2844_v19 = vmul.f32 0.2, %v20391_v17  ;;  %v2021_v20 = vpop.f32.mrb[155].mxu0  ;;  %v4989_v33 = vpack.c.bf16 %v4977_v27, %v4976_v26 }
 0x21d   :  { %20710 = vmatprep.subr.bf16.mxu1 %v21603_v11  ;;  %3356 = vst.msk [vmem:[#allocation2 + $0x4d0] sm:$0xff] %vm3201_vm3, %v3099_v18  ;;  %v3097_v24 = vsel %vm2585_vm15, %v2018_v15, %v2841_v16  ;;  %vm2586_vm2 = vcmp.gt.f32.partialorder %v2021_v20, 0.0  ;;  %v2842_v25 = vmul.f32 0.2, %v2021_v20  ;;  %v5167_v15 = vld [vmem:[#allocation2 + $0x4a0] sm:$0xff] }
 0x21e   :  { %3354 = vst.msk [vmem:[#allocation2 + $0x4c0] sm:$0xff] %vm3201_vm3, %v3097_v24  ;;  %v3100_v28 = vsel %vm2588_vm1, %v20391_v17, %v2844_v19  ;;  %v5165_v19 = vld [vmem:[#allocation2 + $0x490] sm:$0xff] }
 0x21f   :  { %3357 = vst.msk [vmem:[#allocation2 + $0x4d8] sm:$0xff] %vm3201_vm3, %v3100_v28  ;;  %v3098_v30 = vsel %vm2586_vm2, %v2021_v20, %v2842_v25  ;;  %v5168_v16 = vld [vmem:[#allocation2 + $0x4a8] sm:$0xff]  ;;  %v5166_v20 = vld [vmem:[#allocation2 + $0x498] sm:$0xff] }
 0x220   :  { %20711 = vmatpush3.bf16.msra.mxu1 %v21603_v11  ;;  %3355 = vst.msk [vmem:[#allocation2 + $0x4c8] sm:$0xff] %vm3201_vm3, %v3098_v30  ;;  %v5180_v24 = vpack.c.bf16 %v5166_v20, %v5165_v19  ;;  %v21607_v25 = vld [vmem:[%s29688_s2 + $0x148] sm:$0xff]  }
 0x221   :  { %20712 = vmatprep.subr.bf16.mxu1 %v21604_v23  ;;  %v20394_v32 = vpop.f32.mrb[156].mxu0 }
 0x222   :  { %vm2591_vm4 = vcmp.gt.f32.partialorder %v20394_v32, 0.0  ;;  %v2847_v34 = vmul.f32 0.2, %v20394_v32  ;;  %v2034_v35 = vpop.f32.mrb[157].mxu0 }
 0x223   :  { %20697 = vmatmul.mubr.msk.bf16.gmra.mrb[4].mxu1 %vm3201_vm3, %v4989_v33  ;;  %vm2589_vm5 = vcmp.gt.f32.partialorder %v2034_v35, 0.0  ;;  %v2845_v36 = vmul.f32 0.2, %v2034_v35  ;;  %v20395_v37 = vpop.f32.mrb[158].mxu0 }
 0x224   :  { %20700 = vmatprep.mubr.msk.bf16.mxu1 %vm3201_vm3, %v4990_v31  ;;  %20713 = vmatpush3.bf16.msra.mxu1 %v21604_v23  ;;  %v3103_v38 = vsel %vm2591_vm4, %v20394_v32, %v2847_v34  ;;  %vm2592_vm6 = vcmp.gt.f32.partialorder %v20395_v37, 0.0  ;;  %v2848_v39 = vmul.f32 0.2, %v20395_v37  ;;  %v2037_v40 = vpop.f32.mrb[159].mxu0  ;;  %v5181_v23 = vpack.c.bf16 %v5168_v16, %v5167_v15 }
 0x225   :  { %20714 = vmatprep.subr.bf16.mxu1 %v21605_v29  ;;  %3360 = vst.msk [vmem:[#allocation2 + $0x4f0] sm:$0xff] %vm3201_vm3, %v3103_v38  ;;  %v3101_v43 = vsel %vm2589_vm5, %v2034_v35, %v2845_v36  ;;  %vm2590_vm7 = vcmp.gt.f32.partialorder %v2037_v40, 0.0  ;;  %v2846_v44 = vmul.f32 0.2, %v2037_v40  ;;  %v5171_v34 = vld [vmem:[#allocation2 + $0x4c0] sm:$0xff]  ;;  %v21608_v36 = vld [vmem:[%s29688_s2 + $0x150] sm:$0xff]  }
 0x226   :  { %3358 = vst.msk [vmem:[#allocation2 + $0x4e0] sm:$0xff] %vm3201_vm3, %v3101_v43  ;;  %v3104_v48 = vsel %vm2592_vm6, %v20395_v37, %v2848_v39  ;;  %v5169_v39 = vld [vmem:[#allocation2 + $0x4b0] sm:$0xff]  ;;  %v5174_v60 = vld [vmem:[#allocation2 + $0x4d8] sm:$0xff] }
 0x227   :  { %3361 = vst.msk [vmem:[#allocation2 + $0x4f8] sm:$0xff] %vm3201_vm3, %v3104_v48  ;;  %v3102_v49 = vsel %vm2590_vm7, %v2037_v40, %v2846_v44  ;;  %v5172_v35 = vld [vmem:[#allocation2 + $0x4c8] sm:$0xff]  ;;  %v5170_v40 = vld [vmem:[#allocation2 + $0x4b8] sm:$0xff] }
 0x228   :  { %20715 = vmatpush3.bf16.msra.mxu1 %v21605_v29  ;;  %3359 = vst.msk [vmem:[#allocation2 + $0x4e8] sm:$0xff] %vm3201_vm3, %v3102_v49  ;;  %v5183_v43 = vpack.c.bf16 %v5172_v35, %v5171_v34  ;;  %v5182_v44 = vpack.c.bf16 %v5170_v40, %v5169_v39 }
 0x229   :  { %v20398_v54 = vpop.f32.mrb[160].mxu0  ;;  %20732 = vmatprep.subr.bf16.mxu1 %v24602_v45 }
 0x22a   :  { %vm2595_vm8 = vcmp.gt.f32.partialorder %v20398_v54, 0.0  ;;  %v2851_v51 = vmul.f32 0.2, %v20398_v54  ;;  %v2050_v53 = vpop.f32.mrb[161].mxu0 }
 0x22b   :  { %20701 = vmatmul.mubr.msk.bf16.gmra.mrb[8].mxu1 %vm3201_vm3, %v4991_v50  ;;  %vm2593_vm9 = vcmp.gt.f32.partialorder %v2050_v53, 0.0  ;;  %v2849_v55 = vmul.f32 0.2, %v2050_v53  ;;  %v20399_v56 = vpop.f32.mrb[162].mxu0 }
 0x22c   :  { %20704 = vmatprep.mubr.msk.bf16.mxu1 %vm3201_vm3, %v4992_v52  ;;  %v3107_v57 = vsel %vm2595_vm8, %v20398_v54, %v2851_v51  ;;  %vm2596_vm10 = vcmp.gt.f32.partialorder %v20399_v56, 0.0  ;;  %v2852_v58 = vmul.f32 0.2, %v20399_v56  ;;  %v2053_v59 = vpop.f32.mrb[163].mxu0 }
 0x22d   :  { %3364 = vst.msk [vmem:[#allocation2 + $0x510] sm:$0xff] %vm3201_vm3, %v3107_v57  ;;  %v3105_v62 = vsel %vm2593_vm9, %v2050_v53, %v2849_v55  ;;  %vm2594_vm11 = vcmp.gt.f32.partialorder %v2053_v59, 0.0  ;;  %v2850_v63 = vmul.f32 0.2, %v2053_v59  ;;  %v5175_v53 = vld [vmem:[#allocation2 + $0x4e0] sm:$0xff] }
 0x22e   :  { %3362 = vst.msk [vmem:[#allocation2 + $0x500] sm:$0xff] %vm3201_vm3, %v3105_v62  ;;  %v3108_v2 = vsel %vm2596_vm10, %v20399_v56, %v2852_v58  ;;  %v24642_v58 = vld [vmem:[%s29688_s2 + $0x160] sm:$0xff]   ;;  %v5178_v15 = vld [vmem:[#allocation2 + $0x4f8] sm:$0xff] }
 0x22f   :  { %3365 = vst.msk [vmem:[#allocation2 + $0x518] sm:$0xff] %vm3201_vm3, %v3108_v2  ;;  %v3106_v3 = vsel %vm2594_vm11, %v2053_v59, %v2850_v63  ;;  %v5176_v55 = vld [vmem:[#allocation2 + $0x4e8] sm:$0xff]  ;;  %v5173_v59 = vld [vmem:[#allocation2 + $0x4d0] sm:$0xff] }
 0x230   :  { %3363 = vst.msk [vmem:[#allocation2 + $0x508] sm:$0xff] %vm3201_vm3, %v3106_v3  ;;  %v5185_v63 = vpack.c.bf16 %v5176_v55, %v5175_v53  ;;  %v5184_v0 = vpack.c.bf16 %v5174_v60, %v5173_v59 }
 0x231   :  { %v20402_v8 = vpop.f32.mrb[164].mxu0 }
 0x232   :  { %vm2599_vm12 = vcmp.gt.f32.partialorder %v20402_v8, 0.0  ;;  %v2855_v9 = vmul.f32 0.2, %v20402_v8  ;;  %v2066_v10 = vpop.f32.mrb[165].mxu0 }
 0x233   :  { %20705 = vmatmul.mubr.msk.bf16.gmra.mrb[12].mxu1 %vm3201_vm3, %v4993_v7  ;;  %vm2597_vm0 = vcmp.gt.f32.partialorder %v2066_v10, 0.0  ;;  %v2853_v12 = vmul.f32 0.2, %v2066_v10  ;;  %v20403_v4 = vpop.f32.mrb[166].mxu0 }
 0x234   :  { %20716 = vmatprep.mubr.msk.bf16.mxu1 %vm3201_vm3, %v5179_v5  ;;  %v3111_v11 = vsel %vm2599_vm12, %v20402_v8, %v2855_v9  ;;  %vm2600_vm13 = vcmp.gt.f32.partialorder %v20403_v4, 0.0  ;;  %v2856_v13 = vmul.f32 0.2, %v20403_v4  ;;  %v2069_v14 = vpop.f32.mrb[167].mxu0 }
 0x235   :  { %3368 = vst.msk [vmem:[#allocation2 + $0x530] sm:$0xff] %vm3201_vm3, %v3111_v11  ;;  %v3109_v17 = vsel %vm2597_vm0, %v2066_v10, %v2853_v12  ;;  %vm2598_vm14 = vcmp.gt.f32.partialorder %v2069_v14, 0.0  ;;  %v2854_v18 = vmul.f32 0.2, %v2069_v14  ;;  %v5356_v12 = vld [vmem:[#allocation2 + $0x500] sm:$0xff] }
 0x236   :  { %3366 = vst.msk [vmem:[#allocation2 + $0x520] sm:$0xff] %vm3201_vm3, %v3109_v17  ;;  %v3112_v21 = vsel %vm2600_vm13, %v20403_v4, %v2856_v13 }
 0x237   :  { %3369 = vst.msk [vmem:[#allocation2 + $0x538] sm:$0xff] %vm3201_vm3, %v3112_v21  ;;  %v3110_v22 = vsel %vm2598_vm14, %v2069_v14, %v2854_v18  ;;  %v5357_v4 = vld [vmem:[#allocation2 + $0x508] sm:$0xff]  ;;  %v5177_v14 = vld [vmem:[#allocation2 + $0x4f0] sm:$0xff] }
 0x238   :  { %3367 = vst.msk [vmem:[#allocation2 + $0x528] sm:$0xff] %vm3201_vm3, %v3110_v22  ;;  %v5372_v18 = vpack.c.bf16 %v5357_v4, %v5356_v12  ;;  %v5186_v19 = vpack.c.bf16 %v5178_v15, %v5177_v14 }
 0x239   :  { %v20406_v26 = vpop.f32.mrb[168].mxu0 }
 0x23a   :  { %vm2603_vm15 = vcmp.gt.f32.partialorder %v20406_v26, 0.0  ;;  %v2859_v27 = vmul.f32 0.2, %v20406_v26  ;;  %v2082_v28 = vpop.f32.mrb[169].mxu0 }
 0x23b   :  { %20717 = vmatmul.mubr.msk.bf16.vlgmr.msra.gmra.mrb[0].mxu1 %vm3201_vm3, %v5180_v24  ;;  %vm2601_vm1 = vcmp.gt.f32.partialorder %v2082_v28, 0.0  ;;  %v2857_v30 = vmul.f32 0.2, %v2082_v28  ;;  %v20407_v31 = vpop.f32.mrb[170].mxu0 }
 0x23c   :  { %20720 = vmatprep.mubr.msk.bf16.mxu1 %vm3201_vm3, %v5181_v23  ;;  %20733 = vmatpush3.bf16.msra.mxu1 %v24602_v45  ;;  %v3115_v33 = vsel %vm2603_vm15, %v20406_v26, %v2859_v27  ;;  %vm2604_vm2 = vcmp.gt.f32.partialorder %v20407_v31, 0.0  ;;  %v2860_v29 = vmul.f32 0.2, %v20407_v31  ;;  %v2085_v32 = vpop.f32.mrb[171].mxu0  ;;  %v21609_v45 = vld [vmem:[%s29688_s2 + $0x158] sm:$0xff]  }
 0x23d   :  { %20734 = vmatprep.subr.bf16.mxu1 %v21607_v25  ;;  %3372 = vst.msk [vmem:[#allocation2 + $0x550] sm:$0xff] %vm3201_vm3, %v3115_v33  ;;  %v3113_v37 = vsel %vm2601_vm1, %v2082_v28, %v2857_v30  ;;  %vm2602_vm4 = vcmp.gt.f32.partialorder %v2085_v32, 0.0  ;;  %v2858_v38 = vmul.f32 0.2, %v2085_v32  ;;  %v5360_v28 = vld [vmem:[#allocation2 + $0x520] sm:$0xff] }
 0x23e   :  { %3370 = vst.msk [vmem:[#allocation2 + $0x540] sm:$0xff] %vm3201_vm3, %v3113_v37  ;;  %v3116_v41 = vsel %vm2604_vm2, %v20407_v31, %v2860_v29  ;;  %v5358_v29 = vld [vmem:[#allocation2 + $0x510] sm:$0xff] }
 0x23f   :  { %3373 = vst.msk [vmem:[#allocation2 + $0x558] sm:$0xff] %vm3201_vm3, %v3116_v41  ;;  %v3114_v42 = vsel %vm2602_vm4, %v2085_v32, %v2858_v38  ;;  %v5361_v30 = vld [vmem:[#allocation2 + $0x528] sm:$0xff]  ;;  %v5359_v32 = vld [vmem:[#allocation2 + $0x518] sm:$0xff] }
 0x240   :  { %20735 = vmatpush3.bf16.msra.mxu1 %v21607_v25  ;;  %3371 = vst.msk [vmem:[#allocation2 + $0x548] sm:$0xff] %vm3201_vm3, %v3114_v42  ;;  %v5373_v37 = vpack.c.bf16 %v5359_v32, %v5358_v29  ;;  %v21611_v38 = vld [vmem:[%s29688_s2 + $0x168] sm:$0xff]  }
 0x241   :  { %20736 = vmatprep.subr.bf16.mxu1 %v21608_v36  ;;  %v20410_v46 = vpop.f32.mrb[172].mxu0 }
 0x242   :  { %vm2607_vm5 = vcmp.gt.f32.partialorder %v20410_v46, 0.0  ;;  %v2863_v47 = vmul.f32 0.2, %v20410_v46  ;;  %v2098_v48 = vpop.f32.mrb[173].mxu0 }
 0x243   :  { %20721 = vmatmul.mubr.msk.bf16.gmra.mrb[4].mxu1 %vm3201_vm3, %v5182_v44  ;;  %vm2605_vm6 = vcmp.gt.f32.partialorder %v2098_v48, 0.0  ;;  %v2861_v49 = vmul.f32 0.2, %v2098_v48  ;;  %v20411_v52 = vpop.f32.mrb[174].mxu0 }
 0x244   :  { %20724 = vmatprep.mubr.msk.bf16.mxu1 %vm3201_vm3, %v5183_v43  ;;  %20737 = vmatpush3.bf16.msra.mxu1 %v21608_v36  ;;  %v3119_v50 = vsel %vm2607_vm5, %v20410_v46, %v2863_v47  ;;  %vm2608_vm7 = vcmp.gt.f32.partialorder %v20411_v52, 0.0  ;;  %v2864_v54 = vmul.f32 0.2, %v20411_v52  ;;  %v2101_v51 = vpop.f32.mrb[175].mxu0  ;;  %v5374_v36 = vpack.c.bf16 %v5361_v30, %v5360_v28 }
 0x245   :  { %20738 = vmatprep.subr.bf16.mxu1 %v21609_v45  ;;  %3376 = vst.msk [vmem:[#allocation2 + $0x570] sm:$0xff] %vm3201_vm3, %v3119_v50  ;;  %v3117_v56 = vsel %vm2605_vm6, %v2098_v48, %v2861_v49  ;;  %vm2606_vm8 = vcmp.gt.f32.partialorder %v2101_v51, 0.0  ;;  %v2862_v57 = vmul.f32 0.2, %v2101_v51  ;;  %v5364_v47 = vld [vmem:[#allocation2 + $0x540] sm:$0xff]  ;;  %v21612_v49 = vld [vmem:[%s29688_s2 + $0x170] sm:$0xff]  }
 0x246   :  { %3374 = vst.msk [vmem:[#allocation2 + $0x560] sm:$0xff] %vm3201_vm3, %v3117_v56  ;;  %v3120_v61 = vsel %vm2608_vm7, %v20411_v52, %v2864_v54  ;;  %v5362_v54 = vld [vmem:[#allocation2 + $0x530] sm:$0xff]  ;;  %v5367_v12 = vld [vmem:[#allocation2 + $0x558] sm:$0xff] }
 0x247   :  { %3377 = vst.msk [vmem:[#allocation2 + $0x578] sm:$0xff] %vm3201_vm3, %v3120_v61  ;;  %v3118_v62 = vsel %vm2606_vm8, %v2101_v51, %v2862_v57  ;;  %v5365_v48 = vld [vmem:[#allocation2 + $0x548] sm:$0xff]  ;;  %v5363_v51 = vld [vmem:[#allocation2 + $0x538] sm:$0xff] }
 0x248   :  { %20739 = vmatpush3.bf16.msra.mxu1 %v21609_v45  ;;  %3375 = vst.msk [vmem:[#allocation2 + $0x568] sm:$0xff] %vm3201_vm3, %v3118_v62  ;;  %v5376_v56 = vpack.c.bf16 %v5365_v48, %v5364_v47  ;;  %v5375_v57 = vpack.c.bf16 %v5363_v51, %v5362_v54 }
 0x249   :  { %v20414_v1 = vpop.f32.mrb[176].mxu0  ;;  %20756 = vmatprep.subr.bf16.mxu1 %v24642_v58 }
 0x24a   :  { %vm2611_vm9 = vcmp.gt.f32.partialorder %v20414_v1, 0.0  ;;  %v2867_v2 = vmul.f32 0.2, %v20414_v1  ;;  %v2114_v3 = vpop.f32.mrb[177].mxu0 }
 0x24b   :  { %20725 = vmatmul.mubr.msk.bf16.gmra.mrb[8].mxu1 %vm3201_vm3, %v5184_v0  ;;  %vm2609_vm10 = vcmp.gt.f32.partialorder %v2114_v3, 0.0  ;;  %v2865_v5 = vmul.f32 0.2, %v2114_v3  ;;  %v20415_v7 = vpop.f32.mrb[178].mxu0 }
 0x24c   :  { %20728 = vmatprep.mubr.msk.bf16.mxu1 %vm3201_vm3, %v5185_v63  ;;  %v3123_v8 = vsel %vm2611_vm9, %v20414_v1, %v2867_v2  ;;  %vm2612_vm11 = vcmp.gt.f32.partialorder %v20415_v7, 0.0  ;;  %v2868_v9 = vmul.f32 0.2, %v20415_v7  ;;  %v2117_v10 = vpop.f32.mrb[179].mxu0 }
 0x24d   :  { %3380 = vst.msk [vmem:[#allocation2 + $0x590] sm:$0xff] %vm3201_vm3, %v3123_v8  ;;  %v3121_v11 = vsel %vm2609_vm10, %v2114_v3, %v2865_v5  ;;  %vm2610_vm12 = vcmp.gt.f32.partialorder %v2117_v10, 0.0  ;;  %v2866_v13 = vmul.f32 0.2, %v2117_v10  ;;  %v5368_v3 = vld [vmem:[#allocation2 + $0x560] sm:$0xff] }
 0x24e   :  { %3378 = vst.msk [vmem:[#allocation2 + $0x580] sm:$0xff] %vm3201_vm3, %v3121_v11  ;;  %v3124_v16 = vsel %vm2612_vm11, %v20415_v7, %v2868_v9  ;;  %v24682_v9 = vld [vmem:[%s29688_s2 + $0x180] sm:$0xff]   ;;  %v5371_v28 = vld [vmem:[#allocation2 + $0x578] sm:$0xff] }
 0x24f   :  { %3381 = vst.msk [vmem:[#allocation2 + $0x598] sm:$0xff] %vm3201_vm3, %v3124_v16  ;;  %v3122_v17 = vsel %vm2610_vm12, %v2117_v10, %v2866_v13  ;;  %v5369_v5 = vld [vmem:[#allocation2 + $0x568] sm:$0xff]  ;;  %v5366_v10 = vld [vmem:[#allocation2 + $0x550] sm:$0xff] }
 0x250   :  { %3379 = vst.msk [vmem:[#allocation2 + $0x588] sm:$0xff] %vm3201_vm3, %v3122_v17  ;;  %v5378_v13 = vpack.c.bf16 %v5369_v5, %v5368_v3  ;;  %v5377_v14 = vpack.c.bf16 %v5367_v12, %v5366_v10 }
 0x251   :  { %v20418_v20 = vpop.f32.mrb[180].mxu0 }
 0x252   :  { %vm2615_vm0 = vcmp.gt.f32.partialorder %v20418_v20, 0.0  ;;  %v2871_v21 = vmul.f32 0.2, %v20418_v20  ;;  %v2130_v22 = vpop.f32.mrb[181].mxu0 }
 0x253   :  { %20729 = vmatmul.mubr.msk.bf16.gmra.mrb[12].mxu1 %vm3201_vm3, %v5186_v19  ;;  %vm2613_vm13 = vcmp.gt.f32.partialorder %v2130_v22, 0.0  ;;  %v2869_v23 = vmul.f32 0.2, %v2130_v22  ;;  %v20419_v24 = vpop.f32.mrb[182].mxu0 }
 0x254   :  { %20740 = vmatprep.mubr.msk.bf16.mxu1 %vm3201_vm3, %v5372_v18  ;;  %v3127_v25 = vsel %vm2615_vm0, %v20418_v20, %v2871_v21  ;;  %vm2616_vm14 = vcmp.gt.f32.partialorder %v20419_v24, 0.0  ;;  %v2872_v26 = vmul.f32 0.2, %v20419_v24  ;;  %v2133_v27 = vpop.f32.mrb[183].mxu0 }
 0x255   :  { %3384 = vst.msk [vmem:[#allocation2 + $0x5b0] sm:$0xff] %vm3201_vm3, %v3127_v25  ;;  %v3125_v31 = vsel %vm2613_vm13, %v2130_v22, %v2869_v23  ;;  %vm2614_vm15 = vcmp.gt.f32.partialorder %v2133_v27, 0.0  ;;  %v2870_v33 = vmul.f32 0.2, %v2133_v27  ;;  %v5549_v23 = vld [vmem:[#allocation2 + $0x580] sm:$0xff] }
 0x256   :  { %3382 = vst.msk [vmem:[#allocation2 + $0x5a0] sm:$0xff] %vm3201_vm3, %v3125_v31  ;;  %v3128_v34 = vsel %vm2616_vm14, %v20419_v24, %v2872_v26 }
 0x257   :  { %3385 = vst.msk [vmem:[#allocation2 + $0x5b8] sm:$0xff] %vm3201_vm3, %v3128_v34  ;;  %v3126_v35 = vsel %vm2614_vm15, %v2133_v27, %v2870_v33  ;;  %v5550_v24 = vld [vmem:[#allocation2 + $0x588] sm:$0xff]  ;;  %v5370_v27 = vld [vmem:[#allocation2 + $0x570] sm:$0xff] }
 0x258   :  { %3383 = vst.msk [vmem:[#allocation2 + $0x5a8] sm:$0xff] %vm3201_vm3, %v3126_v35  ;;  %v5565_v33 = vpack.c.bf16 %v5550_v24, %v5549_v23  ;;  %v5379_v29 = vpack.c.bf16 %v5371_v28, %v5370_v27 }
 0x259   :  { %v20422_v39 = vpop.f32.mrb[184].mxu0 }
 0x25a   :  { %vm2619_vm1 = vcmp.gt.f32.partialorder %v20422_v39, 0.0  ;;  %v2875_v40 = vmul.f32 0.2, %v20422_v39  ;;  %v2146_v41 = vpop.f32.mrb[185].mxu0 }
 0x25b   :  { %20741 = vmatmul.mubr.msk.bf16.vlgmr.msra.gmra.mrb[0].mxu1 %vm3201_vm3, %v5373_v37  ;;  %vm2617_vm2 = vcmp.gt.f32.partialorder %v2146_v41, 0.0  ;;  %v2873_v42 = vmul.f32 0.2, %v2146_v41  ;;  %v20423_v43 = vpop.f32.mrb[186].mxu0 }
 0x25c   :  { %20744 = vmatprep.mubr.msk.bf16.mxu1 %vm3201_vm3, %v5374_v36  ;;  %20757 = vmatpush3.bf16.msra.mxu1 %v24642_v58  ;;  %v3131_v44 = vsel %vm2619_vm1, %v20422_v39, %v2875_v40  ;;  %vm2620_vm4 = vcmp.gt.f32.partialorder %v20423_v43, 0.0  ;;  %v2876_v45 = vmul.f32 0.2, %v20423_v43  ;;  %v2149_v46 = vpop.f32.mrb[187].mxu0  ;;  %v21613_v58 = vld [vmem:[%s29688_s2 + $0x178] sm:$0xff]  }
 0x25d   :  { %20758 = vmatprep.subr.bf16.mxu1 %v21611_v38  ;;  %3388 = vst.msk [vmem:[#allocation2 + $0x5d0] sm:$0xff] %vm3201_vm3, %v3131_v44  ;;  %v3129_v52 = vsel %vm2617_vm2, %v2146_v41, %v2873_v42  ;;  %vm2618_vm5 = vcmp.gt.f32.partialorder %v2149_v46, 0.0  ;;  %v2874_v50 = vmul.f32 0.2, %v2149_v46  ;;  %v5553_v41 = vld [vmem:[#allocation2 + $0x5a0] sm:$0xff] }
 0x25e   :  { %3386 = vst.msk [vmem:[#allocation2 + $0x5c0] sm:$0xff] %vm3201_vm3, %v3129_v52  ;;  %v3132_v53 = vsel %vm2620_vm4, %v20423_v43, %v2876_v45  ;;  %v5551_v45 = vld [vmem:[#allocation2 + $0x590] sm:$0xff] }
 0x25f   :  { %3389 = vst.msk [vmem:[#allocation2 + $0x5d8] sm:$0xff] %vm3201_vm3, %v3132_v53  ;;  %v3130_v55 = vsel %vm2618_vm5, %v2149_v46, %v2874_v50  ;;  %v5554_v42 = vld [vmem:[#allocation2 + $0x5a8] sm:$0xff]  ;;  %v5552_v46 = vld [vmem:[#allocation2 + $0x598] sm:$0xff] }
 0x260   :  { %20759 = vmatpush3.bf16.msra.mxu1 %v21611_v38  ;;  %3387 = vst.msk [vmem:[#allocation2 + $0x5c8] sm:$0xff] %vm3201_vm3, %v3130_v55  ;;  %v5566_v52 = vpack.c.bf16 %v5552_v46, %v5551_v45  ;;  %v21615_v50 = vld [vmem:[%s29688_s2 + $0x188] sm:$0xff]  }
 0x261   :  { %20760 = vmatprep.subr.bf16.mxu1 %v21612_v49  ;;  %v20426_v59 = vpop.f32.mrb[188].mxu0 }
 0x262   :  { %vm2623_vm6 = vcmp.gt.f32.partialorder %v20426_v59, 0.0  ;;  %v2879_v60 = vmul.f32 0.2, %v20426_v59  ;;  %v2162_v61 = vpop.f32.mrb[189].mxu0 }
 0x263   :  { %20745 = vmatmul.mubr.msk.bf16.gmra.mrb[4].mxu1 %vm3201_vm3, %v5375_v57  ;;  %vm2621_vm7 = vcmp.gt.f32.partialorder %v2162_v61, 0.0  ;;  %v2877_v62 = vmul.f32 0.2, %v2162_v61  ;;  %v20427_v63 = vpop.f32.mrb[190].mxu0 }
 0x264   :  { %20748 = vmatprep.mubr.msk.bf16.mxu1 %vm3201_vm3, %v5376_v56  ;;  %20761 = vmatpush3.bf16.msra.mxu1 %v21612_v49  ;;  %v3135_v0 = vsel %vm2623_vm6, %v20426_v59, %v2879_v60  ;;  %vm2624_vm8 = vcmp.gt.f32.partialorder %v20427_v63, 0.0  ;;  %v2880_v1 = vmul.f32 0.2, %v20427_v63  ;;  %v2165_v2 = vpop.f32.mrb[191].mxu0  ;;  %v5567_v49 = vpack.c.bf16 %v5554_v42, %v5553_v41 }
 0x265   :  { %20762 = vmatprep.subr.bf16.mxu1 %v21613_v58  ;;  %3392 = vst.msk [vmem:[#allocation2 + $0x5f0] sm:$0xff] %vm3201_vm3, %v3135_v0  ;;  %v3133_v7 = vsel %vm2621_vm7, %v2162_v61, %v2877_v62  ;;  %vm2622_vm9 = vcmp.gt.f32.partialorder %v2165_v2, 0.0  ;;  %v2878_v8 = vmul.f32 0.2, %v2165_v2  ;;  %v5557_v60 = vld [vmem:[#allocation2 + $0x5c0] sm:$0xff]  ;;  %v21616_v62 = vld [vmem:[%s29688_s2 + $0x190] sm:$0xff]  }
 0x266   :  { %3390 = vst.msk [vmem:[#allocation2 + $0x5e0] sm:$0xff] %vm3201_vm3, %v3133_v7  ;;  %v3136_v4 = vsel %vm2624_vm8, %v20427_v63, %v2880_v1  ;;  %v5555_v1 = vld [vmem:[#allocation2 + $0x5b0] sm:$0xff]  ;;  %v5560_v23 = vld [vmem:[#allocation2 + $0x5d8] sm:$0xff] }
 0x267   :  { %3393 = vst.msk [vmem:[#allocation2 + $0x5f8] sm:$0xff] %vm3201_vm3, %v3136_v4  ;;  %v3134_v11 = vsel %vm2622_vm9, %v2165_v2, %v2878_v8  ;;  %v5558_v61 = vld [vmem:[#allocation2 + $0x5c8] sm:$0xff]  ;;  %v5556_v2 = vld [vmem:[#allocation2 + $0x5b8] sm:$0xff] }
 0x268   :  { %20763 = vmatpush3.bf16.msra.mxu1 %v21613_v58  ;;  %3391 = vst.msk [vmem:[#allocation2 + $0x5e8] sm:$0xff] %vm3201_vm3, %v3134_v11  ;;  %v5569_v7 = vpack.c.bf16 %v5558_v61, %v5557_v60  ;;  %v5568_v8 = vpack.c.bf16 %v5556_v2, %v5555_v1 }
 0x269   :  { %v20430_v15 = vpop.f32.mrb[192].mxu0  ;;  %20780 = vmatprep.subr.bf16.mxu1 %v24682_v9 }
 0x26a   :  { %vm2627_vm10 = vcmp.gt.f32.partialorder %v20430_v15, 0.0  ;;  %v2883_v16 = vmul.f32 0.2, %v20430_v15  ;;  %v2178_v17 = vpop.f32.mrb[193].mxu0 }
 0x26b   :  { %20749 = vmatmul.mubr.msk.bf16.gmra.mrb[8].mxu1 %vm3201_vm3, %v5377_v14  ;;  %vm2625_vm11 = vcmp.gt.f32.partialorder %v2178_v17, 0.0  ;;  %v2881_v18 = vmul.f32 0.2, %v2178_v17  ;;  %v20431_v19 = vpop.f32.mrb[194].mxu0 }
 0x26c   :  { %20752 = vmatprep.mubr.msk.bf16.mxu1 %vm3201_vm3, %v5378_v13  ;;  %v3139_v20 = vsel %vm2627_vm10, %v20430_v15, %v2883_v16  ;;  %vm2628_vm12 = vcmp.gt.f32.partialorder %v20431_v19, 0.0  ;;  %v2884_v21 = vmul.f32 0.2, %v20431_v19  ;;  %v2181_v22 = vpop.f32.mrb[195].mxu0 }
 0x26d   :  { %3396 = vst.msk [vmem:[#allocation2 + $0x610] sm:$0xff] %vm3201_vm3, %v3139_v20  ;;  %v3137_v25 = vsel %vm2625_vm11, %v2178_v17, %v2881_v18  ;;  %vm2626_vm0 = vcmp.gt.f32.partialorder %v2181_v22, 0.0  ;;  %v2882_v26 = vmul.f32 0.2, %v2181_v22  ;;  %v5561_v17 = vld [vmem:[#allocation2 + $0x5e0] sm:$0xff] }
 0x26e   :  { %3394 = vst.msk [vmem:[#allocation2 + $0x600] sm:$0xff] %vm3201_vm3, %v3137_v25  ;;  %v3140_v30 = vsel %vm2628_vm12, %v20431_v19, %v2884_v21  ;;  %v24722_v21 = vld [vmem:[%s29688_s2 + $0x1a0] sm:$0xff]   ;;  %v5564_v41 = vld [vmem:[#allocation2 + $0x5f8] sm:$0xff] }
 0x26f   :  { %3397 = vst.msk [vmem:[#allocation2 + $0x618] sm:$0xff] %vm3201_vm3, %v3140_v30  ;;  %v3138_v31 = vsel %vm2626_vm0, %v2181_v22, %v2882_v26  ;;  %v5562_v18 = vld [vmem:[#allocation2 + $0x5e8] sm:$0xff]  ;;  %v5559_v22 = vld [vmem:[#allocation2 + $0x5d0] sm:$0xff] }
 0x270   :  { %3395 = vst.msk [vmem:[#allocation2 + $0x608] sm:$0xff] %vm3201_vm3, %v3138_v31  ;;  %v5571_v26 = vpack.c.bf16 %v5562_v18, %v5561_v17  ;;  %v5570_v27 = vpack.c.bf16 %v5560_v23, %v5559_v22 }
 0x271   :  { %v20434_v32 = vpop.f32.mrb[196].mxu0 }
 0x272   :  { %vm2631_vm13 = vcmp.gt.f32.partialorder %v20434_v32, 0.0  ;;  %v2887_v34 = vmul.f32 0.2, %v20434_v32  ;;  %v2194_v35 = vpop.f32.mrb[197].mxu0 }
 0x273   :  { %20753 = vmatmul.mubr.msk.bf16.gmra.mrb[12].mxu1 %vm3201_vm3, %v5379_v29  ;;  %vm2629_vm14 = vcmp.gt.f32.partialorder %v2194_v35, 0.0  ;;  %v2885_v36 = vmul.f32 0.2, %v2194_v35  ;;  %v20435_v37 = vpop.f32.mrb[198].mxu0 }
 0x274   :  { %20764 = vmatprep.mubr.msk.bf16.mxu1 %vm3201_vm3, %v5565_v33  ;;  %v3143_v38 = vsel %vm2631_vm13, %v20434_v32, %v2887_v34  ;;  %vm2632_vm15 = vcmp.gt.f32.partialorder %v20435_v37, 0.0  ;;  %v2888_v39 = vmul.f32 0.2, %v20435_v37  ;;  %v2197_v40 = vpop.f32.mrb[199].mxu0 }
 0x275   :  { %3400 = vst.msk [vmem:[#allocation2 + $0x630] sm:$0xff] %vm3201_vm3, %v3143_v38  ;;  %v3141_v43 = vsel %vm2629_vm14, %v2194_v35, %v2885_v36  ;;  %vm2630_vm1 = vcmp.gt.f32.partialorder %v2197_v40, 0.0  ;;  %v2886_v44 = vmul.f32 0.2, %v2197_v40  ;;  %v5742_v36 = vld [vmem:[#allocation2 + $0x600] sm:$0xff] }
 0x276   :  { %3398 = vst.msk [vmem:[#allocation2 + $0x620] sm:$0xff] %vm3201_vm3, %v3141_v43  ;;  %v3144_v47 = vsel %vm2632_vm15, %v20435_v37, %v2888_v39 }
 0x277   :  { %3401 = vst.msk [vmem:[#allocation2 + $0x638] sm:$0xff] %vm3201_vm3, %v3144_v47  ;;  %v3142_v48 = vsel %vm2630_vm1, %v2197_v40, %v2886_v44  ;;  %v5743_v37 = vld [vmem:[#allocation2 + $0x608] sm:$0xff]  ;;  %v5563_v40 = vld [vmem:[#allocation2 + $0x5f0] sm:$0xff] }
 0x278   :  { %3399 = vst.msk [vmem:[#allocation2 + $0x628] sm:$0xff] %vm3201_vm3, %v3142_v48  ;;  %v5758_v44 = vpack.c.bf16 %v5743_v37, %v5742_v36  ;;  %v5572_v45 = vpack.c.bf16 %v5564_v41, %v5563_v40 }
 0x279   :  { %v20438_v54 = vpop.f32.mrb[200].mxu0 }
 0x27a   :  { %vm2635_vm2 = vcmp.gt.f32.partialorder %v20438_v54, 0.0  ;;  %v2891_v51 = vmul.f32 0.2, %v20438_v54  ;;  %v2210_v53 = vpop.f32.mrb[201].mxu0 }
 0x27b   :  { %20765 = vmatmul.mubr.msk.bf16.vlgmr.msra.gmra.mrb[0].mxu1 %vm3201_vm3, %v5566_v52  ;;  %vm2633_vm4 = vcmp.gt.f32.partialorder %v2210_v53, 0.0  ;;  %v2889_v55 = vmul.f32 0.2, %v2210_v53  ;;  %v20439_v56 = vpop.f32.mrb[202].mxu0 }
 0x27c   :  { %20768 = vmatprep.mubr.msk.bf16.mxu1 %vm3201_vm3, %v5567_v49  ;;  %20781 = vmatpush3.bf16.msra.mxu1 %v24682_v9  ;;  %v3147_v57 = vsel %vm2635_vm2, %v20438_v54, %v2891_v51  ;;  %vm2636_vm5 = vcmp.gt.f32.partialorder %v20439_v56, 0.0  ;;  %v2892_v58 = vmul.f32 0.2, %v20439_v56  ;;  %v2213_v59 = vpop.f32.mrb[203].mxu0  ;;  %v21617_v9 = vld [vmem:[%s29688_s2 + $0x198] sm:$0xff]  }
 0x27d   :  { %20782 = vmatprep.subr.bf16.mxu1 %v21615_v50  ;;  %3404 = vst.msk [vmem:[#allocation2 + $0x650] sm:$0xff] %vm3201_vm3, %v3147_v57  ;;  %v3145_v63 = vsel %vm2633_vm4, %v2210_v53, %v2889_v55  ;;  %vm2634_vm6 = vcmp.gt.f32.partialorder %v2213_v59, 0.0  ;;  %v2890_v0 = vmul.f32 0.2, %v2213_v59  ;;  %v5746_v53 = vld [vmem:[#allocation2 + $0x620] sm:$0xff] }
 0x27e   :  { %3402 = vst.msk [vmem:[#allocation2 + $0x640] sm:$0xff] %vm3201_vm3, %v3145_v63  ;;  %v3148_v3 = vsel %vm2636_vm5, %v20439_v56, %v2892_v58  ;;  %v5744_v58 = vld [vmem:[#allocation2 + $0x610] sm:$0xff] }
 0x27f   :  { %3405 = vst.msk [vmem:[#allocation2 + $0x658] sm:$0xff] %vm3201_vm3, %v3148_v3  ;;  %v3146_v5 = vsel %vm2634_vm6, %v2213_v59, %v2890_v0  ;;  %v5747_v55 = vld [vmem:[#allocation2 + $0x628] sm:$0xff]  ;;  %v5745_v59 = vld [vmem:[#allocation2 + $0x618] sm:$0xff] }
 0x280   :  { %20783 = vmatpush3.bf16.msra.mxu1 %v21615_v50  ;;  %3403 = vst.msk [vmem:[#allocation2 + $0x648] sm:$0xff] %vm3201_vm3, %v3146_v5  ;;  %v5759_v63 = vpack.c.bf16 %v5745_v59, %v5744_v58  ;;  %v21619_v0 = vld [vmem:[%s29688_s2 + $0x1a8] sm:$0xff]  }
 0x281   :  { %20784 = vmatprep.subr.bf16.mxu1 %v21616_v62  ;;  %v20442_v10 = vpop.f32.mrb[204].mxu0 }
 0x282   :  { %vm2639_vm7 = vcmp.gt.f32.partialorder %v20442_v10, 0.0  ;;  %v2895_v12 = vmul.f32 0.2, %v20442_v10  ;;  %v2226_v4 = vpop.f32.mrb[205].mxu0 }
 0x283   :  { %20769 = vmatmul.mubr.msk.bf16.gmra.mrb[4].mxu1 %vm3201_vm3, %v5568_v8  ;;  %vm2637_vm8 = vcmp.gt.f32.partialorder %v2226_v4, 0.0  ;;  %v2893_v11 = vmul.f32 0.2, %v2226_v4  ;;  %v20443_v13 = vpop.f32.mrb[206].mxu0 }
 0x284   :  { %20772 = vmatprep.mubr.msk.bf16.mxu1 %vm3201_vm3, %v5569_v7  ;;  %20785 = vmatpush3.bf16.msra.mxu1 %v21616_v62  ;;  %v3151_v14 = vsel %vm2639_vm7, %v20442_v10, %v2895_v12  ;;  %vm2640_vm9 = vcmp.gt.f32.partialorder %v20443_v13, 0.0  ;;  %v2896_v15 = vmul.f32 0.2, %v20443_v13  ;;  %v2229_v16 = vpop.f32.mrb[207].mxu0  ;;  %v5760_v62 = vpack.c.bf16 %v5747_v55, %v5746_v53 }
 0x285   :  { %20786 = vmatprep.subr.bf16.mxu1 %v21617_v9  ;;  %3408 = vst.msk [vmem:[#allocation2 + $0x670] sm:$0xff] %vm3201_vm3, %v3151_v14  ;;  %v3149_v19 = vsel %vm2637_vm8, %v2226_v4, %v2893_v11  ;;  %vm2638_vm10 = vcmp.gt.f32.partialorder %v2229_v16, 0.0  ;;  %v2894_v20 = vmul.f32 0.2, %v2229_v16  ;;  %v5750_v12 = vld [vmem:[#allocation2 + $0x640] sm:$0xff]  ;;  %v21620_v11 = vld [vmem:[%s29688_s2 + $0x1b0] sm:$0xff]  }
 0x286   :  { %3406 = vst.msk [vmem:[#allocation2 + $0x660] sm:$0xff] %vm3201_vm3, %v3149_v19  ;;  %v3152_v24 = vsel %vm2640_vm9, %v20443_v13, %v2896_v15  ;;  %v5748_v15 = vld [vmem:[#allocation2 + $0x630] sm:$0xff]  ;;  %v5753_v36 = vld [vmem:[#allocation2 + $0x658] sm:$0xff] }
 0x287   :  { %3409 = vst.msk [vmem:[#allocation2 + $0x678] sm:$0xff] %vm3201_vm3, %v3152_v24  ;;  %v3150_v25 = vsel %vm2638_vm10, %v2229_v16, %v2894_v20  ;;  %v5751_v4 = vld [vmem:[#allocation2 + $0x648] sm:$0xff]  ;;  %v5749_v16 = vld [vmem:[#allocation2 + $0x638] sm:$0xff] }
 0x288   :  { %20787 = vmatpush3.bf16.msra.mxu1 %v21617_v9  ;;  %3407 = vst.msk [vmem:[#allocation2 + $0x668] sm:$0xff] %vm3201_vm3, %v3150_v25  ;;  %v5762_v19 = vpack.c.bf16 %v5751_v4, %v5750_v12  ;;  %v5761_v20 = vpack.c.bf16 %v5749_v16, %v5748_v15 }
 0x289   :  { %v20446_v28 = vpop.f32.mrb[208].mxu0  ;;  %20804 = vmatprep.subr.bf16.mxu1 %v24722_v21 }
 0x28a   :  { %vm2643_vm11 = vcmp.gt.f32.partialorder %v20446_v28, 0.0  ;;  %v2899_v30 = vmul.f32 0.2, %v20446_v28  ;;  %v2242_v31 = vpop.f32.mrb[209].mxu0 }
 0x28b   :  { %20773 = vmatmul.mubr.msk.bf16.gmra.mrb[8].mxu1 %vm3201_vm3, %v5570_v27  ;;  %vm2641_vm12 = vcmp.gt.f32.partialorder %v2242_v31, 0.0  ;;  %v2897_v33 = vmul.f32 0.2, %v2242_v31  ;;  %v20447_v29 = vpop.f32.mrb[210].mxu0 }
 0x28c   :  { %20776 = vmatprep.mubr.msk.bf16.mxu1 %vm3201_vm3, %v5571_v26  ;;  %v3155_v32 = vsel %vm2643_vm11, %v20446_v28, %v2899_v30  ;;  %vm2644_vm0 = vcmp.gt.f32.partialorder %v20447_v29, 0.0  ;;  %v2900_v34 = vmul.f32 0.2, %v20447_v29  ;;  %v2245_v35 = vpop.f32.mrb[211].mxu0 }
 0x28d   :  { %3412 = vst.msk [vmem:[#allocation2 + $0x690] sm:$0xff] %vm3201_vm3, %v3155_v32  ;;  %v3153_v38 = vsel %vm2641_vm12, %v2242_v31, %v2897_v33  ;;  %vm2642_vm13 = vcmp.gt.f32.partialorder %v2245_v35, 0.0  ;;  %v2898_v39 = vmul.f32 0.2, %v2245_v35  ;;  %v5754_v31 = vld [vmem:[#allocation2 + $0x660] sm:$0xff] }
 0x28e   :  { %3410 = vst.msk [vmem:[#allocation2 + $0x680] sm:$0xff] %vm3201_vm3, %v3153_v38  ;;  %v3156_v42 = vsel %vm2644_vm0, %v20447_v29, %v2900_v34  ;;  %v24762_v34 = vld [vmem:[%s29688_s2 + $0x1c0] sm:$0xff]   ;;  %v5757_v53 = vld [vmem:[#allocation2 + $0x678] sm:$0xff] }
 0x28f   :  { %3413 = vst.msk [vmem:[#allocation2 + $0x698] sm:$0xff] %vm3201_vm3, %v3156_v42  ;;  %v3154_v43 = vsel %vm2642_vm13, %v2245_v35, %v2898_v39  ;;  %v5755_v33 = vld [vmem:[#allocation2 + $0x668] sm:$0xff]  ;;  %v5752_v35 = vld [vmem:[#allocation2 + $0x650] sm:$0xff] }
 0x290   :  { %3411 = vst.msk [vmem:[#allocation2 + $0x688] sm:$0xff] %vm3201_vm3, %v3154_v43  ;;  %v5764_v39 = vpack.c.bf16 %v5755_v33, %v5754_v31  ;;  %v5763_v40 = vpack.c.bf16 %v5753_v36, %v5752_v35 }
 0x291   :  { %v20450_v46 = vpop.f32.mrb[212].mxu0 }
 0x292   :  { %vm2647_vm14 = vcmp.gt.f32.partialorder %v20450_v46, 0.0  ;;  %v2903_v47 = vmul.f32 0.2, %v20450_v46  ;;  %v2258_v48 = vpop.f32.mrb[213].mxu0 }
 0x293   :  { %20777 = vmatmul.mubr.msk.bf16.gmra.mrb[12].mxu1 %vm3201_vm3, %v5572_v45  ;;  %vm2645_vm15 = vcmp.gt.f32.partialorder %v2258_v48, 0.0  ;;  %v2901_v49 = vmul.f32 0.2, %v2258_v48  ;;  %v20451_v52 = vpop.f32.mrb[214].mxu0 }
 0x294   :  { %20788 = vmatprep.mubr.msk.bf16.mxu1 %vm3201_vm3, %v5758_v44  ;;  %v3159_v50 = vsel %vm2647_vm14, %v20450_v46, %v2903_v47  ;;  %vm2648_vm1 = vcmp.gt.f32.partialorder %v20451_v52, 0.0  ;;  %v2904_v54 = vmul.f32 0.2, %v20451_v52  ;;  %v2261_v51 = vpop.f32.mrb[215].mxu0 }
 0x295   :  { %3416 = vst.msk [vmem:[#allocation2 + $0x6b0] sm:$0xff] %vm3201_vm3, %v3159_v50  ;;  %v3157_v56 = vsel %vm2645_vm15, %v2258_v48, %v2901_v49  ;;  %vm2646_vm2 = vcmp.gt.f32.partialorder %v2261_v51, 0.0  ;;  %v2902_v57 = vmul.f32 0.2, %v2261_v51  ;;  %v5935_v49 = vld [vmem:[#allocation2 + $0x680] sm:$0xff] }
 0x296   :  { %3414 = vst.msk [vmem:[#allocation2 + $0x6a0] sm:$0xff] %vm3201_vm3, %v3157_v56  ;;  %v3160_v60 = vsel %vm2648_vm1, %v20451_v52, %v2904_v54 }
 0x297   :  { %3417 = vst.msk [vmem:[#allocation2 + $0x6b8] sm:$0xff] %vm3201_vm3, %v3160_v60  ;;  %v3158_v61 = vsel %vm2646_vm2, %v2261_v51, %v2902_v57  ;;  %v5936_v52 = vld [vmem:[#allocation2 + $0x688] sm:$0xff]  ;;  %v5756_v51 = vld [vmem:[#allocation2 + $0x670] sm:$0xff] }
 0x298   :  { %3415 = vst.msk [vmem:[#allocation2 + $0x6a8] sm:$0xff] %vm3201_vm3, %v3158_v61  ;;  %v5951_v57 = vpack.c.bf16 %v5936_v52, %v5935_v49  ;;  %v5765_v58 = vpack.c.bf16 %v5757_v53, %v5756_v51 }
 0x299   :  { %v20454_v1 = vpop.f32.mrb[216].mxu0 }
 0x29a   :  { %vm2651_vm4 = vcmp.gt.f32.partialorder %v20454_v1, 0.0  ;;  %v2907_v2 = vmul.f32 0.2, %v20454_v1  ;;  %v2274_v3 = vpop.f32.mrb[217].mxu0 }
 0x29b   :  { %20789 = vmatmul.mubr.msk.bf16.vlgmr.msra.gmra.mrb[0].mxu1 %vm3201_vm3, %v5759_v63  ;;  %vm2649_vm5 = vcmp.gt.f32.partialorder %v2274_v3, 0.0  ;;  %v2905_v5 = vmul.f32 0.2, %v2274_v3  ;;  %v20455_v7 = vpop.f32.mrb[218].mxu0 }
 0x29c   :  { %20792 = vmatprep.mubr.msk.bf16.mxu1 %vm3201_vm3, %v5760_v62  ;;  %20805 = vmatpush3.bf16.msra.mxu1 %v24722_v21  ;;  %v3163_v8 = vsel %vm2651_vm4, %v20454_v1, %v2907_v2  ;;  %vm2652_vm6 = vcmp.gt.f32.partialorder %v20455_v7, 0.0  ;;  %v2908_v9 = vmul.f32 0.2, %v20455_v7  ;;  %v2277_v10 = vpop.f32.mrb[219].mxu0  ;;  %v21621_v21 = vld [vmem:[%s29688_s2 + $0x1b8] sm:$0xff]  }
 0x29d   :  { %20806 = vmatprep.subr.bf16.mxu1 %v21619_v0  ;;  %3420 = vst.msk [vmem:[#allocation2 + $0x6d0] sm:$0xff] %vm3201_vm3, %v3163_v8  ;;  %v3161_v13 = vsel %vm2649_vm5, %v2274_v3, %v2905_v5  ;;  %vm2650_vm7 = vcmp.gt.f32.partialorder %v2277_v10, 0.0  ;;  %v2906_v14 = vmul.f32 0.2, %v2277_v10  ;;  %v5939_v3 = vld [vmem:[#allocation2 + $0x6a0] sm:$0xff] }
 0x29e   :  { %3418 = vst.msk [vmem:[#allocation2 + $0x6c0] sm:$0xff] %vm3201_vm3, %v3161_v13  ;;  %v3164_v17 = vsel %vm2652_vm6, %v20455_v7, %v2908_v9  ;;  %v5937_v9 = vld [vmem:[#allocation2 + $0x690] sm:$0xff] }
 0x29f   :  { %3421 = vst.msk [vmem:[#allocation2 + $0x6d8] sm:$0xff] %vm3201_vm3, %v3164_v17  ;;  %v3162_v18 = vsel %vm2650_vm7, %v2277_v10, %v2906_v14  ;;  %v5940_v5 = vld [vmem:[#allocation2 + $0x6a8] sm:$0xff]  ;;  %v5938_v10 = vld [vmem:[#allocation2 + $0x698] sm:$0xff] }
 0x2a0   :  { %20807 = vmatpush3.bf16.msra.mxu1 %v21619_v0  ;;  %3419 = vst.msk [vmem:[#allocation2 + $0x6c8] sm:$0xff] %vm3201_vm3, %v3162_v18  ;;  %v5952_v13 = vpack.c.bf16 %v5938_v10, %v5937_v9  ;;  %v21623_v14 = vld [vmem:[%s29688_s2 + $0x1c8] sm:$0xff]  }
 0x2a1   :  { %20808 = vmatprep.subr.bf16.mxu1 %v21620_v11  ;;  %v20458_v22 = vpop.f32.mrb[220].mxu0 }
 0x2a2   :  { %vm2655_vm8 = vcmp.gt.f32.partialorder %v20458_v22, 0.0  ;;  %v2911_v23 = vmul.f32 0.2, %v20458_v22  ;;  %v2290_v24 = vpop.f32.mrb[221].mxu0 }
 0x2a3   :  { %20793 = vmatmul.mubr.msk.bf16.gmra.mrb[4].mxu1 %vm3201_vm3, %v5761_v20  ;;  %vm2653_vm9 = vcmp.gt.f32.partialorder %v2290_v24, 0.0  ;;  %v2909_v25 = vmul.f32 0.2, %v2290_v24  ;;  %v20459_v26 = vpop.f32.mrb[222].mxu0 }
 0x2a4   :  { %20796 = vmatprep.mubr.msk.bf16.mxu1 %vm3201_vm3, %v5762_v19  ;;  %20809 = vmatpush3.bf16.msra.mxu1 %v21620_v11  ;;  %v3167_v27 = vsel %vm2655_vm8, %v20458_v22, %v2911_v23  ;;  %vm2656_vm10 = vcmp.gt.f32.partialorder %v20459_v26, 0.0  ;;  %v2912_v28 = vmul.f32 0.2, %v20459_v26  ;;  %v2293_v30 = vpop.f32.mrb[223].mxu0  ;;  %v5953_v11 = vpack.c.bf16 %v5940_v5, %v5939_v3 }
 0x2a5   :  { %20810 = vmatprep.subr.bf16.mxu1 %v21621_v21  ;;  %3424 = vst.msk [vmem:[#allocation2 + $0x6f0] sm:$0xff] %vm3201_vm3, %v3167_v27  ;;  %v3165_v29 = vsel %vm2653_vm9, %v2290_v24, %v2909_v25  ;;  %vm2654_vm11 = vcmp.gt.f32.partialorder %v2293_v30, 0.0  ;;  %v2910_v32 = vmul.f32 0.2, %v2293_v30  ;;  %v5943_v23 = vld [vmem:[#allocation2 + $0x6c0] sm:$0xff]  ;;  %v21624_v25 = vld [vmem:[%s29688_s2 + $0x1d0] sm:$0xff]  }
 0x2a6   :  { %3422 = vst.msk [vmem:[#allocation2 + $0x6e0] sm:$0xff] %vm3201_vm3, %v3165_v29  ;;  %v3168_v37 = vsel %vm2656_vm10, %v20459_v26, %v2912_v28  ;;  %v5941_v28 = vld [vmem:[#allocation2 + $0x6b0] sm:$0xff]  ;;  %v5946_v49 = vld [vmem:[#allocation2 + $0x6d8] sm:$0xff] }
 0x2a7   :  { %3425 = vst.msk [vmem:[#allocation2 + $0x6f8] sm:$0xff] %vm3201_vm3, %v3168_v37  ;;  %v3166_v38 = vsel %vm2654_vm11, %v2293_v30, %v2910_v32  ;;  %v5944_v24 = vld [vmem:[#allocation2 + $0x6c8] sm:$0xff]  ;;  %v5942_v30 = vld [vmem:[#allocation2 + $0x6b8] sm:$0xff] }
 0x2a8   :  { %20811 = vmatpush3.bf16.msra.mxu1 %v21621_v21  ;;  %3423 = vst.msk [vmem:[#allocation2 + $0x6e8] sm:$0xff] %vm3201_vm3, %v3166_v38  ;;  %v5955_v29 = vpack.c.bf16 %v5944_v24, %v5943_v23  ;;  %v5954_v32 = vpack.c.bf16 %v5942_v30, %v5941_v28 }
 0x2a9   :  { %v20462_v41 = vpop.f32.mrb[224].mxu0  ;;  %20828 = vmatprep.subr.bf16.mxu1 %v24762_v34 }
 0x2aa   :  { %vm2659_vm12 = vcmp.gt.f32.partialorder %v20462_v41, 0.0  ;;  %v2915_v42 = vmul.f32 0.2, %v20462_v41  ;;  %v2306_v43 = vpop.f32.mrb[225].mxu0 }
 0x2ab   :  { %20797 = vmatmul.mubr.msk.bf16.gmra.mrb[8].mxu1 %vm3201_vm3, %v5763_v40  ;;  %vm2657_vm0 = vcmp.gt.f32.partialorder %v2306_v43, 0.0  ;;  %v2913_v44 = vmul.f32 0.2, %v2306_v43  ;;  %v20463_v45 = vpop.f32.mrb[226].mxu0 }
 0x2ac   :  { %20800 = vmatprep.mubr.msk.bf16.mxu1 %vm3201_vm3, %v5764_v39  ;;  %v3171_v46 = vsel %vm2659_vm12, %v20462_v41, %v2915_v42  ;;  %vm2660_vm13 = vcmp.gt.f32.partialorder %v20463_v45, 0.0  ;;  %v2916_v47 = vmul.f32 0.2, %v20463_v45  ;;  %v2309_v48 = vpop.f32.mrb[227].mxu0 }
 0x2ad   :  { %3428 = vst.msk [vmem:[#allocation2 + $0x710] sm:$0xff] %vm3201_vm3, %v3171_v46  ;;  %v3169_v50 = vsel %vm2657_vm0, %v2306_v43, %v2913_v44  ;;  %vm2658_vm14 = vcmp.gt.f32.partialorder %v2309_v48, 0.0  ;;  %v2914_v54 = vmul.f32 0.2, %v2309_v48  ;;  %v5947_v43 = vld [vmem:[#allocation2 + $0x6e0] sm:$0xff] }
 0x2ae   :  { %3426 = vst.msk [vmem:[#allocation2 + $0x700] sm:$0xff] %vm3201_vm3, %v3169_v50  ;;  %v3172_v55 = vsel %vm2660_vm13, %v20463_v45, %v2916_v47  ;;  %v24802_v47 = vld [vmem:[%s29688_s2 + $0x1e0] sm:$0xff]   ;;  %v5950_v3 = vld [vmem:[#allocation2 + $0x6f8] sm:$0xff] }
 0x2af   :  { %3429 = vst.msk [vmem:[#allocation2 + $0x718] sm:$0xff] %vm3201_vm3, %v3172_v55  ;;  %v3170_v56 = vsel %vm2658_vm14, %v2309_v48, %v2914_v54  ;;  %v5948_v44 = vld [vmem:[#allocation2 + $0x6e8] sm:$0xff]  ;;  %v5945_v48 = vld [vmem:[#allocation2 + $0x6d0] sm:$0xff] }
 0x2b0   :  { %3427 = vst.msk [vmem:[#allocation2 + $0x708] sm:$0xff] %vm3201_vm3, %v3170_v56  ;;  %v5957_v54 = vpack.c.bf16 %v5948_v44, %v5947_v43  ;;  %v5956_v51 = vpack.c.bf16 %v5946_v49, %v5945_v48 }
 0x2b1   :  { %v20466_v59 = vpop.f32.mrb[228].mxu0 }
 0x2b2   :  { %vm2663_vm15 = vcmp.gt.f32.partialorder %v20466_v59, 0.0  ;;  %v2919_v60 = vmul.f32 0.2, %v20466_v59  ;;  %v2322_v61 = vpop.f32.mrb[229].mxu0 }
 0x2b3   :  { %20801 = vmatmul.mubr.msk.bf16.gmra.mrb[12].mxu1 %vm3201_vm3, %v5765_v58  ;;  %vm2661_vm1 = vcmp.gt.f32.partialorder %v2322_v61, 0.0  ;;  %v2917_v62 = vmul.f32 0.2, %v2322_v61  ;;  %v20467_v63 = vpop.f32.mrb[230].mxu0 }
 0x2b4   :  { %20812 = vmatprep.mubr.msk.bf16.mxu1 %vm3201_vm3, %v5951_v57  ;;  %v3175_v0 = vsel %vm2663_vm15, %v20466_v59, %v2919_v60  ;;  %vm2664_vm2 = vcmp.gt.f32.partialorder %v20467_v63, 0.0  ;;  %v2920_v1 = vmul.f32 0.2, %v20467_v63  ;;  %v2325_v2 = vpop.f32.mrb[231].mxu0 }
 0x2b5   :  { %3432 = vst.msk [vmem:[#allocation2 + $0x730] sm:$0xff] %vm3201_vm3, %v3175_v0  ;;  %v3173_v7 = vsel %vm2661_vm1, %v2322_v61, %v2917_v62  ;;  %vm2662_vm4 = vcmp.gt.f32.partialorder %v2325_v2, 0.0  ;;  %v2918_v8 = vmul.f32 0.2, %v2325_v2  ;;  %v6128_v62 = vld [vmem:[#allocation2 + $0x700] sm:$0xff] }
 0x2b6   :  { %3430 = vst.msk [vmem:[#allocation2 + $0x720] sm:$0xff] %vm3201_vm3, %v3173_v7  ;;  %v3176_v12 = vsel %vm2664_vm2, %v20467_v63, %v2920_v1 }
 0x2b7   :  { %3433 = vst.msk [vmem:[#allocation2 + $0x738] sm:$0xff] %vm3201_vm3, %v3176_v12  ;;  %v3174_v4 = vsel %vm2662_vm4, %v2325_v2, %v2918_v8  ;;  %v6129_v63 = vld [vmem:[#allocation2 + $0x708] sm:$0xff]  ;;  %v5949_v2 = vld [vmem:[#allocation2 + $0x6f0] sm:$0xff] }
 0x2b8   :  { %3431 = vst.msk [vmem:[#allocation2 + $0x728] sm:$0xff] %vm3201_vm3, %v3174_v4  ;;  %v6144_v8 = vpack.c.bf16 %v6129_v63, %v6128_v62  ;;  %v5958_v9 = vpack.c.bf16 %v5950_v3, %v5949_v2 }
 0x2b9   :  { %v20470_v15 = vpop.f32.mrb[232].mxu0 }
 0x2ba   :  { %vm2667_vm5 = vcmp.gt.f32.partialorder %v20470_v15, 0.0  ;;  %v2923_v16 = vmul.f32 0.2, %v20470_v15  ;;  %v2338_v17 = vpop.f32.mrb[233].mxu0 }
 0x2bb   :  { %20813 = vmatmul.mubr.msk.bf16.vlgmr.msra.gmra.mrb[0].mxu1 %vm3201_vm3, %v5952_v13  ;;  %vm2665_vm6 = vcmp.gt.f32.partialorder %v2338_v17, 0.0  ;;  %v2921_v18 = vmul.f32 0.2, %v2338_v17  ;;  %v20471_v19 = vpop.f32.mrb[234].mxu0 }
 0x2bc   :  { %20816 = vmatprep.mubr.msk.bf16.mxu1 %vm3201_vm3, %v5953_v11  ;;  %20829 = vmatpush3.bf16.msra.mxu1 %v24762_v34  ;;  %v3179_v20 = vsel %vm2667_vm5, %v20470_v15, %v2923_v16  ;;  %vm2668_vm7 = vcmp.gt.f32.partialorder %v20471_v19, 0.0  ;;  %v2924_v21 = vmul.f32 0.2, %v20471_v19  ;;  %v2341_v22 = vpop.f32.mrb[235].mxu0  ;;  %v21625_v34 = vld [vmem:[%s29688_s2 + $0x1d8] sm:$0xff]  }
 0x2bd   :  { %20830 = vmatprep.subr.bf16.mxu1 %v21623_v14  ;;  %3436 = vst.msk [vmem:[#allocation2 + $0x750] sm:$0xff] %vm3201_vm3, %v3179_v20  ;;  %v3177_v26 = vsel %vm2665_vm6, %v2338_v17, %v2921_v18  ;;  %vm2666_vm8 = vcmp.gt.f32.partialorder %v2341_v22, 0.0  ;;  %v2922_v27 = vmul.f32 0.2, %v2341_v22  ;;  %v6132_v17 = vld [vmem:[#allocation2 + $0x720] sm:$0xff] }
 0x2be   :  { %3434 = vst.msk [vmem:[#allocation2 + $0x740] sm:$0xff] %vm3201_vm3, %v3177_v26  ;;  %v3180_v31 = vsel %vm2668_vm7, %v20471_v19, %v2924_v21  ;;  %v6130_v21 = vld [vmem:[#allocation2 + $0x710] sm:$0xff] }
 0x2bf   :  { %3437 = vst.msk [vmem:[#allocation2 + $0x758] sm:$0xff] %vm3201_vm3, %v3180_v31  ;;  %v3178_v33 = vsel %vm2666_vm8, %v2341_v22, %v2922_v27  ;;  %v6133_v18 = vld [vmem:[#allocation2 + $0x728] sm:$0xff]  ;;  %v6131_v22 = vld [vmem:[#allocation2 + $0x718] sm:$0xff] }
 0x2c0   :  { %20831 = vmatpush3.bf16.msra.mxu1 %v21623_v14  ;;  %3435 = vst.msk [vmem:[#allocation2 + $0x748] sm:$0xff] %vm3201_vm3, %v3178_v33  ;;  %v6145_v26 = vpack.c.bf16 %v6131_v22, %v6130_v21  ;;  %v21627_v27 = vld [vmem:[%s29688_s2 + $0x1e8] sm:$0xff]  }
 0x2c1   :  { %20832 = vmatprep.subr.bf16.mxu1 %v21624_v25  ;;  %v20474_v35 = vpop.f32.mrb[236].mxu0 }
 0x2c2   :  { %vm2671_vm9 = vcmp.gt.f32.partialorder %v20474_v35, 0.0  ;;  %v2927_v36 = vmul.f32 0.2, %v20474_v35  ;;  %v2354_v37 = vpop.f32.mrb[237].mxu0 }
 0x2c3   :  { %20817 = vmatmul.mubr.msk.bf16.gmra.mrb[4].mxu1 %vm3201_vm3, %v5954_v32  ;;  %vm2669_vm10 = vcmp.gt.f32.partialorder %v2354_v37, 0.0  ;;  %v2925_v38 = vmul.f32 0.2, %v2354_v37  ;;  %v20475_v39 = vpop.f32.mrb[238].mxu0 }
 0x2c4   :  { %20820 = vmatprep.mubr.msk.bf16.mxu1 %vm3201_vm3, %v5955_v29  ;;  %20833 = vmatpush3.bf16.msra.mxu1 %v21624_v25  ;;  %v3183_v40 = vsel %vm2671_vm9, %v20474_v35, %v2927_v36  ;;  %vm2672_vm11 = vcmp.gt.f32.partialorder %v20475_v39, 0.0  ;;  %v2928_v41 = vmul.f32 0.2, %v20475_v39  ;;  %v2357_v42 = vpop.f32.mrb[239].mxu0  ;;  %v6146_v25 = vpack.c.bf16 %v6133_v18, %v6132_v17 }
 0x2c5   :  { %20834 = vmatprep.subr.bf16.mxu1 %v21625_v34  ;;  %3440 = vst.msk [vmem:[#allocation2 + $0x770] sm:$0xff] %vm3201_vm3, %v3183_v40  ;;  %v3181_v45 = vsel %vm2669_vm10, %v2354_v37, %v2925_v38  ;;  %vm2670_vm12 = vcmp.gt.f32.partialorder %v2357_v42, 0.0  ;;  %v2926_v46 = vmul.f32 0.2, %v2357_v42  ;;  %v6136_v36 = vld [vmem:[#allocation2 + $0x740] sm:$0xff]  ;;  %v21628_v38 = vld [vmem:[%s29688_s2 + $0x1f0] sm:$0xff]  }
 0x2c6   :  { %3438 = vst.msk [vmem:[#allocation2 + $0x760] sm:$0xff] %vm3201_vm3, %v3181_v45  ;;  %v3184_v52 = vsel %vm2672_vm11, %v20475_v39, %v2928_v41  ;;  %v6134_v41 = vld [vmem:[#allocation2 + $0x730] sm:$0xff] }
 0x2c7   :  { %3441 = vst.msk [vmem:[#allocation2 + $0x778] sm:$0xff] %vm3201_vm3, %v3184_v52  ;;  %v3182_v50 = vsel %vm2670_vm12, %v2357_v42, %v2926_v46  ;;  %v6137_v37 = vld [vmem:[#allocation2 + $0x748] sm:$0xff]  ;;  %v6135_v42 = vld [vmem:[#allocation2 + $0x738] sm:$0xff] }
 0x2c8   :  { %20835 = vmatpush3.bf16.msra.mxu1 %v21625_v34  ;;  %3439 = vst.msk [vmem:[#allocation2 + $0x768] sm:$0xff] %vm3201_vm3, %v3182_v50  ;;  %v6148_v45 = vpack.c.bf16 %v6137_v37, %v6136_v36  ;;  %v6147_v46 = vpack.c.bf16 %v6135_v42, %v6134_v41 }
 0x2c9   :  { %v20478_v53 = vpop.f32.mrb[240].mxu0  ;;  %20852 = vmatprep.subr.bf16.mxu1 %v24802_v47 }
 0x2ca   :  { %vm2675_vm0 = vcmp.gt.f32.partialorder %v20478_v53, 0.0  ;;  %v2931_v55 = vmul.f32 0.2, %v20478_v53  ;;  %v2370_v56 = vpop.f32.mrb[241].mxu0 }
 0x2cb   :  { %20821 = vmatmul.mubr.msk.bf16.gmra.mrb[8].mxu1 %vm3201_vm3, %v5956_v51  ;;  %vm2673_vm13 = vcmp.gt.f32.partialorder %v2370_v56, 0.0  ;;  %v2929_v57 = vmul.f32 0.2, %v2370_v56  ;;  %v20479_v58 = vpop.f32.mrb[242].mxu0 }
 0x2cc   :  { %20824 = vmatprep.mubr.msk.bf16.mxu1 %vm3201_vm3, %v5957_v54  ;;  %v3187_v59 = vsel %vm2675_vm0, %v20478_v53, %v2931_v55  ;;  %vm2676_vm14 = vcmp.gt.f32.partialorder %v20479_v58, 0.0  ;;  %v2932_v60 = vmul.f32 0.2, %v20479_v58  ;;  %v2373_v61 = vpop.f32.mrb[243].mxu0 }
 0x2cd   :  { %3444 = vst.msk [vmem:[#allocation2 + $0x790] sm:$0xff] %vm3201_vm3, %v3187_v59  ;;  %v3185_v0 = vsel %vm2673_vm13, %v2370_v56, %v2929_v57  ;;  %vm2674_vm15 = vcmp.gt.f32.partialorder %v2373_v61, 0.0  ;;  %v2930_v1 = vmul.f32 0.2, %v2373_v61  ;;  %v6140_v56 = vld [vmem:[#allocation2 + $0x760] sm:$0xff] }
 0x2ce   :  { %3442 = vst.msk [vmem:[#allocation2 + $0x780] sm:$0xff] %vm3201_vm3, %v3185_v0  ;;  %v3188_v5 = vsel %vm2676_vm14, %v20479_v58, %v2932_v60  ;;  %v6138_v60 = vld [vmem:[#allocation2 + $0x750] sm:$0xff] }
 0x2cf   :  { %3445 = vst.msk [vmem:[#allocation2 + $0x798] sm:$0xff] %vm3201_vm3, %v3188_v5  ;;  %v3186_v7 = vsel %vm2674_vm15, %v2373_v61, %v2930_v1  ;;  %v6141_v57 = vld [vmem:[#allocation2 + $0x768] sm:$0xff]  ;;  %v6139_v61 = vld [vmem:[#allocation2 + $0x758] sm:$0xff]  ;;  %v6142_v5 = vld [vmem:[#allocation2 + $0x770] sm:$0xff] }
 0x2d0   :  { %3443 = vst.msk [vmem:[#allocation2 + $0x788] sm:$0xff] %vm3201_vm3, %v3186_v7  ;;  %v6150_v0 = vpack.c.bf16 %v6141_v57, %v6140_v56  ;;  %v6149_v1 = vpack.c.bf16 %v6139_v61, %v6138_v60  ;;  %v6143_v7 = vld [vmem:[#allocation2 + $0x778] sm:$0xff] }
 0x2d1   :  { %v20482_v10 = vpop.f32.mrb[244].mxu0 }
 0x2d2   :  { %vm2679_vm1 = vcmp.gt.f32.partialorder %v20482_v10, 0.0  ;;  %v2935_v12 = vmul.f32 0.2, %v20482_v10  ;;  %v2386_v4 = vpop.f32.mrb[245].mxu0 }
 0x2d3   :  { %20825 = vmatmul.mubr.msk.bf16.gmra.mrb[12].mxu1 %vm3201_vm3, %v5958_v9  ;;  %vm2677_vm2 = vcmp.gt.f32.partialorder %v2386_v4, 0.0  ;;  %v2933_v11 = vmul.f32 0.2, %v2386_v4  ;;  %v20483_v13 = vpop.f32.mrb[246].mxu0  ;;  %v6151_v9 = vpack.c.bf16 %v6143_v7, %v6142_v5 }
 0x2d4   :  { %20836 = vmatprep.mubr.msk.bf16.mxu1 %vm3201_vm3, %v6144_v8  ;;  %v3191_v14 = vsel %vm2679_vm1, %v20482_v10, %v2935_v12  ;;  %vm2680_vm4 = vcmp.gt.f32.partialorder %v20483_v13, 0.0  ;;  %v2936_v15 = vmul.f32 0.2, %v20483_v13  ;;  %v2389_v16 = vpop.f32.mrb[247].mxu0 }
 0x2d5   :  { %3448 = vst.msk [vmem:[#allocation2 + $0x7b0] sm:$0xff] %vm3201_vm3, %v3191_v14  ;;  %v3189_v19 = vsel %vm2677_vm2, %v2386_v4, %v2933_v11  ;;  %vm2678_vm5 = vcmp.gt.f32.partialorder %v2389_v16, 0.0  ;;  %v2934_v20 = vmul.f32 0.2, %v2389_v16  ;;  %v6321_v2 = vld [vmem:[#allocation2 + $0x780] sm:$0xff]  ;;  %v6323_v4 = vld [vmem:[#allocation2 + $0x790] sm:$0xff] }
 0x2d6   :  { %3446 = vst.msk [vmem:[#allocation2 + $0x7a0] sm:$0xff] %vm3201_vm3, %v3189_v19  ;;  %v3192_v23 = vsel %vm2680_vm4, %v20483_v13, %v2936_v15  ;;  %v6324_v11 = vld [vmem:[#allocation2 + $0x798] sm:$0xff] }
 0x2d7   :  { %3449 = vst.msk [vmem:[#allocation2 + $0x7b8] sm:$0xff] %vm3201_vm3, %v3192_v23  ;;  %v3190_v24 = vsel %vm2678_vm5, %v2389_v16, %v2934_v20  ;;  %v6322_v3 = vld [vmem:[#allocation2 + $0x788] sm:$0xff]  ;;  %v6338_v14 = vpack.c.bf16 %v6324_v11, %v6323_v4 }
 0x2d8   :  { %3447 = vst.msk [vmem:[#allocation2 + $0x7a8] sm:$0xff] %vm3201_vm3, %v3190_v24  ;;  %v6337_v8 = vpack.c.bf16 %v6322_v3, %v6321_v2 }
 0x2d9   :  { %v20486_v28 = vpop.f32.mrb[248].mxu0 }
 0x2da   :  { %vm2683_vm6 = vcmp.gt.f32.partialorder %v20486_v28, 0.0  ;;  %v2939_v30 = vmul.f32 0.2, %v20486_v28  ;;  %v2402_v31 = vpop.f32.mrb[249].mxu0 }
 0x2db   :  { %20837 = vmatmul.mubr.msk.bf16.vlgmr.msra.gmra.mrb[0].mxu1 %vm3201_vm3, %v6145_v26  ;;  %vm2681_vm7 = vcmp.gt.f32.partialorder %v2402_v31, 0.0  ;;  %v2937_v33 = vmul.f32 0.2, %v2402_v31  ;;  %v20487_v29 = vpop.f32.mrb[250].mxu0 }
 0x2dc   :  { %20840 = vmatprep.mubr.msk.bf16.mxu1 %vm3201_vm3, %v6146_v25  ;;  %20853 = vmatpush3.bf16.msra.mxu1 %v24802_v47  ;;  %v3195_v32 = vsel %vm2683_vm6, %v20486_v28, %v2939_v30  ;;  %vm2684_vm8 = vcmp.gt.f32.partialorder %v20487_v29, 0.0  ;;  %v2940_v34 = vmul.f32 0.2, %v20487_v29  ;;  %v2405_v35 = vpop.f32.mrb[251].mxu0  ;;  %v21629_v47 = vld [vmem:[%s29688_s2 + $0x1f8] sm:$0xff]   ;;  %v6327_v17 = vld [vmem:[#allocation2 + $0x7b0] sm:$0xff] }
 0x2dd   :  { %20854 = vmatprep.subr.bf16.mxu1 %v21627_v27  ;;  %3452 = vst.msk [vmem:[#allocation2 + $0x7d0] sm:$0xff] %vm3201_vm3, %v3195_v32  ;;  %v3193_v39 = vsel %vm2681_vm7, %v2402_v31, %v2937_v33  ;;  %vm2682_vm9 = vcmp.gt.f32.partialorder %v2405_v35, 0.0  ;;  %v2938_v40 = vmul.f32 0.2, %v2405_v35  ;;  %v6325_v10 = vld [vmem:[#allocation2 + $0x7a0] sm:$0xff] }
 0x2de   :  { %3450 = vst.msk [vmem:[#allocation2 + $0x7c0] sm:$0xff] %vm3201_vm3, %v3193_v39  ;;  %v3196_v43 = vsel %vm2684_vm8, %v20487_v29, %v2940_v34  ;;  %v6328_v18 = vld [vmem:[#allocation2 + $0x7b8] sm:$0xff]  ;;  %v21630_v31 = vld [vmem:[%s29689_s5] sm:$0xff]  }
 0x2df   :  { %3453 = vst.msk [vmem:[#allocation2 + $0x7d8] sm:$0xff] %vm3201_vm3, %v3196_v43  ;;  %v3194_v44 = vsel %vm2682_vm9, %v2405_v35, %v2938_v40  ;;  %v6326_v12 = vld [vmem:[#allocation2 + $0x7a8] sm:$0xff]  ;;  %v6340_v20 = vpack.c.bf16 %v6328_v18, %v6327_v17  ;;  %20892 = vmatprep.mubr.bf16.mxu0 %v21630_v31 }
 0x2e0   :  { %20855 = vmatpush3.bf16.msra.mxu1 %v21627_v27  ;;  %3451 = vst.msk [vmem:[#allocation2 + $0x7c8] sm:$0xff] %vm3201_vm3, %v3194_v44  ;;  %v6339_v13 = vpack.c.bf16 %v6326_v12, %v6325_v10 }
 0x2e1   :  { %20856 = vmatprep.subr.bf16.mxu1 %v21628_v38  ;;  %v20490_v48 = vpop.f32.mrb[252].mxu0 }
 0x2e2   :  { %vm2687_vm10 = vcmp.gt.f32.partialorder %v20490_v48, 0.0  ;;  %v2943_v49 = vmul.f32 0.2, %v20490_v48  ;;  %v2418_v52 = vpop.f32.mrb[253].mxu0 }
 0x2e3   :  { %20841 = vmatmul.mubr.msk.bf16.gmra.mrb[4].mxu1 %vm3201_vm3, %v6147_v46  ;;  %vm2685_vm11 = vcmp.gt.f32.partialorder %v2418_v52, 0.0  ;;  %v2941_v50 = vmul.f32 0.2, %v2418_v52  ;;  %v20491_v54 = vpop.f32.mrb[254].mxu0 }
 0x2e4   :  { %20844 = vmatprep.mubr.msk.bf16.mxu1 %vm3201_vm3, %v6148_v45  ;;  %20857 = vmatpush3.bf16.msra.mxu1 %v21628_v38  ;;  %v3199_v51 = vsel %vm2687_vm10, %v20490_v48, %v2943_v49  ;;  %vm2688_vm12 = vcmp.gt.f32.partialorder %v20491_v54, 0.0  ;;  %v2944_v53 = vmul.f32 0.2, %v20491_v54  ;;  %v2421_v55 = vpop.f32.mrb[255].mxu0  ;;  %v6331_v23 = vld [vmem:[#allocation2 + $0x7d0] sm:$0xff] }
 0x2e5   :  { %20858 = vmatprep.subr.bf16.mxu1 %v21629_v47  ;;  %3456 = vst.msk [vmem:[#allocation2 + $0x7f0] sm:$0xff] %vm3201_vm3, %v3199_v51  ;;  %v3197_v58 = vsel %vm2685_vm11, %v2418_v52, %v2941_v50  ;;  %vm2686_vm0 = vcmp.gt.f32.partialorder %v2421_v55, 0.0  ;;  %v2942_v59 = vmul.f32 0.2, %v2421_v55  ;;  %v6329_v15 = vld [vmem:[#allocation2 + $0x7c0] sm:$0xff] }
 0x2e6   :  { %3454 = vst.msk [vmem:[#allocation2 + $0x7e0] sm:$0xff] %vm3201_vm3, %v3197_v58  ;;  %v3200_v62 = vsel %vm2688_vm12, %v20491_v54, %v2944_v53  ;;  %v6332_v24 = vld [vmem:[#allocation2 + $0x7d8] sm:$0xff] }
 0x2e7   :  { %3457 = vst.msk [vmem:[#allocation2 + $0x7f8] sm:$0xff] %vm3201_vm3, %v3200_v62  ;;  %v3198_v63 = vsel %vm2686_vm0, %v2421_v55, %v2942_v59  ;;  %v6330_v16 = vld [vmem:[#allocation2 + $0x7c8] sm:$0xff]  ;;  %v6342_v26 = vpack.c.bf16 %v6332_v24, %v6331_v23 }
 0x2e8   :  { %20859 = vmatpush3.bf16.msra.mxu1 %v21629_v47  ;;  %3455 = vst.msk [vmem:[#allocation2 + $0x7e8] sm:$0xff] %vm3201_vm3, %v3198_v63  ;;  %v6341_v19 = vpack.c.bf16 %v6330_v16, %v6329_v15 }
 0x2eb   :  { %20845 = vmatmul.mubr.msk.bf16.gmra.mrb[8].mxu1 %vm3201_vm3, %v6149_v1 }
 0x2ec   :  { %20848 = vmatprep.mubr.msk.bf16.mxu1 %vm3201_vm3, %v6150_v0  ;;  %v6335_v27 = vld [vmem:[#allocation2 + $0x7f0] sm:$0xff] }
 0x2ed   :  { %v6333_v21 = vld [vmem:[#allocation2 + $0x7e0] sm:$0xff] }
 0x2ee   :  { %v6336_v28 = vld [vmem:[#allocation2 + $0x7f8] sm:$0xff] }
 0x2ef   :  { %v6334_v22 = vld [vmem:[#allocation2 + $0x7e8] sm:$0xff]  ;;  %v6344_v30 = vpack.c.bf16 %v6336_v28, %v6335_v27 }
 0x2f0   :  { %v6343_v25 = vpack.c.bf16 %v6334_v22, %v6333_v21 }
 0x2f3   :  { %20849 = vmatmul.mubr.msk.bf16.gmra.mrb[12].mxu1 %vm3201_vm3, %v6151_v9 }
 0x2f4   :  { %20860 = vmatprep.mubr.msk.bf16.mxu1 %vm3201_vm3, %v6337_v8 }
 0x2fb   :  { %20861 = vmatmul.mubr.msk.bf16.vlgmr.msra.gmra.mrb[0].mxu1 %vm3201_vm3, %v6338_v14 }
 0x2fc   :  { %20864 = vmatprep.mubr.msk.bf16.mxu1 %vm3201_vm3, %v6339_v13 }
 0x303   :  { %20865 = vmatmul.mubr.msk.bf16.gmra.mrb[4].mxu1 %vm3201_vm3, %v6340_v20 }
 0x304   :  { %20868 = vmatprep.mubr.msk.bf16.mxu1 %vm3201_vm3, %v6341_v19 }
 0x30b   :  { %20869 = vmatmul.mubr.msk.bf16.gmra.mrb[8].mxu1 %vm3201_vm3, %v6342_v26 }
 0x30c   :  { %20872 = vmatprep.mubr.msk.bf16.mxu1 %vm3201_vm3, %v6343_v25 }
 0x313   :  { %20873 = vmatmul.mubr.msk.bf16.gmra.mrb[12].mxu1 %vm3201_vm3, %v6344_v30 }
 0x3ce   :  { %v24856_v33 = vpop.f32.mrb[0].mxu1 }
 0x3cf   :  { %v24858_v29 = vpop.f32.mrb[1].mxu1  ;;  %v6537_v38 = vmul.f32 %v24856_v33, %v24856_v33 }
 0x3d0   :  { %v24860_v32 = vpop.f32.mrb[2].mxu1  ;;  %v6535_v35 = vmul.f32 %v24858_v29, %v24858_v29 }
 0x3d1   :  { %v24862_v34 = vpop.f32.mrb[3].mxu1  ;;  %v6538_v41 = vmul.f32 %v24860_v32, %v24860_v32 }
 0x3d2   :  { %v6514_v36 = vadd.f32 %v24862_v34, %v24858_v29  ;;  %v6536_v37 = vmul.f32 %v24862_v34, %v24862_v34 }
 0x3d4   :  { %v6515_v39 = vadd.f32 %v24856_v33, %v6514_v36  ;;  %v6551_v40 = vadd.f32 %v6536_v37, %v6535_v35 }
 0x3d6   :  { %v6552_v42 = vadd.f32 %v6551_v40, %v6537_v38  ;;  %v24875_v43 = vpop.f32.mrb[4].mxu1  ;;  %v6516_v44 = vadd.f32 %v24860_v32, %v6515_v39 }
 0x3d7   :  { %v24878_v45 = vpop.f32.mrb[5].mxu1  ;;  %v6541_v53 = vmul.f32 %v24875_v43, %v24875_v43 }
 0x3d8   :  { %v6517_v46 = vadd.f32 %v6516_v44, %v24878_v45  ;;  %v6539_v47 = vmul.f32 %v24878_v45, %v24878_v45  ;;  %v6553_v48 = vadd.f32 %v6552_v42, %v6538_v41  ;;  %v24883_v49 = vpop.f32.mrb[6].mxu1 }
 0x3d9   :  { %v24885_v52 = vpop.f32.mrb[7].mxu1  ;;  %v6542_v57 = vmul.f32 %v24883_v49, %v24883_v49 }
 0x3da   :  { %v6554_v50 = vadd.f32 %v6553_v48, %v6539_v47  ;;  %v6518_v54 = vadd.f32 %v6517_v46, %v24885_v52  ;;  %v6540_v51 = vmul.f32 %v24885_v52, %v24885_v52 }
 0x3dc   :  { %v6519_v55 = vadd.f32 %v24875_v43, %v6518_v54  ;;  %v6555_v56 = vadd.f32 %v6554_v50, %v6540_v51 }
 0x3de   :  { %v6556_v58 = vadd.f32 %v6555_v56, %v6541_v53  ;;  %v24895_v59 = vpop.f32.mrb[8].mxu1  ;;  %v6520_v60 = vadd.f32 %v24883_v49, %v6519_v55 }
 0x3df   :  { %v24898_v61 = vpop.f32.mrb[9].mxu1  ;;  %v6545_v8 = vmul.f32 %v24895_v59, %v24895_v59 }
 0x3e0   :  { %v6521_v62 = vadd.f32 %v6520_v60, %v24898_v61  ;;  %v6543_v63 = vmul.f32 %v24898_v61, %v24898_v61  ;;  %v6557_v0 = vadd.f32 %v6556_v58, %v6542_v57  ;;  %v24903_v1 = vpop.f32.mrb[10].mxu1 }
 0x3e1   :  { %v24905_v2 = vpop.f32.mrb[11].mxu1  ;;  %v6546_v12 = vmul.f32 %v24903_v1, %v24903_v1 }
 0x3e2   :  { %v6558_v3 = vadd.f32 %v6557_v0, %v6543_v63  ;;  %v6522_v5 = vadd.f32 %v6521_v62, %v24905_v2  ;;  %v6544_v7 = vmul.f32 %v24905_v2, %v24905_v2 }
 0x3e4   :  { %v6523_v9 = vadd.f32 %v24895_v59, %v6522_v5  ;;  %v6559_v10 = vadd.f32 %v6558_v3, %v6544_v7 }
 0x3e6   :  { %v6560_v4 = vadd.f32 %v6559_v10, %v6545_v8  ;;  %v24915_v11 = vpop.f32.mrb[12].mxu1  ;;  %v6524_v13 = vadd.f32 %v24903_v1, %v6523_v9  ;;  %v24980_v8 = vld [vmem:[%s29691_s4] ss:$0 sm:$0xff] }
 0x3e7   :  { %v24918_v14 = vpop.f32.mrb[13].mxu1  ;;  %v6549_v23 = vmul.f32 %v24915_v11, %v24915_v11 }
 0x3e8   :  { %v6525_v15 = vadd.f32 %v6524_v13, %v24918_v14  ;;  %v6547_v16 = vmul.f32 %v24918_v14, %v24918_v14  ;;  %v6561_v17 = vadd.f32 %v6560_v4, %v6546_v12  ;;  %v24923_v18 = vpop.f32.mrb[14].mxu1 }
 0x3e9   :  { %v6486_v19 = vpop.f32.mrb[15].mxu1  ;;  %v6550_v26 = vmul.f32 %v24923_v18, %v24923_v18 }
 0x3ea   :  { %v6562_v20 = vadd.f32 %v6561_v17, %v6547_v16  ;;  %v6526_v21 = vadd.f32 %v6525_v15, %v6486_v19  ;;  %v6548_v22 = vmul.f32 %v6486_v19, %v6486_v19 }
 0x3ec   :  { %v6527_v24 = vadd.f32 %v24915_v11, %v6526_v21  ;;  %v6563_v25 = vadd.f32 %v6562_v20, %v6548_v22 }
 0x3ee   :  { %v6528_v27 = vadd.f32 %v24923_v18, %v6527_v24  ;;  %v6564_v28 = vadd.f32 %v6563_v25, %v6549_v23 }
 0x3f0   :  { %v6529_v30 = vrot.slane %v6528_v27, 4  ;;  %v6565_v31 = vadd.f32 %v6564_v28, %v6550_v26 }
 0x3f2   :  { %v6530_v35 = vadd.f32 %v6529_v30, %v6528_v27  ;;  %v6566_v36 = vrot.slane %v6565_v31, 4 }
 0x3f4   :  { %v6531_v37 = vrot.slane %v6530_v35, 2  ;;  %v6567_v38 = vadd.f32 %v6566_v36, %v6565_v31 }
 0x3f6   :  { %v6532_v39 = vadd.f32 %v6531_v37, %v6530_v35  ;;  %v6568_v40 = vrot.slane %v6567_v38, 2 }
 0x3f8   :  { %v6533_v41 = vrot.slane %v6532_v39, 1  ;;  %v6569_v42 = vadd.f32 %v6568_v40, %v6567_v38 }
 0x3fa   :  { %v6534_v44 = vadd.f32 %v6533_v41, %v6532_v39  ;;  %v6570_v46 = vrot.slane %v6569_v42, 1 }
 0x3fc   :  { %v6571_v47 = vadd.f32 %v6570_v46, %v6569_v42  ;;  %v24931_v48 = vmul.f32 0.0078125, %v6534_v44 }
 0x3fe   :  { %v6573_v50 = vmul.f32 0.0078125, %v6571_v47  ;;  %v6574_v54 = vmul.f32 %v24931_v48, %v24931_v48  ;;  %v6589_v51 = vsub.f32 %v6486_v19, %v24931_v48  ;;  %v6576_v53 = vsub.f32 %v24858_v29, %v24931_v48 }
 0x3ff   :  { %v6577_v55 = vsub.f32 %v24862_v34, %v24931_v48  ;;  %v6578_v56 = vsub.f32 %v24856_v33, %v24931_v48  ;;  %v6579_v57 = vsub.f32 %v24860_v32, %v24931_v48  ;;  %v6580_v58 = vsub.f32 %v24878_v45, %v24931_v48 }
 0x400   :  { %v6575_v60 = vsub.f32 %v6573_v50, %v6574_v54  ;;  %v6581_v62 = vsub.f32 %v24885_v52, %v24931_v48  ;;  %v6582_v63 = vsub.f32 %v24875_v43, %v24931_v48  ;;  %v6583_v29 = vsub.f32 %v24883_v49, %v24931_v48 }
 0x401   :  { %v6584_v34 = vsub.f32 %v24898_v61, %v24931_v48  ;;  %v6585_v33 = vsub.f32 %v24905_v2, %v24931_v48  ;;  %v6586_v32 = vsub.f32 %v24895_v59, %v24931_v48  ;;  %v6587_v45 = vsub.f32 %v24903_v1, %v24931_v48  ;;  %v24971_v59 = vld [vmem:[%s29690_s3] ss:$0 sm:$0xff] }
 0x402   :  { %v6592_v0 = vadd.f32 1e-05, %v6575_v60  ;;  %v6588_v52 = vsub.f32 %v24918_v14, %v24931_v48  ;;  %v6590_v43 = vsub.f32 %v24915_v11, %v24931_v48  ;;  %v6591_v49 = vsub.f32 %v24923_v18, %v24931_v48 }
 0x404   :  { %23590 = vrsqrt.f32 %v6592_v0 }
 0x40e   :  { %v24966_v61 = vpop.eup %23590 }
 0x40f   :  { %v6607_v2 = vmul.f32 %v24966_v61, %v6589_v51  ;;  %v6594_v3 = vmul.f32 %v24966_v61, %v6576_v53  ;;  %v6595_v5 = vmul.f32 %v24966_v61, %v6577_v55  ;;  %v6596_v7 = vmul.f32 %v24966_v61, %v6578_v56 }
 0x410   :  { %v6597_v9 = vmul.f32 %v24966_v61, %v6579_v57  ;;  %v6598_v10 = vmul.f32 %v24966_v61, %v6580_v58  ;;  %v6599_v12 = vmul.f32 %v24966_v61, %v6581_v62  ;;  %v6600_v4 = vmul.f32 %v24966_v61, %v6582_v63 }
 0x411   :  { %v6630_v13 = vmul.f32 %v24971_v59, %v6607_v2  ;;  %v6617_v15 = vmul.f32 %v24971_v59, %v6594_v3  ;;  %v6618_v16 = vmul.f32 %v24971_v59, %v6595_v5  ;;  %v6619_v17 = vmul.f32 %v24971_v59, %v6596_v7 }
 0x412   :  { %v6620_v19 = vmul.f32 %v24971_v59, %v6597_v9  ;;  %v6621_v20 = vmul.f32 %v24971_v59, %v6598_v10  ;;  %v6622_v21 = vmul.f32 %v24971_v59, %v6599_v12  ;;  %v6601_v22 = vmul.f32 %v24966_v61, %v6583_v29 }
 0x413   :  { %v6640_v23 = vadd.f32 %v24980_v8, %v6617_v15  ;;  %v6641_v24 = vadd.f32 %v24980_v8, %v6618_v16  ;;  %v6642_v25 = vadd.f32 %v24980_v8, %v6619_v17  ;;  %v6623_v26 = vmul.f32 %v24971_v59, %v6600_v4 }
 0x414   :  { %v6643_v27 = vadd.f32 %v24980_v8, %v6620_v19  ;;  %v6644_v28 = vadd.f32 %v24980_v8, %v6621_v20  ;;  %v6645_v30 = vadd.f32 %v24980_v8, %v6622_v21  ;;  %v6624_v31 = vmul.f32 %v24971_v59, %v6601_v22 }
 0x415   :  { %vm6656_vm3 = vcmp.gt.f32.partialorder %v6640_v23, 0.0  ;;  %vm6657_vm13 = vcmp.gt.f32.partialorder %v6641_v24, 0.0  ;;  %v6672_v35 = vmul.f32 0.2, %v6640_v23  ;;  %v6673_v36 = vmul.f32 0.2, %v6641_v24 }
 0x416   :  { %vm6658_vm14 = vcmp.gt.f32.partialorder %v6642_v25, 0.0  ;;  %vm6659_vm15 = vcmp.gt.f32.partialorder %v6643_v27, 0.0  ;;  %v6674_v37 = vmul.f32 0.2, %v6642_v25  ;;  %v6675_v38 = vmul.f32 0.2, %v6643_v27 }
 0x417   :  { %v6688_v39 = vsel %vm6656_vm3, %v6640_v23, %v6672_v35  ;;  %v6689_v40 = vsel %vm6657_vm13, %v6641_v24, %v6673_v36  ;;  %vm6660_vm1 = vcmp.gt.f32.partialorder %v6644_v28, 0.0  ;;  %vm6661_vm2 = vcmp.gt.f32.partialorder %v6645_v30, 0.0 }
 0x418   :  { %v6704_v41 = vpack.c.bf16 %v6689_v40, %v6688_v39  ;;  %v6690_v42 = vsel %vm6658_vm14, %v6642_v25, %v6674_v37  ;;  %v6691_v44 = vsel %vm6659_vm15, %v6643_v27, %v6675_v38  ;;  %v6676_v46 = vmul.f32 0.2, %v6644_v28  ;;  %v21632_v38 = vld [vmem:[%s29689_s5 + $0x10] sm:$0xff]   ;;  %v21655_v39 = vld [vmem:[%s29692_s6 + $0x80] ss:$8 sps:$4 sm:$0xff]  }
 0x419   :  { %v6705_v47 = vpack.c.bf16 %v6691_v44, %v6690_v42  ;;  %v6677_v50 = vmul.f32 0.2, %v6645_v30  ;;  %v6646_v54 = vadd.f32 %v24980_v8, %v6623_v26  ;;  %v6647_v51 = vadd.f32 %v24980_v8, %v6624_v31  ;;  %v21661_v40 = vld [vmem:[%s29692_s6 + $0x94] ss:$8 sps:$4 sm:$0xff]   ;;  %v21665_v42 = vld [vmem:[%s29692_s6 + $0xa4] ss:$8 sps:$4 sm:$0xff]  }
 0x41a   :  { %20876 = vmatprep.subr.bf16.mxu0 %v6704_v41  ;;  %v6692_v53 = vsel %vm6660_vm1, %v6644_v28, %v6676_v46  ;;  %v6602_v55 = vmul.f32 %v24966_v61, %v6584_v34  ;;  %v6603_v56 = vmul.f32 %v24966_v61, %v6585_v33  ;;  %v6604_v57 = vmul.f32 %v24966_v61, %v6586_v32  ;;  %v21633_v44 = vld [vmem:[%s29689_s5 + $0x18] sm:$0xff]   ;;  %v21634_v46 = vld [vmem:[%s29689_s5 + $0x20] sm:$0xff]  }
 0x41b   :  { %20877 = vmatpush3.bf16.msra.mxu0 %v6704_v41  ;;  %v6693_v58 = vsel %vm6661_vm2, %v6645_v30, %v6677_v50  ;;  %vm6662_vm4 = vcmp.gt.f32.partialorder %v6646_v54, 0.0  ;;  %vm6663_vm5 = vcmp.gt.f32.partialorder %v6647_v51, 0.0  ;;  %v6678_v60 = vmul.f32 0.2, %v6646_v54  ;;  %v21659_v41 = vld [vmem:[%s29692_s6 + $0x90] ss:$8 sps:$4 sm:$0xff]  }
 0x41c   :  { %20878 = vmatprep.subr.bf16.mxu0 %v6705_v47  ;;  %v6706_v62 = vpack.c.bf16 %v6693_v58, %v6692_v53  ;;  %v6679_v63 = vmul.f32 0.2, %v6647_v51  ;;  %v6625_v29 = vmul.f32 %v24971_v59, %v6602_v55  ;;  %v6626_v0 = vmul.f32 %v24971_v59, %v6603_v56  ;;  %v21669_v50 = vld [vmem:[%s29692_s6 + $0xb4] ss:$8 sps:$4 sm:$0xff]   ;;  %v21635_v53 = vld [vmem:[%s29689_s5 + $0x28] sm:$0xff]  }
 0x41d   :  { %v6694_v2 = vsel %vm6662_vm4, %v6646_v54, %v6678_v60  ;;  %v6605_v34 = vmul.f32 %v24966_v61, %v6587_v45  ;;  %v6627_v33 = vmul.f32 %v24971_v59, %v6604_v57  ;;  %v6606_v32 = vmul.f32 %v24966_v61, %v6588_v52  ;;  %v21667_v54 = vld [vmem:[%s29692_s6 + $0xb0] ss:$8 sps:$4 sm:$0xff]   ;;  %v21671_v56 = vld [vmem:[%s29692_s6 + $0xc0] ss:$8 sps:$4 sm:$0xff]   ;;  %v21677_v57 = vld [vmem:[%s29692_s6 + $0xd4] ss:$8 sps:$4 sm:$0xff]  }
 0x41e   :  { %v6695_v3 = vsel %vm6663_vm5, %v6647_v51, %v6679_v63  ;;  %v6648_v5 = vadd.f32 %v24980_v8, %v6625_v29  ;;  %v6649_v7 = vadd.f32 %v24980_v8, %v6626_v0  ;;  %v6653_v9 = vadd.f32 %v24980_v8, %v6630_v13  ;;  %v21673_v51 = vld [vmem:[%s29692_s6 + $0xc4] ss:$8 sps:$4 sm:$0xff]   ;;  %v21636_v55 = vld [vmem:[%s29689_s5 + $0x30] sm:$0xff]   ;;  %v21637_v60 = vld [vmem:[%s29689_s5 + $0x38] sm:$0xff]  }
 0x41f   :  { %20879 = vmatpush3.bf16.msra.mxu0 %v6705_v47  ;;  %v6707_v10 = vpack.c.bf16 %v6695_v3, %v6694_v2  ;;  %v6628_v1 = vmul.f32 %v24971_v59, %v6605_v34  ;;  %v6650_v45 = vadd.f32 %v24980_v8, %v6627_v33  ;;  %v6629_v12 = vmul.f32 %v24971_v59, %v6606_v32  ;;  %v21663_v47 = vld [vmem:[%s29692_s6 + $0xa0] ss:$8 sps:$4 sm:$0xff]   ;;  %v21675_v58 = vld [vmem:[%s29692_s6 + $0xd0] ss:$8 sps:$4 sm:$0xff]  }
 0x420   :  { %20880 = vmatprep.subr.bf16.mxu0 %v6706_v62  ;;  %vm6664_vm6 = vcmp.gt.f32.partialorder %v6648_v5, 0.0  ;;  %vm6665_vm7 = vcmp.gt.f32.partialorder %v6649_v7, 0.0  ;;  %v6680_v14 = vmul.f32 0.2, %v6648_v5  ;;  %v6681_v52 = vmul.f32 0.2, %v6649_v7 }
 0x421   :  { %v6651_v4 = vadd.f32 %v24980_v8, %v6628_v1  ;;  %vm6666_vm8 = vcmp.gt.f32.partialorder %v6650_v45, 0.0  ;;  %v6682_v15 = vmul.f32 0.2, %v6650_v45  ;;  %v6652_v16 = vadd.f32 %v24980_v8, %v6629_v12  ;;  %v21639_v63 = vld [vmem:[%s29689_s5 + $0x48] sm:$0xff]   ;;  %v21640_v29 = vld [vmem:[%s29689_s5 + $0x50] sm:$0xff]   ;;  %v21641_v0 = vld [vmem:[%s29689_s5 + $0x58] sm:$0xff]  }
 0x422   :  { %v6696_v13 = vsel %vm6664_vm6, %v6648_v5, %v6680_v14  ;;  %v6697_v17 = vsel %vm6665_vm7, %v6649_v7, %v6681_v52  ;;  %vm6669_vm9 = vcmp.gt.f32.partialorder %v6653_v9, 0.0  ;;  %v6685_v19 = vmul.f32 0.2, %v6653_v9  ;;  %v21642_v2 = vld [vmem:[%s29689_s5 + $0x60] sm:$0xff]   ;;  %v21643_v34 = vld [vmem:[%s29689_s5 + $0x68] sm:$0xff]   ;;  %v21644_v33 = vld [vmem:[%s29689_s5 + $0x70] sm:$0xff]  }
 0x423   :  { %20881 = vmatpush3.bf16.msra.mxu0 %v6706_v62  ;;  %v6708_v20 = vpack.c.bf16 %v6697_v17, %v6696_v13  ;;  %vm6667_vm10 = vcmp.gt.f32.partialorder %v6651_v4, 0.0  ;;  %v6683_v21 = vmul.f32 0.2, %v6651_v4  ;;  %v6698_v22 = vsel %vm6666_vm8, %v6650_v45, %v6682_v15  ;;  %v21638_v62 = vld [vmem:[%s29689_s5 + $0x40] sm:$0xff]   ;;  %v21645_v32 = vld [vmem:[%s29689_s5 + $0x78] sm:$0xff]   ;;  %v21647_v5 = vld [vmem:[%s29689_s5 + $0x88] sm:$0xff]  }
 0x424   :  { %20882 = vmatprep.subr.bf16.mxu0 %v6707_v10  ;;  %vm6668_vm11 = vcmp.gt.f32.partialorder %v6652_v16, 0.0  ;;  %v6684_v23 = vmul.f32 0.2, %v6652_v16  ;;  %v6701_v24 = vsel %vm6669_vm9, %v6653_v9, %v6685_v19  ;;  %v6608_v25 = vmul.f32 %v24966_v61, %v6590_v43  ;;  %v21646_v3 = vld [vmem:[%s29689_s5 + $0x80] sm:$0xff]   ;;  %v21648_v7 = vld [vmem:[%s29689_s5 + $0x90] sm:$0xff]   ;;  %v21649_v9 = vld [vmem:[%s29689_s5 + $0x98] sm:$0xff]  }
 0x425   :  { %v6699_v26 = vsel %vm6667_vm10, %v6651_v4, %v6683_v21  ;;  %v6609_v27 = vmul.f32 %v24966_v61, %v6591_v49  ;;  %v21651_v1 = vld [vmem:[%s29689_s5 + $0xa8] sm:$0xff]   ;;  %v21652_v45 = vld [vmem:[%s29689_s5 + $0xb0] sm:$0xff]   ;;  %v21653_v12 = vld [vmem:[%s29689_s5 + $0xb8] sm:$0xff]   ;;  %vm10109_vm6 = vcmask 261120  }
 0x426   :  { %v6709_v28 = vpack.c.bf16 %v6699_v26, %v6698_v22  ;;  %v6700_v30 = vsel %vm6668_vm11, %v6652_v16, %v6684_v23  ;;  %v6631_v31 = vmul.f32 %v24971_v59, %v6608_v25  ;;  %v21679_v14 = vld [vmem:[%s29692_s6 + $0xe0] ss:$8 sps:$4 sm:$0xff]   ;;  %v21681_v52 = vld [vmem:[%s29692_s6 + $0xe4] ss:$8 sps:$4 sm:$0xff]   ;;  %v21683_v16 = vld [vmem:[%s29692_s6 + $0xf0] ss:$8 sps:$4 sm:$0xff]  }
 0x427   :  { %20883 = vmatpush3.bf16.msra.mxu0 %v6707_v10  ;;  %v6710_v35 = vpack.c.bf16 %v6701_v24, %v6700_v30  ;;  %v6632_v36 = vmul.f32 %v24971_v59, %v6609_v27  ;;  %v21657_v59 = vld [vmem:[%s29692_s6 + $0x84] ss:$8 sps:$4 sm:$0xff]   ;;  %v21685_v13 = vld [vmem:[%s29692_s6 + $0xf4] ss:$8 sps:$4 sm:$0xff]   ;;  %vm18049_vm11 = vcmask 1041409  }
 0x428   :  { %20884 = vmatprep.subr.bf16.mxu0 %v6708_v20  ;;  %v6654_v37 = vadd.f32 %v24980_v8, %v6631_v31  ;;  %v21650_v10 = vld [vmem:[%s29689_s5 + $0xa0] sm:$0xff]   ;;  %v21658_v15 = vld [vmem:[%s29689_s5 + $0xc8] sm:$0xff]   ;;  %v21662_v17 = vld [vmem:[%s29689_s5 + $0xd0] sm:$0xff]  }
 0x429   :  { %v6655_v11 = vadd.f32 %v24980_v8, %v6632_v36  ;;  %v21631_v8 = vld [vmem:[%s29689_s5 + $0x8] sm:$0xff]   ;;  %v21654_v4 = vld [vmem:[%s29689_s5 + $0xc0] sm:$0xff]   ;;  %v21678_v23 = vld [vmem:[%s29689_s5 + $0xf0] sm:$0xff]  }
 0x42a   :  { %vm6670_vm12 = vcmp.gt.f32.partialorder %v6654_v37, 0.0  ;;  %v6686_v43 = vmul.f32 0.2, %v6654_v37  ;;  %v21688_v19 = vld [vmem:[%s29692_s6 + $0x4] ss:$8 sps:$4 sm:$0xff]   ;;  %v21682_v24 = vld [vmem:[%s29689_s5 + $0xf8] sm:$0xff]  }
 0x42b   :  { %20885 = vmatpush3.bf16.msra.mxu0 %v6708_v20  ;;  %vm6671_vm0 = vcmp.gt.f32.partialorder %v6655_v11, 0.0  ;;  %v6687_v18 = vmul.f32 0.2, %v6655_v11  ;;  %v21666_v20 = vld [vmem:[%s29689_s5 + $0xd8] sm:$0xff]   ;;  %v21670_v21 = vld [vmem:[%s29689_s5 + $0xe0] sm:$0xff]   ;;  %v21674_v22 = vld [vmem:[%s29689_s5 + $0xe8] sm:$0xff]  }
 0x42c   :  { %20886 = vmatprep.subr.bf16.mxu0 %v6709_v28  ;;  %v6702_v48 = vsel %vm6670_vm12, %v6654_v37, %v6686_v43  ;;  %vm18052_vm12 = vcmask 58368  }
 0x42d   :  { %v6703_v49 = vsel %vm6671_vm0, %v6655_v11, %v6687_v18  ;;  %v21686_v18 = vld [vmem:[%s29692_s6] ss:$8 sps:$4 sm:$0xff]   ;;  %vm18070_vm0 = vcmask 1024  }
 0x42e   :  { %v6711_v61 = vpack.c.bf16 %v6703_v49, %v6702_v48  ;;  %v21691_v49 = vld [vmem:[%s29692_s6 + $0x14] ss:$8 sps:$4 sm:$0xff]  }
 0x42f   :  { %20887 = vmatpush3.bf16.msra.mxu0 %v6709_v28 }
 0x430   :  { %20888 = vmatprep.subr.bf16.mxu0 %v6710_v35 }
 0x433   :  { %20889 = vmatpush3.bf16.msra.mxu0 %v6710_v35 }
 0x434   :  { %20890 = vmatprep.subr.bf16.mxu0 %v6711_v61 }
 0x437   :  { %20891 = vmatpush3.bf16.msra.mxu0 %v6711_v61  ;;  %v21689_v61 = vld [vmem:[%s29692_s6 + $0x10] ss:$8 sps:$4 sm:$0xff]  }
 0x438   :  { %7445 = vmatprep.subr.bf16.mxu0 %v21657_v59  ;;  %v21694_v59 = vld [vmem:[%s29692_s6 + $0x24] ss:$8 sps:$4 sm:$0xff]  }
 0x43a   :  { %20893 = vmatmul.mubr.bf16.vlgmr.msra.gmra.mrb[0].mxu0 %v21631_v8 }
 0x43b   :  { %20896 = vmatprep.mubr.bf16.mxu0 %v21632_v38  ;;  %7446 = vmatpush1.bf16.msra.mxu0 %v21655_v39 }
 0x43c   :  { %7447 = vmatprep.subr.bf16.mxu0 %v21661_v40  ;;  %v21692_v40 = vld [vmem:[%s29692_s6 + $0x20] ss:$8 sps:$4 sm:$0xff]  }
 0x43f   :  { %7448 = vmatpush1.bf16.msra.mxu0 %v21659_v41 }
 0x440   :  { %7449 = vmatprep.subr.bf16.mxu0 %v21665_v42 }
 0x442   :  { %20897 = vmatmul.mubr.bf16.gmra.mrb[4].mxu0 %v21633_v44  ;;  %v21697_v44 = vld [vmem:[%s29692_s6 + $0x34] ss:$8 sps:$4 sm:$0xff]  }
 0x443   :  { %20900 = vmatprep.mubr.bf16.mxu0 %v21634_v46  ;;  %7450 = vmatpush1.bf16.msra.mxu0 %v21663_v47  ;;  %v21695_v47 = vld [vmem:[%s29692_s6 + $0x30] ss:$8 sps:$4 sm:$0xff]  }
 0x444   :  { %7451 = vmatprep.subr.bf16.mxu0 %v21669_v50  ;;  %v21700_v50 = vld [vmem:[%s29692_s6 + $0x44] ss:$8 sps:$4 sm:$0xff]  }
 0x447   :  { %7452 = vmatpush1.bf16.msra.mxu0 %v21667_v54 }
 0x448   :  { %7453 = vmatprep.subr.bf16.mxu0 %v21673_v51 }
 0x44a   :  { %20901 = vmatmul.mubr.bf16.gmra.mrb[8].mxu0 %v21635_v53 }
 0x44b   :  { %20904 = vmatprep.mubr.bf16.mxu0 %v21636_v55  ;;  %7454 = vmatpush1.bf16.msra.mxu0 %v21671_v56  ;;  %v21698_v55 = vld [vmem:[%s29692_s6 + $0x40] ss:$8 sps:$4 sm:$0xff]  }
 0x44c   :  { %7455 = vmatprep.subr.bf16.mxu0 %v21677_v57 }
 0x44f   :  { %7456 = vmatpush1.bf16.msra.mxu0 %v21675_v58  ;;  %v21703_v58 = vld [vmem:[%s29692_s6 + $0x54] ss:$8 sps:$4 sm:$0xff]  }
 0x450   :  { %7457 = vmatprep.subr.bf16.mxu0 %v21681_v52 }
 0x452   :  { %20905 = vmatmul.mubr.bf16.gmra.mrb[12].mxu0 %v21637_v60 }
 0x453   :  { %20908 = vmatprep.mubr.bf16.mxu0 %v21638_v62  ;;  %7458 = vmatpush1.bf16.msra.mxu0 %v21679_v14  ;;  %v21701_v62 = vld [vmem:[%s29692_s6 + $0x50] ss:$8 sps:$4 sm:$0xff]  }
 0x454   :  { %7459 = vmatprep.subr.bf16.mxu0 %v21685_v13  ;;  %v21718_v13 = vld [vmem:[%s29692_s6 + $0x124] ss:$8 sps:$4 sm:$0xff]  }
 0x457   :  { %7460 = vmatpush1.bf16.msra.mxu0 %v21683_v16  ;;  %v21713_v16 = vld [vmem:[%s29692_s6 + $0x110] ss:$8 sps:$4 sm:$0xff]  }
 0x458   :  { %7578 = vmatprep.subr.bf16.mxu0 %v21688_v19 }
 0x45a   :  { %20909 = vmatmul.mubr.bf16.gmra.mrb[16].mxu0 %v21639_v63  ;;  %v21706_v63 = vld [vmem:[%s29692_s6 + $0x64] ss:$8 sps:$4 sm:$0xff]  }
 0x45b   :  { %20912 = vmatprep.mubr.bf16.mxu0 %v21640_v29 }
 0x462   :  { %20913 = vmatmul.mubr.bf16.gmra.mrb[20].mxu0 %v21641_v0 }
 0x463   :  { %20916 = vmatprep.mubr.bf16.mxu0 %v21642_v2 }
 0x46a   :  { %20917 = vmatmul.mubr.bf16.gmra.mrb[24].mxu0 %v21643_v34  ;;  %v21704_v34 = vld [vmem:[%s29692_s6 + $0x60] ss:$8 sps:$4 sm:$0xff]  }
 0x46b   :  { %20920 = vmatprep.mubr.bf16.mxu0 %v21644_v33 }
 0x472   :  { %20921 = vmatmul.mubr.bf16.gmra.mrb[28].mxu0 %v21645_v32 }
 0x473   :  { %20924 = vmatprep.mubr.bf16.mxu0 %v21646_v3  ;;  %v21709_v3 = vld [vmem:[%s29692_s6 + $0x74] ss:$8 sps:$4 sm:$0xff]  }
 0x47a   :  { %20925 = vmatmul.mubr.bf16.gmra.mrb[32].mxu0 %v21647_v5 }
 0x47b   :  { %20928 = vmatprep.mubr.bf16.mxu0 %v21648_v7  ;;  %v21707_v7 = vld [vmem:[%s29692_s6 + $0x70] ss:$8 sps:$4 sm:$0xff]  }
 0x482   :  { %20929 = vmatmul.mubr.bf16.gmra.mrb[36].mxu0 %v21649_v9  ;;  %v21712_v9 = vld [vmem:[%s29692_s6 + $0x104] ss:$8 sps:$4 sm:$0xff]  }
 0x483   :  { %20932 = vmatprep.mubr.bf16.mxu0 %v21650_v10 }
 0x48a   :  { %20933 = vmatmul.mubr.bf16.gmra.mrb[40].mxu0 %v21651_v1 }
 0x48b   :  { %20936 = vmatprep.mubr.bf16.mxu0 %v21652_v45 }
 0x492   :  { %20937 = vmatmul.mubr.bf16.gmra.mrb[44].mxu0 %v21653_v12  ;;  %v21710_v12 = vld [vmem:[%s29692_s6 + $0x100] ss:$8 sps:$4 sm:$0xff]  }
 0x493   :  { %20940 = vmatprep.mubr.bf16.mxu0 %v21654_v4  ;;  %v21715_v4 = vld [vmem:[%s29692_s6 + $0x114] ss:$8 sps:$4 sm:$0xff]  }
 0x49a   :  { %20941 = vmatmul.mubr.bf16.gmra.mrb[48].mxu0 %v21658_v15 }
 0x49b   :  { %20944 = vmatprep.mubr.bf16.mxu0 %v21662_v17 }
 0x4a2   :  { %20945 = vmatmul.mubr.bf16.gmra.mrb[52].mxu0 %v21666_v20 }
 0x4a3   :  { %20948 = vmatprep.mubr.bf16.mxu0 %v21670_v21  ;;  %v21716_v21 = vld [vmem:[%s29692_s6 + $0x120] ss:$8 sps:$4 sm:$0xff]  }
 0x4aa   :  { %20949 = vmatmul.mubr.bf16.gmra.mrb[56].mxu0 %v21674_v22 }
 0x4ab   :  { %20952 = vmatprep.mubr.bf16.mxu0 %v21678_v23 }
 0x4b2   :  { %20953 = vmatmul.mubr.bf16.gmra.mrb[60].mxu0 %v21682_v24  ;;  %v21721_v24 = vld [vmem:[%s29692_s6 + $0x134] ss:$8 sps:$4 sm:$0xff]  }
 0x4b3   :  { %7477 = vmatprep.mubr.bf16.mxu0 %v23608_v6 }
 0x50d   :  { %v25183_v25 = vpop.f32.mrb[0].mxu0 }
 0x50e   :  { %v25185_v26 = vpop.f32.mrb[1].mxu0 }
 0x50f   :  { %v25187_v27 = vpop.f32.mrb[2].mxu0 }
 0x510   :  { %v7326_v28 = vpack.c.bf16 %v25187_v27, %v25183_v25  ;;  %v25191_v30 = vpop.f32.mrb[3].mxu0  ;;  %v21722_v25 = vld [vmem:[%s29692_s6 + $0x140] ss:$8 sps:$4 sm:$0xff]  }
 0x511   :  { %v7325_v31 = vpack.c.bf16 %v25191_v30, %v25185_v26  ;;  %v21719_v30 = vld [vmem:[%s29692_s6 + $0x130] ss:$8 sps:$4 sm:$0xff]  }
 0x515   :  { %v20898_v35 = vpop.f32.mrb[4].mxu0 }
 0x516   :  { %v7018_v36 = vpop.f32.mrb[5].mxu0 }
 0x517   :  { %v20899_v37 = vpop.f32.mrb[6].mxu0 }
 0x518   :  { %v7348_v11 = vpack.c.bf16 %v20899_v37, %v20898_v35  ;;  %v7021_v43 = vpop.f32.mrb[7].mxu0 }
 0x519   :  { %v7347_v48 = vpack.c.bf16 %v7021_v43, %v7018_v36 }
 0x51b   :  { %7478 = vmatmul.mubr.bf16.vlgmr.msra.gmra.mrb[64].mxu0 %v7347_v48  ;;  %v21730_v48 = vld [vmem:[%s29692_s6 + $0x164] ss:$8 sps:$4 sm:$0xff]  }
 0x51c   :  { %7579 = vmatpush1.bf16.msra.mxu0 %v21686_v18  ;;  %7487 = vmatprep.mubr.bf16.mxu0 %v23608_v6  ;;  %v21725_v18 = vld [vmem:[%s29692_s6 + $0x150] ss:$8 sps:$4 sm:$0xff]  }
 0x51d   :  { %7580 = vmatprep.subr.bf16.mxu0 %v21691_v49  ;;  %v25208_v8 = vpop.f32.mrb[8].mxu0 }
 0x51e   :  { %v25210_v38 = vpop.f32.mrb[9].mxu0 }
 0x51f   :  { %v25212_v39 = vpop.f32.mrb[10].mxu0 }
 0x520   :  { %7581 = vmatpush1.bf16.msra.mxu0 %v21689_v61  ;;  %v7636_v41 = vpack.c.bf16 %v25212_v39, %v25208_v8  ;;  %v25219_v42 = vpop.f32.mrb[11].mxu0  ;;  %v21746_v8 = vld [vmem:[%s29692_s6 + $0x1c0] ss:$8 sps:$4 sm:$0xff]  }
 0x521   :  { %7582 = vmatprep.subr.bf16.mxu0 %v21694_v59  ;;  %v7635_v46 = vpack.c.bf16 %v25219_v42, %v25210_v38  ;;  %v21740_v38 = vld [vmem:[%s29692_s6 + $0x1a0] ss:$8 sps:$4 sm:$0xff]  }
 0x523   :  { %7488 = vmatmul.mubr.bf16.gmra.mrb[68].mxu0 %v7348_v11  ;;  %v21727_v11 = vld [vmem:[%s29692_s6 + $0x154] ss:$8 sps:$4 sm:$0xff]  }
 0x524   :  { %7583 = vmatpush1.bf16.msra.mxu0 %v21692_v40  ;;  %7610 = vmatprep.mubr.bf16.mxu0 %v23608_v6  ;;  %v21728_v40 = vld [vmem:[%s29692_s6 + $0x160] ss:$8 sps:$4 sm:$0xff]  }
 0x525   :  { %7584 = vmatprep.subr.bf16.mxu0 %v21697_v44  ;;  %v25233_v54 = vpop.f32.mrb[12].mxu0 }
 0x526   :  { %v25235_v51 = vpop.f32.mrb[13].mxu0 }
 0x527   :  { %v25237_v53 = vpop.f32.mrb[14].mxu0 }
 0x528   :  { %7585 = vmatpush1.bf16.msra.mxu0 %v21695_v47  ;;  %v7799_v56 = vpack.c.bf16 %v25237_v53, %v25233_v54  ;;  %v25244_v57 = vpop.f32.mrb[15].mxu0  ;;  %v21770_v54 = vld [vmem:[%s29692_s6 + $0x240] ss:$8 sps:$4 sm:$0xff]   ;;  %v21778_v53 = vld [vmem:[%s29692_s6 + $0x264] ss:$8 sps:$4 sm:$0xff]  }
 0x529   :  { %7586 = vmatprep.subr.bf16.mxu0 %v21700_v50  ;;  %v7798_v60 = vpack.c.bf16 %v25244_v57, %v25235_v51  ;;  %v21733_v50 = vld [vmem:[%s29692_s6 + $0x174] ss:$8 sps:$4 sm:$0xff]   ;;  %v21764_v51 = vld [vmem:[%s29692_s6 + $0x220] ss:$8 sps:$4 sm:$0xff]  }
 0x52c   :  { %7587 = vmatpush1.bf16.msra.mxu0 %v21698_v55 }
 0x52d   :  { %7588 = vmatprep.subr.bf16.mxu0 %v21703_v58  ;;  %v25257_v29 = vpop.f32.mrb[16].mxu0  ;;  %v21731_v58 = vld [vmem:[%s29692_s6 + $0x170] ss:$8 sps:$4 sm:$0xff]  }
 0x52e   :  { %v25259_v0 = vpop.f32.mrb[17].mxu0 }
 0x52f   :  { %v25261_v2 = vpop.f32.mrb[18].mxu0 }
 0x530   :  { %7589 = vmatpush1.bf16.msra.mxu0 %v21701_v62  ;;  %v7962_v33 = vpack.c.bf16 %v25261_v2, %v25257_v29  ;;  %v25268_v32 = vpop.f32.mrb[19].mxu0  ;;  %v21736_v62 = vld [vmem:[%s29692_s6 + $0x184] ss:$8 sps:$4 sm:$0xff]   ;;  %v21799_v29 = vld [vmem:[%s29692_s6 + $0x2d4] ss:$8 sps:$4 sm:$0xff]  }
 0x531   :  { %7590 = vmatprep.subr.bf16.mxu0 %v21706_v63  ;;  %v7961_v5 = vpack.c.bf16 %v25268_v32, %v25259_v0  ;;  %v21793_v0 = vld [vmem:[%s29692_s6 + $0x2b4] ss:$8 sps:$4 sm:$0xff]   ;;  %v21791_v32 = vld [vmem:[%s29692_s6 + $0x2b0] ss:$8 sps:$4 sm:$0xff]  }
 0x532   :  { %v21797_v2 = vld [vmem:[%s29692_s6 + $0x2d0] ss:$8 sps:$4 sm:$0xff]  }
 0x534   :  { %7591 = vmatpush1.bf16.msra.mxu0 %v21704_v34 }
 0x535   :  { %7592 = vmatprep.subr.bf16.mxu0 %v21709_v3  ;;  %v25281_v10 = vpop.f32.mrb[20].mxu0 }
 0x536   :  { %v25283_v1 = vpop.f32.mrb[21].mxu0 }
 0x537   :  { %v25285_v45 = vpop.f32.mrb[22].mxu0 }
 0x538   :  { %7593 = vmatpush1.bf16.msra.mxu0 %v21707_v7  ;;  %v8125_v14 = vpack.c.bf16 %v25285_v45, %v25281_v10  ;;  %v25292_v52 = vpop.f32.mrb[23].mxu0  ;;  %v21734_v7 = vld [vmem:[%s29692_s6 + $0x180] ss:$8 sps:$4 sm:$0xff]   ;;  %v21823_v10 = vld [vmem:[%s29692_s6 + $0x354] ss:$8 sps:$4 sm:$0xff]  }
 0x539   :  { %7733 = vmatprep.subr.bf16.mxu0 %v21712_v9  ;;  %v8124_v15 = vpack.c.bf16 %v25292_v52, %v25283_v1  ;;  %v21817_v1 = vld [vmem:[%s29692_s6 + $0x334] ss:$8 sps:$4 sm:$0xff]   ;;  %v21815_v52 = vld [vmem:[%s29692_s6 + $0x330] ss:$8 sps:$4 sm:$0xff]  }
 0x53a   :  { %v21821_v45 = vld [vmem:[%s29692_s6 + $0x350] ss:$8 sps:$4 sm:$0xff]  }
 0x53b   :  { %7611 = vmatmul.mubr.bf16.vlgmr.msra.gmra.mrb[64].mxu0 %v7325_v31  ;;  %v21724_v31 = vld [vmem:[%s29692_s6 + $0x144] ss:$8 sps:$4 sm:$0xff]  }
 0x53c   :  { %7734 = vmatpush1.bf16.msra.mxu0 %v21710_v12  ;;  %7620 = vmatprep.mubr.bf16.mxu0 %v23608_v6 }
 0x53d   :  { %7735 = vmatprep.subr.bf16.mxu0 %v21715_v4  ;;  %v25309_v17 = vpop.f32.mrb[24].mxu0  ;;  %v21739_v4 = vld [vmem:[%s29692_s6 + $0x194] ss:$8 sps:$4 sm:$0xff]  }
 0x53e   :  { %v25311_v19 = vpop.f32.mrb[25].mxu0 }
 0x53f   :  { %v25313_v20 = vpop.f32.mrb[26].mxu0 }
 0x540   :  { %7736 = vmatpush1.bf16.msra.mxu0 %v21713_v16  ;;  %v8288_v22 = vpack.c.bf16 %v25313_v20, %v25309_v17  ;;  %v25320_v23 = vpop.f32.mrb[27].mxu0  ;;  %v21847_v17 = vld [vmem:[%s29692_s6 + $0x3d4] ss:$8 sps:$4 sm:$0xff]   ;;  %v21845_v20 = vld [vmem:[%s29692_s6 + $0x3d0] ss:$8 sps:$4 sm:$0xff]  }
 0x541   :  { %7737 = vmatprep.subr.bf16.mxu0 %v21718_v13  ;;  %v8287_v26 = vpack.c.bf16 %v25320_v23, %v25311_v19  ;;  %v21737_v13 = vld [vmem:[%s29692_s6 + $0x190] ss:$8 sps:$4 sm:$0xff]   ;;  %v21841_v19 = vld [vmem:[%s29692_s6 + $0x3b4] ss:$8 sps:$4 sm:$0xff]  }
 0x542   :  { %v21839_v23 = vld [vmem:[%s29692_s6 + $0x3b0] ss:$8 sps:$4 sm:$0xff]  }
 0x543   :  { %7621 = vmatmul.mubr.bf16.gmra.mrb[68].mxu0 %v7326_v28 }
 0x544   :  { %7738 = vmatpush1.bf16.msra.mxu0 %v21716_v21  ;;  %7765 = vmatprep.mubr.bf16.mxu0 %v23608_v6  ;;  %v21742_v21 = vld [vmem:[%s29692_s6 + $0x1a4] ss:$8 sps:$4 sm:$0xff]  }
 0x545   :  { %7739 = vmatprep.subr.bf16.mxu0 %v21721_v24  ;;  %v25337_v35 = vpop.f32.mrb[28].mxu0 }
 0x546   :  { %v25339_v36 = vpop.f32.mrb[29].mxu0 }
 0x547   :  { %v25341_v37 = vpop.f32.mrb[30].mxu0 }
 0x548   :  { %7740 = vmatpush1.bf16.msra.mxu0 %v21719_v30  ;;  %v8451_v27 = vpack.c.bf16 %v25341_v37, %v25337_v35  ;;  %v25348_v28 = vpop.f32.mrb[31].mxu0  ;;  %v21871_v35 = vld [vmem:[%s29692_s6 + $0x454] ss:$8 sps:$4 sm:$0xff]   ;;  %v21869_v37 = vld [vmem:[%s29692_s6 + $0x450] ss:$8 sps:$4 sm:$0xff]  }
 0x549   :  { %7741 = vmatprep.subr.bf16.mxu0 %v21724_v31  ;;  %v8450_v43 = vpack.c.bf16 %v25348_v28, %v25339_v36  ;;  %v21865_v36 = vld [vmem:[%s29692_s6 + $0x434] ss:$8 sps:$4 sm:$0xff]   ;;  %v21863_v28 = vld [vmem:[%s29692_s6 + $0x430] ss:$8 sps:$4 sm:$0xff]  }
 0x54c   :  { %7742 = vmatpush1.bf16.msra.mxu0 %v21722_v25  ;;  %v21745_v25 = vld [vmem:[%s29692_s6 + $0x1b4] ss:$8 sps:$4 sm:$0xff]  }
 0x54d   :  { %7743 = vmatprep.subr.bf16.mxu0 %v21727_v11  ;;  %v25361_v49 = vpop.f32.mrb[32].mxu0 }
 0x54e   :  { %v25363_v61 = vpop.f32.mrb[33].mxu0 }
 0x54f   :  { %v25365_v59 = vpop.f32.mrb[34].mxu0 }
 0x550   :  { %7744 = vmatpush1.bf16.msra.mxu0 %v21725_v18  ;;  %v25372_v47 = vpop.f32.mrb[35].mxu0  ;;  %v21743_v18 = vld [vmem:[%s29692_s6 + $0x1b0] ss:$8 sps:$4 sm:$0xff]  }
 0x551   :  { %7745 = vmatprep.subr.bf16.mxu0 %v21730_v48  ;;  %v8613_v55 = vpack.c.bf16 %v25372_v47, %v25363_v61  ;;  %v21748_v48 = vld [vmem:[%s29692_s6 + $0x1c4] ss:$8 sps:$4 sm:$0xff]   ;;  %v21889_v61 = vld [vmem:[%s29692_s6 + $0x4b4] ss:$8 sps:$4 sm:$0xff]   ;;  %v29702_v47 = vpack.c.bf16 %v25365_v59, %v25361_v49  ;;  %v21893_v59 = vld [vmem:[%s29692_s6 + $0x4d0] ss:$8 sps:$4 sm:$0xff]  }
 0x552   :  { %v21895_v49 = vld [vmem:[%s29692_s6 + $0x4d4] ss:$8 sps:$4 sm:$0xff]  }
 0x554   :  { %7746 = vmatpush1.bf16.msra.mxu0 %v21728_v40 }
 0x555   :  { %7747 = vmatprep.subr.bf16.mxu0 %v21733_v50  ;;  %v25385_v63 = vpop.f32.mrb[36].mxu0 }
 0x556   :  { %v25387_v34 = vpop.f32.mrb[37].mxu0 }
 0x557   :  { %v25389_v3 = vpop.f32.mrb[38].mxu0 }
 0x558   :  { %7748 = vmatpush1.bf16.msra.mxu0 %v21731_v58  ;;  %v25396_v12 = vpop.f32.mrb[39].mxu0 }
 0x559   :  { %7896 = vmatprep.subr.bf16.mxu0 %v21736_v62  ;;  %v21751_v62 = vld [vmem:[%s29692_s6 + $0x1d4] ss:$8 sps:$4 sm:$0xff]  }
 0x55b   :  { %7766 = vmatmul.mubr.bf16.vlgmr.msra.gmra.mrb[64].mxu0 %v7635_v46 }
 0x55c   :  { %7897 = vmatpush1.bf16.msra.mxu0 %v21734_v7  ;;  %7775 = vmatprep.mubr.bf16.mxu0 %v23608_v6 }
 0x55d   :  { %7898 = vmatprep.subr.bf16.mxu0 %v21739_v4  ;;  %v25413_v24 = vpop.f32.mrb[40].mxu0  ;;  %v21749_v4 = vld [vmem:[%s29692_s6 + $0x1d0] ss:$8 sps:$4 sm:$0xff]  }
 0x55e   :  { %v25415_v30 = vpop.f32.mrb[41].mxu0 }
 0x55f   :  { %v25417_v31 = vpop.f32.mrb[42].mxu0 }
 0x560   :  { %7899 = vmatpush1.bf16.msra.mxu0 %v21737_v13  ;;  %v25424_v46 = vpop.f32.mrb[43].mxu0  ;;  %v21754_v13 = vld [vmem:[%s29692_s6 + $0x1e4] ss:$8 sps:$4 sm:$0xff]  }
 0x561   :  { %7900 = vmatprep.subr.bf16.mxu0 %v21742_v21 }
 0x563   :  { %7776 = vmatmul.mubr.bf16.gmra.mrb[68].mxu0 %v7636_v41 }
 0x564   :  { %7901 = vmatpush1.bf16.msra.mxu0 %v21740_v38  ;;  %7928 = vmatprep.mubr.bf16.mxu0 %v23608_v6 }
 0x565   :  { %7902 = vmatprep.subr.bf16.mxu0 %v21745_v25  ;;  %v25441_v40 = vpop.f32.mrb[44].mxu0 }
 0x566   :  { %v25443_v50 = vpop.f32.mrb[45].mxu0 }
 0x567   :  { %v25445_v58 = vpop.f32.mrb[46].mxu0 }
 0x568   :  { %7903 = vmatpush1.bf16.msra.mxu0 %v21743_v18  ;;  %v25452_v41 = vpop.f32.mrb[47].mxu0  ;;  %v21752_v18 = vld [vmem:[%s29692_s6 + $0x1e0] ss:$8 sps:$4 sm:$0xff]  }
 0x569   :  { %7904 = vmatprep.subr.bf16.mxu0 %v21748_v48  ;;  %v21760_v48 = vld [vmem:[%s29692_s6 + $0x204] ss:$8 sps:$4 sm:$0xff]  }
 0x56c   :  { %7905 = vmatpush1.bf16.msra.mxu0 %v21746_v8 }
 0x56d   :  { %7906 = vmatprep.subr.bf16.mxu0 %v21751_v62  ;;  %v25465_v21 = vpop.f32.mrb[48].mxu0  ;;  %v21757_v62 = vld [vmem:[%s29692_s6 + $0x1f4] ss:$8 sps:$4 sm:$0xff]  }
 0x56e   :  { %v25467_v38 = vpop.f32.mrb[49].mxu0 }
 0x56f   :  { %v25469_v25 = vpop.f32.mrb[50].mxu0 }
 0x570   :  { %7907 = vmatpush1.bf16.msra.mxu0 %v21749_v4  ;;  %v25476_v8 = vpop.f32.mrb[51].mxu0  ;;  %v21755_v4 = vld [vmem:[%s29692_s6 + $0x1f0] ss:$8 sps:$4 sm:$0xff]  }
 0x571   :  { %7908 = vmatprep.subr.bf16.mxu0 %v21754_v13 }
 0x574   :  { %7909 = vmatpush1.bf16.msra.mxu0 %v21752_v18  ;;  %v21758_v18 = vld [vmem:[%s29692_s6 + $0x200] ss:$8 sps:$4 sm:$0xff]  }
 0x575   :  { %7910 = vmatprep.subr.bf16.mxu0 %v21757_v62  ;;  %v25489_v7 = vpop.f32.mrb[52].mxu0  ;;  %v21763_v62 = vld [vmem:[%s29692_s6 + $0x214] ss:$8 sps:$4 sm:$0xff]  }
 0x576   :  { %v25491_v13 = vpop.f32.mrb[53].mxu0 }
 0x577   :  { %v25493_v42 = vpop.f32.mrb[54].mxu0 }
 0x578   :  { %7911 = vmatpush1.bf16.msra.mxu0 %v21755_v4  ;;  %v25500_v11 = vpop.f32.mrb[55].mxu0  ;;  %v21761_v4 = vld [vmem:[%s29692_s6 + $0x210] ss:$8 sps:$4 sm:$0xff]  }
 0x579   :  { %8059 = vmatprep.subr.bf16.mxu0 %v21760_v48  ;;  %v21766_v48 = vld [vmem:[%s29692_s6 + $0x224] ss:$8 sps:$4 sm:$0xff]  }
 0x57b   :  { %7929 = vmatmul.mubr.bf16.vlgmr.msra.gmra.mrb[64].mxu0 %v7798_v60 }
 0x57c   :  { %8060 = vmatpush1.bf16.msra.mxu0 %v21758_v18  ;;  %7938 = vmatprep.mubr.bf16.mxu0 %v23608_v6  ;;  %v21769_v18 = vld [vmem:[%s29692_s6 + $0x234] ss:$8 sps:$4 sm:$0xff]  }
 0x57d   :  { %8061 = vmatprep.subr.bf16.mxu0 %v21763_v62  ;;  %v25517_v39 = vpop.f32.mrb[56].mxu0 }
 0x57e   :  { %v25519_v16 = vpop.f32.mrb[57].mxu0 }
 0x57f   :  { %v25521_v9 = vpop.f32.mrb[58].mxu0 }
 0x580   :  { %8062 = vmatpush1.bf16.msra.mxu0 %v21761_v4  ;;  %v25528_v60 = vpop.f32.mrb[59].mxu0  ;;  %v21767_v4 = vld [vmem:[%s29692_s6 + $0x230] ss:$8 sps:$4 sm:$0xff]  }
 0x581   :  { %8063 = vmatprep.subr.bf16.mxu0 %v21766_v48  ;;  %v21772_v48 = vld [vmem:[%s29692_s6 + $0x244] ss:$8 sps:$4 sm:$0xff]  }
 0x583   :  { %7939 = vmatmul.mubr.bf16.gmra.mrb[68].mxu0 %v7799_v56 }
 0x584   :  { %8064 = vmatpush1.bf16.msra.mxu0 %v21764_v51  ;;  %8091 = vmatprep.mubr.bf16.mxu0 %v23608_v6  ;;  %v21775_v51 = vld [vmem:[%s29692_s6 + $0x254] ss:$8 sps:$4 sm:$0xff]  }
 0x585   :  { %8065 = vmatprep.subr.bf16.mxu0 %v21769_v18  ;;  %v25545_v57 = vpop.f32.mrb[60].mxu0  ;;  %v21781_v18 = vld [vmem:[%s29692_s6 + $0x274] ss:$8 sps:$4 sm:$0xff]  }
 0x586   :  { %v25547_v44 = vpop.f32.mrb[61].mxu0 }
 0x587   :  { %v25549_v62 = vpop.f32.mrb[62].mxu0 }
 0x588   :  { %8066 = vmatpush1.bf16.msra.mxu0 %v21767_v4  ;;  %v25556_v56 = vpop.f32.mrb[63].mxu0  ;;  %v21773_v4 = vld [vmem:[%s29692_s6 + $0x250] ss:$8 sps:$4 sm:$0xff]  }
 0x589   :  { %8067 = vmatprep.subr.bf16.mxu0 %v21772_v48  ;;  %v21776_v48 = vld [vmem:[%s29692_s6 + $0x260] ss:$8 sps:$4 sm:$0xff]  }
 0x58c   :  { %8068 = vmatpush1.bf16.msra.mxu0 %v21770_v54  ;;  %v21779_v54 = vld [vmem:[%s29692_s6 + $0x270] ss:$8 sps:$4 sm:$0xff]  }
 0x58d   :  { %8069 = vmatprep.subr.bf16.mxu0 %v21775_v51  ;;  %v21784_v51 = vld [vmem:[%s29692_s6 + $0x284] ss:$8 sps:$4 sm:$0xff]  }
 0x590   :  { %8070 = vmatpush1.bf16.msra.mxu0 %v21773_v4  ;;  %v21782_v4 = vld [vmem:[%s29692_s6 + $0x280] ss:$8 sps:$4 sm:$0xff]  }
 0x591   :  { %8071 = vmatprep.subr.bf16.mxu0 %v21778_v53  ;;  %v21787_v53 = vld [vmem:[%s29692_s6 + $0x294] ss:$8 sps:$4 sm:$0xff]  }
 0x594   :  { %8072 = vmatpush1.bf16.msra.mxu0 %v21776_v48  ;;  %v21790_v48 = vld [vmem:[%s29692_s6 + $0x2a4] ss:$8 sps:$4 sm:$0xff]  }
 0x595   :  { %8073 = vmatprep.subr.bf16.mxu0 %v21781_v18  ;;  %v21785_v18 = vld [vmem:[%s29692_s6 + $0x290] ss:$8 sps:$4 sm:$0xff]  }
 0x598   :  { %8074 = vmatpush1.bf16.msra.mxu0 %v21779_v54  ;;  %v21788_v54 = vld [vmem:[%s29692_s6 + $0x2a0] ss:$8 sps:$4 sm:$0xff]  }
 0x599   :  { %8222 = vmatprep.subr.bf16.mxu0 %v21784_v51  ;;  %v21794_v51 = vld [vmem:[%s29692_s6 + $0x2c0] ss:$8 sps:$4 sm:$0xff]  }
 0x59b   :  { %8092 = vmatmul.mubr.bf16.vlgmr.msra.gmra.mrb[64].mxu0 %v7961_v5  ;;  %v21796_v5 = vld [vmem:[%s29692_s6 + $0x2c4] ss:$8 sps:$4 sm:$0xff]  }
 0x59c   :  { %8223 = vmatpush1.bf16.msra.mxu0 %v21782_v4  ;;  %8101 = vmatprep.mubr.bf16.mxu0 %v23608_v6  ;;  %v21800_v4 = vld [vmem:[%s29692_s6 + $0x2e0] ss:$8 sps:$4 sm:$0xff]  }
 0x59d   :  { %8224 = vmatprep.subr.bf16.mxu0 %v21787_v53  ;;  %v21805_v53 = vld [vmem:[%s29692_s6 + $0x2f4] ss:$8 sps:$4 sm:$0xff]  }
 0x5a0   :  { %8225 = vmatpush1.bf16.msra.mxu0 %v21785_v18  ;;  %v21803_v18 = vld [vmem:[%s29692_s6 + $0x2f0] ss:$8 sps:$4 sm:$0xff]  }
 0x5a1   :  { %8226 = vmatprep.subr.bf16.mxu0 %v21790_v48  ;;  %v21808_v48 = vld [vmem:[%s29692_s6 + $0x304] ss:$8 sps:$4 sm:$0xff]  }
 0x5a3   :  { %8102 = vmatmul.mubr.bf16.gmra.mrb[68].mxu0 %v7962_v33  ;;  %v21802_v33 = vld [vmem:[%s29692_s6 + $0x2e4] ss:$8 sps:$4 sm:$0xff]  }
 0x5a4   :  { %8227 = vmatpush1.bf16.msra.mxu0 %v21788_v54  ;;  %8254 = vmatprep.mubr.bf16.mxu0 %v23608_v6  ;;  %v21806_v54 = vld [vmem:[%s29692_s6 + $0x300] ss:$8 sps:$4 sm:$0xff]  }
 0x5a5   :  { %8228 = vmatprep.subr.bf16.mxu0 %v21793_v0  ;;  %v21811_v0 = vld [vmem:[%s29692_s6 + $0x314] ss:$8 sps:$4 sm:$0xff]  }
 0x5a8   :  { %8229 = vmatpush1.bf16.msra.mxu0 %v21791_v32  ;;  %v21809_v32 = vld [vmem:[%s29692_s6 + $0x310] ss:$8 sps:$4 sm:$0xff]  }
 0x5a9   :  { %8230 = vmatprep.subr.bf16.mxu0 %v21796_v5  ;;  %v21814_v5 = vld [vmem:[%s29692_s6 + $0x324] ss:$8 sps:$4 sm:$0xff]  }
 0x5ac   :  { %8231 = vmatpush1.bf16.msra.mxu0 %v21794_v51  ;;  %v21812_v51 = vld [vmem:[%s29692_s6 + $0x320] ss:$8 sps:$4 sm:$0xff]  }
 0x5ad   :  { %8232 = vmatprep.subr.bf16.mxu0 %v21799_v29  ;;  %v21818_v29 = vld [vmem:[%s29692_s6 + $0x340] ss:$8 sps:$4 sm:$0xff]  }
 0x5b0   :  { %8233 = vmatpush1.bf16.msra.mxu0 %v21797_v2  ;;  %v21824_v2 = vld [vmem:[%s29692_s6 + $0x360] ss:$8 sps:$4 sm:$0xff]  }
 0x5b1   :  { %8234 = vmatprep.subr.bf16.mxu0 %v21802_v33  ;;  %v21829_v33 = vld [vmem:[%s29692_s6 + $0x374] ss:$8 sps:$4 sm:$0xff]  }
 0x5b4   :  { %8235 = vmatpush1.bf16.msra.mxu0 %v21800_v4  ;;  %v21827_v4 = vld [vmem:[%s29692_s6 + $0x370] ss:$8 sps:$4 sm:$0xff]  }
 0x5b5   :  { %8236 = vmatprep.subr.bf16.mxu0 %v21805_v53  ;;  %v21832_v53 = vld [vmem:[%s29692_s6 + $0x384] ss:$8 sps:$4 sm:$0xff]  }
 0x5b8   :  { %8237 = vmatpush1.bf16.msra.mxu0 %v21803_v18  ;;  %v21830_v18 = vld [vmem:[%s29692_s6 + $0x380] ss:$8 sps:$4 sm:$0xff]  }
 0x5b9   :  { %8385 = vmatprep.subr.bf16.mxu0 %v21808_v48  ;;  %v21835_v48 = vld [vmem:[%s29692_s6 + $0x394] ss:$8 sps:$4 sm:$0xff]  }
 0x5bb   :  { %8255 = vmatmul.mubr.bf16.vlgmr.msra.gmra.mrb[64].mxu0 %v8124_v15  ;;  %v21820_v15 = vld [vmem:[%s29692_s6 + $0x344] ss:$8 sps:$4 sm:$0xff]  }
 0x5bc   :  { %8386 = vmatpush1.bf16.msra.mxu0 %v21806_v54  ;;  %8264 = vmatprep.mubr.bf16.mxu0 %v23608_v6  ;;  %v21833_v54 = vld [vmem:[%s29692_s6 + $0x390] ss:$8 sps:$4 sm:$0xff]  }
 0x5bd   :  { %8387 = vmatprep.subr.bf16.mxu0 %v21811_v0  ;;  %v21838_v0 = vld [vmem:[%s29692_s6 + $0x3a4] ss:$8 sps:$4 sm:$0xff]  }
 0x5c0   :  { %8388 = vmatpush1.bf16.msra.mxu0 %v21809_v32  ;;  %v21836_v32 = vld [vmem:[%s29692_s6 + $0x3a0] ss:$8 sps:$4 sm:$0xff]  }
 0x5c1   :  { %8389 = vmatprep.subr.bf16.mxu0 %v21814_v5  ;;  %v21842_v5 = vld [vmem:[%s29692_s6 + $0x3c0] ss:$8 sps:$4 sm:$0xff]  }
 0x5c3   :  { %8265 = vmatmul.mubr.bf16.gmra.mrb[68].mxu0 %v8125_v14  ;;  %v21826_v14 = vld [vmem:[%s29692_s6 + $0x364] ss:$8 sps:$4 sm:$0xff]  }
 0x5c4   :  { %8390 = vmatpush1.bf16.msra.mxu0 %v21812_v51  ;;  %8417 = vmatprep.mubr.bf16.mxu0 %v23608_v6  ;;  %v21848_v51 = vld [vmem:[%s29692_s6 + $0x3e0] ss:$8 sps:$4 sm:$0xff]  }
 0x5c5   :  { %8391 = vmatprep.subr.bf16.mxu0 %v21817_v1  ;;  %v21853_v1 = vld [vmem:[%s29692_s6 + $0x3f4] ss:$8 sps:$4 sm:$0xff]  }
 0x5c8   :  { %8392 = vmatpush1.bf16.msra.mxu0 %v21815_v52  ;;  %v21851_v52 = vld [vmem:[%s29692_s6 + $0x3f0] ss:$8 sps:$4 sm:$0xff]  }
 0x5c9   :  { %8393 = vmatprep.subr.bf16.mxu0 %v21820_v15  ;;  %v21856_v15 = vld [vmem:[%s29692_s6 + $0x404] ss:$8 sps:$4 sm:$0xff]  }
 0x5cc   :  { %8394 = vmatpush1.bf16.msra.mxu0 %v21818_v29  ;;  %v21854_v29 = vld [vmem:[%s29692_s6 + $0x400] ss:$8 sps:$4 sm:$0xff]  }
 0x5cd   :  { %8395 = vmatprep.subr.bf16.mxu0 %v21823_v10  ;;  %v21859_v10 = vld [vmem:[%s29692_s6 + $0x414] ss:$8 sps:$4 sm:$0xff]  }
 0x5d0   :  { %8396 = vmatpush1.bf16.msra.mxu0 %v21821_v45  ;;  %v21857_v45 = vld [vmem:[%s29692_s6 + $0x410] ss:$8 sps:$4 sm:$0xff]  }
 0x5d1   :  { %8397 = vmatprep.subr.bf16.mxu0 %v21826_v14  ;;  %v21862_v14 = vld [vmem:[%s29692_s6 + $0x424] ss:$8 sps:$4 sm:$0xff]  }
 0x5d4   :  { %8398 = vmatpush1.bf16.msra.mxu0 %v21824_v2  ;;  %v21860_v2 = vld [vmem:[%s29692_s6 + $0x420] ss:$8 sps:$4 sm:$0xff]  }
 0x5d5   :  { %8399 = vmatprep.subr.bf16.mxu0 %v21829_v33  ;;  %v21866_v33 = vld [vmem:[%s29692_s6 + $0x440] ss:$8 sps:$4 sm:$0xff]  }
 0x5d8   :  { %8400 = vmatpush1.bf16.msra.mxu0 %v21827_v4  ;;  %v21872_v4 = vld [vmem:[%s29692_s6 + $0x460] ss:$8 sps:$4 sm:$0xff]  }
 0x5d9   :  { %8548 = vmatprep.subr.bf16.mxu0 %v21832_v53  ;;  %v21877_v53 = vld [vmem:[%s29692_s6 + $0x474] ss:$8 sps:$4 sm:$0xff]  }
 0x5db   :  { %8418 = vmatmul.mubr.bf16.vlgmr.msra.gmra.mrb[64].mxu0 %v8287_v26  ;;  %v21844_v26 = vld [vmem:[%s29692_s6 + $0x3c4] ss:$8 sps:$4 sm:$0xff]  }
 0x5dc   :  { %8549 = vmatpush1.bf16.msra.mxu0 %v21830_v18  ;;  %8427 = vmatprep.mubr.bf16.mxu0 %v23608_v6  ;;  %v21875_v18 = vld [vmem:[%s29692_s6 + $0x470] ss:$8 sps:$4 sm:$0xff]  }
 0x5dd   :  { %8550 = vmatprep.subr.bf16.mxu0 %v21835_v48  ;;  %v21880_v48 = vld [vmem:[%s29692_s6 + $0x484] ss:$8 sps:$4 sm:$0xff]  }
 0x5e0   :  { %8551 = vmatpush1.bf16.msra.mxu0 %v21833_v54  ;;  %v21878_v54 = vld [vmem:[%s29692_s6 + $0x480] ss:$8 sps:$4 sm:$0xff]  }
 0x5e1   :  { %8552 = vmatprep.subr.bf16.mxu0 %v21838_v0  ;;  %v21883_v0 = vld [vmem:[%s29692_s6 + $0x494] ss:$8 sps:$4 sm:$0xff]  }
 0x5e3   :  { %8428 = vmatmul.mubr.bf16.gmra.mrb[68].mxu0 %v8288_v22  ;;  %v21850_v22 = vld [vmem:[%s29692_s6 + $0x3e4] ss:$8 sps:$4 sm:$0xff]  }
 0x5e4   :  { %8553 = vmatpush1.bf16.msra.mxu0 %v21836_v32  ;;  %8580 = vmatprep.mubr.bf16.mxu0 %v23608_v6  ;;  %v21881_v32 = vld [vmem:[%s29692_s6 + $0x490] ss:$8 sps:$4 sm:$0xff]  }
 0x5e5   :  { %8554 = vmatprep.subr.bf16.mxu0 %v21841_v19  ;;  %v21886_v19 = vld [vmem:[%s29692_s6 + $0x4a4] ss:$8 sps:$4 sm:$0xff]  }
 0x5e8   :  { %8555 = vmatpush1.bf16.msra.mxu0 %v21839_v23  ;;  %v21884_v23 = vld [vmem:[%s29692_s6 + $0x4a0] ss:$8 sps:$4 sm:$0xff]  }
 0x5e9   :  { %8556 = vmatprep.subr.bf16.mxu0 %v21844_v26  ;;  %v21892_v26 = vld [vmem:[%s29692_s6 + $0x4c4] ss:$8 sps:$4 sm:$0xff]  }
 0x5ec   :  { %8557 = vmatpush1.bf16.msra.mxu0 %v21842_v5  ;;  %v21890_v5 = vld [vmem:[%s29692_s6 + $0x4c0] ss:$8 sps:$4 sm:$0xff]  }
 0x5ed   :  { %8558 = vmatprep.subr.bf16.mxu0 %v21847_v17  ;;  %v21898_v17 = vld [vmem:[%s29692_s6 + $0x4e4] ss:$8 sps:$4 sm:$0xff]  }
 0x5f0   :  { %8559 = vmatpush1.bf16.msra.mxu0 %v21845_v20  ;;  %v21896_v20 = vld [vmem:[%s29692_s6 + $0x4e0] ss:$8 sps:$4 sm:$0xff]  }
 0x5f1   :  { %8560 = vmatprep.subr.bf16.mxu0 %v21850_v22  ;;  %v21901_v22 = vld [vmem:[%s29692_s6 + $0x4f4] ss:$8 sps:$4 sm:$0xff]  }
 0x5f4   :  { %8561 = vmatpush1.bf16.msra.mxu0 %v21848_v51  ;;  %v21899_v51 = vld [vmem:[%s29692_s6 + $0x4f0] ss:$8 sps:$4 sm:$0xff]  }
 0x5f5   :  { %8562 = vmatprep.subr.bf16.mxu0 %v21853_v1  ;;  %v21904_v1 = vld [vmem:[%s29692_s6 + $0x504] ss:$8 sps:$4 sm:$0xff]  }
 0x5f8   :  { %8563 = vmatpush1.bf16.msra.mxu0 %v21851_v52  ;;  %v21902_v52 = vld [vmem:[%s29692_s6 + $0x500] ss:$8 sps:$4 sm:$0xff]  }
 0x5f9   :  { %8711 = vmatprep.subr.bf16.mxu0 %v21856_v15  ;;  %v21907_v15 = vld [vmem:[%s29692_s6 + $0x514] ss:$8 sps:$4 sm:$0xff]  }
 0x5fb   :  { %8581 = vmatmul.mubr.bf16.vlgmr.msra.gmra.mrb[64].mxu0 %v8450_v43  ;;  %v21868_v43 = vld [vmem:[%s29692_s6 + $0x444] ss:$8 sps:$4 sm:$0xff]  }
 0x5fc   :  { %8712 = vmatpush1.bf16.msra.mxu0 %v21854_v29  ;;  %8590 = vmatprep.mubr.bf16.mxu0 %v23608_v6  ;;  %v29703_v29 = vpack.c.bf16 %v25396_v12, %v25387_v34  ;;  %v21913_v34 = vld [vmem:[%s29692_s6 + $0x534] ss:$8 sps:$4 sm:$0xff]   ;;  %v29704_v12 = vpack.c.bf16 %v25389_v3, %v25385_v63  ;;  %v21917_v3 = vld [vmem:[%s29692_s6 + $0x550] ss:$8 sps:$4 sm:$0xff]  }
 0x5fd   :  { %8713 = vmatprep.subr.bf16.mxu0 %v21859_v10  ;;  %v21905_v10 = vld [vmem:[%s29692_s6 + $0x510] ss:$8 sps:$4 sm:$0xff]   ;;  %v21919_v63 = vld [vmem:[%s29692_s6 + $0x554] ss:$8 sps:$4 sm:$0xff]  }
 0x600   :  { %8714 = vmatpush1.bf16.msra.mxu0 %v21857_v45  ;;  %v21910_v45 = vld [vmem:[%s29692_s6 + $0x524] ss:$8 sps:$4 sm:$0xff]  }
 0x601   :  { %8715 = vmatprep.subr.bf16.mxu0 %v21862_v14  ;;  %v21908_v14 = vld [vmem:[%s29692_s6 + $0x520] ss:$8 sps:$4 sm:$0xff]  }
 0x603   :  { %8591 = vmatmul.mubr.bf16.gmra.mrb[68].mxu0 %v8451_v27  ;;  %v21874_v27 = vld [vmem:[%s29692_s6 + $0x464] ss:$8 sps:$4 sm:$0xff]  }
 0x604   :  { %8716 = vmatpush1.bf16.msra.mxu0 %v21860_v2  ;;  %8743 = vmatprep.mubr.bf16.mxu0 %v23608_v6  ;;  %v21911_v2 = vld [vmem:[%s29692_s6 + $0x530] ss:$8 sps:$4 sm:$0xff]  }
 0x605   :  { %8717 = vmatprep.subr.bf16.mxu0 %v21865_v36  ;;  %v21916_v36 = vld [vmem:[%s29692_s6 + $0x544] ss:$8 sps:$4 sm:$0xff]  }
 0x608   :  { %8718 = vmatpush1.bf16.msra.mxu0 %v21863_v28  ;;  %v21914_v28 = vld [vmem:[%s29692_s6 + $0x540] ss:$8 sps:$4 sm:$0xff]  }
 0x609   :  { %8719 = vmatprep.subr.bf16.mxu0 %v21868_v43  ;;  %v21922_v43 = vld [vmem:[%s29692_s6 + $0x564] ss:$8 sps:$4 sm:$0xff]  }
 0x60c   :  { %8720 = vmatpush1.bf16.msra.mxu0 %v21866_v33  ;;  %v21920_v33 = vld [vmem:[%s29692_s6 + $0x560] ss:$8 sps:$4 sm:$0xff]  }
 0x60d   :  { %8721 = vmatprep.subr.bf16.mxu0 %v21871_v35  ;;  %v21925_v35 = vld [vmem:[%s29692_s6 + $0x574] ss:$8 sps:$4 sm:$0xff]  }
 0x610   :  { %8722 = vmatpush1.bf16.msra.mxu0 %v21869_v37  ;;  %v21923_v37 = vld [vmem:[%s29692_s6 + $0x570] ss:$8 sps:$4 sm:$0xff]  }
 0x611   :  { %8723 = vmatprep.subr.bf16.mxu0 %v21874_v27  ;;  %v21928_v27 = vld [vmem:[%s29692_s6 + $0x584] ss:$8 sps:$4 sm:$0xff]  }
 0x614   :  { %8724 = vmatpush1.bf16.msra.mxu0 %v21872_v4  ;;  %v21926_v4 = vld [vmem:[%s29692_s6 + $0x580] ss:$8 sps:$4 sm:$0xff]  }
 0x615   :  { %8725 = vmatprep.subr.bf16.mxu0 %v21877_v53  ;;  %v21931_v53 = vld [vmem:[%s29692_s6 + $0x594] ss:$8 sps:$4 sm:$0xff]  }
 0x618   :  { %8726 = vmatpush1.bf16.msra.mxu0 %v21875_v18  ;;  %v29705_v18 = vpack.c.bf16 %v25424_v46, %v25415_v30  ;;  %v21937_v30 = vld [vmem:[%s29692_s6 + $0x5b4] ss:$8 sps:$4 sm:$0xff]   ;;  %v29706_v46 = vpack.c.bf16 %v25417_v31, %v25413_v24  ;;  %v21941_v31 = vld [vmem:[%s29692_s6 + $0x5d0] ss:$8 sps:$4 sm:$0xff]  }
 0x619   :  { %8874 = vmatprep.subr.bf16.mxu0 %v21880_v48  ;;  %v21929_v48 = vld [vmem:[%s29692_s6 + $0x590] ss:$8 sps:$4 sm:$0xff]   ;;  %v21943_v24 = vld [vmem:[%s29692_s6 + $0x5d4] ss:$8 sps:$4 sm:$0xff]  }
 0x61b   :  { %8744 = vmatmul.mubr.bf16.vlgmr.msra.gmra.mrb[64].mxu0 %v8613_v55  ;;  %v21887_v55 = vld [vmem:[%s29692_s6 + $0x4b0] ss:$8 sps:$4 sm:$0xff]  }
 0x61c   :  { %8875 = vmatpush1.bf16.msra.mxu0 %v21878_v54  ;;  %8753 = vmatprep.mubr.bf16.mxu0 %v23608_v6  ;;  %v21934_v54 = vld [vmem:[%s29692_s6 + $0x5a4] ss:$8 sps:$4 sm:$0xff]  }
 0x61d   :  { %8876 = vmatprep.subr.bf16.mxu0 %v21883_v0  ;;  %v21932_v0 = vld [vmem:[%s29692_s6 + $0x5a0] ss:$8 sps:$4 sm:$0xff]  }
 0x620   :  { %8877 = vmatpush1.bf16.msra.mxu0 %v21881_v32  ;;  %v21935_v32 = vld [vmem:[%s29692_s6 + $0x5b0] ss:$8 sps:$4 sm:$0xff]  }
 0x621   :  { %8878 = vmatprep.subr.bf16.mxu0 %v21886_v19  ;;  %v21940_v19 = vld [vmem:[%s29692_s6 + $0x5c4] ss:$8 sps:$4 sm:$0xff]  }
 0x623   :  { %8754 = vmatmul.mubr.bf16.gmra.mrb[68].mxu0 %v29702_v47  ;;  %v21944_v47 = vld [vmem:[%s29692_s6 + $0x5e0] ss:$8 sps:$4 sm:$0xff]  }
 0x624   :  { %8879 = vmatpush1.bf16.msra.mxu0 %v21884_v23  ;;  %8906 = vmatprep.mubr.bf16.mxu0 %v23608_v6  ;;  %v21938_v23 = vld [vmem:[%s29692_s6 + $0x5c0] ss:$8 sps:$4 sm:$0xff]  }
 0x625   :  { %8880 = vmatprep.subr.bf16.mxu0 %v21889_v61  ;;  %v21946_v61 = vld [vmem:[%s29692_s6 + $0x5e4] ss:$8 sps:$4 sm:$0xff]  }
 0x628   :  { %8881 = vmatpush1.bf16.msra.mxu0 %v21887_v55  ;;  %v21949_v55 = vld [vmem:[%s29692_s6 + $0x5f4] ss:$8 sps:$4 sm:$0xff]  }
 0x629   :  { %8882 = vmatprep.subr.bf16.mxu0 %v21892_v26  ;;  %v21947_v26 = vld [vmem:[%s29692_s6 + $0x5f0] ss:$8 sps:$4 sm:$0xff]  }
 0x62c   :  { %8883 = vmatpush1.bf16.msra.mxu0 %v21890_v5  ;;  %v21952_v5 = vld [vmem:[%s29692_s6 + $0x604] ss:$8 sps:$4 sm:$0xff]  }
 0x62d   :  { %8884 = vmatprep.subr.bf16.mxu0 %v21895_v49  ;;  %v21950_v49 = vld [vmem:[%s29692_s6 + $0x600] ss:$8 sps:$4 sm:$0xff]  }
 0x630   :  { %8885 = vmatpush1.bf16.msra.mxu0 %v21893_v59  ;;  %v21955_v59 = vld [vmem:[%s29692_s6 + $0x614] ss:$8 sps:$4 sm:$0xff]  }
 0x631   :  { %8886 = vmatprep.subr.bf16.mxu0 %v21898_v17  ;;  %v29707_v17 = vpack.c.bf16 %v25452_v41, %v25443_v50  ;;  %v21961_v50 = vld [vmem:[%s29692_s6 + $0x634] ss:$8 sps:$4 sm:$0xff]   ;;  %v29708_v41 = vpack.c.bf16 %v25445_v58, %v25441_v40  ;;  %v21965_v58 = vld [vmem:[%s29692_s6 + $0x650] ss:$8 sps:$4 sm:$0xff]  }
 0x632   :  { %v21967_v40 = vld [vmem:[%s29692_s6 + $0x654] ss:$8 sps:$4 sm:$0xff]  }
 0x634   :  { %8887 = vmatpush1.bf16.msra.mxu0 %v21896_v20  ;;  %v21953_v20 = vld [vmem:[%s29692_s6 + $0x610] ss:$8 sps:$4 sm:$0xff]  }
 0x635   :  { %8888 = vmatprep.subr.bf16.mxu0 %v21901_v22  ;;  %v21958_v22 = vld [vmem:[%s29692_s6 + $0x624] ss:$8 sps:$4 sm:$0xff]  }
 0x638   :  { %8889 = vmatpush1.bf16.msra.mxu0 %v21899_v51  ;;  %v21956_v51 = vld [vmem:[%s29692_s6 + $0x620] ss:$8 sps:$4 sm:$0xff]  }
 0x639   :  { %9037 = vmatprep.subr.bf16.mxu0 %v21904_v1  ;;  %v21959_v1 = vld [vmem:[%s29692_s6 + $0x630] ss:$8 sps:$4 sm:$0xff]  }
 0x63b   :  { %8907 = vmatmul.mubr.bf16.vlgmr.msra.gmra.mrb[64].mxu0 %v29703_v29  ;;  %v21970_v29 = vld [vmem:[%s29692_s6 + $0x664] ss:$8 sps:$4 sm:$0xff]  }
 0x63c   :  { %9038 = vmatpush1.bf16.msra.mxu0 %v21902_v52  ;;  %8916 = vmatprep.mubr.bf16.mxu0 %v23608_v6  ;;  %v21964_v52 = vld [vmem:[%s29692_s6 + $0x644] ss:$8 sps:$4 sm:$0xff]  }
 0x63d   :  { %9039 = vmatprep.subr.bf16.mxu0 %v21907_v15  ;;  %v21962_v15 = vld [vmem:[%s29692_s6 + $0x640] ss:$8 sps:$4 sm:$0xff]  }
 0x640   :  { %9040 = vmatpush1.bf16.msra.mxu0 %v21905_v10  ;;  %v21968_v10 = vld [vmem:[%s29692_s6 + $0x660] ss:$8 sps:$4 sm:$0xff]  }
 0x641   :  { %9041 = vmatprep.subr.bf16.mxu0 %v21910_v45  ;;  %v21973_v45 = vld [vmem:[%s29692_s6 + $0x674] ss:$8 sps:$4 sm:$0xff]  }
 0x643   :  { %8917 = vmatmul.mubr.bf16.gmra.mrb[68].mxu0 %v29704_v12  ;;  %v21974_v12 = vld [vmem:[%s29692_s6 + $0x680] ss:$8 sps:$4 sm:$0xff]  }
 0x644   :  { %9042 = vmatpush1.bf16.msra.mxu0 %v21908_v14  ;;  %9069 = vmatprep.mubr.bf16.mxu0 %v23608_v6  ;;  %v21971_v14 = vld [vmem:[%s29692_s6 + $0x670] ss:$8 sps:$4 sm:$0xff]  }
 0x645   :  { %9043 = vmatprep.subr.bf16.mxu0 %v21913_v34  ;;  %v21976_v34 = vld [vmem:[%s29692_s6 + $0x684] ss:$8 sps:$4 sm:$0xff]  }
 0x648   :  { %9044 = vmatpush1.bf16.msra.mxu0 %v21911_v2  ;;  %v21979_v2 = vld [vmem:[%s29692_s6 + $0x694] ss:$8 sps:$4 sm:$0xff]  }
 0x649   :  { %9045 = vmatprep.subr.bf16.mxu0 %v21916_v36  ;;  %v29709_v36 = vpack.c.bf16 %v25476_v8, %v25467_v38  ;;  %v21985_v38 = vld [vmem:[%s29692_s6 + $0x6b4] ss:$8 sps:$4 sm:$0xff]   ;;  %v29710_v8 = vpack.c.bf16 %v25469_v25, %v25465_v21  ;;  %v21989_v25 = vld [vmem:[%s29692_s6 + $0x6d0] ss:$8 sps:$4 sm:$0xff]  }
 0x64a   :  { %v21991_v21 = vld [vmem:[%s29692_s6 + $0x6d4] ss:$8 sps:$4 sm:$0xff]  }
 0x64c   :  { %9046 = vmatpush1.bf16.msra.mxu0 %v21914_v28  ;;  %v21977_v28 = vld [vmem:[%s29692_s6 + $0x690] ss:$8 sps:$4 sm:$0xff]  }
 0x64d   :  { %9047 = vmatprep.subr.bf16.mxu0 %v21919_v63  ;;  %v21982_v63 = vld [vmem:[%s29692_s6 + $0x6a4] ss:$8 sps:$4 sm:$0xff]  }
 0x650   :  { %9048 = vmatpush1.bf16.msra.mxu0 %v21917_v3  ;;  %v21980_v3 = vld [vmem:[%s29692_s6 + $0x6a0] ss:$8 sps:$4 sm:$0xff]  }
 0x651   :  { %9049 = vmatprep.subr.bf16.mxu0 %v21922_v43  ;;  %v21983_v43 = vld [vmem:[%s29692_s6 + $0x6b0] ss:$8 sps:$4 sm:$0xff]  }
 0x654   :  { %9050 = vmatpush1.bf16.msra.mxu0 %v21920_v33  ;;  %v21988_v33 = vld [vmem:[%s29692_s6 + $0x6c4] ss:$8 sps:$4 sm:$0xff]  }
 0x655   :  { %9051 = vmatprep.subr.bf16.mxu0 %v21925_v35  ;;  %v21986_v35 = vld [vmem:[%s29692_s6 + $0x6c0] ss:$8 sps:$4 sm:$0xff]  }
 0x658   :  { %9052 = vmatpush1.bf16.msra.mxu0 %v21923_v37  ;;  %v21994_v37 = vld [vmem:[%s29692_s6 + $0x6e4] ss:$8 sps:$4 sm:$0xff]  }
 0x659   :  { %9200 = vmatprep.subr.bf16.mxu0 %v21928_v27  ;;  %v21992_v27 = vld [vmem:[%s29692_s6 + $0x6e0] ss:$8 sps:$4 sm:$0xff]  }
 0x65b   :  { %9070 = vmatmul.mubr.bf16.vlgmr.msra.gmra.mrb[64].mxu0 %v29705_v18  ;;  %v22000_v18 = vld [vmem:[%s29692_s6 + $0x704] ss:$8 sps:$4 sm:$0xff]  }
 0x65c   :  { %9201 = vmatpush1.bf16.msra.mxu0 %v21926_v4  ;;  %9079 = vmatprep.mubr.bf16.mxu0 %v23608_v6  ;;  %v21997_v4 = vld [vmem:[%s29692_s6 + $0x6f4] ss:$8 sps:$4 sm:$0xff]  }
 0x65d   :  { %9202 = vmatprep.subr.bf16.mxu0 %v21931_v53  ;;  %v21995_v53 = vld [vmem:[%s29692_s6 + $0x6f0] ss:$8 sps:$4 sm:$0xff]  }
 0x660   :  { %9203 = vmatpush1.bf16.msra.mxu0 %v21929_v48  ;;  %v21998_v48 = vld [vmem:[%s29692_s6 + $0x700] ss:$8 sps:$4 sm:$0xff]  }
 0x661   :  { %9204 = vmatprep.subr.bf16.mxu0 %v21934_v54  ;;  %v22003_v54 = vld [vmem:[%s29692_s6 + $0x714] ss:$8 sps:$4 sm:$0xff]  }
 0x663   :  { %9080 = vmatmul.mubr.bf16.gmra.mrb[68].mxu0 %v29706_v46  ;;  %v22006_v46 = vld [vmem:[%s29692_s6 + $0x724] ss:$8 sps:$4 sm:$0xff]  }
 0x664   :  { %9205 = vmatpush1.bf16.msra.mxu0 %v21932_v0  ;;  %9232 = vmatprep.mubr.bf16.mxu0 %v23608_v6  ;;  %v29711_v0 = vpack.c.bf16 %v25500_v11, %v25491_v13  ;;  %v22009_v11 = vld [vmem:[%s29692_s6 + $0x734] ss:$8 sps:$4 sm:$0xff]   ;;  %v29712_v13 = vpack.c.bf16 %v25493_v42, %v25489_v7  ;;  %v22013_v7 = vld [vmem:[%s29692_s6 + $0x750] ss:$8 sps:$4 sm:$0xff]  }
 0x665   :  { %9206 = vmatprep.subr.bf16.mxu0 %v21937_v30  ;;  %v22001_v30 = vld [vmem:[%s29692_s6 + $0x710] ss:$8 sps:$4 sm:$0xff]   ;;  %v22015_v42 = vld [vmem:[%s29692_s6 + $0x754] ss:$8 sps:$4 sm:$0xff]  }
 0x668   :  { %9207 = vmatpush1.bf16.msra.mxu0 %v21935_v32  ;;  %v22004_v32 = vld [vmem:[%s29692_s6 + $0x720] ss:$8 sps:$4 sm:$0xff]  }
 0x669   :  { %9208 = vmatprep.subr.bf16.mxu0 %v21940_v19  ;;  %v22007_v19 = vld [vmem:[%s29692_s6 + $0x730] ss:$8 sps:$4 sm:$0xff]  }
 0x66c   :  { %9209 = vmatpush1.bf16.msra.mxu0 %v21938_v23  ;;  %v22012_v23 = vld [vmem:[%s29692_s6 + $0x744] ss:$8 sps:$4 sm:$0xff]  }
 0x66d   :  { %9210 = vmatprep.subr.bf16.mxu0 %v21943_v24  ;;  %v22010_v24 = vld [vmem:[%s29692_s6 + $0x740] ss:$8 sps:$4 sm:$0xff]  }
 0x670   :  { %9211 = vmatpush1.bf16.msra.mxu0 %v21941_v31  ;;  %v22018_v31 = vld [vmem:[%s29692_s6 + $0x764] ss:$8 sps:$4 sm:$0xff]  }
 0x671   :  { %9212 = vmatprep.subr.bf16.mxu0 %v21946_v61  ;;  %v22016_v61 = vld [vmem:[%s29692_s6 + $0x760] ss:$8 sps:$4 sm:$0xff]  }
 0x674   :  { %9213 = vmatpush1.bf16.msra.mxu0 %v21944_v47  ;;  %v22021_v47 = vld [vmem:[%s29692_s6 + $0x774] ss:$8 sps:$4 sm:$0xff]  }
 0x675   :  { %9214 = vmatprep.subr.bf16.mxu0 %v21949_v55  ;;  %v22019_v55 = vld [vmem:[%s29692_s6 + $0x770] ss:$8 sps:$4 sm:$0xff]  }
 0x678   :  { %9215 = vmatpush1.bf16.msra.mxu0 %v21947_v26  ;;  %v22024_v26 = vld [vmem:[%s29692_s6 + $0x784] ss:$8 sps:$4 sm:$0xff]  }
 0x679   :  { %9363 = vmatprep.subr.bf16.mxu0 %v21952_v5  ;;  %v22022_v5 = vld [vmem:[%s29692_s6 + $0x780] ss:$8 sps:$4 sm:$0xff]  }
 0x67b   :  { %9233 = vmatmul.mubr.bf16.vlgmr.msra.gmra.mrb[64].mxu0 %v29707_v17  ;;  %v22025_v17 = vld [vmem:[%s29692_s6 + $0x790] ss:$8 sps:$4 sm:$0xff]  }
 0x67c   :  { %9364 = vmatpush1.bf16.msra.mxu0 %v21950_v49  ;;  %9242 = vmatprep.mubr.bf16.mxu0 %v23608_v6  ;;  %v22027_v49 = vld [vmem:[%s29692_s6 + $0x794] ss:$8 sps:$4 sm:$0xff]  }
 0x67d   :  { %9365 = vmatprep.subr.bf16.mxu0 %v21955_v59  ;;  %v29713_v59 = vpack.c.bf16 %v25528_v60, %v25519_v16  ;;  %v22033_v16 = vld [vmem:[%s29692_s6 + $0x7b4] ss:$8 sps:$4 sm:$0xff]   ;;  %v29714_v60 = vpack.c.bf16 %v25521_v9, %v25517_v39  ;;  %v22037_v39 = vld [vmem:[%s29692_s6 + $0x7d0] ss:$8 sps:$4 sm:$0xff]  }
 0x67e   :  { %v22039_v9 = vld [vmem:[%s29692_s6 + $0x7d4] ss:$8 sps:$4 sm:$0xff]  }
 0x680   :  { %9366 = vmatpush1.bf16.msra.mxu0 %v21953_v20  ;;  %v22030_v20 = vld [vmem:[%s29692_s6 + $0x7a4] ss:$8 sps:$4 sm:$0xff]  }
 0x681   :  { %9367 = vmatprep.subr.bf16.mxu0 %v21958_v22  ;;  %v22028_v22 = vld [vmem:[%s29692_s6 + $0x7a0] ss:$8 sps:$4 sm:$0xff]  }
 0x683   :  { %9243 = vmatmul.mubr.bf16.gmra.mrb[68].mxu0 %v29708_v41  ;;  %v22034_v41 = vld [vmem:[%s29692_s6 + $0x7c0] ss:$8 sps:$4 sm:$0xff]  }
 0x684   :  { %9368 = vmatpush1.bf16.msra.mxu0 %v21956_v51  ;;  %9395 = vmatprep.mubr.bf16.mxu0 %v23608_v6  ;;  %v22031_v51 = vld [vmem:[%s29692_s6 + $0x7b0] ss:$8 sps:$4 sm:$0xff]  }
 0x685   :  { %9369 = vmatprep.subr.bf16.mxu0 %v21961_v50  ;;  %v22036_v50 = vld [vmem:[%s29692_s6 + $0x7c4] ss:$8 sps:$4 sm:$0xff]  }
 0x688   :  { %9370 = vmatpush1.bf16.msra.mxu0 %v21959_v1  ;;  %v22042_v1 = vld [vmem:[%s29692_s6 + $0x7e4] ss:$8 sps:$4 sm:$0xff]  }
 0x689   :  { %9371 = vmatprep.subr.bf16.mxu0 %v21964_v52  ;;  %v22040_v52 = vld [vmem:[%s29692_s6 + $0x7e0] ss:$8 sps:$4 sm:$0xff]  }
 0x68c   :  { %9372 = vmatpush1.bf16.msra.mxu0 %v21962_v15  ;;  %v22045_v15 = vld [vmem:[%s29692_s6 + $0x7f4] ss:$8 sps:$4 sm:$0xff]  }
 0x68d   :  { %9373 = vmatprep.subr.bf16.mxu0 %v21967_v40  ;;  %v22043_v40 = vld [vmem:[%s29692_s6 + $0x7f0] ss:$8 sps:$4 sm:$0xff]  }
 0x690   :  { %9374 = vmatpush1.bf16.msra.mxu0 %v21965_v58  ;;  %v29715_v58 = vpack.c.bf16 %v25556_v56, %v25547_v44  ;;  %v22071_v44 = vld [vmem:[%s29694_s10 + $0xa28] ss:$16 sps:$4 sm:$0xff]  }
 0x691   :  { %9375 = vmatprep.subr.bf16.mxu0 %v21970_v29  ;;  %v29716_v29 = vpack.c.bf16 %v25549_v62, %v25545_v57  ;;  %v22073_v57 = vld [vmem:[%s29694_s10 + $0xa2c] ss:$16 sps:$4 sm:$0xff]   ;;  %v22077_v56 = vld [vmem:[%s29694_s10 + $0xa48] ss:$16 sps:$4 sm:$0xff]  }
 0x692   :  { %v22079_v62 = vld [vmem:[%s29694_s10 + $0xa4c] ss:$16 sps:$4 sm:$0xff]  }
 0x694   :  { %9376 = vmatpush1.bf16.msra.mxu0 %v21968_v10  ;;  %v22065_v10 = vld [vmem:[%s29694_s10 + $0xa08] ss:$16 sps:$4 sm:$0xff]  }
 0x695   :  { %9377 = vmatprep.subr.bf16.mxu0 %v21973_v45  ;;  %v22067_v45 = vld [vmem:[%s29694_s10 + $0xa0c] ss:$16 sps:$4 sm:$0xff]  }
 0x696   :  { %13070 = vmatprep.subr.bf16.mxu1 %v22067_v45 }
 0x697   :  { %13071 = vmatpush1.bf16.msra.mxu1 %v22065_v10 }
 0x698   :  { %9378 = vmatpush1.bf16.msra.mxu0 %v21971_v14  ;;  %13072 = vmatprep.subr.bf16.mxu1 %v22073_v57  ;;  %v22085_v14 = vld [vmem:[%s29694_s10 + $0xa6c] ss:$16 sps:$4 sm:$0xff]  }
 0x699   :  { %9526 = vmatprep.subr.bf16.mxu0 %v21976_v34  ;;  %v22083_v34 = vld [vmem:[%s29694_s10 + $0xa68] ss:$16 sps:$4 sm:$0xff]  }
 0x69b   :  { %9396 = vmatmul.mubr.bf16.vlgmr.msra.gmra.mrb[64].mxu0 %v29709_v36  ;;  %13073 = vmatpush1.bf16.msra.mxu1 %v22071_v44  ;;  %v22098_v36 = vld [vmem:[%s29694_s10 + $0xaac] ss:$16 sps:$4 sm:$0xff]  }
 0x69c   :  { %9527 = vmatpush1.bf16.msra.mxu0 %v21974_v12  ;;  %9405 = vmatprep.mubr.bf16.mxu0 %v23608_v6  ;;  %v22091_v12 = vld [vmem:[%s29694_s10 + $0xa8c] ss:$16 sps:$4 sm:$0xff]  }
 0x69d   :  { %9528 = vmatprep.subr.bf16.mxu0 %v21979_v2  ;;  %13074 = vmatprep.subr.bf16.mxu1 %v22079_v62  ;;  %v22089_v2 = vld [vmem:[%s29694_s10 + $0xa88] ss:$16 sps:$4 sm:$0xff]  }
 0x69f   :  { %13075 = vmatpush1.bf16.msra.mxu1 %v22077_v56 }
 0x6a0   :  { %9529 = vmatpush1.bf16.msra.mxu0 %v21977_v28  ;;  %13076 = vmatprep.subr.bf16.mxu1 %v22085_v14  ;;  %v22096_v28 = vld [vmem:[%s29694_s10 + $0xaa8] ss:$16 sps:$4 sm:$0xff]  }
 0x6a1   :  { %9530 = vmatprep.subr.bf16.mxu0 %v21982_v63  ;;  %v22104_v63 = vld [vmem:[%s29694_s10 + $0xacc] ss:$16 sps:$4 sm:$0xff]  }
 0x6a3   :  { %9406 = vmatmul.mubr.bf16.gmra.mrb[68].mxu0 %v29710_v8  ;;  %13077 = vmatpush1.bf16.msra.mxu1 %v22083_v34  ;;  %v22109_v8 = vld [vmem:[%s29694_s10 + $0xae8] ss:$16 sps:$4 sm:$0xff]  }
 0x6a4   :  { %9531 = vmatpush1.bf16.msra.mxu0 %v21980_v3  ;;  %9558 = vmatprep.mubr.bf16.mxu0 %v23608_v6  ;;  %v22102_v3 = vld [vmem:[%s29694_s10 + $0xac8] ss:$16 sps:$4 sm:$0xff]  }
 0x6a5   :  { %9532 = vmatprep.subr.bf16.mxu0 %v21985_v38  ;;  %13078 = vmatprep.subr.bf16.mxu1 %v22091_v12  ;;  %v22111_v38 = vld [vmem:[%s29694_s10 + $0xaec] ss:$16 sps:$4 sm:$0xff]  }
 0x6a7   :  { %13079 = vmatpush1.bf16.msra.mxu1 %v22089_v2 }
 0x6a8   :  { %9533 = vmatpush1.bf16.msra.mxu0 %v21983_v43  ;;  %13080 = vmatprep.subr.bf16.mxu1 %v22098_v36  ;;  %v22117_v43 = vld [vmem:[%s29694_s10 + $0xb0c] ss:$16 sps:$4 sm:$0xff]  }
 0x6a9   :  { %9534 = vmatprep.subr.bf16.mxu0 %v21988_v33  ;;  %v22115_v33 = vld [vmem:[%s29694_s10 + $0xb08] ss:$16 sps:$4 sm:$0xff]  }
 0x6ab   :  { %13081 = vmatpush1.bf16.msra.mxu1 %v22096_v28 }
 0x6ac   :  { %9535 = vmatpush1.bf16.msra.mxu0 %v21986_v35  ;;  %13082 = vmatprep.subr.bf16.mxu1 %v22104_v63  ;;  %v22124_v35 = vld [vmem:[%s29694_s10 + $0xb2c] ss:$16 sps:$4 sm:$0xff]  }
 0x6ad   :  { %9536 = vmatprep.subr.bf16.mxu0 %v21991_v21 }
 0x6af   :  { %13083 = vmatpush1.bf16.msra.mxu1 %v22102_v3 }
 0x6b0   :  { %9537 = vmatpush1.bf16.msra.mxu0 %v21989_v25  ;;  %13084 = vmatprep.subr.bf16.mxu1 %v22111_v38 }
 0x6b1   :  { %9538 = vmatprep.subr.bf16.mxu0 %v21994_v37  ;;  %v22122_v37 = vld [vmem:[%s29694_s10 + $0xb28] ss:$16 sps:$4 sm:$0xff]  }
 0x6b3   :  { %13085 = vmatpush1.bf16.msra.mxu1 %v22109_v8 }
 0x6b4   :  { %9539 = vmatpush1.bf16.msra.mxu0 %v21992_v27  ;;  %13086 = vmatprep.subr.bf16.mxu1 %v22117_v43 }
 0x6b5   :  { %9540 = vmatprep.subr.bf16.mxu0 %v21997_v4  ;;  %v22130_v4 = vld [vmem:[%s29694_s10 + $0xb4c] ss:$16 sps:$4 sm:$0xff]  }
 0x6b7   :  { %13087 = vmatpush1.bf16.msra.mxu1 %v22115_v33 }
 0x6b8   :  { %9541 = vmatpush1.bf16.msra.mxu0 %v21995_v53  ;;  %13088 = vmatprep.subr.bf16.mxu1 %v22124_v35 }
 0x6b9   :  { %9689 = vmatprep.subr.bf16.mxu0 %v22000_v18 }
 0x6bb   :  { %9559 = vmatmul.mubr.bf16.vlgmr.msra.gmra.mrb[64].mxu0 %v29711_v0  ;;  %13089 = vmatpush1.bf16.msra.mxu1 %v22122_v37 }
 0x6bc   :  { %9690 = vmatpush1.bf16.msra.mxu0 %v21998_v48  ;;  %9568 = vmatprep.mubr.bf16.mxu0 %v23608_v6 }
 0x6bd   :  { %9691 = vmatprep.subr.bf16.mxu0 %v22003_v54  ;;  %13090 = vmatprep.subr.bf16.mxu1 %v22130_v4 }
 0x6c0   :  { %9692 = vmatpush1.bf16.msra.mxu0 %v22001_v30 }
 0x6c1   :  { %9693 = vmatprep.subr.bf16.mxu0 %v22006_v46 }
 0x6c3   :  { %9569 = vmatmul.mubr.bf16.gmra.mrb[68].mxu0 %v29712_v13 }
 0x6c4   :  { %9694 = vmatpush1.bf16.msra.mxu0 %v22004_v32  ;;  %9721 = vmatprep.mubr.bf16.mxu0 %v23608_v6 }
 0x6c5   :  { %9695 = vmatprep.subr.bf16.mxu0 %v22009_v11  ;;  %v22128_v11 = vld [vmem:[%s29694_s10 + $0xb48] ss:$16 sps:$4 sm:$0xff]  }
 0x6c6   :  { %13091 = vmatpush1.bf16.msra.mxu1 %v22128_v11 }
 0x6c8   :  { %9696 = vmatpush1.bf16.msra.mxu0 %v22007_v19 }
 0x6c9   :  { %9697 = vmatprep.subr.bf16.mxu0 %v22012_v23 }
 0x6cc   :  { %9698 = vmatpush1.bf16.msra.mxu0 %v22010_v24 }
 0x6cd   :  { %9699 = vmatprep.subr.bf16.mxu0 %v22015_v42 }
 0x6d0   :  { %9700 = vmatpush1.bf16.msra.mxu0 %v22013_v7 }
 0x6d1   :  { %9701 = vmatprep.subr.bf16.mxu0 %v22018_v31 }
 0x6d4   :  { %9702 = vmatpush1.bf16.msra.mxu0 %v22016_v61 }
 0x6d5   :  { %9703 = vmatprep.subr.bf16.mxu0 %v22021_v47 }
 0x6d8   :  { %9704 = vmatpush1.bf16.msra.mxu0 %v22019_v55 }
 0x6d9   :  { %9852 = vmatprep.subr.bf16.mxu0 %v22024_v26 }
 0x6db   :  { %9722 = vmatmul.mubr.bf16.vlgmr.msra.gmra.mrb[64].mxu0 %v29713_v59 }
 0x6dc   :  { %9853 = vmatpush1.bf16.msra.mxu0 %v22022_v5  ;;  %9731 = vmatprep.mubr.bf16.mxu0 %v23608_v6 }
 0x6dd   :  { %9854 = vmatprep.subr.bf16.mxu0 %v22027_v49 }
 0x6e0   :  { %9855 = vmatpush1.bf16.msra.mxu0 %v22025_v17 }
 0x6e1   :  { %9856 = vmatprep.subr.bf16.mxu0 %v22030_v20 }
 0x6e3   :  { %9732 = vmatmul.mubr.bf16.gmra.mrb[68].mxu0 %v29714_v60 }
 0x6e4   :  { %9857 = vmatpush1.bf16.msra.mxu0 %v22028_v22  ;;  %9884 = vmatprep.mubr.bf16.mxu0 %v23608_v6 }
 0x6e5   :  { %9858 = vmatprep.subr.bf16.mxu0 %v22033_v16 }
 0x6e8   :  { %9859 = vmatpush1.bf16.msra.mxu0 %v22031_v51 }
 0x6e9   :  { %9860 = vmatprep.subr.bf16.mxu0 %v22036_v50 }
 0x6ec   :  { %9861 = vmatpush1.bf16.msra.mxu0 %v22034_v41 }
 0x6ed   :  { %9862 = vmatprep.subr.bf16.mxu0 %v22039_v9 }
 0x6f0   :  { %9863 = vmatpush1.bf16.msra.mxu0 %v22037_v39 }
 0x6f1   :  { %9864 = vmatprep.subr.bf16.mxu0 %v22042_v1 }
 0x6f4   :  { %9865 = vmatpush1.bf16.msra.mxu0 %v22040_v52 }
 0x6f5   :  { %9866 = vmatprep.subr.bf16.mxu0 %v22045_v15 }
 0x6f8   :  { %9867 = vmatpush1.bf16.msra.mxu0 %v22043_v40 }
 0x6fb   :  { %9885 = vmatmul.mubr.bf16.vlgmr.msra.gmra.mrb[64].mxu0 %v29715_v58 }
 0x6fc   :  { %9894 = vmatprep.mubr.bf16.mxu0 %v23608_v6 }
 0x703   :  { %9895 = vmatmul.mubr.bf16.gmra.mrb[68].mxu0 %v29716_v29 }
 0x704   :  { %10166 = vmatprep.mubr.bf16.mxu0 %v23608_v6 }
 0x7ce   :  { %v26259_v21 = vpop.f32.mrb[64].mxu0 }
 0x7cf   :  { %v26261_v25 = vpop.f32.mrb[65].mxu0  ;;  %v9931_v53 = vmul.f32 %v26259_v21, %v26259_v21 }
 0x7d0   :  { %v26266_v27 = vpop.f32.mrb[66].mxu0  ;;  %v9932_v0 = vmul.f32 %v26261_v25, %v26261_v25 }
 0x7d1   :  { %v9913_v18 = vadd.f32 %v26266_v27, %v26259_v21  ;;  %v9933_v48 = vmul.f32 %v26266_v27, %v26266_v27  ;;  %v26277_v54 = vpop.f32.mrb[67].mxu0 }
 0x7d2   :  { %v9922_v30 = vadd.f32 %v26277_v54, %v26261_v25  ;;  %v9934_v46 = vmul.f32 %v26277_v54, %v26277_v54 }
 0x7d3   :  { %v9939_v32 = vadd.f32 %v9933_v48, %v9931_v53 }
 0x7d4   :  { %v9948_v13 = vadd.f32 %v9934_v46, %v9932_v0 }
 0x7d6   :  { %v26288_v19 = vpop.f32.mrb[68].mxu0 }
 0x7d7   :  { %v9914_v23 = vadd.f32 %v9913_v18, %v26288_v19  ;;  %v9935_v24 = vmul.f32 %v26288_v19, %v26288_v19  ;;  %v26293_v42 = vpop.f32.mrb[69].mxu0 }
 0x7d8   :  { %v9923_v7 = vadd.f32 %v9922_v30, %v26293_v42  ;;  %v9936_v31 = vmul.f32 %v26293_v42, %v26293_v42  ;;  %v26298_v61 = vpop.f32.mrb[70].mxu0  ;;  %v9987_v30 = vlaneseq }
 0x7d9   :  { %v9940_v47 = vadd.f32 %v9939_v32, %v9935_v24  ;;  %v9915_v55 = vadd.f32 %v9914_v23, %v26298_v61  ;;  %v9937_v26 = vmul.f32 %v26298_v61, %v26298_v61  ;;  %v26303_v5 = vpop.f32.mrb[71].mxu0 }
 0x7da   :  { %v9949_v49 = vadd.f32 %v9948_v13, %v9936_v31  ;;  %v9924_v59 = vadd.f32 %v9923_v7, %v26303_v5  ;;  %v9938_v17 = vmul.f32 %v26303_v5, %v26303_v5 }
 0x7db   :  { %v9916_v20 = vrot.slane %v9915_v55, 4  ;;  %v9941_v22 = vadd.f32 %v9940_v47, %v9937_v26 }
 0x7dc   :  { %v9925_v16 = vrot.slane %v9924_v59, 4  ;;  %v9950_v60 = vadd.f32 %v9949_v49, %v9938_v17 }
 0x7dd   :  { %v9917_v51 = vadd.f32 %v9916_v20, %v9915_v55  ;;  %v9942_v50 = vrot.slane %v9941_v22, 4 }
 0x7de   :  { %v9926_v41 = vadd.f32 %v9925_v16, %v9924_v59  ;;  %v9951_v9 = vrot.slane %v9950_v60, 4 }
 0x7df   :  { %v9918_v39 = vrot.slane %v9917_v51, 2  ;;  %v9943_v1 = vadd.f32 %v9942_v50, %v9941_v22 }
 0x7e0   :  { %v9927_v52 = vrot.slane %v9926_v41, 2  ;;  %v9952_v15 = vadd.f32 %v9951_v9, %v9950_v60 }
 0x7e1   :  { %v9919_v40 = vadd.f32 %v9918_v39, %v9917_v51  ;;  %v9944_v58 = vrot.slane %v9943_v1, 2 }
 0x7e2   :  { %v9928_v29 = vadd.f32 %v9927_v52, %v9926_v41  ;;  %v9953_v10 = vrot.slane %v9952_v15, 2 }
 0x7e3   :  { %v9920_v45 = vrot.slane %v9919_v40, 1  ;;  %v9945_v44 = vadd.f32 %v9944_v58, %v9943_v1 }
 0x7e4   :  { %v9929_v57 = vrot.slane %v9928_v29, 1  ;;  %v9954_v62 = vadd.f32 %v9953_v10, %v9952_v15 }
 0x7e5   :  { %v9921_v56 = vadd.f32 %v9920_v45, %v9919_v40  ;;  %v9946_v14 = vrot.slane %v9945_v44, 1 }
 0x7e6   :  { %v9930_v34 = vadd.f32 %v9929_v57, %v9928_v29  ;;  %v9955_v12 = vrot.slane %v9954_v62, 1 }
 0x7e7   :  { %v9947_v2 = vadd.f32 %v9946_v14, %v9945_v44  ;;  %v9957_v36 = vmul.f32 0.03125, %v9921_v56 }
 0x7e8   :  { %v9956_v28 = vadd.f32 %v9955_v12, %v9954_v62  ;;  %v9958_v63 = vmul.f32 0.03125, %v9930_v34 }
 0x7e9   :  { %v9959_v3 = vmul.f32 0.03125, %v9947_v2  ;;  %v9961_v38 = vmul.f32 %v9957_v36, %v9957_v36  ;;  %v9971_v8 = vsub.f32 %v26298_v61, %v9957_v36  ;;  %v9965_v43 = vsub.f32 %v26259_v21, %v9957_v36 }
 0x7ea   :  { %v9960_v33 = vmul.f32 0.03125, %v9956_v28  ;;  %v9962_v35 = vmul.f32 %v9958_v63, %v9958_v63  ;;  %v9972_v37 = vsub.f32 %v26303_v5, %v9958_v63  ;;  %v9966_v4 = vsub.f32 %v26261_v25, %v9958_v63  ;;  %v9985_v25 = vld [vmem:[%s29695_s7] sm:$0x3] }
 0x7eb   :  { %v9963_v53 = vsub.f32 %v9959_v3, %v9961_v38  ;;  %v9968_v18 = vsub.f32 %v26277_v54, %v9958_v63  ;;  %v9967_v48 = vsub.f32 %v26266_v27, %v9957_v36  ;;  %v9970_v0 = vsub.f32 %v26293_v42, %v9958_v63  ;;  %v10005_v27 = vld [vmem:[%s29696_s8] sm:$0x3] }
 0x7ec   :  { %v9964_v46 = vsub.f32 %v9960_v33, %v9962_v35  ;;  %v9969_v32 = vsub.f32 %v26288_v19, %v9957_v36  ;;  %v26317_v21 = vshrl.u32 %v9987_v30, 7  ;;  %v22052_v35 = vld [vmem:[%s29694_s10 + $0x204] ss:$16 sps:$4 sm:$0xff]  }
 0x7ed   :  { %v9973_v11 = vadd.f32 1e-05, %v9963_v53 }
 0x7ee   :  { %v9974_v13 = vadd.f32 1e-05, %v9964_v46  ;;  %v26323_v54 = vsub.s32 0, %v26317_v21  ;;  %v26329_v19 = vsub.s32 1, %v26317_v21  ;;  %v22055_v46 = vld [vmem:[%s29694_s10 + $0x224] ss:$16 sps:$4 sm:$0xff]  }
 0x7ef   :  { %23592 = vrsqrt.f32 %v9973_v11  ;;  %v22058_v11 = vld [vmem:[%s29694_s10 + $0x244] ss:$16 sps:$4 sm:$0xff]  }
 0x7f0   :  { %23594 = vrsqrt.f32 %v9974_v13  ;;  %v9990_v23 = vrot.slane %v9985_v25, %v26323_v54  ;;  %v10010_v42 = vrot.slane %v10005_v27, %v26323_v54  ;;  %v9994_v7 = vrot.slane %v9985_v25, %v26329_v19  ;;  %v22047_v13 = vld [vmem:[%s29693_s9 + $0x8] sm:$0xff]   ;;  %v22056_v25 = vld [vmem:[%s29694_s10 + $0x240] ss:$16 sps:$4 sm:$0xff]  }
 0x7f1   :  { %v10014_v31 = vrot.slane %v10005_v27, %v26329_v19  ;;  %v22061_v27 = vld [vmem:[%s29694_s10 + $0x264] ss:$16 sps:$4 sm:$0xff]  }
 0x7f9   :  { %v23593_v24 = vpop.eup %23592 }
 0x7fa   :  { %v23595_v61 = vpop.eup %23594  ;;  %v9983_v47 = vmul.f32 %v23593_v24, %v9971_v8  ;;  %v9977_v55 = vmul.f32 %v23593_v24, %v9965_v43  ;;  %v9979_v26 = vmul.f32 %v23593_v24, %v9967_v48  ;;  %v9981_v5 = vmul.f32 %v23593_v24, %v9969_v32  ;;  %v22046_v48 = vld [vmem:[%s29693_s9] sm:$0xff]  }
 0x7fb   :  { %v9984_v49 = vmul.f32 %v23595_v61, %v9972_v37  ;;  %v9978_v59 = vmul.f32 %v23595_v61, %v9966_v4  ;;  %v9980_v17 = vmul.f32 %v23595_v61, %v9968_v18  ;;  %v9982_v20 = vmul.f32 %v23595_v61, %v9970_v0  ;;  %v22050_v0 = vld [vmem:[%s29694_s10 + $0x200] ss:$16 sps:$4 sm:$0xff]   ;;  %v22064_v24 = vld [vmem:[%s29694_s10 + $0x284] ss:$16 sps:$4 sm:$0xff]  }
 0x7fc   :  { %v10003_v22 = vmul.f32 %v9990_v23, %v9983_v47  ;;  %v9997_v16 = vmul.f32 %v9990_v23, %v9977_v55  ;;  %v9999_v60 = vmul.f32 %v9990_v23, %v9979_v26  ;;  %v10001_v51 = vmul.f32 %v9990_v23, %v9981_v5  ;;  %v22053_v32 = vld [vmem:[%s29694_s10 + $0x220] ss:$16 sps:$4 sm:$0xff]   ;;  %v22076_v47 = vld [vmem:[%s29694_s10 + $0x2c4] ss:$16 sps:$4 sm:$0xff]   ;;  %v22049_v55 = vld [vmem:[%s29693_s9 + $0x18] sm:$0xff]  }
 0x7fd   :  { %v10004_v50 = vmul.f32 %v9994_v7, %v9984_v49  ;;  %v9998_v41 = vmul.f32 %v9994_v7, %v9978_v59  ;;  %v10000_v9 = vmul.f32 %v9994_v7, %v9980_v17  ;;  %v10002_v39 = vmul.f32 %v9994_v7, %v9982_v20  ;;  %v22059_v23 = vld [vmem:[%s29694_s10 + $0x260] ss:$16 sps:$4 sm:$0xff]   ;;  %v22082_v5 = vld [vmem:[%s29694_s10 + $0x2e4] ss:$16 sps:$4 sm:$0xff]  }
 0x7fe   :  { %v10023_v1 = vadd.f32 %v10010_v42, %v10003_v22  ;;  %v10017_v52 = vadd.f32 %v10010_v42, %v9997_v16  ;;  %v10019_v15 = vadd.f32 %v10010_v42, %v9999_v60  ;;  %v10021_v40 = vadd.f32 %v10010_v42, %v10001_v51  ;;  %v22048_v42 = vld [vmem:[%s29693_s9 + $0x10] sm:$0xff]   ;;  %v22092_v17 = vld [vmem:[%s29693_s9 + $0x20] sm:$0xff]   ;;  %v22105_v51 = vld [vmem:[%s29693_s9 + $0x28] sm:$0xff]  }
 0x7ff   :  { %v10018_v58 = vadd.f32 %v10014_v31, %v9998_v41  ;;  %v10020_v29 = vadd.f32 %v10014_v31, %v10000_v9  ;;  %v10022_v10 = vadd.f32 %v10014_v31, %v10002_v39  ;;  %v10024_v45 = vadd.f32 %v10014_v31, %v10004_v50  ;;  %v22062_v7 = vld [vmem:[%s29694_s10 + $0x280] ss:$16 sps:$4 sm:$0xff]   ;;  %v22070_v31 = vld [vmem:[%s29694_s10 + $0x2a4] ss:$16 sps:$4 sm:$0xff]  }
 0x800   :  { %vm10025_vm3 = vcmp.gt.f32.partialorder %v10017_v52, 0.0  ;;  %vm10027_vm13 = vcmp.gt.f32.partialorder %v10019_v15, 0.0  ;;  %v10033_v44 = vmul.f32 0.2, %v10017_v52  ;;  %v10035_v57 = vmul.f32 0.2, %v10019_v15 }
 0x801   :  { %vm10026_vm14 = vcmp.gt.f32.partialorder %v10018_v58, 0.0  ;;  %vm10028_vm15 = vcmp.gt.f32.partialorder %v10020_v29, 0.0  ;;  %v10034_v62 = vmul.f32 0.2, %v10018_v58  ;;  %v10036_v56 = vmul.f32 0.2, %v10020_v29 }
 0x802   :  { %v10041_v14 = vsel %vm10025_vm3, %v10017_v52, %v10033_v44  ;;  %v10043_v34 = vsel %vm10027_vm13, %v10019_v15, %v10035_v57  ;;  %vm10030_vm1 = vcmp.gt.f32.partialorder %v10022_v10, 0.0  ;;  %vm10032_vm2 = vcmp.gt.f32.partialorder %v10024_v45, 0.0  ;;  %v22068_v61 = vld [vmem:[%s29694_s10 + $0x2a0] ss:$16 sps:$4 sm:$0xff]   ;;  %v22088_v59 = vld [vmem:[%s29694_s10 + $0x304] ss:$16 sps:$4 sm:$0xff]  }
 0x803   :  { %v10042_v12 = vsel %vm10026_vm14, %v10018_v58, %v10034_v62  ;;  %v10044_v2 = vsel %vm10028_vm15, %v10020_v29, %v10036_v56  ;;  %v10049_v36 = vpack.c.bf16 %v10043_v34, %v10041_v14  ;;  %v10038_v28 = vmul.f32 0.2, %v10022_v10  ;;  %v22074_v26 = vld [vmem:[%s29694_s10 + $0x2c0] ss:$16 sps:$4 sm:$0xff]   ;;  %v22095_v22 = vld [vmem:[%s29694_s10 + $0x324] ss:$16 sps:$4 sm:$0xff]  }
 0x804   :  { %v10050_v63 = vpack.c.bf16 %v10044_v2, %v10042_v12  ;;  %v10040_v3 = vmul.f32 0.2, %v10024_v45  ;;  %vm10029_vm4 = vcmp.gt.f32.partialorder %v10021_v40, 0.0  ;;  %vm10031_vm5 = vcmp.gt.f32.partialorder %v10023_v1, 0.0  ;;  %v22080_v49 = vld [vmem:[%s29694_s10 + $0x2e0] ss:$16 sps:$4 sm:$0xff]  }
 0x805   :  { %v10046_v38 = vsel %vm10030_vm1, %v10022_v10, %v10038_v28  ;;  %v10037_v8 = vmul.f32 0.2, %v10021_v40  ;;  %v10039_v43 = vmul.f32 0.2, %v10023_v1  ;;  %v22086_v20 = vld [vmem:[%s29694_s10 + $0x300] ss:$16 sps:$4 sm:$0xff]  }
 0x806   :  { %10134 = vmatprep.subr.bf16.mxu0 %v10050_v63  ;;  %v10048_v33 = vsel %vm10032_vm2, %v10024_v45, %v10040_v3  ;;  %v22093_v16 = vld [vmem:[%s29694_s10 + $0x320] ss:$16 sps:$4 sm:$0xff]   ;;  %v22101_v60 = vld [vmem:[%s29694_s10 + $0x344] ss:$16 sps:$4 sm:$0xff]   ;;  %v22131_v29 = vld [vmem:[%s29693_s9 + $0x38] sm:$0xff]  }
 0x807   :  { %10135 = vmatpush1.bf16.msra.mxu0 %v10049_v36  ;;  %v10052_v37 = vpack.c.bf16 %v10048_v33, %v10046_v38  ;;  %v10045_v4 = vsel %vm10029_vm4, %v10021_v40, %v10037_v8  ;;  %v10047_v53 = vsel %vm10031_vm5, %v10023_v1, %v10039_v43  ;;  %v22099_v50 = vld [vmem:[%s29694_s10 + $0x340] ss:$16 sps:$4 sm:$0xff]   ;;  %v22108_v41 = vld [vmem:[%s29694_s10 + $0x364] ss:$16 sps:$4 sm:$0xff]   ;;  %v22135_v44 = vld [vmem:[%s29694_s10 + $0xb68] ss:$16 sps:$4 sm:$0xff]  }
 0x808   :  { %v10051_v18 = vpack.c.bf16 %v10047_v53, %v10045_v4  ;;  %v22106_v9 = vld [vmem:[%s29694_s10 + $0x360] ss:$16 sps:$4 sm:$0xff]   ;;  %v22114_v39 = vld [vmem:[%s29694_s10 + $0x384] ss:$16 sps:$4 sm:$0xff]   ;;  %v22137_v57 = vld [vmem:[%s29694_s10 + $0xb6c] ss:$16 sps:$4 sm:$0xff]  }
 0x809   :  { %10136 = vmatprep.subr.bf16.mxu0 %v10052_v37  ;;  %v22118_v1 = vld [vmem:[%s29693_s9 + $0x30] sm:$0xff]   ;;  %13092 = vmatprep.subr.bf16.mxu1 %v22137_v57  ;;  %v22140_v62 = vld [vmem:[%s29694_s10 + $0x20c] ss:$16 sps:$4 sm:$0xff]   ;;  %v22141_v56 = vld [vmem:[%s29694_s10 + $0xb88] ss:$16 sps:$4 sm:$0xff]  }
 0x80a   :  { %v22112_v52 = vld [vmem:[%s29694_s10 + $0x380] ss:$16 sps:$4 sm:$0xff]   ;;  %v22121_v15 = vld [vmem:[%s29694_s10 + $0x3a4] ss:$16 sps:$4 sm:$0xff]   ;;  %13093 = vmatpush1.bf16.msra.mxu1 %v22135_v44  ;;  %v22143_v14 = vld [vmem:[%s29694_s10 + $0xb8c] ss:$16 sps:$4 sm:$0xff]  }
 0x80b   :  { %10137 = vmatpush1.bf16.msra.mxu0 %v10051_v18  ;;  %v22119_v40 = vld [vmem:[%s29694_s10 + $0x3a0] ss:$16 sps:$4 sm:$0xff]   ;;  %v22127_v58 = vld [vmem:[%s29694_s10 + $0x3c4] ss:$16 sps:$4 sm:$0xff]   ;;  %13094 = vmatprep.subr.bf16.mxu1 %v22143_v14  ;;  %v22147_v34 = vld [vmem:[%s29694_s10 + $0xba8] ss:$16 sps:$4 sm:$0xff]  }
 0x80c   :  { %10735 = vmatprep.subr.bf16.mxu0 %v22052_v35  ;;  %v22125_v10 = vld [vmem:[%s29694_s10 + $0x3c0] ss:$16 sps:$4 sm:$0xff]   ;;  %v22149_v12 = vld [vmem:[%s29694_s10 + $0xbac] ss:$16 sps:$4 sm:$0xff]   ;;  %v22153_v2 = vld [vmem:[%s29694_s10 + $0xbc8] ss:$16 sps:$4 sm:$0xff]  }
 0x80d   :  { %v22132_v45 = vld [vmem:[%s29694_s10 + $0x3e0] ss:$16 sps:$4 sm:$0xff]   ;;  %v22155_v36 = vld [vmem:[%s29694_s10 + $0xbcc] ss:$16 sps:$4 sm:$0xff]   ;;  %v22159_v28 = vld [vmem:[%s29694_s10 + $0xbe8] ss:$16 sps:$4 sm:$0xff]  }
 0x80e   :  { %18827 = vmatmul.mubr.msk.bf16.vlgmr.msra.gmra.mrb[72].mxu0 %vm10109_vm6, %v22046_v48  ;;  %13095 = vmatpush1.bf16.msra.mxu1 %v22141_v56  ;;  %v22161_v63 = vld [vmem:[%s29694_s10 + $0xbec] ss:$16 sps:$4 sm:$0xff]   ;;  %v22167_v3 = vld [vmem:[%s29694_s10 + $0xc04] ss:$16 sps:$4 sm:$0xff]   ;;  %v22138_v37 = vld [vmem:[%s29694_s10 + $0x208] ss:$16 sps:$4 sm:$0xff]  }
 0x80f   :  { %10176 = vmatprep.mubr.bf16.mxu0 %v23608_v6  ;;  %10736 = vmatpush1.bf16.msra.mxu0 %v22050_v0  ;;  %v22146_v53 = vld [vmem:[%s29694_s10 + $0x22c] ss:$16 sps:$4 sm:$0xff]   ;;  %v22144_v18 = vld [vmem:[%s29694_s10 + $0x228] ss:$16 sps:$4 sm:$0xff]   ;;  %v22197_v44 = vld [vmem:[%s29694_s10 + $0xca4] ss:$16 sps:$4 sm:$0xff]  }
 0x810   :  { %10737 = vmatprep.subr.bf16.mxu0 %v22055_v46  ;;  %13096 = vmatprep.subr.bf16.mxu1 %v22149_v12  ;;  %v22152_v46 = vld [vmem:[%s29694_s10 + $0x24c] ss:$16 sps:$4 sm:$0xff]   ;;  %v22192_v57 = vld [vmem:[%s29694_s10 + $0x328] ss:$16 sps:$4 sm:$0xff]   ;;  %v22203_v14 = vld [vmem:[%s29694_s10 + $0xcc4] ss:$16 sps:$4 sm:$0xff]  }
 0x811   :  { %v22200_v56 = vld [vmem:[%s29694_s10 + $0x34c] ss:$16 sps:$4 sm:$0xff]   ;;  %v22201_v12 = vld [vmem:[%s29694_s10 + $0xcc0] ss:$16 sps:$4 sm:$0xff]  }
 0x812   :  { %13097 = vmatpush1.bf16.msra.mxu1 %v22147_v34  ;;  %v22198_v34 = vld [vmem:[%s29694_s10 + $0x348] ss:$16 sps:$4 sm:$0xff]  }
 0x813   :  { %10738 = vmatpush1.bf16.msra.mxu0 %v22053_v32  ;;  %13098 = vmatprep.subr.bf16.mxu1 %v22155_v36  ;;  %v22209_v36 = vld [vmem:[%s29694_s10 + $0xce4] ss:$16 sps:$4 sm:$0xff]  }
 0x814   :  { %10739 = vmatprep.subr.bf16.mxu0 %v22058_v11 }
 0x816   :  { %18828 = vmatmul.mubr.msk.bf16.gmra.mrb[76].mxu0 %vm10109_vm6, %v22047_v13  ;;  %13099 = vmatpush1.bf16.msra.mxu1 %v22153_v2  ;;  %v22150_v13 = vld [vmem:[%s29694_s10 + $0x248] ss:$16 sps:$4 sm:$0xff]   ;;  %v22206_v2 = vld [vmem:[%s29694_s10 + $0x36c] ss:$16 sps:$4 sm:$0xff]  }
 0x817   :  { %10186 = vmatprep.mubr.bf16.mxu0 %v23608_v6  ;;  %10740 = vmatpush1.bf16.msra.mxu0 %v22056_v25  ;;  %v22158_v25 = vld [vmem:[%s29694_s10 + $0x26c] ss:$16 sps:$4 sm:$0xff]  }
 0x818   :  { %10741 = vmatprep.subr.bf16.mxu0 %v22061_v27  ;;  %13100 = vmatprep.subr.bf16.mxu1 %v22161_v63  ;;  %v22207_v63 = vld [vmem:[%s29694_s10 + $0xce0] ss:$16 sps:$4 sm:$0xff]  }
 0x81a   :  { %13101 = vmatpush1.bf16.msra.mxu1 %v22159_v28  ;;  %v22204_v28 = vld [vmem:[%s29694_s10 + $0x368] ss:$16 sps:$4 sm:$0xff]  }
 0x81b   :  { %10742 = vmatpush1.bf16.msra.mxu0 %v22059_v23  ;;  %13503 = vmatprep.subr.bf16.mxu1 %v22167_v3  ;;  %v22156_v23 = vld [vmem:[%s29694_s10 + $0x268] ss:$16 sps:$4 sm:$0xff]   ;;  %v22212_v3 = vld [vmem:[%s29694_s10 + $0x38c] ss:$16 sps:$4 sm:$0xff]  }
 0x81c   :  { %10743 = vmatprep.subr.bf16.mxu0 %v22064_v24 }
 0x81e   :  { %18829 = vmatmul.mubr.msk.bf16.gmra.mrb[80].mxu0 %vm10109_vm6, %v22048_v42  ;;  %v22164_v42 = vld [vmem:[%s29694_s10 + $0x28c] ss:$16 sps:$4 sm:$0xff]  }
 0x81f   :  { %10196 = vmatprep.mubr.bf16.mxu0 %v23608_v6  ;;  %10744 = vmatpush1.bf16.msra.mxu0 %v22062_v7 }
 0x820   :  { %10745 = vmatprep.subr.bf16.mxu0 %v22070_v31 }
 0x823   :  { %10746 = vmatpush1.bf16.msra.mxu0 %v22068_v61 }
 0x824   :  { %10747 = vmatprep.subr.bf16.mxu0 %v22076_v47  ;;  %v22162_v47 = vld [vmem:[%s29694_s10 + $0x288] ss:$16 sps:$4 sm:$0xff]  }
 0x826   :  { %18830 = vmatmul.mubr.msk.bf16.gmra.mrb[84].mxu0 %vm10109_vm6, %v22049_v55  ;;  %v22165_v55 = vld [vmem:[%s29694_s10 + $0xc00] ss:$16 sps:$4 sm:$0xff]  }
 0x827   :  { %10748 = vmatpush1.bf16.msra.mxu0 %v22074_v26  ;;  %10206 = vmatprep.mubr.bf16.mxu0 %v23608_v6 }
 0x828   :  { %10749 = vmatprep.subr.bf16.mxu0 %v22082_v5  ;;  %v22170_v5 = vld [vmem:[%s29694_s10 + $0x2ac] ss:$16 sps:$4 sm:$0xff]  }
 0x82b   :  { %10750 = vmatpush1.bf16.msra.mxu0 %v22080_v49  ;;  %v22173_v49 = vld [vmem:[%s29694_s10 + $0xc24] ss:$16 sps:$4 sm:$0xff]  }
 0x82c   :  { %10751 = vmatprep.subr.bf16.mxu0 %v22088_v59  ;;  %v22168_v59 = vld [vmem:[%s29694_s10 + $0x2a8] ss:$16 sps:$4 sm:$0xff]  }
 0x82e   :  { %18831 = vmatmul.mubr.msk.bf16.gmra.mrb[88].mxu0 %vm10109_vm6, %v22092_v17  ;;  %v22171_v17 = vld [vmem:[%s29694_s10 + $0xc20] ss:$16 sps:$4 sm:$0xff]  }
 0x82f   :  { %10752 = vmatpush1.bf16.msra.mxu0 %v22086_v20  ;;  %10216 = vmatprep.mubr.bf16.mxu0 %v23608_v6 }
 0x830   :  { %10753 = vmatprep.subr.bf16.mxu0 %v22095_v22  ;;  %v22176_v22 = vld [vmem:[%s29694_s10 + $0x2cc] ss:$16 sps:$4 sm:$0xff]  }
 0x833   :  { %10754 = vmatpush1.bf16.msra.mxu0 %v22093_v16  ;;  %v22179_v16 = vld [vmem:[%s29694_s10 + $0xc44] ss:$16 sps:$4 sm:$0xff]  }
 0x834   :  { %10755 = vmatprep.subr.bf16.mxu0 %v22101_v60 }
 0x836   :  { %18832 = vmatmul.mubr.msk.bf16.gmra.mrb[92].mxu0 %vm10109_vm6, %v22105_v51 }
 0x837   :  { %10756 = vmatpush1.bf16.msra.mxu0 %v22099_v50  ;;  %10226 = vmatprep.mubr.bf16.mxu0 %v23608_v6 }
 0x838   :  { %10757 = vmatprep.subr.bf16.mxu0 %v22108_v41 }
 0x83b   :  { %10758 = vmatpush1.bf16.msra.mxu0 %v22106_v9  ;;  %v22174_v9 = vld [vmem:[%s29694_s10 + $0x2c8] ss:$16 sps:$4 sm:$0xff]  }
 0x83c   :  { %10759 = vmatprep.subr.bf16.mxu0 %v22114_v39  ;;  %v22177_v39 = vld [vmem:[%s29694_s10 + $0xc40] ss:$16 sps:$4 sm:$0xff]  }
 0x83e   :  { %18833 = vmatmul.mubr.msk.bf16.gmra.mrb[96].mxu0 %vm10109_vm6, %v22118_v1  ;;  %v22182_v1 = vld [vmem:[%s29694_s10 + $0x2ec] ss:$16 sps:$4 sm:$0xff]  }
 0x83f   :  { %10760 = vmatpush1.bf16.msra.mxu0 %v22112_v52  ;;  %10236 = vmatprep.mubr.bf16.mxu0 %v23608_v6  ;;  %v22134_v6 = vld [vmem:[%s29694_s10 + $0x3e4] ss:$16 sps:$4 sm:$0xff]  }
 0x840   :  { %10761 = vmatprep.subr.bf16.mxu0 %v22121_v15  ;;  %v22185_v52 = vld [vmem:[%s29694_s10 + $0xc64] ss:$16 sps:$4 sm:$0xff]   ;;  %v22180_v15 = vld [vmem:[%s29694_s10 + $0x2e8] ss:$16 sps:$4 sm:$0xff]  }
 0x843   :  { %10762 = vmatpush1.bf16.msra.mxu0 %v22119_v40  ;;  %v22183_v40 = vld [vmem:[%s29694_s10 + $0xc60] ss:$16 sps:$4 sm:$0xff]  }
 0x844   :  { %10763 = vmatprep.subr.bf16.mxu0 %v22127_v58  ;;  %v22188_v58 = vld [vmem:[%s29694_s10 + $0x30c] ss:$16 sps:$4 sm:$0xff]  }
 0x846   :  { %18834 = vmatmul.mubr.msk.bf16.gmra.mrb[100].mxu0 %vm10109_vm6, %v22131_v29  ;;  %v22191_v29 = vld [vmem:[%s29694_s10 + $0xc84] ss:$16 sps:$4 sm:$0xff]  }
 0x847   :  { %10764 = vmatpush1.bf16.msra.mxu0 %v22125_v10  ;;  %v22186_v10 = vld [vmem:[%s29694_s10 + $0x308] ss:$16 sps:$4 sm:$0xff]  }
 0x848   :  { %10765 = vmatprep.subr.bf16.mxu0 %v22134_v6  ;;  %v22194_v6 = vld [vmem:[%s29694_s10 + $0x32c] ss:$16 sps:$4 sm:$0xff]  }
 0x84b   :  { %10766 = vmatpush1.bf16.msra.mxu0 %v22132_v45  ;;  %v22189_v45 = vld [vmem:[%s29694_s10 + $0xc80] ss:$16 sps:$4 sm:$0xff]  }
 0x84c   :  { %10776 = vmatprep.subr.bf16.mxu0 %v22140_v62  ;;  %v22195_v62 = vld [vmem:[%s29694_s10 + $0xca0] ss:$16 sps:$4 sm:$0xff]  }
 0x8e1   :  { %v26506_v38 = vpop.f32.mrb[72].mxu0 }
 0x8e2   :  { %v26508_v8 = vpop.f32.mrb[73].mxu0 }
 0x8e3   :  { %v10172_v43 = vpop.f32.mrb[74].mxu0 }
 0x8e4   :  { %v10174_v33 = vpop.f32.mrb[75].mxu0  ;;  %v26513_v4 = vpack.c.bf16 %v10172_v43, %v10172_v43  ;;  %v22215_v43 = vld [vmem:[%s29694_s10 + $0xd04] ss:$16 sps:$4 sm:$0xff]  }
 0x8e5   :  { %v10350_v35 = vpack.c.bf16 %v10174_v33, %v10174_v33  ;;  %v22210_v33 = vld [vmem:[%s29694_s10 + $0x388] ss:$16 sps:$4 sm:$0xff]  }
 0x8e7   :  { %10767 = vmatprep.mubr.bf16.mxu0 %v10350_v35 }
 0x8e8   :  { %10768 = vmatmul.mubr.bf16.vlgmr.msra.gmra.mrb[104].mxu0 %v26513_v4 }
 0x8e9   :  { %10777 = vmatpush1.bf16.msra.mxu0 %v22138_v37  ;;  %v26522_v48 = vpop.f32.mrb[76].mxu0  ;;  %10808 = vmatprep.mubr.bf16.mxu0 %v10350_v35  ;;  %v22213_v35 = vld [vmem:[%s29694_s10 + $0xd00] ss:$16 sps:$4 sm:$0xff]   ;;  %v22218_v37 = vld [vmem:[%s29694_s10 + $0x3ac] ss:$16 sps:$4 sm:$0xff]  }
 0x8ea   :  { %10778 = vmatprep.subr.bf16.mxu0 %v22146_v53  ;;  %v26524_v0 = vpop.f32.mrb[77].mxu0  ;;  %v22221_v53 = vld [vmem:[%s29694_s10 + $0xd24] ss:$16 sps:$4 sm:$0xff]  }
 0x8eb   :  { %v26529_v32 = vpop.f32.mrb[78].mxu0 }
 0x8ec   :  { %v26531_v11 = vpop.f32.mrb[79].mxu0 }
 0x8ed   :  { %10779 = vmatpush1.bf16.msra.mxu0 %v22144_v18  ;;  %v22216_v18 = vld [vmem:[%s29694_s10 + $0x3a8] ss:$16 sps:$4 sm:$0xff]  }
 0x8ee   :  { %10780 = vmatprep.subr.bf16.mxu0 %v22152_v46  ;;  %v22219_v46 = vld [vmem:[%s29694_s10 + $0xd20] ss:$16 sps:$4 sm:$0xff]  }
 0x8f1   :  { %10781 = vmatpush1.bf16.msra.mxu0 %v22150_v13  ;;  %v26539_v27 = vpop.f32.mrb[80].mxu0  ;;  %v22224_v13 = vld [vmem:[%s29694_s10 + $0x3cc] ss:$16 sps:$4 sm:$0xff]  }
 0x8f2   :  { %v26544_v24 = vpop.f32.mrb[81].mxu0  ;;  %10782 = vmatprep.subr.bf16.mxu0 %v22158_v25  ;;  %v22227_v25 = vld [vmem:[%s29694_s10 + $0xd44] ss:$16 sps:$4 sm:$0xff]  }
 0x8f3   :  { %v10192_v7 = vpop.f32.mrb[82].mxu0 }
 0x8f4   :  { %v10194_v31 = vpop.f32.mrb[83].mxu0  ;;  %v26557_v26 = vpack.c.bf16 %v10192_v7, %v10192_v7  ;;  %v22230_v7 = vld [vmem:[%s29694_s10 + $0x3ec] ss:$16 sps:$4 sm:$0xff]  }
 0x8f5   :  { %v26549_v61 = vpack.c.bf16 %v10194_v31, %v10194_v31  ;;  %10783 = vmatpush1.bf16.msra.mxu0 %v22156_v23  ;;  %v22222_v23 = vld [vmem:[%s29694_s10 + $0x3c8] ss:$16 sps:$4 sm:$0xff]   ;;  %v22233_v31 = vld [vmem:[%s29694_s10 + $0xd64] ss:$16 sps:$4 sm:$0xff]  }
 0x8f6   :  { %10784 = vmatprep.subr.bf16.mxu0 %v22164_v42  ;;  %v22225_v42 = vld [vmem:[%s29694_s10 + $0xd40] ss:$16 sps:$4 sm:$0xff]  }
 0x8f7   :  { %13102 = vmatprep.mubr.bf16.mxu1 %v26549_v61 }
 0x8f8   :  { %13103 = vmatmul.mubr.bf16.vlgmr.msra.gmra.mrb[16].mxu1 %v26557_v26 }
 0x8f9   :  { %10785 = vmatpush1.bf16.msra.mxu0 %v22162_v47  ;;  %13504 = vmatpush1.bf16.msra.mxu1 %v22165_v55  ;;  %v26573_v20 = vpop.f32.mrb[84].mxu0  ;;  %v22228_v47 = vld [vmem:[%s29694_s10 + $0x3e8] ss:$16 sps:$4 sm:$0xff]   ;;  %v22231_v55 = vld [vmem:[%s29694_s10 + $0xd60] ss:$16 sps:$4 sm:$0xff]  }
 0x8fa   :  { %10786 = vmatprep.subr.bf16.mxu0 %v22170_v5  ;;  %13505 = vmatprep.subr.bf16.mxu1 %v22173_v49  ;;  %v10200_v60 = vpop.f32.mrb[85].mxu0  ;;  %v22236_v5 = vld [vmem:[%s29694_s10 + $0x4] ss:$16 sps:$4 sm:$0xff]  }
 0x8fb   :  { %v26581_v51 = vpack.c.bf16 %v10200_v60, %v10200_v60  ;;  %v26583_v50 = vpop.f32.mrb[86].mxu0  ;;  %v22239_v49 = vld [vmem:[%s29694_s10 + $0xd84] ss:$16 sps:$4 sm:$0xff]   ;;  %v26723_v60 = vpack.c.bf16 %v26508_v8, %v26508_v8 }
 0x8fc   :  { %v26585_v41 = vpop.f32.mrb[87].mxu0  ;;  %v22251_v8 = vld [vmem:[%s29694_s10 + $0xdc4] ss:$16 sps:$4 sm:$0xff]  }
 0x8fd   :  { %10787 = vmatpush1.bf16.msra.mxu0 %v22168_v59  ;;  %13506 = vmatpush1.bf16.msra.mxu1 %v22171_v17  ;;  %v22234_v59 = vld [vmem:[%s29694_s10] ss:$16 sps:$4 sm:$0xff]  }
 0x8fe   :  { %10788 = vmatprep.subr.bf16.mxu0 %v22176_v22  ;;  %13507 = vmatprep.subr.bf16.mxu1 %v22179_v16  ;;  %v22237_v17 = vld [vmem:[%s29694_s10 + $0xd80] ss:$16 sps:$4 sm:$0xff]   ;;  %v22242_v22 = vld [vmem:[%s29694_s10 + $0x24] ss:$16 sps:$4 sm:$0xff]  }
 0x8ff   :  { %13535 = vmatprep.mubr.bf16.mxu1 %v26581_v51  ;;  %v22245_v16 = vld [vmem:[%s29694_s10 + $0xda4] ss:$16 sps:$4 sm:$0xff]  }
 0x901   :  { %10789 = vmatpush1.bf16.msra.mxu0 %v22174_v9  ;;  %13508 = vmatpush1.bf16.msra.mxu1 %v22177_v39  ;;  %v22240_v9 = vld [vmem:[%s29694_s10 + $0x20] ss:$16 sps:$4 sm:$0xff]  }
 0x902   :  { %10790 = vmatprep.subr.bf16.mxu0 %v22182_v1  ;;  %13509 = vmatprep.subr.bf16.mxu1 %v22185_v52  ;;  %v22243_v39 = vld [vmem:[%s29694_s10 + $0xda0] ss:$16 sps:$4 sm:$0xff]  }
 0x903   :  { %v22246_v1 = vld [vmem:[%s29694_s10 + $0x40] ss:$16 sps:$4 sm:$0xff]  }
 0x904   :  { %v22249_v52 = vld [vmem:[%s29694_s10 + $0xdc0] ss:$16 sps:$4 sm:$0xff]  }
 0x905   :  { %10791 = vmatpush1.bf16.msra.mxu0 %v22180_v15  ;;  %13510 = vmatpush1.bf16.msra.mxu1 %v22183_v40  ;;  %v22254_v15 = vld [vmem:[%s29694_s10 + $0x64] ss:$16 sps:$4 sm:$0xff]  }
 0x906   :  { %10792 = vmatprep.subr.bf16.mxu0 %v22188_v58  ;;  %13511 = vmatprep.subr.bf16.mxu1 %v22191_v29  ;;  %v22257_v40 = vld [vmem:[%s29694_s10 + $0xde4] ss:$16 sps:$4 sm:$0xff]   ;;  %v22252_v58 = vld [vmem:[%s29694_s10 + $0x60] ss:$16 sps:$4 sm:$0xff]  }
 0x907   :  { %v22255_v29 = vld [vmem:[%s29694_s10 + $0xde0] ss:$16 sps:$4 sm:$0xff]  }
 0x909   :  { %10793 = vmatpush1.bf16.msra.mxu0 %v22186_v10  ;;  %13512 = vmatpush1.bf16.msra.mxu1 %v22189_v45  ;;  %v22260_v10 = vld [vmem:[%s29694_s10 + $0x84] ss:$16 sps:$4 sm:$0xff]   ;;  %v22263_v45 = vld [vmem:[%s29694_s10 + $0xc0c] ss:$16 sps:$4 sm:$0xff]  }
 0x90a   :  { %10794 = vmatprep.subr.bf16.mxu0 %v22194_v6  ;;  %13513 = vmatprep.subr.bf16.mxu1 %v22197_v44  ;;  %v26764_v6 = vpack.c.bf16 %v26573_v20, %v26573_v20  ;;  %v22258_v44 = vld [vmem:[%s29694_s10 + $0x80] ss:$16 sps:$4 sm:$0xff]   ;;  %v22269_v20 = vld [vmem:[%s29694_s10 + $0xc2c] ss:$16 sps:$4 sm:$0xff]  }
 0x90d   :  { %10795 = vmatpush1.bf16.msra.mxu0 %v22192_v57  ;;  %13514 = vmatpush1.bf16.msra.mxu1 %v22195_v62  ;;  %v22261_v57 = vld [vmem:[%s29694_s10 + $0xc08] ss:$16 sps:$4 sm:$0xff]   ;;  %v22266_v62 = vld [vmem:[%s29694_s10 + $0xa4] ss:$16 sps:$4 sm:$0xff]  }
 0x90e   :  { %10796 = vmatprep.subr.bf16.mxu0 %v22200_v56  ;;  %13515 = vmatprep.subr.bf16.mxu1 %v22203_v14  ;;  %v22264_v56 = vld [vmem:[%s29694_s10 + $0xa0] ss:$16 sps:$4 sm:$0xff]   ;;  %v22267_v14 = vld [vmem:[%s29694_s10 + $0xc28] ss:$16 sps:$4 sm:$0xff]  }
 0x911   :  { %10797 = vmatpush1.bf16.msra.mxu0 %v22198_v34  ;;  %13516 = vmatpush1.bf16.msra.mxu1 %v22201_v12  ;;  %v22272_v34 = vld [vmem:[%s29694_s10 + $0xc4] ss:$16 sps:$4 sm:$0xff]   ;;  %v22275_v12 = vld [vmem:[%s29694_s10 + $0xc4c] ss:$16 sps:$4 sm:$0xff]  }
 0x912   :  { %10798 = vmatprep.subr.bf16.mxu0 %v22206_v2  ;;  %13517 = vmatprep.subr.bf16.mxu1 %v22209_v36  ;;  %v22270_v2 = vld [vmem:[%s29694_s10 + $0xc0] ss:$16 sps:$4 sm:$0xff]   ;;  %v22273_v36 = vld [vmem:[%s29694_s10 + $0xc48] ss:$16 sps:$4 sm:$0xff]  }
 0x915   :  { %10799 = vmatpush1.bf16.msra.mxu0 %v22204_v28  ;;  %13518 = vmatpush1.bf16.msra.mxu1 %v22207_v63  ;;  %v22278_v28 = vld [vmem:[%s29694_s10 + $0xe4] ss:$16 sps:$4 sm:$0xff]   ;;  %v22276_v63 = vld [vmem:[%s29694_s10 + $0xe0] ss:$16 sps:$4 sm:$0xff]  }
 0x916   :  { %10800 = vmatprep.subr.bf16.mxu0 %v22212_v3  ;;  %13519 = vmatprep.subr.bf16.mxu1 %v22215_v43  ;;  %v22279_v3 = vld [vmem:[%s29694_s10 + $0xc68] ss:$16 sps:$4 sm:$0xff]   ;;  %v22284_v43 = vld [vmem:[%s29694_s10 + $0x104] ss:$16 sps:$4 sm:$0xff]  }
 0x919   :  { %10801 = vmatpush1.bf16.msra.mxu0 %v22210_v33  ;;  %13520 = vmatpush1.bf16.msra.mxu1 %v22213_v35  ;;  %v22287_v33 = vld [vmem:[%s29694_s10 + $0xc8c] ss:$16 sps:$4 sm:$0xff]   ;;  %v22282_v35 = vld [vmem:[%s29694_s10 + $0x100] ss:$16 sps:$4 sm:$0xff]  }
 0x91a   :  { %10802 = vmatprep.subr.bf16.mxu0 %v22218_v37  ;;  %13521 = vmatprep.subr.bf16.mxu1 %v22221_v53  ;;  %v22285_v37 = vld [vmem:[%s29694_s10 + $0xc88] ss:$16 sps:$4 sm:$0xff]   ;;  %v22290_v53 = vld [vmem:[%s29694_s10 + $0x124] ss:$16 sps:$4 sm:$0xff]  }
 0x91d   :  { %10803 = vmatpush1.bf16.msra.mxu0 %v22216_v18  ;;  %13522 = vmatpush1.bf16.msra.mxu1 %v22219_v46  ;;  %v22293_v18 = vld [vmem:[%s29694_s10 + $0xcac] ss:$16 sps:$4 sm:$0xff]   ;;  %v22288_v46 = vld [vmem:[%s29694_s10 + $0x120] ss:$16 sps:$4 sm:$0xff]  }
 0x91e   :  { %10804 = vmatprep.subr.bf16.mxu0 %v22224_v13  ;;  %13523 = vmatprep.subr.bf16.mxu1 %v22227_v25  ;;  %v22291_v13 = vld [vmem:[%s29694_s10 + $0xca8] ss:$16 sps:$4 sm:$0xff]   ;;  %v22296_v25 = vld [vmem:[%s29694_s10 + $0x144] ss:$16 sps:$4 sm:$0xff]  }
 0x921   :  { %10805 = vmatpush1.bf16.msra.mxu0 %v22222_v23  ;;  %13524 = vmatpush1.bf16.msra.mxu1 %v22225_v42  ;;  %v22299_v23 = vld [vmem:[%s29694_s10 + $0xccc] ss:$16 sps:$4 sm:$0xff]   ;;  %v22294_v42 = vld [vmem:[%s29694_s10 + $0x140] ss:$16 sps:$4 sm:$0xff]  }
 0x922   :  { %10806 = vmatprep.subr.bf16.mxu0 %v22230_v7  ;;  %13525 = vmatprep.subr.bf16.mxu1 %v22233_v31  ;;  %v22297_v7 = vld [vmem:[%s29694_s10 + $0xcc8] ss:$16 sps:$4 sm:$0xff]   ;;  %v22302_v31 = vld [vmem:[%s29694_s10 + $0x164] ss:$16 sps:$4 sm:$0xff]  }
 0x925   :  { %10807 = vmatpush1.bf16.msra.mxu0 %v22228_v47  ;;  %13526 = vmatpush1.bf16.msra.mxu1 %v22231_v55  ;;  %v22305_v47 = vld [vmem:[%s29694_s10 + $0xcec] ss:$16 sps:$4 sm:$0xff]   ;;  %v22300_v55 = vld [vmem:[%s29694_s10 + $0x160] ss:$16 sps:$4 sm:$0xff]  }
 0x926   :  { %11137 = vmatprep.subr.bf16.mxu0 %v22236_v5  ;;  %13527 = vmatprep.subr.bf16.mxu1 %v22239_v49  ;;  %v22303_v5 = vld [vmem:[%s29694_s10 + $0xce8] ss:$16 sps:$4 sm:$0xff]   ;;  %v22308_v49 = vld [vmem:[%s29694_s10 + $0x184] ss:$16 sps:$4 sm:$0xff]  }
 0x928   :  { %10809 = vmatmul.mubr.bf16.vlgmr.msra.gmra.mrb[108].mxu0 %v26513_v4  ;;  %v22248_v4 = vld [vmem:[%s29694_s10 + $0x44] ss:$16 sps:$4 sm:$0xff]  }
 0x929   :  { %11138 = vmatpush1.bf16.msra.mxu0 %v22234_v59  ;;  %13528 = vmatpush1.bf16.msra.mxu1 %v22237_v17  ;;  %v22311_v59 = vld [vmem:[%s29694_s10 + $0xd0c] ss:$16 sps:$4 sm:$0xff]   ;;  %v22306_v17 = vld [vmem:[%s29694_s10 + $0x180] ss:$16 sps:$4 sm:$0xff]  }
 0x92a   :  { %11139 = vmatprep.subr.bf16.mxu0 %v22242_v22  ;;  %13529 = vmatprep.subr.bf16.mxu1 %v22245_v16  ;;  %v22309_v22 = vld [vmem:[%s29694_s10 + $0xd08] ss:$16 sps:$4 sm:$0xff]   ;;  %v22314_v16 = vld [vmem:[%s29694_s10 + $0x1a4] ss:$16 sps:$4 sm:$0xff]  }
 0x92b   :  { %11169 = vmatprep.mubr.bf16.mxu0 %v26723_v60 }
 0x92d   :  { %11140 = vmatpush1.bf16.msra.mxu0 %v22240_v9  ;;  %13530 = vmatpush1.bf16.msra.mxu1 %v22243_v39  ;;  %v22317_v9 = vld [vmem:[%s29694_s10 + $0xd2c] ss:$16 sps:$4 sm:$0xff]   ;;  %v22312_v39 = vld [vmem:[%s29694_s10 + $0x1a0] ss:$16 sps:$4 sm:$0xff]  }
 0x92e   :  { %11141 = vmatprep.subr.bf16.mxu0 %v22248_v4  ;;  %13531 = vmatprep.subr.bf16.mxu1 %v22251_v8  ;;  %v22315_v4 = vld [vmem:[%s29694_s10 + $0xd28] ss:$16 sps:$4 sm:$0xff]   ;;  %v22320_v8 = vld [vmem:[%s29694_s10 + $0x1c4] ss:$16 sps:$4 sm:$0xff]  }
 0x931   :  { %11142 = vmatpush1.bf16.msra.mxu0 %v22246_v1  ;;  %13532 = vmatpush1.bf16.msra.mxu1 %v22249_v52  ;;  %v22323_v1 = vld [vmem:[%s29694_s10 + $0xd4c] ss:$16 sps:$4 sm:$0xff]   ;;  %v22318_v52 = vld [vmem:[%s29694_s10 + $0x1c0] ss:$16 sps:$4 sm:$0xff]  }
 0x932   :  { %11143 = vmatprep.subr.bf16.mxu0 %v22254_v15  ;;  %13533 = vmatprep.subr.bf16.mxu1 %v22257_v40  ;;  %v22321_v15 = vld [vmem:[%s29694_s10 + $0xd48] ss:$16 sps:$4 sm:$0xff]   ;;  %v22326_v40 = vld [vmem:[%s29694_s10 + $0x1e4] ss:$16 sps:$4 sm:$0xff]  }
 0x935   :  { %11144 = vmatpush1.bf16.msra.mxu0 %v22252_v58  ;;  %13534 = vmatpush1.bf16.msra.mxu1 %v22255_v29  ;;  %v22329_v58 = vld [vmem:[%s29694_s10 + $0xd6c] ss:$16 sps:$4 sm:$0xff]   ;;  %v22324_v29 = vld [vmem:[%s29694_s10 + $0x1e0] ss:$16 sps:$4 sm:$0xff]  }
 0x936   :  { %11145 = vmatprep.subr.bf16.mxu0 %v22260_v10  ;;  %13544 = vmatprep.subr.bf16.mxu1 %v22263_v45  ;;  %v22327_v10 = vld [vmem:[%s29694_s10 + $0xd68] ss:$16 sps:$4 sm:$0xff]   ;;  %v22332_v45 = vld [vmem:[%s29694_s10 + $0xc] ss:$16 sps:$4 sm:$0xff]  }
 0x938   :  { %13536 = vmatmul.mubr.bf16.vlgmr.msra.gmra.mrb[20].mxu1 %v26764_v6 }
 0x939   :  { %11146 = vmatpush1.bf16.msra.mxu0 %v22258_v44  ;;  %13545 = vmatpush1.bf16.msra.mxu1 %v22261_v57  ;;  %v22335_v44 = vld [vmem:[%s29694_s10 + $0xd8c] ss:$16 sps:$4 sm:$0xff]   ;;  %v22330_v57 = vld [vmem:[%s29694_s10 + $0x8] ss:$16 sps:$4 sm:$0xff]  }
 0x93a   :  { %11147 = vmatprep.subr.bf16.mxu0 %v22266_v62  ;;  %13546 = vmatprep.subr.bf16.mxu1 %v22269_v20  ;;  %v22333_v62 = vld [vmem:[%s29694_s10 + $0xd88] ss:$16 sps:$4 sm:$0xff]   ;;  %v26920_v20 = vpack.c.bf16 %v26506_v38, %v26506_v38 }
 0x93b   :  { %13576 = vmatprep.mubr.bf16.mxu1 %v26581_v51  ;;  %v22281_v51 = vld [vmem:[%s29694_s10 + $0xc6c] ss:$16 sps:$4 sm:$0xff]   ;;  %v22339_v38 = vld [vmem:[%s29694_s10 + $0xda8] ss:$16 sps:$4 sm:$0xff]  }
 0x93d   :  { %11148 = vmatpush1.bf16.msra.mxu0 %v22264_v56  ;;  %13547 = vmatpush1.bf16.msra.mxu1 %v22267_v14  ;;  %v22338_v56 = vld [vmem:[%s29694_s10 + $0x2c] ss:$16 sps:$4 sm:$0xff]  }
 0x93e   :  { %11149 = vmatprep.subr.bf16.mxu0 %v22272_v34  ;;  %13548 = vmatprep.subr.bf16.mxu1 %v22275_v12  ;;  %v22341_v14 = vld [vmem:[%s29694_s10 + $0xdac] ss:$16 sps:$4 sm:$0xff]   ;;  %v22336_v34 = vld [vmem:[%s29694_s10 + $0x28] ss:$16 sps:$4 sm:$0xff]  }
 0x93f   :  { %v22344_v12 = vld [vmem:[%s29694_s10 + $0x4c] ss:$16 sps:$4 sm:$0xff]  }
 0x941   :  { %11150 = vmatpush1.bf16.msra.mxu0 %v22270_v2  ;;  %13549 = vmatpush1.bf16.msra.mxu1 %v22273_v36  ;;  %v22347_v2 = vld [vmem:[%s29694_s10 + $0xdcc] ss:$16 sps:$4 sm:$0xff]   ;;  %v22342_v36 = vld [vmem:[%s29694_s10 + $0x48] ss:$16 sps:$4 sm:$0xff]  }
 0x942   :  { %11151 = vmatprep.subr.bf16.mxu0 %v22278_v28  ;;  %13550 = vmatprep.subr.bf16.mxu1 %v22281_v51  ;;  %v22345_v28 = vld [vmem:[%s29694_s10 + $0xdc8] ss:$16 sps:$4 sm:$0xff]   ;;  %v22350_v51 = vld [vmem:[%s29694_s10 + $0x6c] ss:$16 sps:$4 sm:$0xff]  }
 0x945   :  { %11152 = vmatpush1.bf16.msra.mxu0 %v22276_v63  ;;  %13551 = vmatpush1.bf16.msra.mxu1 %v22279_v3  ;;  %v22348_v63 = vld [vmem:[%s29694_s10 + $0x68] ss:$16 sps:$4 sm:$0xff]  }
 0x946   :  { %11153 = vmatprep.subr.bf16.mxu0 %v22284_v43  ;;  %13552 = vmatprep.subr.bf16.mxu1 %v22287_v33  ;;  %v22351_v3 = vld [vmem:[%s29694_s10 + $0xde8] ss:$16 sps:$4 sm:$0xff]   ;;  %v22356_v43 = vld [vmem:[%s29694_s10 + $0x8c] ss:$16 sps:$4 sm:$0xff]   ;;  %v22359_v33 = vld [vmem:[%s29694_s10 + $0xe04] ss:$16 sps:$4 sm:$0xff]  }
 0x949   :  { %11154 = vmatpush1.bf16.msra.mxu0 %v22282_v35  ;;  %13553 = vmatpush1.bf16.msra.mxu1 %v22285_v37  ;;  %v22354_v35 = vld [vmem:[%s29694_s10 + $0x88] ss:$16 sps:$4 sm:$0xff]   ;;  %v22357_v37 = vld [vmem:[%s29694_s10 + $0xe00] ss:$16 sps:$4 sm:$0xff]  }
 0x94a   :  { %11155 = vmatprep.subr.bf16.mxu0 %v22290_v53  ;;  %13554 = vmatprep.subr.bf16.mxu1 %v22293_v18  ;;  %v22362_v53 = vld [vmem:[%s29694_s10 + $0xac] ss:$16 sps:$4 sm:$0xff]   ;;  %v22365_v18 = vld [vmem:[%s29694_s10 + $0xe24] ss:$16 sps:$4 sm:$0xff]  }
 0x94d   :  { %11156 = vmatpush1.bf16.msra.mxu0 %v22288_v46  ;;  %13555 = vmatpush1.bf16.msra.mxu1 %v22291_v13  ;;  %v22360_v46 = vld [vmem:[%s29694_s10 + $0xa8] ss:$16 sps:$4 sm:$0xff]   ;;  %v22363_v13 = vld [vmem:[%s29694_s10 + $0xe20] ss:$16 sps:$4 sm:$0xff]  }
 0x94e   :  { %11157 = vmatprep.subr.bf16.mxu0 %v22296_v25  ;;  %13556 = vmatprep.subr.bf16.mxu1 %v22299_v23  ;;  %v26987_v25 = vpack.c.bf16 %v26585_v41, %v26585_v41  ;;  %v22371_v23 = vld [vmem:[%s29694_s10 + $0xe44] ss:$16 sps:$4 sm:$0xff]   ;;  %v22369_v41 = vld [vmem:[%s29694_s10 + $0xe40] ss:$16 sps:$4 sm:$0xff]  }
 0x951   :  { %11158 = vmatpush1.bf16.msra.mxu0 %v22294_v42  ;;  %13557 = vmatpush1.bf16.msra.mxu1 %v22297_v7  ;;  %v22366_v42 = vld [vmem:[%s29694_s10 + $0xc8] ss:$16 sps:$4 sm:$0xff]   ;;  %v22374_v7 = vld [vmem:[%s29694_s10 + $0xec] ss:$16 sps:$4 sm:$0xff]  }
 0x952   :  { %11159 = vmatprep.subr.bf16.mxu0 %v22302_v31  ;;  %13558 = vmatprep.subr.bf16.mxu1 %v22305_v47  ;;  %v22377_v31 = vld [vmem:[%s29694_s10 + $0xe64] ss:$16 sps:$4 sm:$0xff]   ;;  %v22372_v47 = vld [vmem:[%s29694_s10 + $0xe8] ss:$16 sps:$4 sm:$0xff]  }
 0x955   :  { %11160 = vmatpush1.bf16.msra.mxu0 %v22300_v55  ;;  %13559 = vmatpush1.bf16.msra.mxu1 %v22303_v5  ;;  %v22375_v55 = vld [vmem:[%s29694_s10 + $0xe60] ss:$16 sps:$4 sm:$0xff]   ;;  %v22380_v5 = vld [vmem:[%s29694_s10 + $0x10c] ss:$16 sps:$4 sm:$0xff]  }
 0x956   :  { %11161 = vmatprep.subr.bf16.mxu0 %v22308_v49  ;;  %13560 = vmatprep.subr.bf16.mxu1 %v22311_v59  ;;  %v22383_v49 = vld [vmem:[%s29694_s10 + $0xe84] ss:$16 sps:$4 sm:$0xff]   ;;  %v22378_v59 = vld [vmem:[%s29694_s10 + $0x108] ss:$16 sps:$4 sm:$0xff]  }
 0x959   :  { %11162 = vmatpush1.bf16.msra.mxu0 %v22306_v17  ;;  %13561 = vmatpush1.bf16.msra.mxu1 %v22309_v22  ;;  %v22381_v17 = vld [vmem:[%s29694_s10 + $0xe80] ss:$16 sps:$4 sm:$0xff]   ;;  %v22386_v22 = vld [vmem:[%s29694_s10 + $0x12c] ss:$16 sps:$4 sm:$0xff]  }
 0x95a   :  { %11163 = vmatprep.subr.bf16.mxu0 %v22314_v16  ;;  %13562 = vmatprep.subr.bf16.mxu1 %v22317_v9  ;;  %v22389_v16 = vld [vmem:[%s29694_s10 + $0xea4] ss:$16 sps:$4 sm:$0xff]   ;;  %v22384_v9 = vld [vmem:[%s29694_s10 + $0x128] ss:$16 sps:$4 sm:$0xff]  }
 0x95d   :  { %11164 = vmatpush1.bf16.msra.mxu0 %v22312_v39  ;;  %13563 = vmatpush1.bf16.msra.mxu1 %v22315_v4  ;;  %v22387_v39 = vld [vmem:[%s29694_s10 + $0xea0] ss:$16 sps:$4 sm:$0xff]   ;;  %v22392_v4 = vld [vmem:[%s29694_s10 + $0x14c] ss:$16 sps:$4 sm:$0xff]  }
 0x95e   :  { %11165 = vmatprep.subr.bf16.mxu0 %v22320_v8  ;;  %13564 = vmatprep.subr.bf16.mxu1 %v22323_v1  ;;  %v22395_v8 = vld [vmem:[%s29694_s10 + $0xec4] ss:$16 sps:$4 sm:$0xff]   ;;  %v22390_v1 = vld [vmem:[%s29694_s10 + $0x148] ss:$16 sps:$4 sm:$0xff]  }
 0x961   :  { %11166 = vmatpush1.bf16.msra.mxu0 %v22318_v52  ;;  %13565 = vmatpush1.bf16.msra.mxu1 %v22321_v15  ;;  %v22393_v52 = vld [vmem:[%s29694_s10 + $0xec0] ss:$16 sps:$4 sm:$0xff]   ;;  %v22398_v15 = vld [vmem:[%s29694_s10 + $0x16c] ss:$16 sps:$4 sm:$0xff]  }
 0x962   :  { %11167 = vmatprep.subr.bf16.mxu0 %v22326_v40  ;;  %13566 = vmatprep.subr.bf16.mxu1 %v22329_v58  ;;  %v22401_v40 = vld [vmem:[%s29694_s10 + $0xee4] ss:$16 sps:$4 sm:$0xff]   ;;  %v22396_v58 = vld [vmem:[%s29694_s10 + $0x168] ss:$16 sps:$4 sm:$0xff]  }
 0x965   :  { %11168 = vmatpush1.bf16.msra.mxu0 %v22324_v29  ;;  %13567 = vmatpush1.bf16.msra.mxu1 %v22327_v10  ;;  %v22399_v29 = vld [vmem:[%s29694_s10 + $0xee0] ss:$16 sps:$4 sm:$0xff]   ;;  %v22404_v10 = vld [vmem:[%s29694_s10 + $0x18c] ss:$16 sps:$4 sm:$0xff]  }
 0x966   :  { %11178 = vmatprep.subr.bf16.mxu0 %v22332_v45  ;;  %13568 = vmatprep.subr.bf16.mxu1 %v22335_v44  ;;  %v22407_v45 = vld [vmem:[%s29694_s10 + $0xf04] ss:$16 sps:$4 sm:$0xff]   ;;  %v22402_v44 = vld [vmem:[%s29694_s10 + $0x188] ss:$16 sps:$4 sm:$0xff]  }
 0x968   :  { %11170 = vmatmul.mubr.bf16.vlgmr.msra.gmra.mrb[104].mxu0 %v26920_v20 }
 0x969   :  { %11179 = vmatpush1.bf16.msra.mxu0 %v22330_v57  ;;  %13569 = vmatpush1.bf16.msra.mxu1 %v22333_v62  ;;  %v22405_v57 = vld [vmem:[%s29694_s10 + $0xf00] ss:$16 sps:$4 sm:$0xff]   ;;  %v22410_v62 = vld [vmem:[%s29694_s10 + $0x1ac] ss:$16 sps:$4 sm:$0xff]  }
 0x96a   :  { %11180 = vmatprep.subr.bf16.mxu0 %v22338_v56  ;;  %13570 = vmatprep.subr.bf16.mxu1 %v22341_v14  ;;  %v22413_v56 = vld [vmem:[%s29694_s10 + $0xf24] ss:$16 sps:$4 sm:$0xff]   ;;  %v22408_v14 = vld [vmem:[%s29694_s10 + $0x1a8] ss:$16 sps:$4 sm:$0xff]  }
 0x96b   :  { %11210 = vmatprep.mubr.bf16.mxu0 %v26723_v60  ;;  %v22353_v60 = vld [vmem:[%s29694_s10 + $0xdec] ss:$16 sps:$4 sm:$0xff]  }
 0x96d   :  { %11181 = vmatpush1.bf16.msra.mxu0 %v22336_v34  ;;  %13571 = vmatpush1.bf16.msra.mxu1 %v22339_v38  ;;  %v22411_v34 = vld [vmem:[%s29694_s10 + $0xf20] ss:$16 sps:$4 sm:$0xff]   ;;  %v22416_v38 = vld [vmem:[%s29694_s10 + $0x1cc] ss:$16 sps:$4 sm:$0xff]  }
 0x96e   :  { %11182 = vmatprep.subr.bf16.mxu0 %v22344_v12  ;;  %13572 = vmatprep.subr.bf16.mxu1 %v22347_v2  ;;  %v22419_v12 = vld [vmem:[%s29694_s10 + $0xf44] ss:$16 sps:$4 sm:$0xff]   ;;  %v22414_v2 = vld [vmem:[%s29694_s10 + $0x1c8] ss:$16 sps:$4 sm:$0xff]  }
 0x971   :  { %11183 = vmatpush1.bf16.msra.mxu0 %v22342_v36  ;;  %13573 = vmatpush1.bf16.msra.mxu1 %v22345_v28  ;;  %v22417_v36 = vld [vmem:[%s29694_s10 + $0xf40] ss:$16 sps:$4 sm:$0xff]   ;;  %v22422_v28 = vld [vmem:[%s29694_s10 + $0x1ec] ss:$16 sps:$4 sm:$0xff]  }
 0x972   :  { %11184 = vmatprep.subr.bf16.mxu0 %v22350_v51  ;;  %13574 = vmatprep.subr.bf16.mxu1 %v22353_v60  ;;  %v22425_v51 = vld [vmem:[%s29694_s10 + $0xf64] ss:$16 sps:$4 sm:$0xff]   ;;  %v22420_v60 = vld [vmem:[%s29694_s10 + $0x1e8] ss:$16 sps:$4 sm:$0xff]  }
 0x975   :  { %11185 = vmatpush1.bf16.msra.mxu0 %v22348_v63  ;;  %13575 = vmatpush1.bf16.msra.mxu1 %v22351_v3  ;;  %v22423_v63 = vld [vmem:[%s29694_s10 + $0xf60] ss:$16 sps:$4 sm:$0xff]   ;;  %v22428_v3 = vld [vmem:[%s29694_s10 + $0x404] ss:$16 sps:$4 sm:$0xff]  }
 0x976   :  { %11186 = vmatprep.subr.bf16.mxu0 %v22356_v43  ;;  %13977 = vmatprep.subr.bf16.mxu1 %v22359_v33  ;;  %v22431_v43 = vld [vmem:[%s29694_s10 + $0xf84] ss:$16 sps:$4 sm:$0xff]   ;;  %v22426_v33 = vld [vmem:[%s29694_s10 + $0x400] ss:$16 sps:$4 sm:$0xff]  }
 0x978   :  { %13577 = vmatmul.mubr.bf16.vlgmr.msra.gmra.mrb[16].mxu1 %v26764_v6  ;;  %v22368_v6 = vld [vmem:[%s29694_s10 + $0xcc] ss:$16 sps:$4 sm:$0xff]  }
 0x979   :  { %11187 = vmatpush1.bf16.msra.mxu0 %v22354_v35  ;;  %13978 = vmatpush1.bf16.msra.mxu1 %v22357_v37  ;;  %v22429_v35 = vld [vmem:[%s29694_s10 + $0xf80] ss:$16 sps:$4 sm:$0xff]   ;;  %v22434_v37 = vld [vmem:[%s29694_s10 + $0x424] ss:$16 sps:$4 sm:$0xff]  }
 0x97a   :  { %11188 = vmatprep.subr.bf16.mxu0 %v22362_v53  ;;  %13979 = vmatprep.subr.bf16.mxu1 %v22365_v18  ;;  %v22437_v53 = vld [vmem:[%s29694_s10 + $0xfa4] ss:$16 sps:$4 sm:$0xff]   ;;  %v27131_v18 = vpack.c.bf16 %v26524_v0, %v26524_v0 }
 0x97b   :  { %14009 = vmatprep.mubr.bf16.mxu1 %v26987_v25  ;;  %v22443_v0 = vld [vmem:[%s29694_s10 + $0xfc4] ss:$16 sps:$4 sm:$0xff]  }
 0x97d   :  { %11189 = vmatpush1.bf16.msra.mxu0 %v22360_v46  ;;  %13980 = vmatpush1.bf16.msra.mxu1 %v22363_v13  ;;  %v22432_v46 = vld [vmem:[%s29694_s10 + $0x420] ss:$16 sps:$4 sm:$0xff]  }
 0x97e   :  { %11190 = vmatprep.subr.bf16.mxu0 %v22368_v6  ;;  %13981 = vmatprep.subr.bf16.mxu1 %v22371_v23  ;;  %v22435_v13 = vld [vmem:[%s29694_s10 + $0xfa0] ss:$16 sps:$4 sm:$0xff]  }
 0x97f   :  { %v22438_v6 = vld [vmem:[%s29694_s10 + $0x440] ss:$16 sps:$4 sm:$0xff]  }
 0x980   :  { %v22441_v23 = vld [vmem:[%s29694_s10 + $0xfc0] ss:$16 sps:$4 sm:$0xff]  }
 0x981   :  { %11191 = vmatpush1.bf16.msra.mxu0 %v22366_v42  ;;  %13982 = vmatpush1.bf16.msra.mxu1 %v22369_v41  ;;  %v22446_v42 = vld [vmem:[%s29694_s10 + $0x464] ss:$16 sps:$4 sm:$0xff]  }
 0x982   :  { %11192 = vmatprep.subr.bf16.mxu0 %v22374_v7  ;;  %13983 = vmatprep.subr.bf16.mxu1 %v22377_v31  ;;  %v22449_v41 = vld [vmem:[%s29694_s10 + $0xfe4] ss:$16 sps:$4 sm:$0xff]   ;;  %v22444_v7 = vld [vmem:[%s29694_s10 + $0x460] ss:$16 sps:$4 sm:$0xff]  }
 0x983   :  { %v22447_v31 = vld [vmem:[%s29694_s10 + $0xfe0] ss:$16 sps:$4 sm:$0xff]  }
 0x985   :  { %11193 = vmatpush1.bf16.msra.mxu0 %v22372_v47  ;;  %13984 = vmatpush1.bf16.msra.mxu1 %v22375_v55  ;;  %v27164_v47 = vpop.f32.mrb[88].mxu0  ;;  %v22452_v55 = vld [vmem:[%s29694_s10 + $0x484] ss:$16 sps:$4 sm:$0xff]  }
 0x986   :  { %11194 = vmatprep.subr.bf16.mxu0 %v22380_v5  ;;  %13985 = vmatprep.subr.bf16.mxu1 %v22383_v49  ;;  %v22455_v5 = vld [vmem:[%s29694_s10 + $0xe0c] ss:$16 sps:$4 sm:$0xff]   ;;  %v27172_v49 = vpop.f32.mrb[89].mxu0 }
 0x989   :  { %11195 = vmatpush1.bf16.msra.mxu0 %v22378_v59  ;;  %13986 = vmatpush1.bf16.msra.mxu1 %v22381_v17  ;;  %v22450_v59 = vld [vmem:[%s29694_s10 + $0x480] ss:$16 sps:$4 sm:$0xff]   ;;  %v22453_v17 = vld [vmem:[%s29694_s10 + $0xe08] ss:$16 sps:$4 sm:$0xff]  }
 0x98a   :  { %11196 = vmatprep.subr.bf16.mxu0 %v22386_v22  ;;  %13987 = vmatprep.subr.bf16.mxu1 %v22389_v16  ;;  %v27182_v22 = vpack.c.bf16 %v26583_v50, %v26583_v50  ;;  %v22458_v16 = vld [vmem:[%s29694_s10 + $0x4a4] ss:$16 sps:$4 sm:$0xff]   ;;  %v22459_v50 = vld [vmem:[%s29694_s10 + $0xe28] ss:$16 sps:$4 sm:$0xff]  }
 0x98d   :  { %11197 = vmatpush1.bf16.msra.mxu0 %v22384_v9  ;;  %13988 = vmatpush1.bf16.msra.mxu1 %v22387_v39  ;;  %v22461_v9 = vld [vmem:[%s29694_s10 + $0xe2c] ss:$16 sps:$4 sm:$0xff]   ;;  %v22456_v39 = vld [vmem:[%s29694_s10 + $0x4a0] ss:$16 sps:$4 sm:$0xff]  }
 0x98e   :  { %11198 = vmatprep.subr.bf16.mxu0 %v22392_v4  ;;  %13989 = vmatprep.subr.bf16.mxu1 %v22395_v8  ;;  %v22464_v4 = vld [vmem:[%s29694_s10 + $0x4c4] ss:$16 sps:$4 sm:$0xff]   ;;  %v22467_v8 = vld [vmem:[%s29694_s10 + $0xe4c] ss:$16 sps:$4 sm:$0xff]  }
 0x991   :  { %11199 = vmatpush1.bf16.msra.mxu0 %v22390_v1  ;;  %13990 = vmatpush1.bf16.msra.mxu1 %v22393_v52  ;;  %v22462_v1 = vld [vmem:[%s29694_s10 + $0x4c0] ss:$16 sps:$4 sm:$0xff]   ;;  %v22465_v52 = vld [vmem:[%s29694_s10 + $0xe48] ss:$16 sps:$4 sm:$0xff]  }
 0x992   :  { %11200 = vmatprep.subr.bf16.mxu0 %v22398_v15  ;;  %13991 = vmatprep.subr.bf16.mxu1 %v22401_v40  ;;  %v22470_v15 = vld [vmem:[%s29694_s10 + $0x4e4] ss:$16 sps:$4 sm:$0xff]   ;;  %v22468_v40 = vld [vmem:[%s29694_s10 + $0x4e0] ss:$16 sps:$4 sm:$0xff]  }
 0x995   :  { %11201 = vmatpush1.bf16.msra.mxu0 %v22396_v58  ;;  %13992 = vmatpush1.bf16.msra.mxu1 %v22399_v29  ;;  %v22471_v58 = vld [vmem:[%s29694_s10 + $0xe68] ss:$16 sps:$4 sm:$0xff]   ;;  %v22476_v29 = vld [vmem:[%s29694_s10 + $0x504] ss:$16 sps:$4 sm:$0xff]  }
 0x996   :  { %11202 = vmatprep.subr.bf16.mxu0 %v22404_v10  ;;  %13993 = vmatprep.subr.bf16.mxu1 %v22407_v45  ;;  %v22479_v10 = vld [vmem:[%s29694_s10 + $0xe8c] ss:$16 sps:$4 sm:$0xff]   ;;  %v22474_v45 = vld [vmem:[%s29694_s10 + $0x500] ss:$16 sps:$4 sm:$0xff]  }
 0x999   :  { %11203 = vmatpush1.bf16.msra.mxu0 %v22402_v44  ;;  %13994 = vmatpush1.bf16.msra.mxu1 %v22405_v57  ;;  %v22477_v44 = vld [vmem:[%s29694_s10 + $0xe88] ss:$16 sps:$4 sm:$0xff]   ;;  %v22482_v57 = vld [vmem:[%s29694_s10 + $0x524] ss:$16 sps:$4 sm:$0xff]  }
 0x99a   :  { %11204 = vmatprep.subr.bf16.mxu0 %v22410_v62  ;;  %13995 = vmatprep.subr.bf16.mxu1 %v22413_v56  ;;  %v22485_v62 = vld [vmem:[%s29694_s10 + $0xeac] ss:$16 sps:$4 sm:$0xff]   ;;  %v27240_v56 = vpop.f32.mrb[90].mxu0 }
 0x99d   :  { %11205 = vmatpush1.bf16.msra.mxu0 %v22408_v14  ;;  %13996 = vmatpush1.bf16.msra.mxu1 %v22411_v34  ;;  %v27242_v14 = vpop.f32.mrb[91].mxu0  ;;  %v22480_v34 = vld [vmem:[%s29694_s10 + $0x520] ss:$16 sps:$4 sm:$0xff]  }
 0x99e   :  { %11206 = vmatprep.subr.bf16.mxu0 %v22416_v38  ;;  %13997 = vmatprep.subr.bf16.mxu1 %v22419_v12  ;;  %v22483_v38 = vld [vmem:[%s29694_s10 + $0xea8] ss:$16 sps:$4 sm:$0xff]   ;;  %v22488_v12 = vld [vmem:[%s29694_s10 + $0x544] ss:$16 sps:$4 sm:$0xff]  }
 0x9a1   :  { %11207 = vmatpush1.bf16.msra.mxu0 %v22414_v2  ;;  %13998 = vmatpush1.bf16.msra.mxu1 %v22417_v36  ;;  %v22491_v2 = vld [vmem:[%s29694_s10 + $0xecc] ss:$16 sps:$4 sm:$0xff]   ;;  %v22486_v36 = vld [vmem:[%s29694_s10 + $0x540] ss:$16 sps:$4 sm:$0xff]  }
 0x9a2   :  { %11208 = vmatprep.subr.bf16.mxu0 %v22422_v28  ;;  %13999 = vmatprep.subr.bf16.mxu1 %v22425_v51  ;;  %v22489_v28 = vld [vmem:[%s29694_s10 + $0xec8] ss:$16 sps:$4 sm:$0xff]   ;;  %v22494_v51 = vld [vmem:[%s29694_s10 + $0x564] ss:$16 sps:$4 sm:$0xff]  }
 0x9a5   :  { %11209 = vmatpush1.bf16.msra.mxu0 %v22420_v60  ;;  %14000 = vmatpush1.bf16.msra.mxu1 %v22423_v63  ;;  %v22497_v60 = vld [vmem:[%s29694_s10 + $0xeec] ss:$16 sps:$4 sm:$0xff]   ;;  %v22492_v63 = vld [vmem:[%s29694_s10 + $0x560] ss:$16 sps:$4 sm:$0xff]  }
 0x9a6   :  { %11607 = vmatprep.subr.bf16.mxu0 %v22428_v3  ;;  %14001 = vmatprep.subr.bf16.mxu1 %v22431_v43  ;;  %v22495_v3 = vld [vmem:[%s29694_s10 + $0xee8] ss:$16 sps:$4 sm:$0xff]   ;;  %v22500_v43 = vld [vmem:[%s29694_s10 + $0x584] ss:$16 sps:$4 sm:$0xff]  }
 0x9a8   :  { %11211 = vmatmul.mubr.bf16.vlgmr.msra.gmra.mrb[108].mxu0 %v26920_v20  ;;  %v22440_v20 = vld [vmem:[%s29694_s10 + $0x444] ss:$16 sps:$4 sm:$0xff]  }
 0x9a9   :  { %11608 = vmatpush1.bf16.msra.mxu0 %v22426_v33  ;;  %14002 = vmatpush1.bf16.msra.mxu1 %v22429_v35  ;;  %v22503_v33 = vld [vmem:[%s29694_s10 + $0xf0c] ss:$16 sps:$4 sm:$0xff]   ;;  %v22498_v35 = vld [vmem:[%s29694_s10 + $0x580] ss:$16 sps:$4 sm:$0xff]  }
 0x9aa   :  { %11609 = vmatprep.subr.bf16.mxu0 %v22434_v37  ;;  %14003 = vmatprep.subr.bf16.mxu1 %v22437_v53  ;;  %v22501_v37 = vld [vmem:[%s29694_s10 + $0xf08] ss:$16 sps:$4 sm:$0xff]   ;;  %v22506_v53 = vld [vmem:[%s29694_s10 + $0x5a4] ss:$16 sps:$4 sm:$0xff]  }
 0x9ab   :  { %11639 = vmatprep.mubr.bf16.mxu0 %v27131_v18 }
 0x9ad   :  { %11610 = vmatpush1.bf16.msra.mxu0 %v22432_v46  ;;  %14004 = vmatpush1.bf16.msra.mxu1 %v22435_v13  ;;  %v22509_v46 = vld [vmem:[%s29694_s10 + $0xf2c] ss:$16 sps:$4 sm:$0xff]   ;;  %v22504_v13 = vld [vmem:[%s29694_s10 + $0x5a0] ss:$16 sps:$4 sm:$0xff]  }
 0x9ae   :  { %11611 = vmatprep.subr.bf16.mxu0 %v22440_v20  ;;  %14005 = vmatprep.subr.bf16.mxu1 %v22443_v0  ;;  %v22507_v20 = vld [vmem:[%s29694_s10 + $0xf28] ss:$16 sps:$4 sm:$0xff]   ;;  %v22512_v0 = vld [vmem:[%s29694_s10 + $0x5c4] ss:$16 sps:$4 sm:$0xff]  }
 0x9b1   :  { %11612 = vmatpush1.bf16.msra.mxu0 %v22438_v6  ;;  %14006 = vmatpush1.bf16.msra.mxu1 %v22441_v23  ;;  %v22515_v6 = vld [vmem:[%s29694_s10 + $0xf4c] ss:$16 sps:$4 sm:$0xff]   ;;  %v22510_v23 = vld [vmem:[%s29694_s10 + $0x5c0] ss:$16 sps:$4 sm:$0xff]  }
 0x9b2   :  { %11613 = vmatprep.subr.bf16.mxu0 %v22446_v42  ;;  %14007 = vmatprep.subr.bf16.mxu1 %v22449_v41  ;;  %v22513_v42 = vld [vmem:[%s29694_s10 + $0xf48] ss:$16 sps:$4 sm:$0xff]   ;;  %v22518_v41 = vld [vmem:[%s29694_s10 + $0x5e4] ss:$16 sps:$4 sm:$0xff]  }
 0x9b5   :  { %11614 = vmatpush1.bf16.msra.mxu0 %v22444_v7  ;;  %14008 = vmatpush1.bf16.msra.mxu1 %v22447_v31  ;;  %v22521_v7 = vld [vmem:[%s29694_s10 + $0xf6c] ss:$16 sps:$4 sm:$0xff]   ;;  %v22516_v31 = vld [vmem:[%s29694_s10 + $0x5e0] ss:$16 sps:$4 sm:$0xff]  }
 0x9b6   :  { %11615 = vmatprep.subr.bf16.mxu0 %v22452_v55  ;;  %14018 = vmatprep.subr.bf16.mxu1 %v22455_v5  ;;  %v22519_v55 = vld [vmem:[%s29694_s10 + $0xf68] ss:$16 sps:$4 sm:$0xff]   ;;  %v22524_v5 = vld [vmem:[%s29694_s10 + $0x40c] ss:$16 sps:$4 sm:$0xff]  }
 0x9b8   :  { %14010 = vmatmul.mubr.bf16.vlgmr.msra.gmra.mrb[20].mxu1 %v27182_v22 }
 0x9b9   :  { %11616 = vmatpush1.bf16.msra.mxu0 %v22450_v59  ;;  %14019 = vmatpush1.bf16.msra.mxu1 %v22453_v17  ;;  %v22527_v59 = vld [vmem:[%s29694_s10 + $0xf8c] ss:$16 sps:$4 sm:$0xff]   ;;  %v22522_v17 = vld [vmem:[%s29694_s10 + $0x408] ss:$16 sps:$4 sm:$0xff]  }
 0x9ba   :  { %11617 = vmatprep.subr.bf16.mxu0 %v22458_v16  ;;  %14020 = vmatprep.subr.bf16.mxu1 %v22461_v9  ;;  %v22525_v16 = vld [vmem:[%s29694_s10 + $0xf88] ss:$16 sps:$4 sm:$0xff]   ;;  %v27336_v9 = vpack.c.bf16 %v26522_v48, %v26522_v48 }
 0x9bb   :  { %14050 = vmatprep.mubr.bf16.mxu1 %v26987_v25  ;;  %v22473_v25 = vld [vmem:[%s29694_s10 + $0xe6c] ss:$16 sps:$4 sm:$0xff]   ;;  %v22531_v48 = vld [vmem:[%s29694_s10 + $0xfa8] ss:$16 sps:$4 sm:$0xff]  }
 0x9bd   :  { %11618 = vmatpush1.bf16.msra.mxu0 %v22456_v39  ;;  %14021 = vmatpush1.bf16.msra.mxu1 %v22459_v50  ;;  %v22530_v39 = vld [vmem:[%s29694_s10 + $0x42c] ss:$16 sps:$4 sm:$0xff]  }
 0x9be   :  { %11619 = vmatprep.subr.bf16.mxu0 %v22464_v4  ;;  %14022 = vmatprep.subr.bf16.mxu1 %v22467_v8  ;;  %v22533_v50 = vld [vmem:[%s29694_s10 + $0xfac] ss:$16 sps:$4 sm:$0xff]   ;;  %v22528_v4 = vld [vmem:[%s29694_s10 + $0x428] ss:$16 sps:$4 sm:$0xff]  }
 0x9bf   :  { %v22536_v8 = vld [vmem:[%s29694_s10 + $0x44c] ss:$16 sps:$4 sm:$0xff]  }
 0x9c1   :  { %11620 = vmatpush1.bf16.msra.mxu0 %v22462_v1  ;;  %14023 = vmatpush1.bf16.msra.mxu1 %v22465_v52  ;;  %v22539_v1 = vld [vmem:[%s29694_s10 + $0xfcc] ss:$16 sps:$4 sm:$0xff]   ;;  %v22534_v52 = vld [vmem:[%s29694_s10 + $0x448] ss:$16 sps:$4 sm:$0xff]  }
 0x9c2   :  { %11621 = vmatprep.subr.bf16.mxu0 %v22470_v15  ;;  %14024 = vmatprep.subr.bf16.mxu1 %v22473_v25  ;;  %v22537_v15 = vld [vmem:[%s29694_s10 + $0xfc8] ss:$16 sps:$4 sm:$0xff]   ;;  %v22542_v25 = vld [vmem:[%s29694_s10 + $0x46c] ss:$16 sps:$4 sm:$0xff]  }
 0x9c5   :  { %11622 = vmatpush1.bf16.msra.mxu0 %v22468_v40  ;;  %14025 = vmatpush1.bf16.msra.mxu1 %v22471_v58  ;;  %v22540_v40 = vld [vmem:[%s29694_s10 + $0x468] ss:$16 sps:$4 sm:$0xff]  }
 0x9c6   :  { %11623 = vmatprep.subr.bf16.mxu0 %v22476_v29  ;;  %14026 = vmatprep.subr.bf16.mxu1 %v22479_v10  ;;  %v22543_v58 = vld [vmem:[%s29694_s10 + $0xfe8] ss:$16 sps:$4 sm:$0xff]   ;;  %v22548_v29 = vld [vmem:[%s29694_s10 + $0x48c] ss:$16 sps:$4 sm:$0xff]   ;;  %v22551_v10 = vld [vmem:[%s29694_s10 + $0x1004] ss:$16 sps:$4 sm:$0xff]  }
 0x9c9   :  { %11624 = vmatpush1.bf16.msra.mxu0 %v22474_v45  ;;  %14027 = vmatpush1.bf16.msra.mxu1 %v22477_v44  ;;  %v22546_v45 = vld [vmem:[%s29694_s10 + $0x488] ss:$16 sps:$4 sm:$0xff]   ;;  %v22549_v44 = vld [vmem:[%s29694_s10 + $0x1000] ss:$16 sps:$4 sm:$0xff]  }
 0x9ca   :  { %11625 = vmatprep.subr.bf16.mxu0 %v22482_v57  ;;  %14028 = vmatprep.subr.bf16.mxu1 %v22485_v62  ;;  %v22554_v57 = vld [vmem:[%s29694_s10 + $0x4ac] ss:$16 sps:$4 sm:$0xff]   ;;  %v22557_v62 = vld [vmem:[%s29694_s10 + $0x1024] ss:$16 sps:$4 sm:$0xff]  }
 0x9cd   :  { %11626 = vmatpush1.bf16.msra.mxu0 %v22480_v34  ;;  %14029 = vmatpush1.bf16.msra.mxu1 %v22483_v38  ;;  %v27396_v34 = vpack.c.bf16 %v27172_v49, %v27172_v49  ;;  %v22552_v38 = vld [vmem:[%s29694_s10 + $0x4a8] ss:$16 sps:$4 sm:$0xff]   ;;  %v22563_v49 = vld [vmem:[%s29694_s10 + $0x1044] ss:$16 sps:$4 sm:$0xff]  }
 0x9ce   :  { %11627 = vmatprep.subr.bf16.mxu0 %v22488_v12  ;;  %14030 = vmatprep.subr.bf16.mxu1 %v22491_v2  ;;  %v22555_v12 = vld [vmem:[%s29694_s10 + $0x1020] ss:$16 sps:$4 sm:$0xff]   ;;  %v22560_v2 = vld [vmem:[%s29694_s10 + $0x4cc] ss:$16 sps:$4 sm:$0xff]  }
 0x9d1   :  { %11628 = vmatpush1.bf16.msra.mxu0 %v22486_v36  ;;  %14031 = vmatpush1.bf16.msra.mxu1 %v22489_v28  ;;  %v22561_v36 = vld [vmem:[%s29694_s10 + $0x1040] ss:$16 sps:$4 sm:$0xff]   ;;  %v22566_v28 = vld [vmem:[%s29694_s10 + $0x4ec] ss:$16 sps:$4 sm:$0xff]  }
 0x9d2   :  { %11629 = vmatprep.subr.bf16.mxu0 %v22494_v51  ;;  %14032 = vmatprep.subr.bf16.mxu1 %v22497_v60  ;;  %v22569_v51 = vld [vmem:[%s29694_s10 + $0x1064] ss:$16 sps:$4 sm:$0xff]   ;;  %v22564_v60 = vld [vmem:[%s29694_s10 + $0x4e8] ss:$16 sps:$4 sm:$0xff]  }
 0x9d5   :  { %11630 = vmatpush1.bf16.msra.mxu0 %v22492_v63  ;;  %14033 = vmatpush1.bf16.msra.mxu1 %v22495_v3  ;;  %v22567_v63 = vld [vmem:[%s29694_s10 + $0x1060] ss:$16 sps:$4 sm:$0xff]   ;;  %v22572_v3 = vld [vmem:[%s29694_s10 + $0x50c] ss:$16 sps:$4 sm:$0xff]  }
 0x9d6   :  { %11631 = vmatprep.subr.bf16.mxu0 %v22500_v43  ;;  %14034 = vmatprep.subr.bf16.mxu1 %v22503_v33  ;;  %v22575_v43 = vld [vmem:[%s29694_s10 + $0x1084] ss:$16 sps:$4 sm:$0xff]   ;;  %v22570_v33 = vld [vmem:[%s29694_s10 + $0x508] ss:$16 sps:$4 sm:$0xff]  }
 0x9d9   :  { %11632 = vmatpush1.bf16.msra.mxu0 %v22498_v35  ;;  %14035 = vmatpush1.bf16.msra.mxu1 %v22501_v37  ;;  %v22573_v35 = vld [vmem:[%s29694_s10 + $0x1080] ss:$16 sps:$4 sm:$0xff]   ;;  %v22578_v37 = vld [vmem:[%s29694_s10 + $0x52c] ss:$16 sps:$4 sm:$0xff]  }
 0x9da   :  { %11633 = vmatprep.subr.bf16.mxu0 %v22506_v53  ;;  %14036 = vmatprep.subr.bf16.mxu1 %v22509_v46  ;;  %v22581_v53 = vld [vmem:[%s29694_s10 + $0x10a4] ss:$16 sps:$4 sm:$0xff]   ;;  %v22576_v46 = vld [vmem:[%s29694_s10 + $0x528] ss:$16 sps:$4 sm:$0xff]  }
 0x9dd   :  { %11634 = vmatpush1.bf16.msra.mxu0 %v22504_v13  ;;  %14037 = vmatpush1.bf16.msra.mxu1 %v22507_v20  ;;  %v22579_v13 = vld [vmem:[%s29694_s10 + $0x10a0] ss:$16 sps:$4 sm:$0xff]   ;;  %v22584_v20 = vld [vmem:[%s29694_s10 + $0x54c] ss:$16 sps:$4 sm:$0xff]  }
 0x9de   :  { %11635 = vmatprep.subr.bf16.mxu0 %v22512_v0  ;;  %14038 = vmatprep.subr.bf16.mxu1 %v22515_v6  ;;  %v22587_v0 = vld [vmem:[%s29694_s10 + $0x10c4] ss:$16 sps:$4 sm:$0xff]   ;;  %v22582_v6 = vld [vmem:[%s29694_s10 + $0x548] ss:$16 sps:$4 sm:$0xff]  }
 0x9e1   :  { %11636 = vmatpush1.bf16.msra.mxu0 %v22510_v23  ;;  %14039 = vmatpush1.bf16.msra.mxu1 %v22513_v42  ;;  %v22585_v23 = vld [vmem:[%s29694_s10 + $0x10c0] ss:$16 sps:$4 sm:$0xff]   ;;  %v22590_v42 = vld [vmem:[%s29694_s10 + $0x56c] ss:$16 sps:$4 sm:$0xff]  }
 0x9e2   :  { %11637 = vmatprep.subr.bf16.mxu0 %v22518_v41  ;;  %14040 = vmatprep.subr.bf16.mxu1 %v22521_v7  ;;  %v22593_v41 = vld [vmem:[%s29694_s10 + $0x10e4] ss:$16 sps:$4 sm:$0xff]   ;;  %v22588_v7 = vld [vmem:[%s29694_s10 + $0x568] ss:$16 sps:$4 sm:$0xff]  }
 0x9e5   :  { %11638 = vmatpush1.bf16.msra.mxu0 %v22516_v31  ;;  %14041 = vmatpush1.bf16.msra.mxu1 %v22519_v55  ;;  %v22591_v31 = vld [vmem:[%s29694_s10 + $0x10e0] ss:$16 sps:$4 sm:$0xff]   ;;  %v22596_v55 = vld [vmem:[%s29694_s10 + $0x58c] ss:$16 sps:$4 sm:$0xff]  }
 0x9e6   :  { %11648 = vmatprep.subr.bf16.mxu0 %v22524_v5  ;;  %14042 = vmatprep.subr.bf16.mxu1 %v22527_v59  ;;  %v22599_v5 = vld [vmem:[%s29694_s10 + $0x1104] ss:$16 sps:$4 sm:$0xff]   ;;  %v22594_v59 = vld [vmem:[%s29694_s10 + $0x588] ss:$16 sps:$4 sm:$0xff]  }
 0x9e8   :  { %11640 = vmatmul.mubr.bf16.vlgmr.msra.gmra.mrb[104].mxu0 %v27336_v9 }
 0x9e9   :  { %11649 = vmatpush1.bf16.msra.mxu0 %v22522_v17  ;;  %14043 = vmatpush1.bf16.msra.mxu1 %v22525_v16  ;;  %v22597_v17 = vld [vmem:[%s29694_s10 + $0x1100] ss:$16 sps:$4 sm:$0xff]   ;;  %v22602_v16 = vld [vmem:[%s29694_s10 + $0x5ac] ss:$16 sps:$4 sm:$0xff]  }
 0x9ea   :  { %11650 = vmatprep.subr.bf16.mxu0 %v22530_v39  ;;  %14044 = vmatprep.subr.bf16.mxu1 %v22533_v50  ;;  %v22605_v39 = vld [vmem:[%s29694_s10 + $0x1124] ss:$16 sps:$4 sm:$0xff]   ;;  %v22600_v50 = vld [vmem:[%s29694_s10 + $0x5a8] ss:$16 sps:$4 sm:$0xff]  }
 0x9eb   :  { %11680 = vmatprep.mubr.bf16.mxu0 %v27131_v18  ;;  %v22545_v18 = vld [vmem:[%s29694_s10 + $0xfec] ss:$16 sps:$4 sm:$0xff]  }
 0x9ed   :  { %11651 = vmatpush1.bf16.msra.mxu0 %v22528_v4  ;;  %14045 = vmatpush1.bf16.msra.mxu1 %v22531_v48  ;;  %v22603_v4 = vld [vmem:[%s29694_s10 + $0x1120] ss:$16 sps:$4 sm:$0xff]   ;;  %v22608_v48 = vld [vmem:[%s29694_s10 + $0x5cc] ss:$16 sps:$4 sm:$0xff]  }
 0x9ee   :  { %11652 = vmatprep.subr.bf16.mxu0 %v22536_v8  ;;  %14046 = vmatprep.subr.bf16.mxu1 %v22539_v1  ;;  %v22611_v8 = vld [vmem:[%s29694_s10 + $0x1144] ss:$16 sps:$4 sm:$0xff]   ;;  %v22606_v1 = vld [vmem:[%s29694_s10 + $0x5c8] ss:$16 sps:$4 sm:$0xff]  }
 0x9f1   :  { %11653 = vmatpush1.bf16.msra.mxu0 %v22534_v52  ;;  %14047 = vmatpush1.bf16.msra.mxu1 %v22537_v15  ;;  %v22609_v52 = vld [vmem:[%s29694_s10 + $0x1140] ss:$16 sps:$4 sm:$0xff]   ;;  %v22614_v15 = vld [vmem:[%s29694_s10 + $0x5ec] ss:$16 sps:$4 sm:$0xff]  }
 0x9f2   :  { %11654 = vmatprep.subr.bf16.mxu0 %v22542_v25  ;;  %14048 = vmatprep.subr.bf16.mxu1 %v22545_v18  ;;  %v22617_v25 = vld [vmem:[%s29694_s10 + $0x1164] ss:$16 sps:$4 sm:$0xff]   ;;  %v22612_v18 = vld [vmem:[%s29694_s10 + $0x5e8] ss:$16 sps:$4 sm:$0xff]  }
 0x9f5   :  { %11655 = vmatpush1.bf16.msra.mxu0 %v22540_v40  ;;  %14049 = vmatpush1.bf16.msra.mxu1 %v22543_v58  ;;  %v22615_v40 = vld [vmem:[%s29694_s10 + $0x1160] ss:$16 sps:$4 sm:$0xff]   ;;  %v22620_v58 = vld [vmem:[%s29694_s10 + $0x604] ss:$16 sps:$4 sm:$0xff]  }
 0x9f6   :  { %11656 = vmatprep.subr.bf16.mxu0 %v22548_v29  ;;  %14451 = vmatprep.subr.bf16.mxu1 %v22551_v10  ;;  %v22623_v29 = vld [vmem:[%s29694_s10 + $0x1184] ss:$16 sps:$4 sm:$0xff]   ;;  %v22618_v10 = vld [vmem:[%s29694_s10 + $0x600] ss:$16 sps:$4 sm:$0xff]  }
 0x9f8   :  { %14051 = vmatmul.mubr.bf16.vlgmr.msra.gmra.mrb[16].mxu1 %v27182_v22  ;;  %v22558_v22 = vld [vmem:[%s29694_s10 + $0x4c8] ss:$16 sps:$4 sm:$0xff]  }
 0x9f9   :  { %11657 = vmatpush1.bf16.msra.mxu0 %v22546_v45  ;;  %14452 = vmatpush1.bf16.msra.mxu1 %v22549_v44  ;;  %v22621_v45 = vld [vmem:[%s29694_s10 + $0x1180] ss:$16 sps:$4 sm:$0xff]   ;;  %v22626_v44 = vld [vmem:[%s29694_s10 + $0x624] ss:$16 sps:$4 sm:$0xff]  }
 0x9fa   :  { %11658 = vmatprep.subr.bf16.mxu0 %v22554_v57  ;;  %14453 = vmatprep.subr.bf16.mxu1 %v22557_v62  ;;  %v22629_v57 = vld [vmem:[%s29694_s10 + $0x11a4] ss:$16 sps:$4 sm:$0xff]   ;;  %v27547_v62 = vpack.c.bf16 %v26531_v11, %v26531_v11 }
 0x9fb   :  { %14483 = vmatprep.mubr.bf16.mxu1 %v27396_v34  ;;  %v22635_v11 = vld [vmem:[%s29694_s10 + $0x11c4] ss:$16 sps:$4 sm:$0xff]  }
 0x9fd   :  { %11659 = vmatpush1.bf16.msra.mxu0 %v22552_v38  ;;  %14454 = vmatpush1.bf16.msra.mxu1 %v22555_v12  ;;  %v22624_v38 = vld [vmem:[%s29694_s10 + $0x620] ss:$16 sps:$4 sm:$0xff]  }
 0x9fe   :  { %11660 = vmatprep.subr.bf16.mxu0 %v22560_v2  ;;  %14455 = vmatprep.subr.bf16.mxu1 %v22563_v49  ;;  %v22627_v12 = vld [vmem:[%s29694_s10 + $0x11a0] ss:$16 sps:$4 sm:$0xff]  }
 0x9ff   :  { %v22630_v2 = vld [vmem:[%s29694_s10 + $0x640] ss:$16 sps:$4 sm:$0xff]  }
 0xa00   :  { %v22633_v49 = vld [vmem:[%s29694_s10 + $0x11c0] ss:$16 sps:$4 sm:$0xff]  }
 0xa01   :  { %11661 = vmatpush1.bf16.msra.mxu0 %v22558_v22  ;;  %14456 = vmatpush1.bf16.msra.mxu1 %v22561_v36  ;;  %v22638_v22 = vld [vmem:[%s29694_s10 + $0x664] ss:$16 sps:$4 sm:$0xff]  }
 0xa02   :  { %11662 = vmatprep.subr.bf16.mxu0 %v22566_v28  ;;  %14457 = vmatprep.subr.bf16.mxu1 %v22569_v51  ;;  %v22641_v36 = vld [vmem:[%s29694_s10 + $0x11e4] ss:$16 sps:$4 sm:$0xff]   ;;  %v22636_v28 = vld [vmem:[%s29694_s10 + $0x660] ss:$16 sps:$4 sm:$0xff]  }
 0xa03   :  { %v22639_v51 = vld [vmem:[%s29694_s10 + $0x11e0] ss:$16 sps:$4 sm:$0xff]  }
 0xa05   :  { %11663 = vmatpush1.bf16.msra.mxu0 %v22564_v60  ;;  %14458 = vmatpush1.bf16.msra.mxu1 %v22567_v63  ;;  %v22644_v60 = vld [vmem:[%s29694_s10 + $0x684] ss:$16 sps:$4 sm:$0xff]   ;;  %v22647_v63 = vld [vmem:[%s29694_s10 + $0x100c] ss:$16 sps:$4 sm:$0xff]  }
 0xa06   :  { %11664 = vmatprep.subr.bf16.mxu0 %v22572_v3  ;;  %14459 = vmatprep.subr.bf16.mxu1 %v22575_v43  ;;  %v27588_v3 = vpack.c.bf16 %v27164_v47, %v27164_v47  ;;  %v22642_v43 = vld [vmem:[%s29694_s10 + $0x680] ss:$16 sps:$4 sm:$0xff]   ;;  %v22653_v47 = vld [vmem:[%s29694_s10 + $0x102c] ss:$16 sps:$4 sm:$0xff]  }
 0xa09   :  { %11665 = vmatpush1.bf16.msra.mxu0 %v22570_v33  ;;  %14460 = vmatpush1.bf16.msra.mxu1 %v22573_v35  ;;  %v22645_v33 = vld [vmem:[%s29694_s10 + $0x1008] ss:$16 sps:$4 sm:$0xff]   ;;  %v22650_v35 = vld [vmem:[%s29694_s10 + $0x6a4] ss:$16 sps:$4 sm:$0xff]  }
 0xa0a   :  { %11666 = vmatprep.subr.bf16.mxu0 %v22578_v37  ;;  %14461 = vmatprep.subr.bf16.mxu1 %v22581_v53  ;;  %v22648_v37 = vld [vmem:[%s29694_s10 + $0x6a0] ss:$16 sps:$4 sm:$0xff]   ;;  %v22651_v53 = vld [vmem:[%s29694_s10 + $0x1028] ss:$16 sps:$4 sm:$0xff]  }
 0xa0d   :  { %11667 = vmatpush1.bf16.msra.mxu0 %v22576_v46  ;;  %14462 = vmatpush1.bf16.msra.mxu1 %v22579_v13  ;;  %v22656_v46 = vld [vmem:[%s29694_s10 + $0x6c4] ss:$16 sps:$4 sm:$0xff]   ;;  %v22659_v13 = vld [vmem:[%s29694_s10 + $0x104c] ss:$16 sps:$4 sm:$0xff]  }
 0xa0e   :  { %11668 = vmatprep.subr.bf16.mxu0 %v22584_v20  ;;  %14463 = vmatprep.subr.bf16.mxu1 %v22587_v0  ;;  %v22654_v20 = vld [vmem:[%s29694_s10 + $0x6c0] ss:$16 sps:$4 sm:$0xff]   ;;  %v22657_v0 = vld [vmem:[%s29694_s10 + $0x1048] ss:$16 sps:$4 sm:$0xff]  }
 0xa11   :  { %11669 = vmatpush1.bf16.msra.mxu0 %v22582_v6  ;;  %14464 = vmatpush1.bf16.msra.mxu1 %v22585_v23  ;;  %v22662_v6 = vld [vmem:[%s29694_s10 + $0x6e4] ss:$16 sps:$4 sm:$0xff]   ;;  %v22660_v23 = vld [vmem:[%s29694_s10 + $0x6e0] ss:$16 sps:$4 sm:$0xff]  }
 0xa12   :  { %11670 = vmatprep.subr.bf16.mxu0 %v22590_v42  ;;  %14465 = vmatprep.subr.bf16.mxu1 %v22593_v41  ;;  %v22663_v42 = vld [vmem:[%s29694_s10 + $0x1068] ss:$16 sps:$4 sm:$0xff]   ;;  %v22668_v41 = vld [vmem:[%s29694_s10 + $0x704] ss:$16 sps:$4 sm:$0xff]  }
 0xa15   :  { %11671 = vmatpush1.bf16.msra.mxu0 %v22588_v7  ;;  %14466 = vmatpush1.bf16.msra.mxu1 %v22591_v31  ;;  %v22671_v7 = vld [vmem:[%s29694_s10 + $0x108c] ss:$16 sps:$4 sm:$0xff]   ;;  %v22666_v31 = vld [vmem:[%s29694_s10 + $0x700] ss:$16 sps:$4 sm:$0xff]  }
 0xa16   :  { %11672 = vmatprep.subr.bf16.mxu0 %v22596_v55  ;;  %14467 = vmatprep.subr.bf16.mxu1 %v22599_v5  ;;  %v22669_v55 = vld [vmem:[%s29694_s10 + $0x1088] ss:$16 sps:$4 sm:$0xff]   ;;  %v22674_v5 = vld [vmem:[%s29694_s10 + $0x724] ss:$16 sps:$4 sm:$0xff]  }
 0xa19   :  { %11673 = vmatpush1.bf16.msra.mxu0 %v22594_v59  ;;  %14468 = vmatpush1.bf16.msra.mxu1 %v22597_v17  ;;  %v22677_v59 = vld [vmem:[%s29694_s10 + $0x10ac] ss:$16 sps:$4 sm:$0xff]   ;;  %v22672_v17 = vld [vmem:[%s29694_s10 + $0x720] ss:$16 sps:$4 sm:$0xff]  }
 0xa1a   :  { %11674 = vmatprep.subr.bf16.mxu0 %v22602_v16  ;;  %14469 = vmatprep.subr.bf16.mxu1 %v22605_v39  ;;  %v22675_v16 = vld [vmem:[%s29694_s10 + $0x10a8] ss:$16 sps:$4 sm:$0xff]   ;;  %v22680_v39 = vld [vmem:[%s29694_s10 + $0x744] ss:$16 sps:$4 sm:$0xff]  }
 0xa1d   :  { %11675 = vmatpush1.bf16.msra.mxu0 %v22600_v50  ;;  %14470 = vmatpush1.bf16.msra.mxu1 %v22603_v4  ;;  %v22683_v50 = vld [vmem:[%s29694_s10 + $0x10cc] ss:$16 sps:$4 sm:$0xff]   ;;  %v22678_v4 = vld [vmem:[%s29694_s10 + $0x740] ss:$16 sps:$4 sm:$0xff]  }
 0xa1e   :  { %11676 = vmatprep.subr.bf16.mxu0 %v22608_v48  ;;  %14471 = vmatprep.subr.bf16.mxu1 %v22611_v8  ;;  %v22681_v48 = vld [vmem:[%s29694_s10 + $0x10c8] ss:$16 sps:$4 sm:$0xff]   ;;  %v22686_v8 = vld [vmem:[%s29694_s10 + $0x764] ss:$16 sps:$4 sm:$0xff]  }
 0xa21   :  { %11677 = vmatpush1.bf16.msra.mxu0 %v22606_v1  ;;  %14472 = vmatpush1.bf16.msra.mxu1 %v22609_v52  ;;  %v22689_v1 = vld [vmem:[%s29694_s10 + $0x10ec] ss:$16 sps:$4 sm:$0xff]   ;;  %v22684_v52 = vld [vmem:[%s29694_s10 + $0x760] ss:$16 sps:$4 sm:$0xff]  }
 0xa22   :  { %11678 = vmatprep.subr.bf16.mxu0 %v22614_v15  ;;  %14473 = vmatprep.subr.bf16.mxu1 %v22617_v25  ;;  %v22687_v15 = vld [vmem:[%s29694_s10 + $0x10e8] ss:$16 sps:$4 sm:$0xff]   ;;  %v22692_v25 = vld [vmem:[%s29694_s10 + $0x784] ss:$16 sps:$4 sm:$0xff]  }
 0xa25   :  { %11679 = vmatpush1.bf16.msra.mxu0 %v22612_v18  ;;  %14474 = vmatpush1.bf16.msra.mxu1 %v22615_v40  ;;  %v22695_v18 = vld [vmem:[%s29694_s10 + $0x110c] ss:$16 sps:$4 sm:$0xff]   ;;  %v22690_v40 = vld [vmem:[%s29694_s10 + $0x780] ss:$16 sps:$4 sm:$0xff]  }
 0xa26   :  { %12081 = vmatprep.subr.bf16.mxu0 %v22620_v58  ;;  %14475 = vmatprep.subr.bf16.mxu1 %v22623_v29  ;;  %v22693_v58 = vld [vmem:[%s29694_s10 + $0x1108] ss:$16 sps:$4 sm:$0xff]   ;;  %v22698_v29 = vld [vmem:[%s29694_s10 + $0x7a4] ss:$16 sps:$4 sm:$0xff]  }
 0xa28   :  { %11681 = vmatmul.mubr.bf16.vlgmr.msra.gmra.mrb[108].mxu0 %v27336_v9  ;;  %v22632_v9 = vld [vmem:[%s29694_s10 + $0x644] ss:$16 sps:$4 sm:$0xff]  }
 0xa29   :  { %12082 = vmatpush1.bf16.msra.mxu0 %v22618_v10  ;;  %14476 = vmatpush1.bf16.msra.mxu1 %v22621_v45  ;;  %v22701_v10 = vld [vmem:[%s29694_s10 + $0x112c] ss:$16 sps:$4 sm:$0xff]   ;;  %v22696_v45 = vld [vmem:[%s29694_s10 + $0x7a0] ss:$16 sps:$4 sm:$0xff]  }
 0xa2a   :  { %12083 = vmatprep.subr.bf16.mxu0 %v22626_v44  ;;  %14477 = vmatprep.subr.bf16.mxu1 %v22629_v57  ;;  %v22699_v44 = vld [vmem:[%s29694_s10 + $0x1128] ss:$16 sps:$4 sm:$0xff]   ;;  %v22704_v57 = vld [vmem:[%s29694_s10 + $0x7c4] ss:$16 sps:$4 sm:$0xff]  }
 0xa2b   :  { %12113 = vmatprep.mubr.bf16.mxu0 %v27547_v62 }
 0xa2d   :  { %12084 = vmatpush1.bf16.msra.mxu0 %v22624_v38  ;;  %14478 = vmatpush1.bf16.msra.mxu1 %v22627_v12  ;;  %v22707_v38 = vld [vmem:[%s29694_s10 + $0x114c] ss:$16 sps:$4 sm:$0xff]   ;;  %v22702_v12 = vld [vmem:[%s29694_s10 + $0x7c0] ss:$16 sps:$4 sm:$0xff]  }
 0xa2e   :  { %12085 = vmatprep.subr.bf16.mxu0 %v22632_v9  ;;  %14479 = vmatprep.subr.bf16.mxu1 %v22635_v11  ;;  %v22705_v9 = vld [vmem:[%s29694_s10 + $0x1148] ss:$16 sps:$4 sm:$0xff]   ;;  %v22710_v11 = vld [vmem:[%s29694_s10 + $0x7e4] ss:$16 sps:$4 sm:$0xff]  }
 0xa31   :  { %12086 = vmatpush1.bf16.msra.mxu0 %v22630_v2  ;;  %14480 = vmatpush1.bf16.msra.mxu1 %v22633_v49  ;;  %v22713_v2 = vld [vmem:[%s29694_s10 + $0x116c] ss:$16 sps:$4 sm:$0xff]   ;;  %v22708_v49 = vld [vmem:[%s29694_s10 + $0x7e0] ss:$16 sps:$4 sm:$0xff]  }
 0xa32   :  { %12087 = vmatprep.subr.bf16.mxu0 %v22638_v22  ;;  %14481 = vmatprep.subr.bf16.mxu1 %v22641_v36  ;;  %v22711_v22 = vld [vmem:[%s29694_s10 + $0x1168] ss:$16 sps:$4 sm:$0xff]   ;;  %v22716_v36 = vld [vmem:[%s29694_s10 + $0x60c] ss:$16 sps:$4 sm:$0xff]  }
 0xa35   :  { %12088 = vmatpush1.bf16.msra.mxu0 %v22636_v28  ;;  %14482 = vmatpush1.bf16.msra.mxu1 %v22639_v51  ;;  %v22719_v28 = vld [vmem:[%s29694_s10 + $0x118c] ss:$16 sps:$4 sm:$0xff]   ;;  %v22714_v51 = vld [vmem:[%s29694_s10 + $0x608] ss:$16 sps:$4 sm:$0xff]  }
 0xa36   :  { %12089 = vmatprep.subr.bf16.mxu0 %v22644_v60  ;;  %14492 = vmatprep.subr.bf16.mxu1 %v22647_v63  ;;  %v22717_v60 = vld [vmem:[%s29694_s10 + $0x1188] ss:$16 sps:$4 sm:$0xff]   ;;  %v27744_v63 = vpack.c.bf16 %v26529_v32, %v26529_v32 }
 0xa37   :  { %v22723_v32 = vld [vmem:[%s29694_s10 + $0x11a8] ss:$16 sps:$4 sm:$0xff]  }
 0xa38   :  { %14484 = vmatmul.mubr.bf16.vlgmr.msra.gmra.mrb[20].mxu1 %v27588_v3 }
 0xa39   :  { %12090 = vmatpush1.bf16.msra.mxu0 %v22642_v43  ;;  %14493 = vmatpush1.bf16.msra.mxu1 %v22645_v33  ;;  %v22722_v43 = vld [vmem:[%s29694_s10 + $0x62c] ss:$16 sps:$4 sm:$0xff]  }
 0xa3a   :  { %12091 = vmatprep.subr.bf16.mxu0 %v22650_v35  ;;  %14494 = vmatprep.subr.bf16.mxu1 %v22653_v47  ;;  %v22725_v33 = vld [vmem:[%s29694_s10 + $0x11ac] ss:$16 sps:$4 sm:$0xff]   ;;  %v22720_v35 = vld [vmem:[%s29694_s10 + $0x628] ss:$16 sps:$4 sm:$0xff]  }
 0xa3b   :  { %14524 = vmatprep.mubr.bf16.mxu1 %v27396_v34  ;;  %v22665_v34 = vld [vmem:[%s29694_s10 + $0x106c] ss:$16 sps:$4 sm:$0xff]  }
 0xa3c   :  { %v22728_v47 = vld [vmem:[%s29694_s10 + $0x64c] ss:$16 sps:$4 sm:$0xff]  }
 0xa3d   :  { %12092 = vmatpush1.bf16.msra.mxu0 %v22648_v37  ;;  %14495 = vmatpush1.bf16.msra.mxu1 %v22651_v53  ;;  %v22731_v37 = vld [vmem:[%s29694_s10 + $0x11cc] ss:$16 sps:$4 sm:$0xff]   ;;  %v22726_v53 = vld [vmem:[%s29694_s10 + $0x648] ss:$16 sps:$4 sm:$0xff]  }
 0xa3e   :  { %12093 = vmatprep.subr.bf16.mxu0 %v22656_v46  ;;  %14496 = vmatprep.subr.bf16.mxu1 %v22659_v13  ;;  %v22729_v46 = vld [vmem:[%s29694_s10 + $0x11c8] ss:$16 sps:$4 sm:$0xff]   ;;  %v22734_v13 = vld [vmem:[%s29694_s10 + $0x66c] ss:$16 sps:$4 sm:$0xff]  }
 0xa41   :  { %12094 = vmatpush1.bf16.msra.mxu0 %v22654_v20  ;;  %14497 = vmatpush1.bf16.msra.mxu1 %v22657_v0  ;;  %v22732_v20 = vld [vmem:[%s29694_s10 + $0x668] ss:$16 sps:$4 sm:$0xff]  }
 0xa42   :  { %12095 = vmatprep.subr.bf16.mxu0 %v22662_v6  ;;  %14498 = vmatprep.subr.bf16.mxu1 %v22665_v34  ;;  %v22735_v0 = vld [vmem:[%s29694_s10 + $0x11e8] ss:$16 sps:$4 sm:$0xff]   ;;  %v22740_v6 = vld [vmem:[%s29694_s10 + $0x68c] ss:$16 sps:$4 sm:$0xff]   ;;  %v22743_v34 = vld [vmem:[%s29694_s10 + $0x1204] ss:$16 sps:$4 sm:$0xff]  }
 0xa45   :  { %12096 = vmatpush1.bf16.msra.mxu0 %v22660_v23  ;;  %14499 = vmatpush1.bf16.msra.mxu1 %v22663_v42  ;;  %v22738_v23 = vld [vmem:[%s29694_s10 + $0x688] ss:$16 sps:$4 sm:$0xff]   ;;  %v22741_v42 = vld [vmem:[%s29694_s10 + $0x1200] ss:$16 sps:$4 sm:$0xff]  }
 0xa46   :  { %12097 = vmatprep.subr.bf16.mxu0 %v22668_v41  ;;  %14500 = vmatprep.subr.bf16.mxu1 %v22671_v7  ;;  %v22746_v41 = vld [vmem:[%s29694_s10 + $0x6ac] ss:$16 sps:$4 sm:$0xff]   ;;  %v22749_v7 = vld [vmem:[%s29694_s10 + $0x1224] ss:$16 sps:$4 sm:$0xff]  }
 0xa49   :  { %12098 = vmatpush1.bf16.msra.mxu0 %v22666_v31  ;;  %14501 = vmatpush1.bf16.msra.mxu1 %v22669_v55  ;;  %v22744_v31 = vld [vmem:[%s29694_s10 + $0x6a8] ss:$16 sps:$4 sm:$0xff]   ;;  %v22747_v55 = vld [vmem:[%s29694_s10 + $0x1220] ss:$16 sps:$4 sm:$0xff]  }
 0xa4a   :  { %12099 = vmatprep.subr.bf16.mxu0 %v22674_v5  ;;  %14502 = vmatprep.subr.bf16.mxu1 %v22677_v59  ;;  %v27811_v5 = vpack.c.bf16 %v27242_v14, %v27242_v14  ;;  %v22755_v59 = vld [vmem:[%s29694_s10 + $0x1244] ss:$16 sps:$4 sm:$0xff]   ;;  %v22753_v14 = vld [vmem:[%s29694_s10 + $0x1240] ss:$16 sps:$4 sm:$0xff]  }
 0xa4d   :  { %12100 = vmatpush1.bf16.msra.mxu0 %v22672_v17  ;;  %14503 = vmatpush1.bf16.msra.mxu1 %v22675_v16  ;;  %v22750_v17 = vld [vmem:[%s29694_s10 + $0x6c8] ss:$16 sps:$4 sm:$0xff]   ;;  %v22758_v16 = vld [vmem:[%s29694_s10 + $0x6ec] ss:$16 sps:$4 sm:$0xff]  }
 0xa4e   :  { %12101 = vmatprep.subr.bf16.mxu0 %v22680_v39  ;;  %14504 = vmatprep.subr.bf16.mxu1 %v22683_v50  ;;  %v22761_v39 = vld [vmem:[%s29694_s10 + $0x1264] ss:$16 sps:$4 sm:$0xff]   ;;  %v22756_v50 = vld [vmem:[%s29694_s10 + $0x6e8] ss:$16 sps:$4 sm:$0xff]  }
 0xa51   :  { %12102 = vmatpush1.bf16.msra.mxu0 %v22678_v4  ;;  %14505 = vmatpush1.bf16.msra.mxu1 %v22681_v48  ;;  %v22759_v4 = vld [vmem:[%s29694_s10 + $0x1260] ss:$16 sps:$4 sm:$0xff]   ;;  %v22764_v48 = vld [vmem:[%s29694_s10 + $0x70c] ss:$16 sps:$4 sm:$0xff]  }
 0xa52   :  { %12103 = vmatprep.subr.bf16.mxu0 %v22686_v8  ;;  %14506 = vmatprep.subr.bf16.mxu1 %v22689_v1  ;;  %v22767_v8 = vld [vmem:[%s29694_s10 + $0x1284] ss:$16 sps:$4 sm:$0xff]   ;;  %v22762_v1 = vld [vmem:[%s29694_s10 + $0x708] ss:$16 sps:$4 sm:$0xff]  }
 0xa55   :  { %12104 = vmatpush1.bf16.msra.mxu0 %v22684_v52  ;;  %14507 = vmatpush1.bf16.msra.mxu1 %v22687_v15  ;;  %v22765_v52 = vld [vmem:[%s29694_s10 + $0x1280] ss:$16 sps:$4 sm:$0xff]   ;;  %v22770_v15 = vld [vmem:[%s29694_s10 + $0x72c] ss:$16 sps:$4 sm:$0xff]  }
 0xa56   :  { %12105 = vmatprep.subr.bf16.mxu0 %v22692_v25  ;;  %14508 = vmatprep.subr.bf16.mxu1 %v22695_v18  ;;  %v22773_v25 = vld [vmem:[%s29694_s10 + $0x12a4] ss:$16 sps:$4 sm:$0xff]   ;;  %v22768_v18 = vld [vmem:[%s29694_s10 + $0x728] ss:$16 sps:$4 sm:$0xff]  }
 0xa59   :  { %12106 = vmatpush1.bf16.msra.mxu0 %v22690_v40  ;;  %14509 = vmatpush1.bf16.msra.mxu1 %v22693_v58  ;;  %v22771_v40 = vld [vmem:[%s29694_s10 + $0x12a0] ss:$16 sps:$4 sm:$0xff]   ;;  %v22776_v58 = vld [vmem:[%s29694_s10 + $0x74c] ss:$16 sps:$4 sm:$0xff]  }
 0xa5a   :  { %12107 = vmatprep.subr.bf16.mxu0 %v22698_v29  ;;  %14510 = vmatprep.subr.bf16.mxu1 %v22701_v10  ;;  %v22779_v29 = vld [vmem:[%s29694_s10 + $0x12c4] ss:$16 sps:$4 sm:$0xff]   ;;  %v22774_v10 = vld [vmem:[%s29694_s10 + $0x748] ss:$16 sps:$4 sm:$0xff]  }
 0xa5d   :  { %12108 = vmatpush1.bf16.msra.mxu0 %v22696_v45  ;;  %14511 = vmatpush1.bf16.msra.mxu1 %v22699_v44  ;;  %v22777_v45 = vld [vmem:[%s29694_s10 + $0x12c0] ss:$16 sps:$4 sm:$0xff]   ;;  %v22782_v44 = vld [vmem:[%s29694_s10 + $0x76c] ss:$16 sps:$4 sm:$0xff]  }
 0xa5e   :  { %12109 = vmatprep.subr.bf16.mxu0 %v22704_v57  ;;  %14512 = vmatprep.subr.bf16.mxu1 %v22707_v38  ;;  %v22785_v57 = vld [vmem:[%s29694_s10 + $0x12e4] ss:$16 sps:$4 sm:$0xff]   ;;  %v22780_v38 = vld [vmem:[%s29694_s10 + $0x768] ss:$16 sps:$4 sm:$0xff]  }
 0xa61   :  { %12110 = vmatpush1.bf16.msra.mxu0 %v22702_v12  ;;  %14513 = vmatpush1.bf16.msra.mxu1 %v22705_v9  ;;  %v22783_v12 = vld [vmem:[%s29694_s10 + $0x12e0] ss:$16 sps:$4 sm:$0xff]   ;;  %v22788_v9 = vld [vmem:[%s29694_s10 + $0x78c] ss:$16 sps:$4 sm:$0xff]  }
 0xa62   :  { %12111 = vmatprep.subr.bf16.mxu0 %v22710_v11  ;;  %14514 = vmatprep.subr.bf16.mxu1 %v22713_v2  ;;  %v22791_v11 = vld [vmem:[%s29694_s10 + $0x1304] ss:$16 sps:$4 sm:$0xff]   ;;  %v22786_v2 = vld [vmem:[%s29694_s10 + $0x788] ss:$16 sps:$4 sm:$0xff]  }
 0xa65   :  { %12112 = vmatpush1.bf16.msra.mxu0 %v22708_v49  ;;  %14515 = vmatpush1.bf16.msra.mxu1 %v22711_v22  ;;  %v22789_v49 = vld [vmem:[%s29694_s10 + $0x1300] ss:$16 sps:$4 sm:$0xff]   ;;  %v22794_v22 = vld [vmem:[%s29694_s10 + $0x7ac] ss:$16 sps:$4 sm:$0xff]  }
 0xa66   :  { %12122 = vmatprep.subr.bf16.mxu0 %v22716_v36  ;;  %14516 = vmatprep.subr.bf16.mxu1 %v22719_v28  ;;  %v22797_v36 = vld [vmem:[%s29694_s10 + $0x1324] ss:$16 sps:$4 sm:$0xff]   ;;  %v22792_v28 = vld [vmem:[%s29694_s10 + $0x7a8] ss:$16 sps:$4 sm:$0xff]  }
 0xa68   :  { %12114 = vmatmul.mubr.bf16.vlgmr.msra.gmra.mrb[104].mxu0 %v27744_v63 }
 0xa69   :  { %12123 = vmatpush1.bf16.msra.mxu0 %v22714_v51  ;;  %14517 = vmatpush1.bf16.msra.mxu1 %v22717_v60  ;;  %v22795_v51 = vld [vmem:[%s29694_s10 + $0x1320] ss:$16 sps:$4 sm:$0xff]   ;;  %v22800_v60 = vld [vmem:[%s29694_s10 + $0x7cc] ss:$16 sps:$4 sm:$0xff]  }
 0xa6a   :  { %12124 = vmatprep.subr.bf16.mxu0 %v22722_v43  ;;  %14518 = vmatprep.subr.bf16.mxu1 %v22725_v33  ;;  %v22803_v43 = vld [vmem:[%s29694_s10 + $0x1344] ss:$16 sps:$4 sm:$0xff]   ;;  %v22798_v33 = vld [vmem:[%s29694_s10 + $0x7c8] ss:$16 sps:$4 sm:$0xff]  }
 0xa6b   :  { %12154 = vmatprep.mubr.bf16.mxu0 %v27547_v62  ;;  %v22737_v62 = vld [vmem:[%s29694_s10 + $0x11ec] ss:$16 sps:$4 sm:$0xff]  }
 0xa6d   :  { %12125 = vmatpush1.bf16.msra.mxu0 %v22720_v35  ;;  %14519 = vmatpush1.bf16.msra.mxu1 %v22723_v32  ;;  %v22801_v35 = vld [vmem:[%s29694_s10 + $0x1340] ss:$16 sps:$4 sm:$0xff]   ;;  %v22806_v32 = vld [vmem:[%s29694_s10 + $0x7ec] ss:$16 sps:$4 sm:$0xff]  }
 0xa6e   :  { %12126 = vmatprep.subr.bf16.mxu0 %v22728_v47  ;;  %14520 = vmatprep.subr.bf16.mxu1 %v22731_v37  ;;  %v22809_v47 = vld [vmem:[%s29694_s10 + $0x1364] ss:$16 sps:$4 sm:$0xff]   ;;  %v22804_v37 = vld [vmem:[%s29694_s10 + $0x7e8] ss:$16 sps:$4 sm:$0xff]  }
 0xa71   :  { %12127 = vmatpush1.bf16.msra.mxu0 %v22726_v53  ;;  %14521 = vmatpush1.bf16.msra.mxu1 %v22729_v46  ;;  %v22807_v53 = vld [vmem:[%s29694_s10 + $0x1360] ss:$16 sps:$4 sm:$0xff]   ;;  %v22812_v46 = vld [vmem:[%s29694_s10 + $0x804] ss:$16 sps:$4 sm:$0xff]  }
 0xa72   :  { %12128 = vmatprep.subr.bf16.mxu0 %v22734_v13  ;;  %14522 = vmatprep.subr.bf16.mxu1 %v22737_v62  ;;  %v22815_v13 = vld [vmem:[%s29694_s10 + $0x1384] ss:$16 sps:$4 sm:$0xff]   ;;  %v22810_v62 = vld [vmem:[%s29694_s10 + $0x800] ss:$16 sps:$4 sm:$0xff]  }
 0xa75   :  { %12129 = vmatpush1.bf16.msra.mxu0 %v22732_v20  ;;  %14523 = vmatpush1.bf16.msra.mxu1 %v22735_v0  ;;  %v22813_v20 = vld [vmem:[%s29694_s10 + $0x1380] ss:$16 sps:$4 sm:$0xff]   ;;  %v22818_v0 = vld [vmem:[%s29694_s10 + $0x824] ss:$16 sps:$4 sm:$0xff]  }
 0xa76   :  { %12130 = vmatprep.subr.bf16.mxu0 %v22740_v6  ;;  %14925 = vmatprep.subr.bf16.mxu1 %v22743_v34  ;;  %v22821_v6 = vld [vmem:[%s29694_s10 + $0x13a4] ss:$16 sps:$4 sm:$0xff]   ;;  %v27955_v34 = vpack.c.bf16 %v26544_v24, %v26544_v24 }
 0xa77   :  { %v22827_v24 = vld [vmem:[%s29694_s10 + $0x13c4] ss:$16 sps:$4 sm:$0xff]  }
 0xa78   :  { %14525 = vmatmul.mubr.bf16.vlgmr.msra.gmra.mrb[16].mxu1 %v27588_v3  ;;  %v22752_v3 = vld [vmem:[%s29694_s10 + $0x6cc] ss:$16 sps:$4 sm:$0xff]  }
 0xa79   :  { %12131 = vmatpush1.bf16.msra.mxu0 %v22738_v23  ;;  %14926 = vmatpush1.bf16.msra.mxu1 %v22741_v42  ;;  %v22816_v23 = vld [vmem:[%s29694_s10 + $0x820] ss:$16 sps:$4 sm:$0xff]  }
 0xa7a   :  { %12132 = vmatprep.subr.bf16.mxu0 %v22746_v41  ;;  %14927 = vmatprep.subr.bf16.mxu1 %v22749_v7  ;;  %v22819_v42 = vld [vmem:[%s29694_s10 + $0x13a0] ss:$16 sps:$4 sm:$0xff]  }
 0xa7b   :  { %14957 = vmatprep.mubr.bf16.mxu1 %v27811_v5  ;;  %v22822_v41 = vld [vmem:[%s29694_s10 + $0x840] ss:$16 sps:$4 sm:$0xff]  }
 0xa7c   :  { %v22825_v7 = vld [vmem:[%s29694_s10 + $0x13c0] ss:$16 sps:$4 sm:$0xff]  }
 0xa7d   :  { %12133 = vmatpush1.bf16.msra.mxu0 %v22744_v31  ;;  %14928 = vmatpush1.bf16.msra.mxu1 %v22747_v55  ;;  %v22830_v31 = vld [vmem:[%s29694_s10 + $0x864] ss:$16 sps:$4 sm:$0xff]  }
 0xa7e   :  { %12134 = vmatprep.subr.bf16.mxu0 %v22752_v3  ;;  %14929 = vmatprep.subr.bf16.mxu1 %v22755_v59  ;;  %v22833_v55 = vld [vmem:[%s29694_s10 + $0x13e4] ss:$16 sps:$4 sm:$0xff]   ;;  %v22828_v3 = vld [vmem:[%s29694_s10 + $0x860] ss:$16 sps:$4 sm:$0xff]  }
 0xa7f   :  { %v22831_v59 = vld [vmem:[%s29694_s10 + $0x13e0] ss:$16 sps:$4 sm:$0xff]  }
 0xa81   :  { %12135 = vmatpush1.bf16.msra.mxu0 %v22750_v17  ;;  %14930 = vmatpush1.bf16.msra.mxu1 %v22753_v14  ;;  %v22836_v17 = vld [vmem:[%s29694_s10 + $0x884] ss:$16 sps:$4 sm:$0xff]   ;;  %v22839_v14 = vld [vmem:[%s29694_s10 + $0x120c] ss:$16 sps:$4 sm:$0xff]  }
 0xa82   :  { %12136 = vmatprep.subr.bf16.mxu0 %v22758_v16  ;;  %14931 = vmatprep.subr.bf16.mxu1 %v22761_v39  ;;  %v27994_v16 = vpop.f32.mrb[92].mxu0 }
 0xa83   :  { %v27996_v39 = vpop.f32.mrb[93].mxu0 }
 0xa85   :  { %12137 = vmatpush1.bf16.msra.mxu0 %v22756_v50  ;;  %14932 = vmatpush1.bf16.msra.mxu1 %v22759_v4  ;;  %v22834_v50 = vld [vmem:[%s29694_s10 + $0x880] ss:$16 sps:$4 sm:$0xff]   ;;  %v22837_v4 = vld [vmem:[%s29694_s10 + $0x1208] ss:$16 sps:$4 sm:$0xff]  }
 0xa86   :  { %12138 = vmatprep.subr.bf16.mxu0 %v22764_v48  ;;  %14933 = vmatprep.subr.bf16.mxu1 %v22767_v8  ;;  %v28006_v48 = vpack.c.bf16 %v27240_v56, %v27240_v56  ;;  %v22842_v8 = vld [vmem:[%s29694_s10 + $0x8a4] ss:$16 sps:$4 sm:$0xff]   ;;  %v22843_v56 = vld [vmem:[%s29694_s10 + $0x1228] ss:$16 sps:$4 sm:$0xff]  }
 0xa89   :  { %12139 = vmatpush1.bf16.msra.mxu0 %v22762_v1  ;;  %14934 = vmatpush1.bf16.msra.mxu1 %v22765_v52  ;;  %v22845_v1 = vld [vmem:[%s29694_s10 + $0x122c] ss:$16 sps:$4 sm:$0xff]   ;;  %v22840_v52 = vld [vmem:[%s29694_s10 + $0x8a0] ss:$16 sps:$4 sm:$0xff]  }
 0xa8a   :  { %12140 = vmatprep.subr.bf16.mxu0 %v22770_v15  ;;  %14935 = vmatprep.subr.bf16.mxu1 %v22773_v25  ;;  %v22848_v15 = vld [vmem:[%s29694_s10 + $0x8c4] ss:$16 sps:$4 sm:$0xff]   ;;  %v22851_v25 = vld [vmem:[%s29694_s10 + $0x124c] ss:$16 sps:$4 sm:$0xff]  }
 0xa8d   :  { %12141 = vmatpush1.bf16.msra.mxu0 %v22768_v18  ;;  %14936 = vmatpush1.bf16.msra.mxu1 %v22771_v40  ;;  %v22846_v18 = vld [vmem:[%s29694_s10 + $0x8c0] ss:$16 sps:$4 sm:$0xff]   ;;  %v22849_v40 = vld [vmem:[%s29694_s10 + $0x1248] ss:$16 sps:$4 sm:$0xff]  }
 0xa8e   :  { %12142 = vmatprep.subr.bf16.mxu0 %v22776_v58  ;;  %14937 = vmatprep.subr.bf16.mxu1 %v22779_v29  ;;  %v22854_v58 = vld [vmem:[%s29694_s10 + $0x8e4] ss:$16 sps:$4 sm:$0xff]   ;;  %v22852_v29 = vld [vmem:[%s29694_s10 + $0x8e0] ss:$16 sps:$4 sm:$0xff]  }
 0xa91   :  { %12143 = vmatpush1.bf16.msra.mxu0 %v22774_v10  ;;  %14938 = vmatpush1.bf16.msra.mxu1 %v22777_v45  ;;  %v22855_v10 = vld [vmem:[%s29694_s10 + $0x1268] ss:$16 sps:$4 sm:$0xff]   ;;  %v22860_v45 = vld [vmem:[%s29694_s10 + $0x904] ss:$16 sps:$4 sm:$0xff]  }
 0xa92   :  { %12144 = vmatprep.subr.bf16.mxu0 %v22782_v44  ;;  %14939 = vmatprep.subr.bf16.mxu1 %v22785_v57  ;;  %v22863_v44 = vld [vmem:[%s29694_s10 + $0x128c] ss:$16 sps:$4 sm:$0xff]   ;;  %v22858_v57 = vld [vmem:[%s29694_s10 + $0x900] ss:$16 sps:$4 sm:$0xff]  }
 0xa95   :  { %12145 = vmatpush1.bf16.msra.mxu0 %v22780_v38  ;;  %14940 = vmatpush1.bf16.msra.mxu1 %v22783_v12  ;;  %v22861_v38 = vld [vmem:[%s29694_s10 + $0x1288] ss:$16 sps:$4 sm:$0xff]   ;;  %v22866_v12 = vld [vmem:[%s29694_s10 + $0x924] ss:$16 sps:$4 sm:$0xff]  }
 0xa96   :  { %12146 = vmatprep.subr.bf16.mxu0 %v22788_v9  ;;  %14941 = vmatprep.subr.bf16.mxu1 %v22791_v11  ;;  %v22869_v9 = vld [vmem:[%s29694_s10 + $0x12ac] ss:$16 sps:$4 sm:$0xff]   ;;  %v28064_v11 = vpop.f32.mrb[94].mxu0 }
 0xa99   :  { %12147 = vmatpush1.bf16.msra.mxu0 %v22786_v2  ;;  %14942 = vmatpush1.bf16.msra.mxu1 %v22789_v49  ;;  %v28066_v2 = vpop.f32.mrb[95].mxu0  ;;  %v22864_v49 = vld [vmem:[%s29694_s10 + $0x920] ss:$16 sps:$4 sm:$0xff]  }
 0xa9a   :  { %12148 = vmatprep.subr.bf16.mxu0 %v22794_v22  ;;  %14943 = vmatprep.subr.bf16.mxu1 %v22797_v36  ;;  %v22867_v22 = vld [vmem:[%s29694_s10 + $0x12a8] ss:$16 sps:$4 sm:$0xff]   ;;  %v22872_v36 = vld [vmem:[%s29694_s10 + $0x944] ss:$16 sps:$4 sm:$0xff]  }
 0xa9d   :  { %12149 = vmatpush1.bf16.msra.mxu0 %v22792_v28  ;;  %14944 = vmatpush1.bf16.msra.mxu1 %v22795_v51  ;;  %v22875_v28 = vld [vmem:[%s29694_s10 + $0x12cc] ss:$16 sps:$4 sm:$0xff]   ;;  %v22870_v51 = vld [vmem:[%s29694_s10 + $0x940] ss:$16 sps:$4 sm:$0xff]  }
 0xa9e   :  { %12150 = vmatprep.subr.bf16.mxu0 %v22800_v60  ;;  %14945 = vmatprep.subr.bf16.mxu1 %v22803_v43  ;;  %v22873_v60 = vld [vmem:[%s29694_s10 + $0x12c8] ss:$16 sps:$4 sm:$0xff]   ;;  %v22878_v43 = vld [vmem:[%s29694_s10 + $0x964] ss:$16 sps:$4 sm:$0xff]  }
 0xaa1   :  { %12151 = vmatpush1.bf16.msra.mxu0 %v22798_v33  ;;  %14946 = vmatpush1.bf16.msra.mxu1 %v22801_v35  ;;  %v22881_v33 = vld [vmem:[%s29694_s10 + $0x12ec] ss:$16 sps:$4 sm:$0xff]   ;;  %v22876_v35 = vld [vmem:[%s29694_s10 + $0x960] ss:$16 sps:$4 sm:$0xff]  }
 0xaa2   :  { %12152 = vmatprep.subr.bf16.mxu0 %v22806_v32  ;;  %14947 = vmatprep.subr.bf16.mxu1 %v22809_v47  ;;  %v22879_v32 = vld [vmem:[%s29694_s10 + $0x12e8] ss:$16 sps:$4 sm:$0xff]   ;;  %v22884_v47 = vld [vmem:[%s29694_s10 + $0x984] ss:$16 sps:$4 sm:$0xff]  }
 0xaa5   :  { %12153 = vmatpush1.bf16.msra.mxu0 %v22804_v37  ;;  %14948 = vmatpush1.bf16.msra.mxu1 %v22807_v53  ;;  %v22887_v37 = vld [vmem:[%s29694_s10 + $0x130c] ss:$16 sps:$4 sm:$0xff]   ;;  %v22882_v53 = vld [vmem:[%s29694_s10 + $0x980] ss:$16 sps:$4 sm:$0xff]  }
 0xaa6   :  { %12555 = vmatprep.subr.bf16.mxu0 %v22812_v46  ;;  %14949 = vmatprep.subr.bf16.mxu1 %v22815_v13  ;;  %v22885_v46 = vld [vmem:[%s29694_s10 + $0x1308] ss:$16 sps:$4 sm:$0xff]   ;;  %v22890_v13 = vld [vmem:[%s29694_s10 + $0x9a4] ss:$16 sps:$4 sm:$0xff]  }
 0xaa8   :  { %12155 = vmatmul.mubr.bf16.vlgmr.msra.gmra.mrb[108].mxu0 %v27744_v63  ;;  %v22824_v63 = vld [vmem:[%s29694_s10 + $0x844] ss:$16 sps:$4 sm:$0xff]  }
 0xaa9   :  { %12556 = vmatpush1.bf16.msra.mxu0 %v22810_v62  ;;  %14950 = vmatpush1.bf16.msra.mxu1 %v22813_v20  ;;  %v22893_v62 = vld [vmem:[%s29694_s10 + $0x132c] ss:$16 sps:$4 sm:$0xff]   ;;  %v22888_v20 = vld [vmem:[%s29694_s10 + $0x9a0] ss:$16 sps:$4 sm:$0xff]  }
 0xaaa   :  { %12557 = vmatprep.subr.bf16.mxu0 %v22818_v0  ;;  %14951 = vmatprep.subr.bf16.mxu1 %v22821_v6  ;;  %v22891_v0 = vld [vmem:[%s29694_s10 + $0x1328] ss:$16 sps:$4 sm:$0xff]   ;;  %v22896_v6 = vld [vmem:[%s29694_s10 + $0x9c4] ss:$16 sps:$4 sm:$0xff]  }
 0xaab   :  { %12587 = vmatprep.mubr.bf16.mxu0 %v27955_v34 }
 0xaad   :  { %12558 = vmatpush1.bf16.msra.mxu0 %v22816_v23  ;;  %14952 = vmatpush1.bf16.msra.mxu1 %v22819_v42  ;;  %v22899_v23 = vld [vmem:[%s29694_s10 + $0x134c] ss:$16 sps:$4 sm:$0xff]   ;;  %v22894_v42 = vld [vmem:[%s29694_s10 + $0x9c0] ss:$16 sps:$4 sm:$0xff]  }
 0xaae   :  { %12559 = vmatprep.subr.bf16.mxu0 %v22824_v63  ;;  %14953 = vmatprep.subr.bf16.mxu1 %v22827_v24  ;;  %v22897_v63 = vld [vmem:[%s29694_s10 + $0x1348] ss:$16 sps:$4 sm:$0xff]   ;;  %v22902_v24 = vld [vmem:[%s29694_s10 + $0x9e4] ss:$16 sps:$4 sm:$0xff]  }
 0xab1   :  { %12560 = vmatpush1.bf16.msra.mxu0 %v22822_v41  ;;  %14954 = vmatpush1.bf16.msra.mxu1 %v22825_v7  ;;  %v22905_v41 = vld [vmem:[%s29694_s10 + $0x136c] ss:$16 sps:$4 sm:$0xff]   ;;  %v22900_v7 = vld [vmem:[%s29694_s10 + $0x9e0] ss:$16 sps:$4 sm:$0xff]  }
 0xab2   :  { %12561 = vmatprep.subr.bf16.mxu0 %v22830_v31  ;;  %14955 = vmatprep.subr.bf16.mxu1 %v22833_v55  ;;  %v22903_v31 = vld [vmem:[%s29694_s10 + $0x1368] ss:$16 sps:$4 sm:$0xff]   ;;  %v22908_v55 = vld [vmem:[%s29694_s10 + $0x80c] ss:$16 sps:$4 sm:$0xff]  }
 0xab5   :  { %12562 = vmatpush1.bf16.msra.mxu0 %v22828_v3  ;;  %14956 = vmatpush1.bf16.msra.mxu1 %v22831_v59  ;;  %v22911_v3 = vld [vmem:[%s29694_s10 + $0x138c] ss:$16 sps:$4 sm:$0xff]   ;;  %v22906_v59 = vld [vmem:[%s29694_s10 + $0x808] ss:$16 sps:$4 sm:$0xff]  }
 0xab6   :  { %12563 = vmatprep.subr.bf16.mxu0 %v22836_v17  ;;  %14966 = vmatprep.subr.bf16.mxu1 %v22839_v14  ;;  %v28157_v17 = vpack.c.bf16 %v26539_v27, %v26539_v27  ;;  %v22909_v14 = vld [vmem:[%s29694_s10 + $0x1388] ss:$16 sps:$4 sm:$0xff]  }
 0xab7   :  { %v22912_v27 = vld [vmem:[%s29694_s10 + $0x828] ss:$16 sps:$4 sm:$0xff]  }
 0xab8   :  { %14958 = vmatmul.mubr.bf16.vlgmr.msra.gmra.mrb[20].mxu1 %v28006_v48 }
 0xab9   :  { %12564 = vmatpush1.bf16.msra.mxu0 %v22834_v50  ;;  %14967 = vmatpush1.bf16.msra.mxu1 %v22837_v4  ;;  %v22914_v50 = vld [vmem:[%s29694_s10 + $0x82c] ss:$16 sps:$4 sm:$0xff]  }
 0xaba   :  { %12565 = vmatprep.subr.bf16.mxu0 %v22842_v8  ;;  %14968 = vmatprep.subr.bf16.mxu1 %v22845_v1  ;;  %v22917_v4 = vld [vmem:[%s29694_s10 + $0x13ac] ss:$16 sps:$4 sm:$0xff]   ;;  %v22915_v8 = vld [vmem:[%s29694_s10 + $0x13a8] ss:$16 sps:$4 sm:$0xff]  }
 0xabb   :  { %14998 = vmatprep.mubr.bf16.mxu1 %v27811_v5  ;;  %v22857_v5 = vld [vmem:[%s29694_s10 + $0x126c] ss:$16 sps:$4 sm:$0xff]  }
 0xabc   :  { %v22920_v1 = vld [vmem:[%s29694_s10 + $0x84c] ss:$16 sps:$4 sm:$0xff]  }
 0xabd   :  { %12566 = vmatpush1.bf16.msra.mxu0 %v22840_v52  ;;  %14969 = vmatpush1.bf16.msra.mxu1 %v22843_v56  ;;  %v22923_v52 = vld [vmem:[%s29694_s10 + $0x13cc] ss:$16 sps:$4 sm:$0xff]   ;;  %v22921_v56 = vld [vmem:[%s29694_s10 + $0x13c8] ss:$16 sps:$4 sm:$0xff]  }
 0xabe   :  { %12567 = vmatprep.subr.bf16.mxu0 %v22848_v15  ;;  %14970 = vmatprep.subr.bf16.mxu1 %v22851_v25  ;;  %v22926_v15 = vld [vmem:[%s29694_s10 + $0x86c] ss:$16 sps:$4 sm:$0xff]  }
 0xabf   :  { %v22929_v25 = vld [vmem:[%s29694_s10 + $0x13ec] ss:$16 sps:$4 sm:$0xff]  }
 0xac1   :  { %12568 = vmatpush1.bf16.msra.mxu0 %v22846_v18  ;;  %14971 = vmatpush1.bf16.msra.mxu1 %v22849_v40  ;;  %v22924_v18 = vld [vmem:[%s29694_s10 + $0x868] ss:$16 sps:$4 sm:$0xff]  }
 0xac2   :  { %12569 = vmatprep.subr.bf16.mxu0 %v22854_v58  ;;  %14972 = vmatprep.subr.bf16.mxu1 %v22857_v5  ;;  %v22927_v40 = vld [vmem:[%s29694_s10 + $0x13e8] ss:$16 sps:$4 sm:$0xff]   ;;  %v22932_v58 = vld [vmem:[%s29694_s10 + $0x88c] ss:$16 sps:$4 sm:$0xff]   ;;  %v22935_v5 = vld [vmem:[%s29694_s10 + $0x1404] ss:$16 sps:$4 sm:$0xff]  }
 0xac5   :  { %12570 = vmatpush1.bf16.msra.mxu0 %v22852_v29  ;;  %14973 = vmatpush1.bf16.msra.mxu1 %v22855_v10  ;;  %v22930_v29 = vld [vmem:[%s29694_s10 + $0x888] ss:$16 sps:$4 sm:$0xff]   ;;  %v22933_v10 = vld [vmem:[%s29694_s10 + $0x1400] ss:$16 sps:$4 sm:$0xff]  }
 0xac6   :  { %12571 = vmatprep.subr.bf16.mxu0 %v22860_v45  ;;  %14974 = vmatprep.subr.bf16.mxu1 %v22863_v44  ;;  %v22938_v45 = vld [vmem:[%s29694_s10 + $0x8ac] ss:$16 sps:$4 sm:$0xff]   ;;  %v22941_v44 = vld [vmem:[%s29694_s10 + $0x1424] ss:$16 sps:$4 sm:$0xff]  }
 0xac9   :  { %12572 = vmatpush1.bf16.msra.mxu0 %v22858_v57  ;;  %14975 = vmatpush1.bf16.msra.mxu1 %v22861_v38  ;;  %v28220_v57 = vpack.c.bf16 %v27996_v39, %v27996_v39  ;;  %v22936_v38 = vld [vmem:[%s29694_s10 + $0x8a8] ss:$16 sps:$4 sm:$0xff]   ;;  %v22947_v39 = vld [vmem:[%s29694_s10 + $0x1444] ss:$16 sps:$4 sm:$0xff]  }
 0xaca   :  { %12573 = vmatprep.subr.bf16.mxu0 %v22866_v12  ;;  %14976 = vmatprep.subr.bf16.mxu1 %v22869_v9  ;;  %v22939_v12 = vld [vmem:[%s29694_s10 + $0x1420] ss:$16 sps:$4 sm:$0xff]   ;;  %v22944_v9 = vld [vmem:[%s29694_s10 + $0x8cc] ss:$16 sps:$4 sm:$0xff]  }
 0xacd   :  { %12574 = vmatpush1.bf16.msra.mxu0 %v22864_v49  ;;  %14977 = vmatpush1.bf16.msra.mxu1 %v22867_v22  ;;  %v22945_v49 = vld [vmem:[%s29694_s10 + $0x1440] ss:$16 sps:$4 sm:$0xff]   ;;  %v22950_v22 = vld [vmem:[%s29694_s10 + $0x8ec] ss:$16 sps:$4 sm:$0xff]  }
 0xace   :  { %12575 = vmatprep.subr.bf16.mxu0 %v22872_v36  ;;  %14978 = vmatprep.subr.bf16.mxu1 %v22875_v28  ;;  %v22953_v36 = vld [vmem:[%s29694_s10 + $0x1464] ss:$16 sps:$4 sm:$0xff]   ;;  %v22948_v28 = vld [vmem:[%s29694_s10 + $0x8e8] ss:$16 sps:$4 sm:$0xff]  }
 0xad1   :  { %12576 = vmatpush1.bf16.msra.mxu0 %v22870_v51  ;;  %14979 = vmatpush1.bf16.msra.mxu1 %v22873_v60  ;;  %v22951_v51 = vld [vmem:[%s29694_s10 + $0x1460] ss:$16 sps:$4 sm:$0xff]   ;;  %v22956_v60 = vld [vmem:[%s29694_s10 + $0x90c] ss:$16 sps:$4 sm:$0xff]  }
 0xad2   :  { %12577 = vmatprep.subr.bf16.mxu0 %v22878_v43  ;;  %14980 = vmatprep.subr.bf16.mxu1 %v22881_v33  ;;  %v22959_v43 = vld [vmem:[%s29694_s10 + $0x1484] ss:$16 sps:$4 sm:$0xff]   ;;  %v22954_v33 = vld [vmem:[%s29694_s10 + $0x908] ss:$16 sps:$4 sm:$0xff]  }
 0xad5   :  { %12578 = vmatpush1.bf16.msra.mxu0 %v22876_v35  ;;  %14981 = vmatpush1.bf16.msra.mxu1 %v22879_v32  ;;  %v22957_v35 = vld [vmem:[%s29694_s10 + $0x1480] ss:$16 sps:$4 sm:$0xff]   ;;  %v22962_v32 = vld [vmem:[%s29694_s10 + $0x92c] ss:$16 sps:$4 sm:$0xff]  }
 0xad6   :  { %12579 = vmatprep.subr.bf16.mxu0 %v22884_v47  ;;  %14982 = vmatprep.subr.bf16.mxu1 %v22887_v37  ;;  %v22965_v47 = vld [vmem:[%s29694_s10 + $0x14a4] ss:$16 sps:$4 sm:$0xff]   ;;  %v22960_v37 = vld [vmem:[%s29694_s10 + $0x928] ss:$16 sps:$4 sm:$0xff]  }
 0xad9   :  { %12580 = vmatpush1.bf16.msra.mxu0 %v22882_v53  ;;  %14983 = vmatpush1.bf16.msra.mxu1 %v22885_v46  ;;  %v22963_v53 = vld [vmem:[%s29694_s10 + $0x14a0] ss:$16 sps:$4 sm:$0xff]   ;;  %v22968_v46 = vld [vmem:[%s29694_s10 + $0x94c] ss:$16 sps:$4 sm:$0xff]  }
 0xada   :  { %12581 = vmatprep.subr.bf16.mxu0 %v22890_v13  ;;  %14984 = vmatprep.subr.bf16.mxu1 %v22893_v62  ;;  %v22971_v13 = vld [vmem:[%s29694_s10 + $0x14c4] ss:$16 sps:$4 sm:$0xff]   ;;  %v22966_v62 = vld [vmem:[%s29694_s10 + $0x948] ss:$16 sps:$4 sm:$0xff]  }
 0xadd   :  { %12582 = vmatpush1.bf16.msra.mxu0 %v22888_v20  ;;  %14985 = vmatpush1.bf16.msra.mxu1 %v22891_v0  ;;  %v22969_v20 = vld [vmem:[%s29694_s10 + $0x14c0] ss:$16 sps:$4 sm:$0xff]   ;;  %v22974_v0 = vld [vmem:[%s29694_s10 + $0x96c] ss:$16 sps:$4 sm:$0xff]  }
 0xade   :  { %12583 = vmatprep.subr.bf16.mxu0 %v22896_v6  ;;  %14986 = vmatprep.subr.bf16.mxu1 %v22899_v23  ;;  %v22977_v6 = vld [vmem:[%s29694_s10 + $0x14e4] ss:$16 sps:$4 sm:$0xff]   ;;  %v22972_v23 = vld [vmem:[%s29694_s10 + $0x968] ss:$16 sps:$4 sm:$0xff]  }
 0xae1   :  { %12584 = vmatpush1.bf16.msra.mxu0 %v22894_v42  ;;  %14987 = vmatpush1.bf16.msra.mxu1 %v22897_v63  ;;  %v22975_v42 = vld [vmem:[%s29694_s10 + $0x14e0] ss:$16 sps:$4 sm:$0xff]   ;;  %v22980_v63 = vld [vmem:[%s29694_s10 + $0x98c] ss:$16 sps:$4 sm:$0xff]  }
 0xae2   :  { %12585 = vmatprep.subr.bf16.mxu0 %v22902_v24  ;;  %14988 = vmatprep.subr.bf16.mxu1 %v22905_v41  ;;  %v22983_v24 = vld [vmem:[%s29694_s10 + $0x1504] ss:$16 sps:$4 sm:$0xff]   ;;  %v22978_v41 = vld [vmem:[%s29694_s10 + $0x988] ss:$16 sps:$4 sm:$0xff]  }
 0xae5   :  { %12586 = vmatpush1.bf16.msra.mxu0 %v22900_v7  ;;  %14989 = vmatpush1.bf16.msra.mxu1 %v22903_v31  ;;  %v22981_v7 = vld [vmem:[%s29694_s10 + $0x1500] ss:$16 sps:$4 sm:$0xff]   ;;  %v22986_v31 = vld [vmem:[%s29694_s10 + $0x9ac] ss:$16 sps:$4 sm:$0xff]  }
 0xae6   :  { %12596 = vmatprep.subr.bf16.mxu0 %v22908_v55  ;;  %14990 = vmatprep.subr.bf16.mxu1 %v22911_v3  ;;  %v22989_v55 = vld [vmem:[%s29694_s10 + $0x1524] ss:$16 sps:$4 sm:$0xff]   ;;  %v22984_v3 = vld [vmem:[%s29694_s10 + $0x9a8] ss:$16 sps:$4 sm:$0xff]  }
 0xae8   :  { %12588 = vmatmul.mubr.bf16.vlgmr.msra.gmra.mrb[104].mxu0 %v28157_v17 }
 0xae9   :  { %12597 = vmatpush1.bf16.msra.mxu0 %v22906_v59  ;;  %12628 = vmatprep.mubr.bf16.mxu0 %v27955_v34  ;;  %v22918_v34 = vld [vmem:[%s29694_s10 + $0x848] ss:$16 sps:$4 sm:$0xff]   ;;  %v22987_v59 = vld [vmem:[%s29694_s10 + $0x1520] ss:$16 sps:$4 sm:$0xff]  }
 0xaea   :  { %14991 = vmatpush1.bf16.msra.mxu1 %v22909_v14  ;;  %12598 = vmatprep.subr.bf16.mxu0 %v22914_v50  ;;  %v22992_v14 = vld [vmem:[%s29694_s10 + $0x9cc] ss:$16 sps:$4 sm:$0xff]   ;;  %v22995_v50 = vld [vmem:[%s29694_s10 + $0x1544] ss:$16 sps:$4 sm:$0xff]  }
 0xaeb   :  { %14992 = vmatprep.subr.bf16.mxu1 %v22917_v4  ;;  %v22990_v4 = vld [vmem:[%s29694_s10 + $0x9c8] ss:$16 sps:$4 sm:$0xff]  }
 0xaed   :  { %12599 = vmatpush1.bf16.msra.mxu0 %v22912_v27  ;;  %v22993_v27 = vld [vmem:[%s29694_s10 + $0x1540] ss:$16 sps:$4 sm:$0xff]  }
 0xaee   :  { %14993 = vmatpush1.bf16.msra.mxu1 %v22915_v8  ;;  %12600 = vmatprep.subr.bf16.mxu0 %v22920_v1  ;;  %v22998_v8 = vld [vmem:[%s29694_s10 + $0x9ec] ss:$16 sps:$4 sm:$0xff]   ;;  %v23001_v1 = vld [vmem:[%s29694_s10 + $0x1564] ss:$16 sps:$4 sm:$0xff]  }
 0xaef   :  { %14994 = vmatprep.subr.bf16.mxu1 %v22923_v52  ;;  %v22996_v52 = vld [vmem:[%s29694_s10 + $0x9e8] ss:$16 sps:$4 sm:$0xff]  }
 0xaf1   :  { %12601 = vmatpush1.bf16.msra.mxu0 %v22918_v34  ;;  %v22999_v34 = vld [vmem:[%s29694_s10 + $0x1560] ss:$16 sps:$4 sm:$0xff]  }
 0xaf2   :  { %14995 = vmatpush1.bf16.msra.mxu1 %v22921_v56  ;;  %12602 = vmatprep.subr.bf16.mxu0 %v22926_v15  ;;  %v23004_v56 = vld [vmem:[%s29694_s10 + $0xa04] ss:$16 sps:$4 sm:$0xff]  }
 0xaf3   :  { %14996 = vmatprep.subr.bf16.mxu1 %v22929_v25  ;;  %v23007_v15 = vld [vmem:[%s29694_s10 + $0x1584] ss:$16 sps:$4 sm:$0xff]   ;;  %v23002_v25 = vld [vmem:[%s29694_s10 + $0xa00] ss:$16 sps:$4 sm:$0xff]  }
 0xaf5   :  { %12603 = vmatpush1.bf16.msra.mxu0 %v22924_v18  ;;  %v23005_v18 = vld [vmem:[%s29694_s10 + $0x1580] ss:$16 sps:$4 sm:$0xff]  }
 0xaf6   :  { %14997 = vmatpush1.bf16.msra.mxu1 %v22927_v40  ;;  %12604 = vmatprep.subr.bf16.mxu0 %v22932_v58  ;;  %v23010_v40 = vld [vmem:[%s29694_s10 + $0xa24] ss:$16 sps:$4 sm:$0xff]  }
 0xaf7   :  { %15399 = vmatprep.subr.bf16.mxu1 %v22935_v5  ;;  %v23013_v58 = vld [vmem:[%s29694_s10 + $0x15a4] ss:$16 sps:$4 sm:$0xff]   ;;  %v23008_v5 = vld [vmem:[%s29694_s10 + $0xa20] ss:$16 sps:$4 sm:$0xff]  }
 0xaf9   :  { %12605 = vmatpush1.bf16.msra.mxu0 %v22930_v29  ;;  %14999 = vmatmul.mubr.bf16.vlgmr.msra.gmra.mrb[16].mxu1 %v28006_v48  ;;  %v22942_v48 = vld [vmem:[%s29694_s10 + $0x8c8] ss:$16 sps:$4 sm:$0xff]   ;;  %v23011_v29 = vld [vmem:[%s29694_s10 + $0x15a0] ss:$16 sps:$4 sm:$0xff]  }
 0xafa   :  { %15400 = vmatpush1.bf16.msra.mxu1 %v22933_v10  ;;  %12606 = vmatprep.subr.bf16.mxu0 %v22938_v45  ;;  %v23016_v10 = vld [vmem:[%s29694_s10 + $0xa44] ss:$16 sps:$4 sm:$0xff]   ;;  %v23017_v45 = vld [vmem:[%s29694_s10 + $0x15c0] ss:$16 sps:$4 sm:$0xff]  }
 0xafb   :  { %15401 = vmatprep.subr.bf16.mxu1 %v22941_v44  ;;  %15431 = vmatprep.mubr.bf16.mxu1 %v28220_v57  ;;  %v23022_v44 = vld [vmem:[%s29694_s10 + $0xa64] ss:$16 sps:$4 sm:$0xff]  }
 0xafd   :  { %12607 = vmatpush1.bf16.msra.mxu0 %v22936_v38  ;;  %v23025_v38 = vld [vmem:[%s29694_s10 + $0x15e4] ss:$16 sps:$4 sm:$0xff]  }
 0xafe   :  { %15402 = vmatpush1.bf16.msra.mxu1 %v22939_v12  ;;  %12608 = vmatprep.subr.bf16.mxu0 %v22944_v9  ;;  %v23020_v12 = vld [vmem:[%s29694_s10 + $0xa60] ss:$16 sps:$4 sm:$0xff]  }
 0xaff   :  { %15403 = vmatprep.subr.bf16.mxu1 %v22947_v39  ;;  %v23023_v9 = vld [vmem:[%s29694_s10 + $0x15e0] ss:$16 sps:$4 sm:$0xff]   ;;  %v23028_v39 = vld [vmem:[%s29694_s10 + $0xa84] ss:$16 sps:$4 sm:$0xff]  }
 0xb01   :  { %12609 = vmatpush1.bf16.msra.mxu0 %v22942_v48  ;;  %v23031_v48 = vld [vmem:[%s29694_s10 + $0x140c] ss:$16 sps:$4 sm:$0xff]  }
 0xb02   :  { %15404 = vmatpush1.bf16.msra.mxu1 %v22945_v49  ;;  %12610 = vmatprep.subr.bf16.mxu0 %v22950_v22  ;;  %v28408_v49 = vpack.c.bf16 %v27994_v16, %v27994_v16  ;;  %v23026_v22 = vld [vmem:[%s29694_s10 + $0xa80] ss:$16 sps:$4 sm:$0xff]   ;;  %v23037_v16 = vld [vmem:[%s29694_s10 + $0x142c] ss:$16 sps:$4 sm:$0xff]  }
 0xb03   :  { %15405 = vmatprep.subr.bf16.mxu1 %v22953_v36  ;;  %v23029_v36 = vld [vmem:[%s29694_s10 + $0x1408] ss:$16 sps:$4 sm:$0xff]  }
 0xb05   :  { %12611 = vmatpush1.bf16.msra.mxu0 %v22948_v28  ;;  %v23034_v28 = vld [vmem:[%s29694_s10 + $0xaa4] ss:$16 sps:$4 sm:$0xff]  }
 0xb06   :  { %15406 = vmatpush1.bf16.msra.mxu1 %v22951_v51  ;;  %12612 = vmatprep.subr.bf16.mxu0 %v22956_v60  ;;  %v23032_v51 = vld [vmem:[%s29694_s10 + $0xaa0] ss:$16 sps:$4 sm:$0xff]   ;;  %v23035_v60 = vld [vmem:[%s29694_s10 + $0x1428] ss:$16 sps:$4 sm:$0xff]  }
 0xb07   :  { %15407 = vmatprep.subr.bf16.mxu1 %v22959_v43  ;;  %v23040_v43 = vld [vmem:[%s29694_s10 + $0xac4] ss:$16 sps:$4 sm:$0xff]  }
 0xb09   :  { %12613 = vmatpush1.bf16.msra.mxu0 %v22954_v33  ;;  %v23043_v33 = vld [vmem:[%s29694_s10 + $0x144c] ss:$16 sps:$4 sm:$0xff]  }
 0xb0a   :  { %15408 = vmatpush1.bf16.msra.mxu1 %v22957_v35  ;;  %12614 = vmatprep.subr.bf16.mxu0 %v22962_v32  ;;  %v23038_v35 = vld [vmem:[%s29694_s10 + $0xac0] ss:$16 sps:$4 sm:$0xff]   ;;  %v23041_v32 = vld [vmem:[%s29694_s10 + $0x1448] ss:$16 sps:$4 sm:$0xff]  }
 0xb0b   :  { %15409 = vmatprep.subr.bf16.mxu1 %v22965_v47  ;;  %v23046_v47 = vld [vmem:[%s29694_s10 + $0xae4] ss:$16 sps:$4 sm:$0xff]  }
 0xb0d   :  { %12615 = vmatpush1.bf16.msra.mxu0 %v22960_v37  ;;  %v23044_v37 = vld [vmem:[%s29694_s10 + $0xae0] ss:$16 sps:$4 sm:$0xff]  }
 0xb0e   :  { %15410 = vmatpush1.bf16.msra.mxu1 %v22963_v53  ;;  %12616 = vmatprep.subr.bf16.mxu0 %v22968_v46  ;;  %v23047_v53 = vld [vmem:[%s29694_s10 + $0x1468] ss:$16 sps:$4 sm:$0xff]   ;;  %v23052_v46 = vld [vmem:[%s29694_s10 + $0xb04] ss:$16 sps:$4 sm:$0xff]  }
 0xb0f   :  { %15411 = vmatprep.subr.bf16.mxu1 %v22971_v13  ;;  %v23055_v13 = vld [vmem:[%s29694_s10 + $0x148c] ss:$16 sps:$4 sm:$0xff]  }
 0xb11   :  { %12617 = vmatpush1.bf16.msra.mxu0 %v22966_v62  ;;  %v23050_v62 = vld [vmem:[%s29694_s10 + $0xb00] ss:$16 sps:$4 sm:$0xff]  }
 0xb12   :  { %15412 = vmatpush1.bf16.msra.mxu1 %v22969_v20  ;;  %12618 = vmatprep.subr.bf16.mxu0 %v22974_v0  ;;  %v23053_v20 = vld [vmem:[%s29694_s10 + $0x1488] ss:$16 sps:$4 sm:$0xff]   ;;  %v23058_v0 = vld [vmem:[%s29694_s10 + $0xb24] ss:$16 sps:$4 sm:$0xff]  }
 0xb13   :  { %15413 = vmatprep.subr.bf16.mxu1 %v22977_v6  ;;  %v23061_v6 = vld [vmem:[%s29694_s10 + $0x14ac] ss:$16 sps:$4 sm:$0xff]  }
 0xb15   :  { %12619 = vmatpush1.bf16.msra.mxu0 %v22972_v23  ;;  %v23056_v23 = vld [vmem:[%s29694_s10 + $0xb20] ss:$16 sps:$4 sm:$0xff]  }
 0xb16   :  { %15414 = vmatpush1.bf16.msra.mxu1 %v22975_v42  ;;  %12620 = vmatprep.subr.bf16.mxu0 %v22980_v63  ;;  %v23059_v42 = vld [vmem:[%s29694_s10 + $0x14a8] ss:$16 sps:$4 sm:$0xff]   ;;  %v23064_v63 = vld [vmem:[%s29694_s10 + $0xb44] ss:$16 sps:$4 sm:$0xff]  }
 0xb17   :  { %15415 = vmatprep.subr.bf16.mxu1 %v22983_v24  ;;  %v23067_v24 = vld [vmem:[%s29694_s10 + $0x14cc] ss:$16 sps:$4 sm:$0xff]  }
 0xb19   :  { %12621 = vmatpush1.bf16.msra.mxu0 %v22978_v41  ;;  %v23062_v41 = vld [vmem:[%s29694_s10 + $0xb40] ss:$16 sps:$4 sm:$0xff]  }
 0xb1a   :  { %15416 = vmatpush1.bf16.msra.mxu1 %v22981_v7  ;;  %12622 = vmatprep.subr.bf16.mxu0 %v22986_v31  ;;  %v23065_v7 = vld [vmem:[%s29694_s10 + $0x14c8] ss:$16 sps:$4 sm:$0xff]   ;;  %v23070_v31 = vld [vmem:[%s29694_s10 + $0xb64] ss:$16 sps:$4 sm:$0xff]  }
 0xb1b   :  { %15417 = vmatprep.subr.bf16.mxu1 %v22989_v55  ;;  %v23073_v55 = vld [vmem:[%s29694_s10 + $0x14ec] ss:$16 sps:$4 sm:$0xff]  }
 0xb1d   :  { %12623 = vmatpush1.bf16.msra.mxu0 %v22984_v3  ;;  %v23068_v3 = vld [vmem:[%s29694_s10 + $0xb60] ss:$16 sps:$4 sm:$0xff]  }
 0xb1e   :  { %15418 = vmatpush1.bf16.msra.mxu1 %v22987_v59  ;;  %12624 = vmatprep.subr.bf16.mxu0 %v22992_v14  ;;  %v23071_v59 = vld [vmem:[%s29694_s10 + $0x14e8] ss:$16 sps:$4 sm:$0xff]   ;;  %v23076_v14 = vld [vmem:[%s29694_s10 + $0xb84] ss:$16 sps:$4 sm:$0xff]  }
 0xb1f   :  { %15419 = vmatprep.subr.bf16.mxu1 %v22995_v50  ;;  %v23079_v50 = vld [vmem:[%s29694_s10 + $0x150c] ss:$16 sps:$4 sm:$0xff]  }
 0xb21   :  { %12625 = vmatpush1.bf16.msra.mxu0 %v22990_v4  ;;  %v23074_v4 = vld [vmem:[%s29694_s10 + $0xb80] ss:$16 sps:$4 sm:$0xff]  }
 0xb22   :  { %15420 = vmatpush1.bf16.msra.mxu1 %v22993_v27  ;;  %12626 = vmatprep.subr.bf16.mxu0 %v22998_v8  ;;  %v23077_v27 = vld [vmem:[%s29694_s10 + $0x1508] ss:$16 sps:$4 sm:$0xff]   ;;  %v23082_v8 = vld [vmem:[%s29694_s10 + $0xba4] ss:$16 sps:$4 sm:$0xff]  }
 0xb23   :  { %15421 = vmatprep.subr.bf16.mxu1 %v23001_v1  ;;  %v23085_v1 = vld [vmem:[%s29694_s10 + $0x152c] ss:$16 sps:$4 sm:$0xff]  }
 0xb25   :  { %12627 = vmatpush1.bf16.msra.mxu0 %v22996_v52  ;;  %v23080_v52 = vld [vmem:[%s29694_s10 + $0xba0] ss:$16 sps:$4 sm:$0xff]  }
 0xb26   :  { %15422 = vmatpush1.bf16.msra.mxu1 %v22999_v34  ;;  %13029 = vmatprep.subr.bf16.mxu0 %v23004_v56  ;;  %v23083_v34 = vld [vmem:[%s29694_s10 + $0x1528] ss:$16 sps:$4 sm:$0xff]   ;;  %v23088_v56 = vld [vmem:[%s29694_s10 + $0xbc4] ss:$16 sps:$4 sm:$0xff]  }
 0xb27   :  { %15423 = vmatprep.subr.bf16.mxu1 %v23007_v15  ;;  %v23091_v15 = vld [vmem:[%s29694_s10 + $0x154c] ss:$16 sps:$4 sm:$0xff]  }
 0xb28   :  { %12629 = vmatmul.mubr.bf16.vlgmr.msra.gmra.mrb[108].mxu0 %v28157_v17  ;;  %v23019_v17 = vld [vmem:[%s29694_s10 + $0x15c4] ss:$16 sps:$4 sm:$0xff]  }
 0xb29   :  { %13030 = vmatpush1.bf16.msra.mxu0 %v23002_v25  ;;  %13061 = vmatprep.mubr.bf16.mxu0 %v26549_v61  ;;  %v23014_v61 = vld [vmem:[%s29694_s10 + $0xa40] ss:$16 sps:$4 sm:$0xff]  }
 0xb2a   :  { %15424 = vmatpush1.bf16.msra.mxu1 %v23005_v18  ;;  %13031 = vmatprep.subr.bf16.mxu0 %v23010_v40  ;;  %v23086_v25 = vld [vmem:[%s29694_s10 + $0xbc0] ss:$16 sps:$4 sm:$0xff]   ;;  %v23089_v18 = vld [vmem:[%s29694_s10 + $0x1548] ss:$16 sps:$4 sm:$0xff]   ;;  %v23094_v40 = vld [vmem:[%s29694_s10 + $0xbe4] ss:$16 sps:$4 sm:$0xff]  }
 0xb2b   :  { %15425 = vmatprep.subr.bf16.mxu1 %v23013_v58  ;;  %v23097_v58 = vld [vmem:[%s29694_s10 + $0x156c] ss:$16 sps:$4 sm:$0xff]  }
 0xb2d   :  { %13032 = vmatpush1.bf16.msra.mxu0 %v23008_v5  ;;  %v23092_v5 = vld [vmem:[%s29694_s10 + $0xbe0] ss:$16 sps:$4 sm:$0xff]  }
 0xb2e   :  { %15426 = vmatpush1.bf16.msra.mxu1 %v23011_v29  ;;  %13033 = vmatprep.subr.bf16.mxu0 %v23016_v10  ;;  %v23095_v29 = vld [vmem:[%s29694_s10 + $0x1568] ss:$16 sps:$4 sm:$0xff]   ;;  %v23100_v10 = vld [vmem:[%s29694_s10 + $0x158c] ss:$16 sps:$4 sm:$0xff]  }
 0xb2f   :  { %15427 = vmatprep.subr.bf16.mxu1 %v23019_v17  ;;  %v23098_v17 = vld [vmem:[%s29694_s10 + $0x1588] ss:$16 sps:$4 sm:$0xff]  }
 0xb31   :  { %13034 = vmatpush1.bf16.msra.mxu0 %v23014_v61  ;;  %v23103_v61 = vld [vmem:[%s29694_s10 + $0x15ac] ss:$16 sps:$4 sm:$0xff]  }
 0xb32   :  { %15428 = vmatpush1.bf16.msra.mxu1 %v23017_v45  ;;  %13035 = vmatprep.subr.bf16.mxu0 %v23022_v44  ;;  %v23101_v45 = vld [vmem:[%s29694_s10 + $0x15a8] ss:$16 sps:$4 sm:$0xff]   ;;  %v23106_v44 = vld [vmem:[%s29694_s10 + $0x15cc] ss:$16 sps:$4 sm:$0xff]  }
 0xb33   :  { %15429 = vmatprep.subr.bf16.mxu1 %v23025_v38  ;;  %v23104_v38 = vld [vmem:[%s29694_s10 + $0x15c8] ss:$16 sps:$4 sm:$0xff]  }
 0xb35   :  { %13036 = vmatpush1.bf16.msra.mxu0 %v23020_v12  ;;  %v23107_v12 = vld [vmem:[%s29694_s10 + $0x15e8] ss:$16 sps:$4 sm:$0xff]  }
 0xb36   :  { %15430 = vmatpush1.bf16.msra.mxu1 %v23023_v9  ;;  %13037 = vmatprep.subr.bf16.mxu0 %v23028_v39  ;;  %v28575_v9 = vpop.f32.mrb[96].mxu0  ;;  %v23112_v39 = vld [vmem:[%s29694_s10 + $0x1604] ss:$16 sps:$4 sm:$0xff]  }
 0xb37   :  { %15440 = vmatprep.subr.bf16.mxu1 %v23031_v48  ;;  %v28580_v48 = vpop.f32.mrb[97].mxu0 }
 0xb39   :  { %13038 = vmatpush1.bf16.msra.mxu0 %v23026_v22  ;;  %15432 = vmatmul.mubr.bf16.vlgmr.msra.gmra.mrb[20].mxu1 %v28408_v49  ;;  %v28582_v22 = vpop.f32.mrb[98].mxu0 }
 0xb3a   :  { %15441 = vmatpush1.bf16.msra.mxu1 %v23029_v36  ;;  %13039 = vmatprep.subr.bf16.mxu0 %v23034_v28  ;;  %v23110_v36 = vld [vmem:[%s29694_s10 + $0x1600] ss:$16 sps:$4 sm:$0xff]   ;;  %v28587_v28 = vpop.f32.mrb[99].mxu0 }
 0xb3b   :  { %15442 = vmatprep.subr.bf16.mxu1 %v23037_v16  ;;  %15472 = vmatprep.mubr.bf16.mxu1 %v28220_v57  ;;  %v23049_v57 = vld [vmem:[%s29694_s10 + $0x146c] ss:$16 sps:$4 sm:$0xff]   ;;  %v23115_v16 = vld [vmem:[%s29694_s10 + $0x1624] ss:$16 sps:$4 sm:$0xff]  }
 0xb3d   :  { %13040 = vmatpush1.bf16.msra.mxu0 %v23032_v51  ;;  %v28592_v51 = vpop.f32.mrb[100].mxu0 }
 0xb3e   :  { %15443 = vmatpush1.bf16.msra.mxu1 %v23035_v60  ;;  %13041 = vmatprep.subr.bf16.mxu0 %v23040_v43  ;;  %v28596_v60 = vpack.c.bf16 %v28066_v2, %v28066_v2  ;;  %v28598_v43 = vpop.f32.mrb[101].mxu0  ;;  %v23118_v2 = vld [vmem:[%s29694_s10 + $0x1644] ss:$16 sps:$4 sm:$0xff]  }
 0xb3f   :  { %15444 = vmatprep.subr.bf16.mxu1 %v23043_v33  ;;  %v28601_v33 = vpop.f32.mrb[102].mxu0 }
 0xb41   :  { %13042 = vmatpush1.bf16.msra.mxu0 %v23038_v35  ;;  %v23113_v35 = vld [vmem:[%s29694_s10 + $0x1620] ss:$16 sps:$4 sm:$0xff]  }
 0xb42   :  { %15445 = vmatpush1.bf16.msra.mxu1 %v23041_v32  ;;  %13043 = vmatprep.subr.bf16.mxu0 %v23046_v47  ;;  %v28607_v32 = vpop.f32.mrb[103].mxu0  ;;  %v23121_v47 = vld [vmem:[%s29694_s10 + $0x1664] ss:$16 sps:$4 sm:$0xff]  }
 0xb43   :  { %15446 = vmatprep.subr.bf16.mxu1 %v23049_v57  ;;  %v23119_v57 = vld [vmem:[%s29694_s10 + $0x1660] ss:$16 sps:$4 sm:$0xff]  }
 0xb45   :  { %13044 = vmatpush1.bf16.msra.mxu0 %v23044_v37  ;;  %v23124_v37 = vld [vmem:[%s29694_s10 + $0x1684] ss:$16 sps:$4 sm:$0xff]  }
 0xb46   :  { %15447 = vmatpush1.bf16.msra.mxu1 %v23047_v53  ;;  %13045 = vmatprep.subr.bf16.mxu0 %v23052_v46  ;;  %v23122_v53 = vld [vmem:[%s29694_s10 + $0x1680] ss:$16 sps:$4 sm:$0xff]   ;;  %v23127_v46 = vld [vmem:[%s29694_s10 + $0x16a4] ss:$16 sps:$4 sm:$0xff]  }
 0xb47   :  { %15448 = vmatprep.subr.bf16.mxu1 %v23055_v13  ;;  %v23125_v13 = vld [vmem:[%s29694_s10 + $0x16a0] ss:$16 sps:$4 sm:$0xff]  }
 0xb49   :  { %13046 = vmatpush1.bf16.msra.mxu0 %v23050_v62  ;;  %v23130_v62 = vld [vmem:[%s29694_s10 + $0x16c4] ss:$16 sps:$4 sm:$0xff]  }
 0xb4a   :  { %15449 = vmatpush1.bf16.msra.mxu1 %v23053_v20  ;;  %13047 = vmatprep.subr.bf16.mxu0 %v23058_v0  ;;  %v23128_v20 = vld [vmem:[%s29694_s10 + $0x16c0] ss:$16 sps:$4 sm:$0xff]   ;;  %v23133_v0 = vld [vmem:[%s29694_s10 + $0x16e4] ss:$16 sps:$4 sm:$0xff]  }
 0xb4b   :  { %15450 = vmatprep.subr.bf16.mxu1 %v23061_v6  ;;  %v23131_v6 = vld [vmem:[%s29694_s10 + $0x16e0] ss:$16 sps:$4 sm:$0xff]  }
 0xb4d   :  { %13048 = vmatpush1.bf16.msra.mxu0 %v23056_v23  ;;  %v23136_v23 = vld [vmem:[%s29694_s10 + $0x1704] ss:$16 sps:$4 sm:$0xff]  }
 0xb4e   :  { %15451 = vmatpush1.bf16.msra.mxu1 %v23059_v42  ;;  %13049 = vmatprep.subr.bf16.mxu0 %v23064_v63  ;;  %v23134_v42 = vld [vmem:[%s29694_s10 + $0x1700] ss:$16 sps:$4 sm:$0xff]   ;;  %v23139_v63 = vld [vmem:[%s29694_s10 + $0x1724] ss:$16 sps:$4 sm:$0xff]  }
 0xb4f   :  { %15452 = vmatprep.subr.bf16.mxu1 %v23067_v24  ;;  %v23137_v24 = vld [vmem:[%s29694_s10 + $0x1720] ss:$16 sps:$4 sm:$0xff]  }
 0xb51   :  { %13050 = vmatpush1.bf16.msra.mxu0 %v23062_v41  ;;  %v23142_v41 = vld [vmem:[%s29694_s10 + $0x1744] ss:$16 sps:$4 sm:$0xff]  }
 0xb52   :  { %15453 = vmatpush1.bf16.msra.mxu1 %v23065_v7  ;;  %13051 = vmatprep.subr.bf16.mxu0 %v23070_v31  ;;  %v23140_v7 = vld [vmem:[%s29694_s10 + $0x1740] ss:$16 sps:$4 sm:$0xff]   ;;  %v23145_v31 = vld [vmem:[%s29694_s10 + $0x1764] ss:$16 sps:$4 sm:$0xff]  }
 0xb53   :  { %15454 = vmatprep.subr.bf16.mxu1 %v23073_v55  ;;  %v23143_v55 = vld [vmem:[%s29694_s10 + $0x1760] ss:$16 sps:$4 sm:$0xff]  }
 0xb55   :  { %13052 = vmatpush1.bf16.msra.mxu0 %v23068_v3  ;;  %v23148_v3 = vld [vmem:[%s29694_s10 + $0x1784] ss:$16 sps:$4 sm:$0xff]  }
 0xb56   :  { %15455 = vmatpush1.bf16.msra.mxu1 %v23071_v59  ;;  %13053 = vmatprep.subr.bf16.mxu0 %v23076_v14  ;;  %v23146_v59 = vld [vmem:[%s29694_s10 + $0x1780] ss:$16 sps:$4 sm:$0xff]   ;;  %v23151_v14 = vld [vmem:[%s29694_s10 + $0x17a4] ss:$16 sps:$4 sm:$0xff]  }
 0xb57   :  { %15456 = vmatprep.subr.bf16.mxu1 %v23079_v50  ;;  %v23149_v50 = vld [vmem:[%s29694_s10 + $0x17a0] ss:$16 sps:$4 sm:$0xff]  }
 0xb59   :  { %13054 = vmatpush1.bf16.msra.mxu0 %v23074_v4  ;;  %v23154_v4 = vld [vmem:[%s29694_s10 + $0x17c4] ss:$16 sps:$4 sm:$0xff]  }
 0xb5a   :  { %15457 = vmatpush1.bf16.msra.mxu1 %v23077_v27  ;;  %13055 = vmatprep.subr.bf16.mxu0 %v23082_v8  ;;  %v23152_v27 = vld [vmem:[%s29694_s10 + $0x17c0] ss:$16 sps:$4 sm:$0xff]   ;;  %v23157_v8 = vld [vmem:[%s29694_s10 + $0x17e4] ss:$16 sps:$4 sm:$0xff]  }
 0xb5b   :  { %15458 = vmatprep.subr.bf16.mxu1 %v23085_v1  ;;  %v23155_v1 = vld [vmem:[%s29694_s10 + $0x17e0] ss:$16 sps:$4 sm:$0xff]  }
 0xb5d   :  { %13056 = vmatpush1.bf16.msra.mxu0 %v23080_v52  ;;  %v23160_v52 = vld [vmem:[%s29694_s10 + $0x160c] ss:$16 sps:$4 sm:$0xff]  }
 0xb5e   :  { %15459 = vmatpush1.bf16.msra.mxu1 %v23083_v34  ;;  %13057 = vmatprep.subr.bf16.mxu0 %v23088_v56  ;;  %v23158_v34 = vld [vmem:[%s29694_s10 + $0x1608] ss:$16 sps:$4 sm:$0xff]   ;;  %v28701_v56 = vpack.c.bf16 %v28064_v11, %v28064_v11  ;;  %v23166_v11 = vld [vmem:[%s29694_s10 + $0x164c] ss:$16 sps:$4 sm:$0xff]  }
 0xb5f   :  { %15460 = vmatprep.subr.bf16.mxu1 %v23091_v15  ;;  %v23163_v15 = vld [vmem:[%s29694_s10 + $0x162c] ss:$16 sps:$4 sm:$0xff]  }
 0xb61   :  { %13058 = vmatpush1.bf16.msra.mxu0 %v23086_v25  ;;  %v23161_v25 = vld [vmem:[%s29694_s10 + $0x1628] ss:$16 sps:$4 sm:$0xff]  }
 0xb62   :  { %15461 = vmatpush1.bf16.msra.mxu1 %v23089_v18  ;;  %13059 = vmatprep.subr.bf16.mxu0 %v23094_v40  ;;  %v23164_v18 = vld [vmem:[%s29694_s10 + $0x1648] ss:$16 sps:$4 sm:$0xff]   ;;  %v23169_v40 = vld [vmem:[%s29694_s10 + $0x166c] ss:$16 sps:$4 sm:$0xff]  }
 0xb63   :  { %15462 = vmatprep.subr.bf16.mxu1 %v23097_v58  ;;  %v23167_v58 = vld [vmem:[%s29694_s10 + $0x1668] ss:$16 sps:$4 sm:$0xff]  }
 0xb65   :  { %13060 = vmatpush1.bf16.msra.mxu0 %v23092_v5  ;;  %v23172_v5 = vld [vmem:[%s29694_s10 + $0x168c] ss:$16 sps:$4 sm:$0xff]  }
 0xb66   :  { %15463 = vmatpush1.bf16.msra.mxu1 %v23095_v29  ;;  %v23170_v29 = vld [vmem:[%s29694_s10 + $0x1688] ss:$16 sps:$4 sm:$0xff]  }
 0xb67   :  { %15464 = vmatprep.subr.bf16.mxu1 %v23100_v10  ;;  %v23175_v10 = vld [vmem:[%s29694_s10 + $0x16ac] ss:$16 sps:$4 sm:$0xff]  }
 0xb68   :  { %13062 = vmatmul.mubr.bf16.vlgmr.msra.gmra.mrb[104].mxu0 %v26557_v26  ;;  %v23109_v26 = vld [vmem:[%s29694_s10 + $0x15ec] ss:$16 sps:$4 sm:$0xff]  }
 0xb6a   :  { %15465 = vmatpush1.bf16.msra.mxu1 %v23098_v17  ;;  %v23173_v17 = vld [vmem:[%s29694_s10 + $0x16a8] ss:$16 sps:$4 sm:$0xff]  }
 0xb6b   :  { %15466 = vmatprep.subr.bf16.mxu1 %v23103_v61  ;;  %v23178_v61 = vld [vmem:[%s29694_s10 + $0x16cc] ss:$16 sps:$4 sm:$0xff]  }
 0xb6e   :  { %15467 = vmatpush1.bf16.msra.mxu1 %v23101_v45  ;;  %v23176_v45 = vld [vmem:[%s29694_s10 + $0x16c8] ss:$16 sps:$4 sm:$0xff]  }
 0xb6f   :  { %15468 = vmatprep.subr.bf16.mxu1 %v23106_v44  ;;  %v23181_v44 = vld [vmem:[%s29694_s10 + $0x16ec] ss:$16 sps:$4 sm:$0xff]  }
 0xb72   :  { %15469 = vmatpush1.bf16.msra.mxu1 %v23104_v38  ;;  %v23179_v38 = vld [vmem:[%s29694_s10 + $0x16e8] ss:$16 sps:$4 sm:$0xff]  }
 0xb73   :  { %15470 = vmatprep.subr.bf16.mxu1 %v23109_v26  ;;  %v23184_v26 = vld [vmem:[%s29694_s10 + $0x170c] ss:$16 sps:$4 sm:$0xff]  }
 0xb76   :  { %15471 = vmatpush1.bf16.msra.mxu1 %v23107_v12  ;;  %v23182_v12 = vld [vmem:[%s29694_s10 + $0x1708] ss:$16 sps:$4 sm:$0xff]  }
 0xb77   :  { %15873 = vmatprep.subr.bf16.mxu1 %v23112_v39  ;;  %v23187_v39 = vld [vmem:[%s29694_s10 + $0x172c] ss:$16 sps:$4 sm:$0xff]  }
 0xb79   :  { %15473 = vmatmul.mubr.bf16.vlgmr.msra.gmra.mrb[16].mxu1 %v28408_v49  ;;  %v23116_v49 = vld [vmem:[%s29694_s10 + $0x1640] ss:$16 sps:$4 sm:$0xff]  }
 0xb7a   :  { %15874 = vmatpush1.bf16.msra.mxu1 %v23110_v36  ;;  %15905 = vmatprep.mubr.bf16.mxu1 %v28596_v60  ;;  %v23185_v36 = vld [vmem:[%s29694_s10 + $0x1728] ss:$16 sps:$4 sm:$0xff]  }
 0xb7b   :  { %15875 = vmatprep.subr.bf16.mxu1 %v23115_v16  ;;  %v23190_v16 = vld [vmem:[%s29694_s10 + $0x174c] ss:$16 sps:$4 sm:$0xff]  }
 0xb7e   :  { %15876 = vmatpush1.bf16.msra.mxu1 %v23113_v35  ;;  %v23193_v35 = vld [vmem:[%s29694_s10 + $0x176c] ss:$16 sps:$4 sm:$0xff]  }
 0xb7f   :  { %15877 = vmatprep.subr.bf16.mxu1 %v23118_v2  ;;  %v23191_v2 = vld [vmem:[%s29694_s10 + $0x1768] ss:$16 sps:$4 sm:$0xff]  }
 0xb82   :  { %15878 = vmatpush1.bf16.msra.mxu1 %v23116_v49  ;;  %v23196_v49 = vld [vmem:[%s29694_s10 + $0x178c] ss:$16 sps:$4 sm:$0xff]  }
 0xb83   :  { %15879 = vmatprep.subr.bf16.mxu1 %v23121_v47  ;;  %v23194_v47 = vld [vmem:[%s29694_s10 + $0x1788] ss:$16 sps:$4 sm:$0xff]  }
 0xb86   :  { %15880 = vmatpush1.bf16.msra.mxu1 %v23119_v57  ;;  %v23199_v57 = vld [vmem:[%s29694_s10 + $0x17ac] ss:$16 sps:$4 sm:$0xff]  }
 0xb87   :  { %15881 = vmatprep.subr.bf16.mxu1 %v23124_v37  ;;  %v23197_v37 = vld [vmem:[%s29694_s10 + $0x17a8] ss:$16 sps:$4 sm:$0xff]  }
 0xb8a   :  { %15882 = vmatpush1.bf16.msra.mxu1 %v23122_v53  ;;  %v23202_v53 = vld [vmem:[%s29694_s10 + $0x17cc] ss:$16 sps:$4 sm:$0xff]  }
 0xb8b   :  { %15883 = vmatprep.subr.bf16.mxu1 %v23127_v46  ;;  %v23200_v46 = vld [vmem:[%s29694_s10 + $0x17c8] ss:$16 sps:$4 sm:$0xff]  }
 0xb8e   :  { %15884 = vmatpush1.bf16.msra.mxu1 %v23125_v13  ;;  %v23205_v13 = vld [vmem:[%s29694_s10 + $0x17ec] ss:$16 sps:$4 sm:$0xff]  }
 0xb8f   :  { %15885 = vmatprep.subr.bf16.mxu1 %v23130_v62  ;;  %v23203_v62 = vld [vmem:[%s29694_s10 + $0x17e8] ss:$16 sps:$4 sm:$0xff]  }
 0xb92   :  { %15886 = vmatpush1.bf16.msra.mxu1 %v23128_v20  ;;  %v23208_v20 = vld [vmem:[%s29694_s10 + $0x1804] ss:$16 sps:$4 sm:$0xff]  }
 0xb93   :  { %15887 = vmatprep.subr.bf16.mxu1 %v23133_v0  ;;  %v28800_v0 = vpack.c.bf16 %v28580_v48, %v28580_v48 }
 0xb96   :  { %15888 = vmatpush1.bf16.msra.mxu1 %v23131_v6  ;;  %v23206_v6 = vld [vmem:[%s29694_s10 + $0x1800] ss:$16 sps:$4 sm:$0xff]  }
 0xb97   :  { %15889 = vmatprep.subr.bf16.mxu1 %v23136_v23  ;;  %v23211_v23 = vld [vmem:[%s29694_s10 + $0x1824] ss:$16 sps:$4 sm:$0xff]  }
 0xb9a   :  { %15890 = vmatpush1.bf16.msra.mxu1 %v23134_v42  ;;  %v23209_v42 = vld [vmem:[%s29694_s10 + $0x1820] ss:$16 sps:$4 sm:$0xff]  }
 0xb9b   :  { %15891 = vmatprep.subr.bf16.mxu1 %v23139_v63  ;;  %v23214_v63 = vld [vmem:[%s29694_s10 + $0x1844] ss:$16 sps:$4 sm:$0xff]  }
 0xb9e   :  { %15892 = vmatpush1.bf16.msra.mxu1 %v23137_v24 }
 0xb9f   :  { %15893 = vmatprep.subr.bf16.mxu1 %v23142_v41 }
 0xba2   :  { %15894 = vmatpush1.bf16.msra.mxu1 %v23140_v7 }
 0xba3   :  { %15895 = vmatprep.subr.bf16.mxu1 %v23145_v31  ;;  %v23212_v31 = vld [vmem:[%s29694_s10 + $0x1840] ss:$16 sps:$4 sm:$0xff]  }
 0xba6   :  { %15896 = vmatpush1.bf16.msra.mxu1 %v23143_v55  ;;  %v23217_v55 = vld [vmem:[%s29694_s10 + $0x1864] ss:$16 sps:$4 sm:$0xff]  }
 0xba7   :  { %15897 = vmatprep.subr.bf16.mxu1 %v23148_v3  ;;  %v23215_v3 = vld [vmem:[%s29694_s10 + $0x1860] ss:$16 sps:$4 sm:$0xff]  }
 0xbaa   :  { %15898 = vmatpush1.bf16.msra.mxu1 %v23146_v59  ;;  %v23220_v59 = vld [vmem:[%s29694_s10 + $0x1884] ss:$16 sps:$4 sm:$0xff]  }
 0xbab   :  { %15899 = vmatprep.subr.bf16.mxu1 %v23151_v14  ;;  %v23218_v14 = vld [vmem:[%s29694_s10 + $0x1880] ss:$16 sps:$4 sm:$0xff]  }
 0xbae   :  { %15900 = vmatpush1.bf16.msra.mxu1 %v23149_v50  ;;  %v23223_v50 = vld [vmem:[%s29694_s10 + $0x18a4] ss:$16 sps:$4 sm:$0xff]  }
 0xbaf   :  { %15901 = vmatprep.subr.bf16.mxu1 %v23154_v4  ;;  %v23221_v4 = vld [vmem:[%s29694_s10 + $0x18a0] ss:$16 sps:$4 sm:$0xff]  }
 0xbb2   :  { %15902 = vmatpush1.bf16.msra.mxu1 %v23152_v27  ;;  %v23226_v27 = vld [vmem:[%s29694_s10 + $0x18c4] ss:$16 sps:$4 sm:$0xff]  }
 0xbb3   :  { %15903 = vmatprep.subr.bf16.mxu1 %v23157_v8  ;;  %v23224_v8 = vld [vmem:[%s29694_s10 + $0x18c0] ss:$16 sps:$4 sm:$0xff]  }
 0xbb6   :  { %15904 = vmatpush1.bf16.msra.mxu1 %v23155_v1  ;;  %v23229_v1 = vld [vmem:[%s29694_s10 + $0x18e4] ss:$16 sps:$4 sm:$0xff]  }
 0xbb7   :  { %15914 = vmatprep.subr.bf16.mxu1 %v23160_v52  ;;  %v23227_v52 = vld [vmem:[%s29694_s10 + $0x18e0] ss:$16 sps:$4 sm:$0xff]  }
 0xbb9   :  { %15906 = vmatmul.mubr.bf16.vlgmr.msra.gmra.mrb[20].mxu1 %v28701_v56 }
 0xbba   :  { %15915 = vmatpush1.bf16.msra.mxu1 %v23158_v34  ;;  %15946 = vmatprep.mubr.bf16.mxu1 %v28596_v60  ;;  %v23188_v60 = vld [vmem:[%s29694_s10 + $0x1748] ss:$16 sps:$4 sm:$0xff]   ;;  %v23232_v34 = vld [vmem:[%s29694_s10 + $0x1904] ss:$16 sps:$4 sm:$0xff]  }
 0xbbb   :  { %15916 = vmatprep.subr.bf16.mxu1 %v23163_v15  ;;  %v23235_v15 = vld [vmem:[%s29694_s10 + $0x1924] ss:$16 sps:$4 sm:$0xff]  }
 0xbbe   :  { %15917 = vmatpush1.bf16.msra.mxu1 %v23161_v25  ;;  %v23233_v25 = vld [vmem:[%s29694_s10 + $0x1920] ss:$16 sps:$4 sm:$0xff]  }
 0xbbf   :  { %15918 = vmatprep.subr.bf16.mxu1 %v23166_v11  ;;  %v23238_v11 = vld [vmem:[%s29694_s10 + $0x1944] ss:$16 sps:$4 sm:$0xff]  }
 0xbc2   :  { %15919 = vmatpush1.bf16.msra.mxu1 %v23164_v18  ;;  %v23236_v18 = vld [vmem:[%s29694_s10 + $0x1940] ss:$16 sps:$4 sm:$0xff]  }
 0xbc3   :  { %15920 = vmatprep.subr.bf16.mxu1 %v23169_v40  ;;  %v23241_v40 = vld [vmem:[%s29694_s10 + $0x1964] ss:$16 sps:$4 sm:$0xff]  }
 0xbc6   :  { %15921 = vmatpush1.bf16.msra.mxu1 %v23167_v58  ;;  %v23239_v58 = vld [vmem:[%s29694_s10 + $0x1960] ss:$16 sps:$4 sm:$0xff]  }
 0xbc7   :  { %15922 = vmatprep.subr.bf16.mxu1 %v23172_v5  ;;  %v23244_v5 = vld [vmem:[%s29694_s10 + $0x1984] ss:$16 sps:$4 sm:$0xff]  }
 0xbca   :  { %15923 = vmatpush1.bf16.msra.mxu1 %v23170_v29  ;;  %v23242_v29 = vld [vmem:[%s29694_s10 + $0x1980] ss:$16 sps:$4 sm:$0xff]  }
 0xbcb   :  { %15924 = vmatprep.subr.bf16.mxu1 %v23175_v10  ;;  %v23247_v10 = vld [vmem:[%s29694_s10 + $0x19a4] ss:$16 sps:$4 sm:$0xff]  }
 0xbce   :  { %15925 = vmatpush1.bf16.msra.mxu1 %v23173_v17  ;;  %v23245_v17 = vld [vmem:[%s29694_s10 + $0x19a0] ss:$16 sps:$4 sm:$0xff]  }
 0xbcf   :  { %15926 = vmatprep.subr.bf16.mxu1 %v23178_v61  ;;  %v23250_v61 = vld [vmem:[%s29694_s10 + $0x19c4] ss:$16 sps:$4 sm:$0xff]  }
 0xbd2   :  { %15927 = vmatpush1.bf16.msra.mxu1 %v23176_v45  ;;  %v23248_v45 = vld [vmem:[%s29694_s10 + $0x19c0] ss:$16 sps:$4 sm:$0xff]  }
 0xbd3   :  { %15928 = vmatprep.subr.bf16.mxu1 %v23181_v44  ;;  %v23253_v44 = vld [vmem:[%s29694_s10 + $0x19e4] ss:$16 sps:$4 sm:$0xff]  }
 0xbd6   :  { %15929 = vmatpush1.bf16.msra.mxu1 %v23179_v38  ;;  %v23251_v38 = vld [vmem:[%s29694_s10 + $0x19e0] ss:$16 sps:$4 sm:$0xff]  }
 0xbd7   :  { %15930 = vmatprep.subr.bf16.mxu1 %v23184_v26  ;;  %v23256_v26 = vld [vmem:[%s29694_s10 + $0x180c] ss:$16 sps:$4 sm:$0xff]  }
 0xbda   :  { %15931 = vmatpush1.bf16.msra.mxu1 %v23182_v12  ;;  %v28906_v12 = vpack.c.bf16 %v28575_v9, %v28575_v9 }
 0xbdb   :  { %15932 = vmatprep.subr.bf16.mxu1 %v23187_v39  ;;  %v23254_v39 = vld [vmem:[%s29694_s10 + $0x1808] ss:$16 sps:$4 sm:$0xff]  }
 0xbde   :  { %15933 = vmatpush1.bf16.msra.mxu1 %v23185_v36  ;;  %v23259_v36 = vld [vmem:[%s29694_s10 + $0x182c] ss:$16 sps:$4 sm:$0xff]  }
 0xbdf   :  { %15934 = vmatprep.subr.bf16.mxu1 %v23190_v16  ;;  %v23257_v16 = vld [vmem:[%s29694_s10 + $0x1828] ss:$16 sps:$4 sm:$0xff]  }
 0xbe2   :  { %15935 = vmatpush1.bf16.msra.mxu1 %v23188_v60  ;;  %v23262_v60 = vld [vmem:[%s29694_s10 + $0x184c] ss:$16 sps:$4 sm:$0xff]  }
 0xbe3   :  { %15936 = vmatprep.subr.bf16.mxu1 %v23193_v35 }
 0xbe6   :  { %15937 = vmatpush1.bf16.msra.mxu1 %v23191_v2 }
 0xbe7   :  { %15938 = vmatprep.subr.bf16.mxu1 %v23196_v49 }
 0xbea   :  { %15939 = vmatpush1.bf16.msra.mxu1 %v23194_v47  ;;  %v23260_v47 = vld [vmem:[%s29694_s10 + $0x1848] ss:$16 sps:$4 sm:$0xff]  }
 0xbeb   :  { %15940 = vmatprep.subr.bf16.mxu1 %v23199_v57  ;;  %v23265_v57 = vld [vmem:[%s29694_s10 + $0x186c] ss:$16 sps:$4 sm:$0xff]  }
 0xbee   :  { %15941 = vmatpush1.bf16.msra.mxu1 %v23197_v37  ;;  %v23263_v37 = vld [vmem:[%s29694_s10 + $0x1868] ss:$16 sps:$4 sm:$0xff]  }
 0xbef   :  { %15942 = vmatprep.subr.bf16.mxu1 %v23202_v53  ;;  %v23268_v53 = vld [vmem:[%s29694_s10 + $0x188c] ss:$16 sps:$4 sm:$0xff]  }
 0xbf2   :  { %15943 = vmatpush1.bf16.msra.mxu1 %v23200_v46  ;;  %v23266_v46 = vld [vmem:[%s29694_s10 + $0x1888] ss:$16 sps:$4 sm:$0xff]  }
 0xbf3   :  { %15944 = vmatprep.subr.bf16.mxu1 %v23205_v13  ;;  %v23271_v13 = vld [vmem:[%s29694_s10 + $0x18ac] ss:$16 sps:$4 sm:$0xff]  }
 0xbf6   :  { %15945 = vmatpush1.bf16.msra.mxu1 %v23203_v62  ;;  %v23269_v62 = vld [vmem:[%s29694_s10 + $0x18a8] ss:$16 sps:$4 sm:$0xff]  }
 0xbf7   :  { %16347 = vmatprep.subr.bf16.mxu1 %v23208_v20  ;;  %v23274_v20 = vld [vmem:[%s29694_s10 + $0x18cc] ss:$16 sps:$4 sm:$0xff]  }
 0xbf9   :  { %15947 = vmatmul.mubr.bf16.vlgmr.msra.gmra.mrb[16].mxu1 %v28701_v56  ;;  %v23230_v56 = vld [vmem:[%s29694_s10 + $0x1900] ss:$16 sps:$4 sm:$0xff]  }
 0xbfa   :  { %16348 = vmatpush1.bf16.msra.mxu1 %v23206_v6  ;;  %16379 = vmatprep.mubr.bf16.mxu1 %v28800_v0  ;;  %v23277_v6 = vld [vmem:[%s29694_s10 + $0x18ec] ss:$16 sps:$4 sm:$0xff]  }
 0xbfb   :  { %v28813_v48 = vpop.f32.mrb[108].mxu0  ;;  %16349 = vmatprep.subr.bf16.mxu1 %v23211_v23  ;;  %v23275_v23 = vld [vmem:[%s29694_s10 + $0x18e8] ss:$16 sps:$4 sm:$0xff]  }
 0xbfc   :  { %v28818_v24 = vpop.f32.mrb[109].mxu0 }
 0xbfd   :  { %v12634_v41 = vpop.f32.mrb[110].mxu0 }
 0xbfe   :  { %16350 = vmatpush1.bf16.msra.mxu1 %v23209_v42  ;;  %v12635_v7 = vpop.f32.mrb[111].mxu0  ;;  %v23280_v42 = vld [vmem:[%s29694_s10 + $0x190c] ss:$16 sps:$4 sm:$0xff]  }
 0xbff   :  { %16351 = vmatprep.subr.bf16.mxu1 %v23214_v63  ;;  %v23278_v63 = vld [vmem:[%s29694_s10 + $0x1908] ss:$16 sps:$4 sm:$0xff]   ;;  %v23283_v41 = vld [vmem:[%s29694_s10 + $0x192c] ss:$16 sps:$4 sm:$0xff]  }
 0xc00   :  { %v23281_v7 = vld [vmem:[%s29694_s10 + $0x1928] ss:$16 sps:$4 sm:$0xff]  }
 0xc02   :  { %16352 = vmatpush1.bf16.msra.mxu1 %v23212_v31  ;;  %v23286_v31 = vld [vmem:[%s29694_s10 + $0x194c] ss:$16 sps:$4 sm:$0xff]  }
 0xc03   :  { %16353 = vmatprep.subr.bf16.mxu1 %v23217_v55  ;;  %v23284_v55 = vld [vmem:[%s29694_s10 + $0x1948] ss:$16 sps:$4 sm:$0xff]  }
 0xc06   :  { %16354 = vmatpush1.bf16.msra.mxu1 %v23215_v3  ;;  %v23289_v3 = vld [vmem:[%s29694_s10 + $0x196c] ss:$16 sps:$4 sm:$0xff]  }
 0xc07   :  { %16355 = vmatprep.subr.bf16.mxu1 %v23220_v59  ;;  %v23287_v59 = vld [vmem:[%s29694_s10 + $0x1968] ss:$16 sps:$4 sm:$0xff]  }
 0xc0a   :  { %16356 = vmatpush1.bf16.msra.mxu1 %v23218_v14  ;;  %v23292_v14 = vld [vmem:[%s29694_s10 + $0x198c] ss:$16 sps:$4 sm:$0xff]  }
 0xc0b   :  { %16357 = vmatprep.subr.bf16.mxu1 %v23223_v50  ;;  %v23290_v50 = vld [vmem:[%s29694_s10 + $0x1988] ss:$16 sps:$4 sm:$0xff]  }
 0xc0e   :  { %16358 = vmatpush1.bf16.msra.mxu1 %v23221_v4  ;;  %v23295_v4 = vld [vmem:[%s29694_s10 + $0x19ac] ss:$16 sps:$4 sm:$0xff]  }
 0xc0f   :  { %16359 = vmatprep.subr.bf16.mxu1 %v23226_v27  ;;  %v23293_v27 = vld [vmem:[%s29694_s10 + $0x19a8] ss:$16 sps:$4 sm:$0xff]  }
 0xc12   :  { %16360 = vmatpush1.bf16.msra.mxu1 %v23224_v8  ;;  %v23298_v8 = vld [vmem:[%s29694_s10 + $0x19cc] ss:$16 sps:$4 sm:$0xff]  }
 0xc13   :  { %16361 = vmatprep.subr.bf16.mxu1 %v23229_v1  ;;  %v23296_v1 = vld [vmem:[%s29694_s10 + $0x19c8] ss:$16 sps:$4 sm:$0xff]  }
 0xc16   :  { %16362 = vmatpush1.bf16.msra.mxu1 %v23227_v52  ;;  %v23301_v52 = vld [vmem:[%s29694_s10 + $0x19ec] ss:$16 sps:$4 sm:$0xff]  }
 0xc17   :  { %16363 = vmatprep.subr.bf16.mxu1 %v23232_v34  ;;  %v23299_v34 = vld [vmem:[%s29694_s10 + $0x19e8] ss:$16 sps:$4 sm:$0xff]  }
 0xc1a   :  { %16364 = vmatpush1.bf16.msra.mxu1 %v23230_v56  ;;  %v23304_v56 = vld [vmem:[%s29694_s10 + $0x1a04] ss:$16 sps:$4 sm:$0xff]  }
 0xc1b   :  { %16365 = vmatprep.subr.bf16.mxu1 %v23235_v15  ;;  %v23302_v15 = vld [vmem:[%s29694_s10 + $0x1a00] ss:$16 sps:$4 sm:$0xff]  }
 0xc1e   :  { %16366 = vmatpush1.bf16.msra.mxu1 %v23233_v25  ;;  %v23307_v25 = vld [vmem:[%s29694_s10 + $0x1a24] ss:$16 sps:$4 sm:$0xff]  }
 0xc1f   :  { %16367 = vmatprep.subr.bf16.mxu1 %v23238_v11  ;;  %v29018_v11 = vpack.c.bf16 %v28587_v28, %v28587_v28  ;;  %v23308_v28 = vld [vmem:[%s29694_s10 + $0x1a40] ss:$16 sps:$4 sm:$0xff]  }
 0xc22   :  { %16368 = vmatpush1.bf16.msra.mxu1 %v23236_v18  ;;  %v23305_v18 = vld [vmem:[%s29694_s10 + $0x1a20] ss:$16 sps:$4 sm:$0xff]  }
 0xc23   :  { %16369 = vmatprep.subr.bf16.mxu1 %v23241_v40  ;;  %v23310_v40 = vld [vmem:[%s29694_s10 + $0x1a44] ss:$16 sps:$4 sm:$0xff]  }
 0xc26   :  { %16370 = vmatpush1.bf16.msra.mxu1 %v23239_v58  ;;  %v23313_v58 = vld [vmem:[%s29694_s10 + $0x1a64] ss:$16 sps:$4 sm:$0xff]  }
 0xc27   :  { %16371 = vmatprep.subr.bf16.mxu1 %v23244_v5  ;;  %v23311_v5 = vld [vmem:[%s29694_s10 + $0x1a60] ss:$16 sps:$4 sm:$0xff]  }
 0xc2a   :  { %16372 = vmatpush1.bf16.msra.mxu1 %v23242_v29  ;;  %v23316_v29 = vld [vmem:[%s29694_s10 + $0x1a84] ss:$16 sps:$4 sm:$0xff]  }
 0xc2b   :  { %16373 = vmatprep.subr.bf16.mxu1 %v23247_v10  ;;  %v23314_v10 = vld [vmem:[%s29694_s10 + $0x1a80] ss:$16 sps:$4 sm:$0xff]  }
 0xc2e   :  { %16374 = vmatpush1.bf16.msra.mxu1 %v23245_v17  ;;  %v23319_v17 = vld [vmem:[%s29694_s10 + $0x1aa4] ss:$16 sps:$4 sm:$0xff]  }
 0xc2f   :  { %16375 = vmatprep.subr.bf16.mxu1 %v23250_v61  ;;  %v23317_v61 = vld [vmem:[%s29694_s10 + $0x1aa0] ss:$16 sps:$4 sm:$0xff]  }
 0xc32   :  { %16376 = vmatpush1.bf16.msra.mxu1 %v23248_v45  ;;  %v23322_v45 = vld [vmem:[%s29694_s10 + $0x1ac4] ss:$16 sps:$4 sm:$0xff]  }
 0xc33   :  { %16377 = vmatprep.subr.bf16.mxu1 %v23253_v44  ;;  %v23320_v44 = vld [vmem:[%s29694_s10 + $0x1ac0] ss:$16 sps:$4 sm:$0xff]  }
 0xc36   :  { %16378 = vmatpush1.bf16.msra.mxu1 %v23251_v38  ;;  %v23325_v38 = vld [vmem:[%s29694_s10 + $0x1ae4] ss:$16 sps:$4 sm:$0xff]  }
 0xc37   :  { %16388 = vmatprep.subr.bf16.mxu1 %v23256_v26  ;;  %v23323_v26 = vld [vmem:[%s29694_s10 + $0x1ae0] ss:$16 sps:$4 sm:$0xff]  }
 0xc39   :  { %16380 = vmatmul.mubr.bf16.vlgmr.msra.gmra.mrb[20].mxu1 %v28906_v12 }
 0xc3a   :  { %16389 = vmatpush1.bf16.msra.mxu1 %v23254_v39  ;;  %16420 = vmatprep.mubr.bf16.mxu1 %v28800_v0  ;;  %v23272_v0 = vld [vmem:[%s29694_s10 + $0x18c8] ss:$16 sps:$4 sm:$0xff]   ;;  %v23326_v39 = vld [vmem:[%s29694_s10 + $0x1b00] ss:$16 sps:$4 sm:$0xff]  }
 0xc3b   :  { %v28919_v9 = vpop.f32.mrb[104].mxu0  ;;  %16390 = vmatprep.subr.bf16.mxu1 %v23259_v36  ;;  %v23331_v36 = vld [vmem:[%s29694_s10 + $0x1b24] ss:$16 sps:$4 sm:$0xff]  }
 0xc3c   :  { %v28924_v35 = vpop.f32.mrb[105].mxu0 }
 0xc3d   :  { %v13067_v2 = vpop.f32.mrb[106].mxu0 }
 0xc3e   :  { %16391 = vmatpush1.bf16.msra.mxu1 %v23257_v16  ;;  %v13068_v49 = vpop.f32.mrb[107].mxu0  ;;  %v23329_v16 = vld [vmem:[%s29694_s10 + $0x1b20] ss:$16 sps:$4 sm:$0xff]  }
 0xc3f   :  { %16392 = vmatprep.subr.bf16.mxu1 %v23262_v60  ;;  %v23334_v60 = vld [vmem:[%s29694_s10 + $0x1b44] ss:$16 sps:$4 sm:$0xff]   ;;  %v23332_v2 = vld [vmem:[%s29694_s10 + $0x1b40] ss:$16 sps:$4 sm:$0xff]  }
 0xc40   :  { %v23337_v49 = vld [vmem:[%s29694_s10 + $0x1b64] ss:$16 sps:$4 sm:$0xff]  }
 0xc42   :  { %16393 = vmatpush1.bf16.msra.mxu1 %v23260_v47  ;;  %v23335_v47 = vld [vmem:[%s29694_s10 + $0x1b60] ss:$16 sps:$4 sm:$0xff]  }
 0xc43   :  { %16394 = vmatprep.subr.bf16.mxu1 %v23265_v57  ;;  %v23340_v57 = vld [vmem:[%s29694_s10 + $0x1b84] ss:$16 sps:$4 sm:$0xff]  }
 0xc46   :  { %16395 = vmatpush1.bf16.msra.mxu1 %v23263_v37  ;;  %v23338_v37 = vld [vmem:[%s29694_s10 + $0x1b80] ss:$16 sps:$4 sm:$0xff]  }
 0xc47   :  { %16396 = vmatprep.subr.bf16.mxu1 %v23268_v53  ;;  %v23343_v53 = vld [vmem:[%s29694_s10 + $0x1ba4] ss:$16 sps:$4 sm:$0xff]  }
 0xc4a   :  { %16397 = vmatpush1.bf16.msra.mxu1 %v23266_v46  ;;  %v23341_v46 = vld [vmem:[%s29694_s10 + $0x1ba0] ss:$16 sps:$4 sm:$0xff]  }
 0xc4b   :  { %16398 = vmatprep.subr.bf16.mxu1 %v23271_v13  ;;  %v23346_v13 = vld [vmem:[%s29694_s10 + $0x1bc4] ss:$16 sps:$4 sm:$0xff]  }
 0xc4e   :  { %16399 = vmatpush1.bf16.msra.mxu1 %v23269_v62  ;;  %v23344_v62 = vld [vmem:[%s29694_s10 + $0x1bc0] ss:$16 sps:$4 sm:$0xff]  }
 0xc4f   :  { %16400 = vmatprep.subr.bf16.mxu1 %v23274_v20  ;;  %v23349_v20 = vld [vmem:[%s29694_s10 + $0x1be4] ss:$16 sps:$4 sm:$0xff]  }
 0xc52   :  { %16401 = vmatpush1.bf16.msra.mxu1 %v23272_v0  ;;  %v23347_v0 = vld [vmem:[%s29694_s10 + $0x1be0] ss:$16 sps:$4 sm:$0xff]  }
 0xc53   :  { %16402 = vmatprep.subr.bf16.mxu1 %v23277_v6  ;;  %v23352_v6 = vld [vmem:[%s29694_s10 + $0x1a0c] ss:$16 sps:$4 sm:$0xff]  }
 0xc56   :  { %16403 = vmatpush1.bf16.msra.mxu1 %v23275_v23  ;;  %v23350_v23 = vld [vmem:[%s29694_s10 + $0x1a08] ss:$16 sps:$4 sm:$0xff]  }
 0xc57   :  { %16404 = vmatprep.subr.bf16.mxu1 %v23280_v42  ;;  %v29117_v42 = vpack.c.bf16 %v28582_v22, %v28582_v22  ;;  %v23358_v22 = vld [vmem:[%s29694_s10 + $0x1a4c] ss:$16 sps:$4 sm:$0xff]  }
 0xc5a   :  { %16405 = vmatpush1.bf16.msra.mxu1 %v23278_v63  ;;  %v23355_v63 = vld [vmem:[%s29694_s10 + $0x1a2c] ss:$16 sps:$4 sm:$0xff]  }
 0xc5b   :  { %16406 = vmatprep.subr.bf16.mxu1 %v23283_v41  ;;  %v23353_v41 = vld [vmem:[%s29694_s10 + $0x1a28] ss:$16 sps:$4 sm:$0xff]  }
 0xc5e   :  { %16407 = vmatpush1.bf16.msra.mxu1 %v23281_v7  ;;  %v23356_v7 = vld [vmem:[%s29694_s10 + $0x1a48] ss:$16 sps:$4 sm:$0xff]  }
 0xc5f   :  { %16408 = vmatprep.subr.bf16.mxu1 %v23286_v31  ;;  %v23361_v31 = vld [vmem:[%s29694_s10 + $0x1a6c] ss:$16 sps:$4 sm:$0xff]  }
 0xc62   :  { %16409 = vmatpush1.bf16.msra.mxu1 %v23284_v55  ;;  %v23359_v55 = vld [vmem:[%s29694_s10 + $0x1a68] ss:$16 sps:$4 sm:$0xff]  }
 0xc63   :  { %16410 = vmatprep.subr.bf16.mxu1 %v23289_v3  ;;  %v23364_v3 = vld [vmem:[%s29694_s10 + $0x1a8c] ss:$16 sps:$4 sm:$0xff]  }
 0xc66   :  { %16411 = vmatpush1.bf16.msra.mxu1 %v23287_v59  ;;  %v23362_v59 = vld [vmem:[%s29694_s10 + $0x1a88] ss:$16 sps:$4 sm:$0xff]  }
 0xc67   :  { %16412 = vmatprep.subr.bf16.mxu1 %v23292_v14  ;;  %v23367_v14 = vld [vmem:[%s29694_s10 + $0x1aac] ss:$16 sps:$4 sm:$0xff]  }
 0xc6a   :  { %16413 = vmatpush1.bf16.msra.mxu1 %v23290_v50  ;;  %v23365_v50 = vld [vmem:[%s29694_s10 + $0x1aa8] ss:$16 sps:$4 sm:$0xff]  }
 0xc6b   :  { %16414 = vmatprep.subr.bf16.mxu1 %v23295_v4  ;;  %v23370_v4 = vld [vmem:[%s29694_s10 + $0x1acc] ss:$16 sps:$4 sm:$0xff]  }
 0xc6e   :  { %16415 = vmatpush1.bf16.msra.mxu1 %v23293_v27  ;;  %v23368_v27 = vld [vmem:[%s29694_s10 + $0x1ac8] ss:$16 sps:$4 sm:$0xff]  }
 0xc6f   :  { %16416 = vmatprep.subr.bf16.mxu1 %v23298_v8  ;;  %v23373_v8 = vld [vmem:[%s29694_s10 + $0x1aec] ss:$16 sps:$4 sm:$0xff]  }
 0xc72   :  { %16417 = vmatpush1.bf16.msra.mxu1 %v23296_v1  ;;  %v23371_v1 = vld [vmem:[%s29694_s10 + $0x1ae8] ss:$16 sps:$4 sm:$0xff]  }
 0xc73   :  { %16418 = vmatprep.subr.bf16.mxu1 %v23301_v52  ;;  %v23376_v52 = vld [vmem:[%s29694_s10 + $0x1b0c] ss:$16 sps:$4 sm:$0xff]  }
 0xc76   :  { %16419 = vmatpush1.bf16.msra.mxu1 %v23299_v34  ;;  %v23374_v34 = vld [vmem:[%s29694_s10 + $0x1b08] ss:$16 sps:$4 sm:$0xff]  }
 0xc77   :  { %16821 = vmatprep.subr.bf16.mxu1 %v23304_v56  ;;  %v23379_v56 = vld [vmem:[%s29694_s10 + $0x1b2c] ss:$16 sps:$4 sm:$0xff]  }
 0xc79   :  { %16421 = vmatmul.mubr.bf16.vlgmr.msra.gmra.mrb[16].mxu1 %v28906_v12  ;;  %v23328_v12 = vld [vmem:[%s29694_s10 + $0x1b04] ss:$16 sps:$4 sm:$0xff]  }
 0xc7a   :  { %16822 = vmatpush1.bf16.msra.mxu1 %v23302_v15  ;;  %16853 = vmatprep.mubr.bf16.mxu1 %v29018_v11  ;;  %v23377_v15 = vld [vmem:[%s29694_s10 + $0x1b28] ss:$16 sps:$4 sm:$0xff]  }
 0xc7b   :  { %16823 = vmatprep.subr.bf16.mxu1 %v23307_v25  ;;  %v23382_v25 = vld [vmem:[%s29694_s10 + $0x1b4c] ss:$16 sps:$4 sm:$0xff]  }
 0xc7e   :  { %16824 = vmatpush1.bf16.msra.mxu1 %v23305_v18  ;;  %v23385_v18 = vld [vmem:[%s29694_s10 + $0x1b6c] ss:$16 sps:$4 sm:$0xff]  }
 0xc7f   :  { %16825 = vmatprep.subr.bf16.mxu1 %v23310_v40  ;;  %v23383_v40 = vld [vmem:[%s29694_s10 + $0x1b68] ss:$16 sps:$4 sm:$0xff]  }
 0xc82   :  { %16826 = vmatpush1.bf16.msra.mxu1 %v23308_v28  ;;  %v23388_v28 = vld [vmem:[%s29694_s10 + $0x1b8c] ss:$16 sps:$4 sm:$0xff]  }
 0xc83   :  { %16827 = vmatprep.subr.bf16.mxu1 %v23313_v58  ;;  %v23386_v58 = vld [vmem:[%s29694_s10 + $0x1b88] ss:$16 sps:$4 sm:$0xff]  }
 0xc86   :  { %16828 = vmatpush1.bf16.msra.mxu1 %v23311_v5  ;;  %v23391_v5 = vld [vmem:[%s29694_s10 + $0x1bac] ss:$16 sps:$4 sm:$0xff]  }
 0xc87   :  { %16829 = vmatprep.subr.bf16.mxu1 %v23316_v29  ;;  %v23389_v29 = vld [vmem:[%s29694_s10 + $0x1ba8] ss:$16 sps:$4 sm:$0xff]  }
 0xc8a   :  { %16830 = vmatpush1.bf16.msra.mxu1 %v23314_v10  ;;  %v23394_v10 = vld [vmem:[%s29694_s10 + $0x1bcc] ss:$16 sps:$4 sm:$0xff]  }
 0xc8b   :  { %16831 = vmatprep.subr.bf16.mxu1 %v23319_v17  ;;  %v23392_v17 = vld [vmem:[%s29694_s10 + $0x1bc8] ss:$16 sps:$4 sm:$0xff]  }
 0xc8e   :  { %16832 = vmatpush1.bf16.msra.mxu1 %v23317_v61  ;;  %v23397_v61 = vld [vmem:[%s29694_s10 + $0x1bec] ss:$16 sps:$4 sm:$0xff]  }
 0xc8f   :  { %16833 = vmatprep.subr.bf16.mxu1 %v23322_v45  ;;  %v23395_v45 = vld [vmem:[%s29694_s10 + $0x1be8] ss:$16 sps:$4 sm:$0xff]  }
 0xc92   :  { %16834 = vmatpush1.bf16.msra.mxu1 %v23320_v44  ;;  %v23400_v44 = vld [vmem:[%s29694_s10 + $0x1c04] ss:$16 sps:$4 sm:$0xff]  }
 0xc93   :  { %16835 = vmatprep.subr.bf16.mxu1 %v23325_v38  ;;  %v23398_v38 = vld [vmem:[%s29694_s10 + $0x1c00] ss:$16 sps:$4 sm:$0xff]  }
 0xc96   :  { %16836 = vmatpush1.bf16.msra.mxu1 %v23323_v26  ;;  %v23403_v26 = vld [vmem:[%s29694_s10 + $0x1c24] ss:$16 sps:$4 sm:$0xff]  }
 0xc97   :  { %16837 = vmatprep.subr.bf16.mxu1 %v23328_v12  ;;  %v29222_v12 = vpack.c.bf16 %v28598_v43, %v28598_v43  ;;  %v23404_v43 = vld [vmem:[%s29694_s10 + $0x1c40] ss:$16 sps:$4 sm:$0xff]  }
 0xc9a   :  { %16838 = vmatpush1.bf16.msra.mxu1 %v23326_v39  ;;  %v23401_v39 = vld [vmem:[%s29694_s10 + $0x1c20] ss:$16 sps:$4 sm:$0xff]  }
 0xc9b   :  { %16839 = vmatprep.subr.bf16.mxu1 %v23331_v36  ;;  %v23406_v36 = vld [vmem:[%s29694_s10 + $0x1c44] ss:$16 sps:$4 sm:$0xff]  }
 0xc9e   :  { %16840 = vmatpush1.bf16.msra.mxu1 %v23329_v16  ;;  %v23409_v16 = vld [vmem:[%s29694_s10 + $0x1c64] ss:$16 sps:$4 sm:$0xff]  }
 0xc9f   :  { %16841 = vmatprep.subr.bf16.mxu1 %v23334_v60  ;;  %v23407_v60 = vld [vmem:[%s29694_s10 + $0x1c60] ss:$16 sps:$4 sm:$0xff]  }
 0xca2   :  { %16842 = vmatpush1.bf16.msra.mxu1 %v23332_v2  ;;  %v23412_v2 = vld [vmem:[%s29694_s10 + $0x1c84] ss:$16 sps:$4 sm:$0xff]  }
 0xca3   :  { %16843 = vmatprep.subr.bf16.mxu1 %v23337_v49  ;;  %v23410_v49 = vld [vmem:[%s29694_s10 + $0x1c80] ss:$16 sps:$4 sm:$0xff]  }
 0xca6   :  { %16844 = vmatpush1.bf16.msra.mxu1 %v23335_v47  ;;  %v23415_v47 = vld [vmem:[%s29694_s10 + $0x1ca4] ss:$16 sps:$4 sm:$0xff]  }
 0xca7   :  { %16845 = vmatprep.subr.bf16.mxu1 %v23340_v57  ;;  %v23413_v57 = vld [vmem:[%s29694_s10 + $0x1ca0] ss:$16 sps:$4 sm:$0xff]  }
 0xcaa   :  { %16846 = vmatpush1.bf16.msra.mxu1 %v23338_v37  ;;  %v23418_v37 = vld [vmem:[%s29694_s10 + $0x1cc4] ss:$16 sps:$4 sm:$0xff]  }
 0xcab   :  { %16847 = vmatprep.subr.bf16.mxu1 %v23343_v53  ;;  %v23416_v53 = vld [vmem:[%s29694_s10 + $0x1cc0] ss:$16 sps:$4 sm:$0xff]  }
 0xcae   :  { %16848 = vmatpush1.bf16.msra.mxu1 %v23341_v46  ;;  %v23421_v46 = vld [vmem:[%s29694_s10 + $0x1ce4] ss:$16 sps:$4 sm:$0xff]  }
 0xcaf   :  { %16849 = vmatprep.subr.bf16.mxu1 %v23346_v13  ;;  %v23419_v13 = vld [vmem:[%s29694_s10 + $0x1ce0] ss:$16 sps:$4 sm:$0xff]  }
 0xcb2   :  { %16850 = vmatpush1.bf16.msra.mxu1 %v23344_v62  ;;  %v23424_v62 = vld [vmem:[%s29694_s10 + $0x1d04] ss:$16 sps:$4 sm:$0xff]  }
 0xcb3   :  { %16851 = vmatprep.subr.bf16.mxu1 %v23349_v20  ;;  %v23422_v20 = vld [vmem:[%s29694_s10 + $0x1d00] ss:$16 sps:$4 sm:$0xff]  }
 0xcb6   :  { %16852 = vmatpush1.bf16.msra.mxu1 %v23347_v0  ;;  %v23427_v0 = vld [vmem:[%s29694_s10 + $0x1d24] ss:$16 sps:$4 sm:$0xff]  }
 0xcb7   :  { %16862 = vmatprep.subr.bf16.mxu1 %v23352_v6  ;;  %v23425_v6 = vld [vmem:[%s29694_s10 + $0x1d20] ss:$16 sps:$4 sm:$0xff]  }
 0xcb9   :  { %16854 = vmatmul.mubr.bf16.vlgmr.msra.gmra.mrb[20].mxu1 %v29117_v42 }
 0xcba   :  { %16863 = vmatpush1.bf16.msra.mxu1 %v23350_v23  ;;  %16894 = vmatprep.mubr.bf16.mxu1 %v29018_v11  ;;  %v23380_v11 = vld [vmem:[%s29694_s10 + $0x1b48] ss:$16 sps:$4 sm:$0xff]   ;;  %v23430_v23 = vld [vmem:[%s29694_s10 + $0x1d44] ss:$16 sps:$4 sm:$0xff]  }
 0xcbb   :  { %16864 = vmatprep.subr.bf16.mxu1 %v23355_v63  ;;  %v23433_v63 = vld [vmem:[%s29694_s10 + $0x1d64] ss:$16 sps:$4 sm:$0xff]  }
 0xcbe   :  { %16865 = vmatpush1.bf16.msra.mxu1 %v23353_v41  ;;  %v23431_v41 = vld [vmem:[%s29694_s10 + $0x1d60] ss:$16 sps:$4 sm:$0xff]  }
 0xcbf   :  { %16866 = vmatprep.subr.bf16.mxu1 %v23358_v22  ;;  %v23436_v22 = vld [vmem:[%s29694_s10 + $0x1d84] ss:$16 sps:$4 sm:$0xff]  }
 0xcc2   :  { %16867 = vmatpush1.bf16.msra.mxu1 %v23356_v7  ;;  %v23434_v7 = vld [vmem:[%s29694_s10 + $0x1d80] ss:$16 sps:$4 sm:$0xff]  }
 0xcc3   :  { %16868 = vmatprep.subr.bf16.mxu1 %v23361_v31  ;;  %v23439_v31 = vld [vmem:[%s29694_s10 + $0x1da4] ss:$16 sps:$4 sm:$0xff]  }
 0xcc6   :  { %16869 = vmatpush1.bf16.msra.mxu1 %v23359_v55  ;;  %v23437_v55 = vld [vmem:[%s29694_s10 + $0x1da0] ss:$16 sps:$4 sm:$0xff]  }
 0xcc7   :  { %16870 = vmatprep.subr.bf16.mxu1 %v23364_v3  ;;  %v23442_v3 = vld [vmem:[%s29694_s10 + $0x1dc4] ss:$16 sps:$4 sm:$0xff]  }
 0xcca   :  { %16871 = vmatpush1.bf16.msra.mxu1 %v23362_v59  ;;  %v23440_v59 = vld [vmem:[%s29694_s10 + $0x1dc0] ss:$16 sps:$4 sm:$0xff]  }
 0xccb   :  { %16872 = vmatprep.subr.bf16.mxu1 %v23367_v14  ;;  %v23445_v14 = vld [vmem:[%s29694_s10 + $0x1de4] ss:$16 sps:$4 sm:$0xff]  }
 0xcce   :  { %16873 = vmatpush1.bf16.msra.mxu1 %v23365_v50  ;;  %v23443_v50 = vld [vmem:[%s29694_s10 + $0x1de0] ss:$16 sps:$4 sm:$0xff]  }
 0xccf   :  { %16874 = vmatprep.subr.bf16.mxu1 %v23370_v4  ;;  %v23448_v4 = vld [vmem:[%s29694_s10 + $0x1c0c] ss:$16 sps:$4 sm:$0xff]  }
 0xcd2   :  { %16875 = vmatpush1.bf16.msra.mxu1 %v23368_v27  ;;  %v23446_v27 = vld [vmem:[%s29694_s10 + $0x1c08] ss:$16 sps:$4 sm:$0xff]  }
 0xcd3   :  { %16876 = vmatprep.subr.bf16.mxu1 %v23373_v8  ;;  %v29321_v8 = vpack.c.bf16 %v28592_v51, %v28592_v51  ;;  %v23454_v51 = vld [vmem:[%s29694_s10 + $0x1c4c] ss:$16 sps:$4 sm:$0xff]  }
 0xcd6   :  { %16877 = vmatpush1.bf16.msra.mxu1 %v23371_v1  ;;  %v23451_v1 = vld [vmem:[%s29694_s10 + $0x1c2c] ss:$16 sps:$4 sm:$0xff]  }
 0xcd7   :  { %16878 = vmatprep.subr.bf16.mxu1 %v23376_v52  ;;  %v23449_v52 = vld [vmem:[%s29694_s10 + $0x1c28] ss:$16 sps:$4 sm:$0xff]  }
 0xcda   :  { %16879 = vmatpush1.bf16.msra.mxu1 %v23374_v34  ;;  %v23452_v34 = vld [vmem:[%s29694_s10 + $0x1c48] ss:$16 sps:$4 sm:$0xff]  }
 0xcdb   :  { %16880 = vmatprep.subr.bf16.mxu1 %v23379_v56  ;;  %v23457_v56 = vld [vmem:[%s29694_s10 + $0x1c6c] ss:$16 sps:$4 sm:$0xff]  }
 0xcde   :  { %16881 = vmatpush1.bf16.msra.mxu1 %v23377_v15  ;;  %v23455_v15 = vld [vmem:[%s29694_s10 + $0x1c68] ss:$16 sps:$4 sm:$0xff]  }
 0xcdf   :  { %16882 = vmatprep.subr.bf16.mxu1 %v23382_v25  ;;  %v23460_v25 = vld [vmem:[%s29694_s10 + $0x1c8c] ss:$16 sps:$4 sm:$0xff]  }
 0xce2   :  { %16883 = vmatpush1.bf16.msra.mxu1 %v23380_v11  ;;  %v23458_v11 = vld [vmem:[%s29694_s10 + $0x1c88] ss:$16 sps:$4 sm:$0xff]  }
 0xce3   :  { %16884 = vmatprep.subr.bf16.mxu1 %v23385_v18  ;;  %v23463_v18 = vld [vmem:[%s29694_s10 + $0x1cac] ss:$16 sps:$4 sm:$0xff]  }
 0xce6   :  { %16885 = vmatpush1.bf16.msra.mxu1 %v23383_v40  ;;  %v23461_v40 = vld [vmem:[%s29694_s10 + $0x1ca8] ss:$16 sps:$4 sm:$0xff]  }
 0xce7   :  { %16886 = vmatprep.subr.bf16.mxu1 %v23388_v28  ;;  %v23466_v28 = vld [vmem:[%s29694_s10 + $0x1ccc] ss:$16 sps:$4 sm:$0xff]  }
 0xcea   :  { %16887 = vmatpush1.bf16.msra.mxu1 %v23386_v58  ;;  %v23464_v58 = vld [vmem:[%s29694_s10 + $0x1cc8] ss:$16 sps:$4 sm:$0xff]  }
 0xceb   :  { %16888 = vmatprep.subr.bf16.mxu1 %v23391_v5  ;;  %v23469_v5 = vld [vmem:[%s29694_s10 + $0x1cec] ss:$16 sps:$4 sm:$0xff]  }
 0xcee   :  { %16889 = vmatpush1.bf16.msra.mxu1 %v23389_v29  ;;  %v23467_v29 = vld [vmem:[%s29694_s10 + $0x1ce8] ss:$16 sps:$4 sm:$0xff]  }
 0xcef   :  { %16890 = vmatprep.subr.bf16.mxu1 %v23394_v10  ;;  %v23472_v10 = vld [vmem:[%s29694_s10 + $0x1d0c] ss:$16 sps:$4 sm:$0xff]  }
 0xcf2   :  { %16891 = vmatpush1.bf16.msra.mxu1 %v23392_v17  ;;  %v23470_v17 = vld [vmem:[%s29694_s10 + $0x1d08] ss:$16 sps:$4 sm:$0xff]  }
 0xcf3   :  { %16892 = vmatprep.subr.bf16.mxu1 %v23397_v61  ;;  %v23475_v61 = vld [vmem:[%s29694_s10 + $0x1d2c] ss:$16 sps:$4 sm:$0xff]  }
 0xcf6   :  { %16893 = vmatpush1.bf16.msra.mxu1 %v23395_v45  ;;  %v23473_v45 = vld [vmem:[%s29694_s10 + $0x1d28] ss:$16 sps:$4 sm:$0xff]  }
 0xcf7   :  { %17295 = vmatprep.subr.bf16.mxu1 %v23400_v44  ;;  %v23478_v44 = vld [vmem:[%s29694_s10 + $0x1d4c] ss:$16 sps:$4 sm:$0xff]  }
 0xcf9   :  { %16895 = vmatmul.mubr.bf16.vlgmr.msra.gmra.mrb[16].mxu1 %v29117_v42  ;;  %v23428_v42 = vld [vmem:[%s29694_s10 + $0x1d40] ss:$16 sps:$4 sm:$0xff]  }
 0xcfa   :  { %17296 = vmatpush1.bf16.msra.mxu1 %v23398_v38  ;;  %17327 = vmatprep.mubr.bf16.mxu1 %v29222_v12  ;;  %v23476_v38 = vld [vmem:[%s29694_s10 + $0x1d48] ss:$16 sps:$4 sm:$0xff]  }
 0xcfb   :  { %17297 = vmatprep.subr.bf16.mxu1 %v23403_v26  ;;  %v23481_v26 = vld [vmem:[%s29694_s10 + $0x1d6c] ss:$16 sps:$4 sm:$0xff]  }
 0xcfe   :  { %17298 = vmatpush1.bf16.msra.mxu1 %v23401_v39  ;;  %v23484_v39 = vld [vmem:[%s29694_s10 + $0x1d8c] ss:$16 sps:$4 sm:$0xff]  }
 0xcff   :  { %17299 = vmatprep.subr.bf16.mxu1 %v23406_v36  ;;  %v23482_v36 = vld [vmem:[%s29694_s10 + $0x1d88] ss:$16 sps:$4 sm:$0xff]  }
 0xd02   :  { %17300 = vmatpush1.bf16.msra.mxu1 %v23404_v43  ;;  %v23487_v43 = vld [vmem:[%s29694_s10 + $0x1dac] ss:$16 sps:$4 sm:$0xff]  }
 0xd03   :  { %17301 = vmatprep.subr.bf16.mxu1 %v23409_v16  ;;  %v23485_v16 = vld [vmem:[%s29694_s10 + $0x1da8] ss:$16 sps:$4 sm:$0xff]  }
 0xd06   :  { %17302 = vmatpush1.bf16.msra.mxu1 %v23407_v60  ;;  %v23490_v60 = vld [vmem:[%s29694_s10 + $0x1dcc] ss:$16 sps:$4 sm:$0xff]  }
 0xd07   :  { %17303 = vmatprep.subr.bf16.mxu1 %v23412_v2  ;;  %v23488_v2 = vld [vmem:[%s29694_s10 + $0x1dc8] ss:$16 sps:$4 sm:$0xff]  }
 0xd0a   :  { %17304 = vmatpush1.bf16.msra.mxu1 %v23410_v49  ;;  %v23493_v49 = vld [vmem:[%s29694_s10 + $0x1dec] ss:$16 sps:$4 sm:$0xff]  }
 0xd0b   :  { %17305 = vmatprep.subr.bf16.mxu1 %v23415_v47  ;;  %v23491_v47 = vld [vmem:[%s29694_s10 + $0x1de8] ss:$16 sps:$4 sm:$0xff]  }
 0xd0e   :  { %17306 = vmatpush1.bf16.msra.mxu1 %v23413_v57  ;;  %v23496_v57 = vld [vmem:[%s29694_s10 + $0x1e04] ss:$16 sps:$4 sm:$0xff]  }
 0xd0f   :  { %17307 = vmatprep.subr.bf16.mxu1 %v23418_v37  ;;  %v23494_v37 = vld [vmem:[%s29694_s10 + $0x1e00] ss:$16 sps:$4 sm:$0xff]  }
 0xd12   :  { %17308 = vmatpush1.bf16.msra.mxu1 %v23416_v53  ;;  %v23499_v53 = vld [vmem:[%s29694_s10 + $0x1e24] ss:$16 sps:$4 sm:$0xff]  }
 0xd13   :  { %17309 = vmatprep.subr.bf16.mxu1 %v23421_v46  ;;  %v29426_v46 = vpack.c.bf16 %v28607_v32, %v28607_v32  ;;  %v23500_v32 = vld [vmem:[%s29694_s10 + $0x1e40] ss:$16 sps:$4 sm:$0xff]  }
 0xd16   :  { %17310 = vmatpush1.bf16.msra.mxu1 %v23419_v13  ;;  %v23497_v13 = vld [vmem:[%s29694_s10 + $0x1e20] ss:$16 sps:$4 sm:$0xff]  }
 0xd17   :  { %17311 = vmatprep.subr.bf16.mxu1 %v23424_v62  ;;  %v23502_v62 = vld [vmem:[%s29694_s10 + $0x1e44] ss:$16 sps:$4 sm:$0xff]  }
 0xd1a   :  { %17312 = vmatpush1.bf16.msra.mxu1 %v23422_v20  ;;  %v23505_v20 = vld [vmem:[%s29694_s10 + $0x1e64] ss:$16 sps:$4 sm:$0xff]  }
 0xd1b   :  { %17313 = vmatprep.subr.bf16.mxu1 %v23427_v0  ;;  %v23503_v0 = vld [vmem:[%s29694_s10 + $0x1e60] ss:$16 sps:$4 sm:$0xff]  }
 0xd1e   :  { %17314 = vmatpush1.bf16.msra.mxu1 %v23425_v6  ;;  %v23508_v6 = vld [vmem:[%s29694_s10 + $0x1e84] ss:$16 sps:$4 sm:$0xff]  }
 0xd1f   :  { %17315 = vmatprep.subr.bf16.mxu1 %v23430_v23  ;;  %v23506_v23 = vld [vmem:[%s29694_s10 + $0x1e80] ss:$16 sps:$4 sm:$0xff]  }
 0xd22   :  { %17316 = vmatpush1.bf16.msra.mxu1 %v23428_v42  ;;  %v23511_v42 = vld [vmem:[%s29694_s10 + $0x1ea4] ss:$16 sps:$4 sm:$0xff]  }
 0xd23   :  { %17317 = vmatprep.subr.bf16.mxu1 %v23433_v63  ;;  %v23509_v63 = vld [vmem:[%s29694_s10 + $0x1ea0] ss:$16 sps:$4 sm:$0xff]  }
 0xd26   :  { %17318 = vmatpush1.bf16.msra.mxu1 %v23431_v41  ;;  %v23514_v41 = vld [vmem:[%s29694_s10 + $0x1ec4] ss:$16 sps:$4 sm:$0xff]  }
 0xd27   :  { %17319 = vmatprep.subr.bf16.mxu1 %v23436_v22  ;;  %v23512_v22 = vld [vmem:[%s29694_s10 + $0x1ec0] ss:$16 sps:$4 sm:$0xff]  }
 0xd2a   :  { %17320 = vmatpush1.bf16.msra.mxu1 %v23434_v7  ;;  %v23517_v7 = vld [vmem:[%s29694_s10 + $0x1ee4] ss:$16 sps:$4 sm:$0xff]  }
 0xd2b   :  { %17321 = vmatprep.subr.bf16.mxu1 %v23439_v31  ;;  %v23515_v31 = vld [vmem:[%s29694_s10 + $0x1ee0] ss:$16 sps:$4 sm:$0xff]  }
 0xd2e   :  { %17322 = vmatpush1.bf16.msra.mxu1 %v23437_v55  ;;  %v23520_v55 = vld [vmem:[%s29694_s10 + $0x1f04] ss:$16 sps:$4 sm:$0xff]  }
 0xd2f   :  { %17323 = vmatprep.subr.bf16.mxu1 %v23442_v3  ;;  %v23518_v3 = vld [vmem:[%s29694_s10 + $0x1f00] ss:$16 sps:$4 sm:$0xff]  }
 0xd32   :  { %17324 = vmatpush1.bf16.msra.mxu1 %v23440_v59  ;;  %v23523_v59 = vld [vmem:[%s29694_s10 + $0x1f24] ss:$16 sps:$4 sm:$0xff]  }
 0xd33   :  { %17325 = vmatprep.subr.bf16.mxu1 %v23445_v14  ;;  %v23521_v14 = vld [vmem:[%s29694_s10 + $0x1f20] ss:$16 sps:$4 sm:$0xff]  }
 0xd36   :  { %17326 = vmatpush1.bf16.msra.mxu1 %v23443_v50  ;;  %v23526_v50 = vld [vmem:[%s29694_s10 + $0x1f44] ss:$16 sps:$4 sm:$0xff]  }
 0xd37   :  { %17336 = vmatprep.subr.bf16.mxu1 %v23448_v4  ;;  %v23524_v4 = vld [vmem:[%s29694_s10 + $0x1f40] ss:$16 sps:$4 sm:$0xff]  }
 0xd39   :  { %17328 = vmatmul.mubr.bf16.vlgmr.msra.gmra.mrb[20].mxu1 %v29321_v8 }
 0xd3a   :  { %17337 = vmatpush1.bf16.msra.mxu1 %v23446_v27  ;;  %17368 = vmatprep.mubr.bf16.mxu1 %v29222_v12  ;;  %v23479_v12 = vld [vmem:[%s29694_s10 + $0x1d68] ss:$16 sps:$4 sm:$0xff]   ;;  %v23529_v27 = vld [vmem:[%s29694_s10 + $0x1f64] ss:$16 sps:$4 sm:$0xff]  }
 0xd3b   :  { %17338 = vmatprep.subr.bf16.mxu1 %v23451_v1  ;;  %v23532_v1 = vld [vmem:[%s29694_s10 + $0x1f84] ss:$16 sps:$4 sm:$0xff]  }
 0xd3e   :  { %17339 = vmatpush1.bf16.msra.mxu1 %v23449_v52  ;;  %v23530_v52 = vld [vmem:[%s29694_s10 + $0x1f80] ss:$16 sps:$4 sm:$0xff]  }
 0xd3f   :  { %17340 = vmatprep.subr.bf16.mxu1 %v23454_v51  ;;  %v23535_v51 = vld [vmem:[%s29694_s10 + $0x1fa4] ss:$16 sps:$4 sm:$0xff]  }
 0xd42   :  { %17341 = vmatpush1.bf16.msra.mxu1 %v23452_v34  ;;  %v23533_v34 = vld [vmem:[%s29694_s10 + $0x1fa0] ss:$16 sps:$4 sm:$0xff]  }
 0xd43   :  { %17342 = vmatprep.subr.bf16.mxu1 %v23457_v56  ;;  %v23538_v56 = vld [vmem:[%s29694_s10 + $0x1fc4] ss:$16 sps:$4 sm:$0xff]  }
 0xd46   :  { %17343 = vmatpush1.bf16.msra.mxu1 %v23455_v15  ;;  %v23536_v15 = vld [vmem:[%s29694_s10 + $0x1fc0] ss:$16 sps:$4 sm:$0xff]  }
 0xd47   :  { %17344 = vmatprep.subr.bf16.mxu1 %v23460_v25  ;;  %v23541_v25 = vld [vmem:[%s29694_s10 + $0x1fe4] ss:$16 sps:$4 sm:$0xff]  }
 0xd4a   :  { %17345 = vmatpush1.bf16.msra.mxu1 %v23458_v11  ;;  %v23539_v11 = vld [vmem:[%s29694_s10 + $0x1fe0] ss:$16 sps:$4 sm:$0xff]  }
 0xd4b   :  { %17346 = vmatprep.subr.bf16.mxu1 %v23463_v18  ;;  %v23544_v18 = vld [vmem:[%s29694_s10 + $0x1e0c] ss:$16 sps:$4 sm:$0xff]  }
 0xd4e   :  { %17347 = vmatpush1.bf16.msra.mxu1 %v23461_v40  ;;  %v23542_v40 = vld [vmem:[%s29694_s10 + $0x1e08] ss:$16 sps:$4 sm:$0xff]  }
 0xd4f   :  { %17348 = vmatprep.subr.bf16.mxu1 %v23466_v28  ;;  %v29525_v28 = vpack.c.bf16 %v28601_v33, %v28601_v33  ;;  %v23550_v33 = vld [vmem:[%s29694_s10 + $0x1e4c] ss:$16 sps:$4 sm:$0xff]  }
 0xd52   :  { %17349 = vmatpush1.bf16.msra.mxu1 %v23464_v58  ;;  %v23547_v58 = vld [vmem:[%s29694_s10 + $0x1e2c] ss:$16 sps:$4 sm:$0xff]  }
 0xd53   :  { %17350 = vmatprep.subr.bf16.mxu1 %v23469_v5  ;;  %v23545_v5 = vld [vmem:[%s29694_s10 + $0x1e28] ss:$16 sps:$4 sm:$0xff]  }
 0xd56   :  { %17351 = vmatpush1.bf16.msra.mxu1 %v23467_v29  ;;  %v23548_v29 = vld [vmem:[%s29694_s10 + $0x1e48] ss:$16 sps:$4 sm:$0xff]  }
 0xd57   :  { %17352 = vmatprep.subr.bf16.mxu1 %v23472_v10  ;;  %v23553_v10 = vld [vmem:[%s29694_s10 + $0x1e6c] ss:$16 sps:$4 sm:$0xff]  }
 0xd5a   :  { %17353 = vmatpush1.bf16.msra.mxu1 %v23470_v17  ;;  %v23551_v17 = vld [vmem:[%s29694_s10 + $0x1e68] ss:$16 sps:$4 sm:$0xff]  }
 0xd5b   :  { %17354 = vmatprep.subr.bf16.mxu1 %v23475_v61  ;;  %v23556_v61 = vld [vmem:[%s29694_s10 + $0x1e8c] ss:$16 sps:$4 sm:$0xff]  }
 0xd5e   :  { %17355 = vmatpush1.bf16.msra.mxu1 %v23473_v45  ;;  %v23554_v45 = vld [vmem:[%s29694_s10 + $0x1e88] ss:$16 sps:$4 sm:$0xff]  }
 0xd5f   :  { %17356 = vmatprep.subr.bf16.mxu1 %v23478_v44  ;;  %v23559_v44 = vld [vmem:[%s29694_s10 + $0x1eac] ss:$16 sps:$4 sm:$0xff]  }
 0xd62   :  { %17357 = vmatpush1.bf16.msra.mxu1 %v23476_v38  ;;  %v23557_v38 = vld [vmem:[%s29694_s10 + $0x1ea8] ss:$16 sps:$4 sm:$0xff]  }
 0xd63   :  { %17358 = vmatprep.subr.bf16.mxu1 %v23481_v26  ;;  %v23562_v26 = vld [vmem:[%s29694_s10 + $0x1ecc] ss:$16 sps:$4 sm:$0xff]  }
 0xd66   :  { %17359 = vmatpush1.bf16.msra.mxu1 %v23479_v12  ;;  %v23560_v12 = vld [vmem:[%s29694_s10 + $0x1ec8] ss:$16 sps:$4 sm:$0xff]  }
 0xd67   :  { %17360 = vmatprep.subr.bf16.mxu1 %v23484_v39  ;;  %v23565_v39 = vld [vmem:[%s29694_s10 + $0x1eec] ss:$16 sps:$4 sm:$0xff]  }
 0xd6a   :  { %17361 = vmatpush1.bf16.msra.mxu1 %v23482_v36  ;;  %v23563_v36 = vld [vmem:[%s29694_s10 + $0x1ee8] ss:$16 sps:$4 sm:$0xff]  }
 0xd6b   :  { %17362 = vmatprep.subr.bf16.mxu1 %v23487_v43  ;;  %v23568_v43 = vld [vmem:[%s29694_s10 + $0x1f0c] ss:$16 sps:$4 sm:$0xff]  }
 0xd6e   :  { %17363 = vmatpush1.bf16.msra.mxu1 %v23485_v16  ;;  %v23566_v16 = vld [vmem:[%s29694_s10 + $0x1f08] ss:$16 sps:$4 sm:$0xff]  }
 0xd6f   :  { %17364 = vmatprep.subr.bf16.mxu1 %v23490_v60  ;;  %v23571_v60 = vld [vmem:[%s29694_s10 + $0x1f2c] ss:$16 sps:$4 sm:$0xff]  }
 0xd72   :  { %17365 = vmatpush1.bf16.msra.mxu1 %v23488_v2  ;;  %v23569_v2 = vld [vmem:[%s29694_s10 + $0x1f28] ss:$16 sps:$4 sm:$0xff]  }
 0xd73   :  { %17366 = vmatprep.subr.bf16.mxu1 %v23493_v49  ;;  %v23574_v49 = vld [vmem:[%s29694_s10 + $0x1f4c] ss:$16 sps:$4 sm:$0xff]  }
 0xd76   :  { %17367 = vmatpush1.bf16.msra.mxu1 %v23491_v47  ;;  %v23572_v47 = vld [vmem:[%s29694_s10 + $0x1f48] ss:$16 sps:$4 sm:$0xff]  }
 0xd77   :  { %17769 = vmatprep.subr.bf16.mxu1 %v23496_v57  ;;  %v23577_v57 = vld [vmem:[%s29694_s10 + $0x1f6c] ss:$16 sps:$4 sm:$0xff]  }
 0xd79   :  { %17369 = vmatmul.mubr.bf16.vlgmr.msra.gmra.mrb[16].mxu1 %v29321_v8  ;;  %v23527_v8 = vld [vmem:[%s29694_s10 + $0x1f60] ss:$16 sps:$4 sm:$0xff]  }
 0xd7a   :  { %17770 = vmatpush1.bf16.msra.mxu1 %v23494_v37  ;;  %17801 = vmatprep.mubr.bf16.mxu1 %v29426_v46  ;;  %v23575_v37 = vld [vmem:[%s29694_s10 + $0x1f68] ss:$16 sps:$4 sm:$0xff]  }
 0xd7b   :  { %17771 = vmatprep.subr.bf16.mxu1 %v23499_v53  ;;  %v23580_v53 = vld [vmem:[%s29694_s10 + $0x1f8c] ss:$16 sps:$4 sm:$0xff]  }
 0xd7e   :  { %17772 = vmatpush1.bf16.msra.mxu1 %v23497_v13  ;;  %v23583_v13 = vld [vmem:[%s29694_s10 + $0x1fac] ss:$16 sps:$4 sm:$0xff]  }
 0xd7f   :  { %17773 = vmatprep.subr.bf16.mxu1 %v23502_v62  ;;  %v23581_v62 = vld [vmem:[%s29694_s10 + $0x1fa8] ss:$16 sps:$4 sm:$0xff]  }
 0xd82   :  { %17774 = vmatpush1.bf16.msra.mxu1 %v23500_v32  ;;  %v23586_v32 = vld [vmem:[%s29694_s10 + $0x1fcc] ss:$16 sps:$4 sm:$0xff]  }
 0xd83   :  { %17775 = vmatprep.subr.bf16.mxu1 %v23505_v20  ;;  %v23584_v20 = vld [vmem:[%s29694_s10 + $0x1fc8] ss:$16 sps:$4 sm:$0xff]  }
 0xd86   :  { %17776 = vmatpush1.bf16.msra.mxu1 %v23503_v0  ;;  %v23589_v0 = vld [vmem:[%s29694_s10 + $0x1fec] ss:$16 sps:$4 sm:$0xff]  }
 0xd87   :  { %17777 = vmatprep.subr.bf16.mxu1 %v23508_v6  ;;  %v23587_v6 = vld [vmem:[%s29694_s10 + $0x1fe8] ss:$16 sps:$4 sm:$0xff]  }
 0xd8a   :  { %17778 = vmatpush1.bf16.msra.mxu1 %v23506_v23 }
 0xd8b   :  { %17779 = vmatprep.subr.bf16.mxu1 %v23511_v42 }
 0xd8e   :  { %17780 = vmatpush1.bf16.msra.mxu1 %v23509_v63 }
 0xd8f   :  { %17781 = vmatprep.subr.bf16.mxu1 %v23514_v41 }
 0xd92   :  { %17782 = vmatpush1.bf16.msra.mxu1 %v23512_v22 }
 0xd93   :  { %17783 = vmatprep.subr.bf16.mxu1 %v23517_v7 }
 0xd96   :  { %17784 = vmatpush1.bf16.msra.mxu1 %v23515_v31 }
 0xd97   :  { %17785 = vmatprep.subr.bf16.mxu1 %v23520_v55 }
 0xd9a   :  { %17786 = vmatpush1.bf16.msra.mxu1 %v23518_v3 }
 0xd9b   :  { %17787 = vmatprep.subr.bf16.mxu1 %v23523_v59 }
 0xd9e   :  { %17788 = vmatpush1.bf16.msra.mxu1 %v23521_v14 }
 0xd9f   :  { %17789 = vmatprep.subr.bf16.mxu1 %v23526_v50 }
 0xda2   :  { %17790 = vmatpush1.bf16.msra.mxu1 %v23524_v4 }
 0xda3   :  { %17791 = vmatprep.subr.bf16.mxu1 %v23529_v27 }
 0xda6   :  { %17792 = vmatpush1.bf16.msra.mxu1 %v23527_v8 }
 0xda7   :  { %17793 = vmatprep.subr.bf16.mxu1 %v23532_v1 }
 0xdaa   :  { %17794 = vmatpush1.bf16.msra.mxu1 %v23530_v52 }
 0xdab   :  { %17795 = vmatprep.subr.bf16.mxu1 %v23535_v51 }
 0xdae   :  { %17796 = vmatpush1.bf16.msra.mxu1 %v23533_v34 }
 0xdaf   :  { %17797 = vmatprep.subr.bf16.mxu1 %v23538_v56 }
 0xdb2   :  { %17798 = vmatpush1.bf16.msra.mxu1 %v23536_v15 }
 0xdb3   :  { %17799 = vmatprep.subr.bf16.mxu1 %v23541_v25 }
 0xdb6   :  { %17800 = vmatpush1.bf16.msra.mxu1 %v23539_v11 }
 0xdb7   :  { %17810 = vmatprep.subr.bf16.mxu1 %v23544_v18 }
 0xdb9   :  { %17802 = vmatmul.mubr.bf16.vlgmr.msra.gmra.mrb[20].mxu1 %v29525_v28 }
 0xdba   :  { %17811 = vmatpush1.bf16.msra.mxu1 %v23542_v40  ;;  %17842 = vmatprep.mubr.bf16.mxu1 %v29426_v46  ;;  %v23578_v46 = vld [vmem:[%s29694_s10 + $0x1f88] ss:$16 sps:$4 sm:$0xff]  }
 0xdbb   :  { %17812 = vmatprep.subr.bf16.mxu1 %v23547_v58 }
 0xdbe   :  { %17813 = vmatpush1.bf16.msra.mxu1 %v23545_v5 }
 0xdbf   :  { %17814 = vmatprep.subr.bf16.mxu1 %v23550_v33 }
 0xdc2   :  { %17815 = vmatpush1.bf16.msra.mxu1 %v23548_v29 }
 0xdc3   :  { %17816 = vmatprep.subr.bf16.mxu1 %v23553_v10 }
 0xdc6   :  { %17817 = vmatpush1.bf16.msra.mxu1 %v23551_v17 }
 0xdc7   :  { %17818 = vmatprep.subr.bf16.mxu1 %v23556_v61 }
 0xdca   :  { %17819 = vmatpush1.bf16.msra.mxu1 %v23554_v45 }
 0xdcb   :  { %17820 = vmatprep.subr.bf16.mxu1 %v23559_v44 }
 0xdce   :  { %17821 = vmatpush1.bf16.msra.mxu1 %v23557_v38 }
 0xdcf   :  { %17822 = vmatprep.subr.bf16.mxu1 %v23562_v26 }
 0xdd2   :  { %17823 = vmatpush1.bf16.msra.mxu1 %v23560_v12 }
 0xdd3   :  { %17824 = vmatprep.subr.bf16.mxu1 %v23565_v39 }
 0xdd6   :  { %17825 = vmatpush1.bf16.msra.mxu1 %v23563_v36 }
 0xdd7   :  { %17826 = vmatprep.subr.bf16.mxu1 %v23568_v43  ;;  %v29625_v43 = vld [vmem:[%s29697_s11] sm:$0xf] }
 0xdda   :  { %17827 = vmatpush1.bf16.msra.mxu1 %v23566_v16  ;;  %v29630_v16 = vld [vmem:[%s29698_s12] sm:$0xf] }
 0xddb   :  { %17828 = vmatprep.subr.bf16.mxu1 %v23571_v60 }
 0xdde   :  { %17829 = vmatpush1.bf16.msra.mxu1 %v23569_v2  ;;  %v17944_v2 = vrot.slane %v29625_v43, %v26323_v54 }
 0xddf   :  { %17830 = vmatprep.subr.bf16.mxu1 %v23574_v49 }
 0xde2   :  { %17831 = vmatpush1.bf16.msra.mxu1 %v23572_v47 }
 0xde3   :  { %17832 = vmatprep.subr.bf16.mxu1 %v23577_v57  ;;  %v17948_v57 = vrot.slane %v29625_v43, %v26329_v19 }
 0xde6   :  { %17833 = vmatpush1.bf16.msra.mxu1 %v23575_v37 }
 0xde7   :  { %17834 = vmatprep.subr.bf16.mxu1 %v23580_v53 }
 0xdea   :  { %17835 = vmatpush1.bf16.msra.mxu1 %v23578_v46  ;;  %v17970_v46 = vrot.slane %v29630_v16, %v26323_v54  ;;  %v18011_v54 = vld [vmem:[%s29699_s13] sm:$0xff] }
 0xdeb   :  { %17836 = vmatprep.subr.bf16.mxu1 %v23583_v13 }
 0xdee   :  { %17837 = vmatpush1.bf16.msra.mxu1 %v23581_v62  ;;  %v17974_v62 = vrot.slane %v29630_v16, %v26329_v19  ;;  %v18015_v19 = vld [vmem:[%s29699_s13 + $0x20] sm:$0xff] }
 0xdef   :  { %17838 = vmatprep.subr.bf16.mxu1 %v23586_v32 }
 0xdf2   :  { %17839 = vmatpush1.bf16.msra.mxu1 %v23584_v20 }
 0xdf3   :  { %17840 = vmatprep.subr.bf16.mxu1 %v23589_v0 }
 0xdf6   :  { %17841 = vmatpush1.bf16.msra.mxu1 %v23587_v6 }
 0xdf9   :  { %17843 = vmatmul.mubr.bf16.vlgmr.msra.gmra.mrb[16].mxu1 %v29525_v28 }
 0xe8c   :  { %v17803_v23 = vpop.f32.mrb[20].mxu1 }
 0xe8d   :  { %v20956_v42 = vadd.f32 %v17803_v23, %v28919_v9  ;;  %v17805_v63 = vpop.f32.mrb[21].mxu1 }
 0xe8e   :  { %v20957_v41 = vadd.f32 %v17805_v63, %v28924_v35  ;;  %v17807_v22 = vpop.f32.mrb[22].mxu1 }
 0xe8f   :  { %v17855_v7 = vrot.slane %v20956_v42, 4  ;;  %v17879_v31 = vmul.f32 %v20956_v42, %v20956_v42  ;;  %v17808_v55 = vpop.f32.mrb[23].mxu1 }
 0xe90   :  { %v17861_v3 = vrot.slane %v20957_v41, 4  ;;  %v17880_v59 = vmul.f32 %v20957_v41, %v20957_v41  ;;  %v18012_v55 = vld [vmem:[%s29699_s13 + $0x8] sm:$0xff] }
 0xe91   :  { %v17856_v14 = vadd.f32 %v20956_v42, %v17855_v7  ;;  %v17883_v50 = vrot.slane %v17879_v31, 4 }
 0xe92   :  { %v17862_v4 = vadd.f32 %v20957_v41, %v17861_v3  ;;  %v17889_v27 = vrot.slane %v17880_v59, 4  ;;  %v18016_v3 = vld [vmem:[%s29699_s13 + $0x28] sm:$0xff] }
 0xe93   :  { %v17857_v8 = vrot.slane %v17856_v14, 2  ;;  %v17884_v1 = vadd.f32 %v17883_v50, %v17879_v31 }
 0xe94   :  { %v17863_v52 = vrot.slane %v17862_v4, 2  ;;  %v17890_v51 = vadd.f32 %v17889_v27, %v17880_v59 }
 0xe95   :  { %v17858_v34 = vadd.f32 %v17857_v8, %v17856_v14  ;;  %v17885_v56 = vrot.slane %v17884_v1, 2 }
 0xe96   :  { %v17864_v9 = vadd.f32 %v17863_v52, %v17862_v4  ;;  %v17891_v15 = vrot.slane %v17890_v51, 2 }
 0xe97   :  { %v17859_v25 = vrot.slane %v17858_v34, 1  ;;  %v17886_v35 = vadd.f32 %v17885_v56, %v17884_v1 }
 0xe98   :  { %v17865_v11 = vrot.slane %v17864_v9, 1  ;;  %v17892_v18 = vadd.f32 %v17891_v15, %v17890_v51 }
 0xe99   :  { %v17860_v40 = vadd.f32 %v17859_v25, %v17858_v34  ;;  %v17887_v28 = vrot.slane %v17886_v35, 1 }
 0xe9a   :  { %v17866_v58 = vadd.f32 %v17865_v11, %v17864_v9  ;;  %v17893_v5 = vrot.slane %v17892_v18, 1 }
 0xe9b   :  { %v17888_v33 = vadd.f32 %v17887_v28, %v17886_v35  ;;  %v17907_v29 = vmul.f32 0.125, %v17860_v40 }
 0xe9c   :  { %v17894_v10 = vadd.f32 %v17893_v5, %v17892_v18  ;;  %v17908_v17 = vmul.f32 0.125, %v17866_v58 }
 0xe9d   :  { %v17911_v61 = vmul.f32 0.125, %v17888_v33  ;;  %v17915_v45 = vmul.f32 %v17907_v29, %v17907_v29  ;;  %v17923_v60 = vsub.f32 %v20956_v42, %v17907_v29 }
 0xe9e   :  { %v17912_v44 = vmul.f32 0.125, %v17894_v10  ;;  %v17916_v38 = vmul.f32 %v17908_v17, %v17908_v17  ;;  %v17924_v47 = vsub.f32 %v20957_v41, %v17908_v17 }
 0xe9f   :  { %v17919_v26 = vsub.f32 %v17911_v61, %v17915_v45 }
 0xea0   :  { %v17920_v12 = vsub.f32 %v17912_v44, %v17916_v38 }
 0xea1   :  { %v17927_v39 = vadd.f32 1e-05, %v17919_v26 }
 0xea2   :  { %v17928_v36 = vadd.f32 1e-05, %v17920_v12 }
 0xea3   :  { %23596 = vrsqrt.f32 %v17927_v39 }
 0xea4   :  { %23598 = vrsqrt.f32 %v17928_v36 }
 0xead   :  { %v23597_v49 = vpop.eup %23596 }
 0xeae   :  { %v23599_v37 = vpop.eup %23598  ;;  %v17935_v53 = vmul.f32 %v23597_v49, %v17923_v60 }
 0xeaf   :  { %v17936_v13 = vmul.f32 %v23599_v37, %v17924_v47 }
 0xeb0   :  { %v17961_v32 = vmul.f32 %v17944_v2, %v17935_v53 }
 0xeb1   :  { %v17962_v20 = vmul.f32 %v17948_v57, %v17936_v13 }
 0xeb2   :  { %v17987_v0 = vadd.f32 %v17970_v46, %v17961_v32 }
 0xeb3   :  { %v17988_v6 = vadd.f32 %v17974_v62, %v17962_v20 }
 0xeb4   :  { %vm17991_vm7 = vcmp.gt.f32.partialorder %v17987_v0, 0.0  ;;  %v17995_v23 = vmul.f32 0.2, %v17987_v0 }
 0xeb5   :  { %vm17992_vm8 = vcmp.gt.f32.partialorder %v17988_v6, 0.0  ;;  %v17996_v42 = vmul.f32 0.2, %v17988_v6 }
 0xeb6   :  { %v17999_v63 = vsel %vm17991_vm7, %v17987_v0, %v17995_v23  ;;  %v17951_v23 = vsub.s32 2, %v26317_v21 }
 0xeb7   :  { %v18000_v41 = vsel %vm17992_vm8, %v17988_v6, %v17996_v42  ;;  %v18003_v22 = vpack.c.bf16 %v17999_v63, %v17999_v63  ;;  %v17955_v42 = vsub.s32 3, %v26317_v21 }
 0xeb8   :  { %v18004_v7 = vpack.c.bf16 %v18000_v41, %v18000_v41  ;;  %v17952_v41 = vrot.slane %v29625_v43, %v17951_v23 }
 0xeb9   :  { %v18007_v31 = vunpack.c.l.bf16 %v18003_v22 }
 0xeba   :  { %v18008_v59 = vunpack.c.l.bf16 %v18004_v7 }
 0xebb   :  { %v18019_v14 = vmul.f32 %v18011_v54, %v18007_v31  ;;  %v18023_v50 = vmul.f32 %v18015_v19, %v18007_v31  ;;  %v17956_v54 = vrot.slane %v29625_v43, %v17955_v42  ;;  %v18013_v43 = vld [vmem:[%s29699_s13 + $0x10] sm:$0xff] }
 0xebc   :  { %v18020_v4 = vmul.f32 %v18012_v55, %v18008_v59  ;;  %v18024_v27 = vmul.f32 %v18016_v3, %v18008_v59  ;;  %v17978_v55 = vrot.slane %v29630_v16, %v17951_v23  ;;  %v17982_v59 = vrot.slane %v29630_v16, %v17955_v42  ;;  %v18017_v16 = vld [vmem:[%s29699_s13 + $0x30] sm:$0xff] }
 0xebe   :  { %v29652_v8 = vadd.f32 %v18020_v4, %v18019_v14  ;;  %v29654_v1 = vadd.f32 %v18024_v27, %v18023_v50 }
 0xecc   :  { %v17844_v52 = vpop.f32.mrb[16].mxu1 }
 0xecd   :  { %v20958_v51 = vadd.f32 %v17844_v52, %v28813_v48  ;;  %v17846_v34 = vpop.f32.mrb[17].mxu1 }
 0xece   :  { %v20959_v56 = vadd.f32 %v17846_v34, %v28818_v24  ;;  %v17848_v9 = vpop.f32.mrb[18].mxu1 }
 0xecf   :  { %v17867_v15 = vrot.slane %v20958_v51, 4  ;;  %v17881_v25 = vmul.f32 %v20958_v51, %v20958_v51  ;;  %v17849_v35 = vpop.f32.mrb[19].mxu1 }
 0xed0   :  { %v17873_v11 = vrot.slane %v20959_v56, 4  ;;  %v17882_v18 = vmul.f32 %v20959_v56, %v20959_v56  ;;  %v18014_v35 = vld [vmem:[%s29699_s13 + $0x18] sm:$0xff] }
 0xed1   :  { %v17868_v40 = vadd.f32 %v20958_v51, %v17867_v15  ;;  %v17895_v28 = vrot.slane %v17881_v25, 4 }
 0xed2   :  { %v17874_v58 = vadd.f32 %v20959_v56, %v17873_v11  ;;  %v17901_v5 = vrot.slane %v17882_v18, 4  ;;  %v18018_v11 = vld [vmem:[%s29699_s13 + $0x38] sm:$0xff] }
 0xed3   :  { %v17869_v33 = vrot.slane %v17868_v40, 2  ;;  %v17896_v29 = vadd.f32 %v17895_v28, %v17881_v25 }
 0xed4   :  { %v17875_v10 = vrot.slane %v17874_v58, 2  ;;  %v17902_v17 = vadd.f32 %v17901_v5, %v17882_v18 }
 0xed5   :  { %v17870_v61 = vadd.f32 %v17869_v33, %v17868_v40  ;;  %v17897_v45 = vrot.slane %v17896_v29, 2 }
 0xed6   :  { %v17876_v48 = vadd.f32 %v17875_v10, %v17874_v58  ;;  %v17903_v44 = vrot.slane %v17902_v17, 2 }
 0xed7   :  { %v17871_v38 = vrot.slane %v17870_v61, 1  ;;  %v17898_v24 = vadd.f32 %v17897_v45, %v17896_v29  ;;  %v18040_v45 = vand.u32 127, %v9987_v30 }
 0xed8   :  { %v17877_v26 = vrot.slane %v17876_v48, 1  ;;  %v17904_v12 = vadd.f32 %v17903_v44, %v17902_v17 }
 0xed9   :  { %v17872_v39 = vadd.f32 %v17871_v38, %v17870_v61  ;;  %v17899_v36 = vrot.slane %v17898_v24, 1  ;;  %v20_v61 = vstv %s29700_s14  ;;  %v18043_v44 = vsub.s32 %v18040_v45, %v26317_v21 }
 0xeda   :  { %v17878_v60 = vadd.f32 %v17877_v26, %v17876_v48  ;;  %v17905_v2 = vrot.slane %v17904_v12, 1  ;;  %21 = vst [vmem:[#allocation5] sm:$0x1] %v20_v61 }
 0xedb   :  { %v17900_v49 = vadd.f32 %v17899_v36, %v17898_v24  ;;  %v17909_v47 = vmul.f32 0.125, %v17872_v39 }
 0xedc   :  { %v17906_v57 = vadd.f32 %v17905_v2, %v17904_v12  ;;  %v17910_v37 = vmul.f32 0.125, %v17878_v60 }
 0xedd   :  { %v17913_v53 = vmul.f32 0.125, %v17900_v49  ;;  %v17917_v46 = vmul.f32 %v17909_v47, %v17909_v47  ;;  %v17925_v63 = vsub.f32 %v20958_v51, %v17909_v47 }
 0xede   :  { %v17914_v13 = vmul.f32 0.125, %v17906_v57  ;;  %v17918_v62 = vmul.f32 %v17910_v37, %v17910_v37  ;;  %v17926_v7 = vsub.f32 %v20959_v56, %v17910_v37 }
 0xedf   :  { %v17921_v32 = vsub.f32 %v17913_v53, %v17917_v46 }
 0xee0   :  { %v17922_v20 = vsub.f32 %v17914_v13, %v17918_v62 }
 0xee1   :  { %v17929_v0 = vadd.f32 1e-05, %v17921_v32  ;;  %v19859_v12 = vld [vmem:[#allocation5] ss:$0 sm:$0xff] }
 0xee2   :  { %v17930_v6 = vadd.f32 1e-05, %v17922_v20 }
 0xee3   :  { %23600 = vrsqrt.f32 %v17929_v0 }
 0xee4   :  { %23602 = vrsqrt.f32 %v17930_v6 }
 0xeed   :  { %v23601_v22 = vpop.eup %23600 }
 0xeee   :  { %v23603_v19 = vpop.eup %23602  ;;  %v17937_v31 = vmul.f32 %v23601_v22, %v17925_v63 }
 0xeef   :  { %v17938_v3 = vmul.f32 %v23603_v19, %v17926_v7 }
 0xef0   :  { %v17963_v14 = vmul.f32 %v17952_v41, %v17937_v31 }
 0xef1   :  { %v17964_v50 = vmul.f32 %v17956_v54, %v17938_v3 }
 0xef2   :  { %v17989_v4 = vadd.f32 %v17978_v55, %v17963_v14 }
 0xef3   :  { %v17990_v27 = vadd.f32 %v17982_v59, %v17964_v50 }
 0xef4   :  { %vm17993_vm9 = vcmp.gt.f32.partialorder %v17989_v4, 0.0  ;;  %v17997_v52 = vmul.f32 0.2, %v17989_v4 }
 0xef5   :  { %vm17994_vm10 = vcmp.gt.f32.partialorder %v17990_v27, 0.0  ;;  %v17998_v51 = vmul.f32 0.2, %v17990_v27 }
 0xef6   :  { %v18001_v34 = vsel %vm17993_vm9, %v17989_v4, %v17997_v52 }
 0xef7   :  { %v18002_v9 = vsel %vm17994_vm10, %v17990_v27, %v17998_v51  ;;  %v18005_v56 = vpack.c.bf16 %v18001_v34, %v18001_v34 }
 0xef8   :  { %v18006_v15 = vpack.c.bf16 %v18002_v9, %v18002_v9 }
 0xef9   :  { %v18009_v25 = vunpack.c.l.bf16 %v18005_v56 }
 0xefa   :  { %v18010_v18 = vunpack.c.l.bf16 %v18006_v15 }
 0xefb   :  { %v18021_v40 = vmul.f32 %v18013_v43, %v18009_v25  ;;  %v18025_v28 = vmul.f32 %v18017_v16, %v18009_v25 }
 0xefc   :  { %v18022_v58 = vmul.f32 %v18014_v35, %v18010_v18  ;;  %v18026_v5 = vmul.f32 %v18018_v11, %v18010_v18 }
 0xefd   :  { %v18028_v33 = vadd.f32 %v29652_v8, %v18021_v40  ;;  %v18033_v29 = vadd.f32 %v29654_v1, %v18025_v28 }
 0xeff   :  { %v18029_v10 = vadd.f32 %v18028_v33, %v18022_v58  ;;  %v18034_v17 = vadd.f32 %v18033_v29, %v18026_v5 }
 0xf01   :  { %18030 = vadd.xlane.f32.xlu0 %v18029_v10 }
 0xf05   :  { %18035 = vadd.xlane.f32.xlu0 %v18034_v17 }
 0xf8e   :  { %v18031_v48 = vpop.xlane.xlu0 %18030 }
 0xf8f   :  { %v18044_v24 = vrot.slane %v18031_v48, %v18043_v44 }
 0xf92   :  { %v18036_v38 = vpop.xlane.xlu0 %18035 }
 0xf93   :  { %v18048_v8 = vrot.slane %v18036_v38, %v18043_v44 }
 0xf95   :  { %v18050_v1 = vsel %vm18049_vm11, %v18048_v8, %v18044_v24 }
 0xf96   :  { %v18053_v26 = vsel %vm18052_vm12, %v18050_v1, 0.0 }
 0xf97   :  { %18054 = vadd.xlane.f32.xlu1 %v18053_v26 }
0x1024   :  { %v18055_v39 = vpop.xlane.xlu1 %18054 }
0x1025   :  { %v18063_v36 = vadd.f32 %v19859_v12, %v18055_v39 }
0x1027   :  { %v19860_v60 = vmul.f32 -1.442695, %v18063_v36 }
0x1029   :  { %23604 = vpow2.f32 %v19860_v60 }
0x1033   :  { %v23605_v2 = vpop.eup %23604 }
0x1034   :  { %v18067_v49 = vadd.f32 1.0, %v23605_v2 }
0x1036   :  { %23606 = vrcp.f32 %v18067_v49 }
0x1040   :  { %v23607_v30 = vpop.eup %23606 }
0x1041   :  { %18071 = vst.msk [vmem:[%s29701_s15] sm:$0x3] %vm18070_vm0, %v23607_v30 }

</bundles_post_ra>
